<compile_context>
chip_gen: v6e
topology: v6e:2x2x1
jax: 0.10.0
libtpu: 0.0.40
codegen_flags: <defaults>
</compile_context>

<pallas_src>
import jax
import jax.numpy as jnp
from jax.experimental import pallas as pl
from jax.experimental.pallas import tpu as pltpu


def basic_block_kernel(
    scal_ref,        # SMEM (7,) f32: 1/thr0, 1/thr1, thr0, thr1, leak0, leak1, t-1
    inp_ref,         # VMEM [1, H, W, Cin]  bf16   input spikes (out_prev)
    mem0_ref,        # VMEM [1, H, W, P]    f32    mem[pos]
    mem1_ref,        # VMEM [1, H, W, P]    f32    mem[pos+1]
    spike0_ref,      # VMEM [1, H, W, P]    f32    spike[pos]
    spike1_ref,      # VMEM [1, H, W, P]    f32    spike[pos+1]
    mask_ref,        # VMEM [1, H, W, P]    bf16   dropout mask[pos]
    w1f_ref,         # VMEM [9*Cin, 2P]     bf16   fused residual[0] 3x3 + identity 1x1
    w2f_ref,         # VMEM [9*P, P]        bf16   residual[3] 3x3 conv weight (flattened)
    se_w1t_ref,      # VMEM [Pr, P]         f32    SE fc1 weight, transposed (no bias)
    se_w2_ref,       # VMEM [Pr, P]         f32    SE fc2 weight (no bias)
    out_ref,         # VMEM [1, H, W, P]    bf16   out_prev (returned spikes)
    mem0_out_ref, mem1_out_ref, spike0_out_ref, spike1_out_ref,   # f32 state outs
):
    _, H, W, Cin = inp_ref.shape
    P = w2f_ref.shape[-1]
    HW = H * W

    rthr0 = scal_ref[0]
    rthr1 = scal_ref[1]
    thr0 = scal_ref[2]
    thr1 = scal_ref[3]
    leak0 = scal_ref[4]
    leak1 = scal_ref[5]
    t_m1 = scal_ref[6]

    # flat position / column index of every (h, w) -> edge masks for the 3x3 taps
    pos = jax.lax.broadcasted_iota(jnp.int32, (HW, 1), 0)
    col = jax.lax.broadcasted_iota(jnp.int32, (H, W, 1), 1).reshape(HW, 1)

    def im2col(x32):
        """Row-flattened [HW, C] f32 image -> [HW, 9*C] f32.  Tap order is
        (ky, kx) row-major to match w.reshape(9*C, P); wrapped / out-of-image
        entries are masked to zero (same edge logic as the per-tap version)."""
        taps = []
        for dy in (-1, 0, 1):
            for dx in (-1, 0, 1):
                shift = dy * W + dx
                # tap[p] = x32[p + shift]
                tap = x32 if shift == 0 else pltpu.roll(x32, (-shift) % HW, axis=0)
                conds = []
                if dy == -1:
                    conds.append(pos >= W)          # row h-1 exists
                elif dy == 1:
                    conds.append(pos < HW - W)      # row h+1 exists
                if dx == -1:
                    conds.append(col >= 1)          # col w-1 exists
                elif dx == 1:
                    conds.append(col <= W - 2)      # col w+1 exists
                if conds:
                    m = conds[0]
                    for c in conds[1:]:
                        m = jnp.logical_and(m, c)
                    tap = jnp.where(m, tap, 0.0)
                taps.append(tap)
        return jnp.concatenate(taps, axis=-1)       # [HW, 9*C]

    x32 = inp_ref[...].reshape(HW, Cin).astype(jnp.float32)   # input spikes (0/1)

    # ---- fused residual[0] 3x3 conv + identity 1x1 conv: one K=9*Cin matmul ----
    r1 = jnp.dot(im2col(x32).astype(jnp.bfloat16), w1f_ref[...],
                 preferred_element_type=jnp.float32)           # [HW, 2P]
    conv1 = r1[:, :P]
    identity = r1[:, P:]

    # ---- first membrane / spike update ----
    mem0 = mem0_ref[...].reshape(HW, P)
    fire0 = mem0 * rthr0 - 1.0 > 0.0                # == (mem/thr - 1 > 0)
    out0 = fire0.astype(jnp.float32)                # LinearSpike forward
    mem0_out_ref[...] = (leak0 * mem0 + conv1 - thr0 * out0).reshape(1, H, W, P)
    spike0_out_ref[...] = jnp.where(
        fire0, t_m1, spike0_ref[...].reshape(HW, P)).reshape(1, H, W, P)

    # ---- dropout (out_prev = spike * mask) and residual[3]: fused 3x3 conv ----
    op32 = jnp.where(fire0, mask_ref[...].reshape(HW, P).astype(jnp.float32), 0.0)
    conv2 = jnp.dot(im2col(op32).astype(jnp.bfloat16), w2f_ref[...],
                    preferred_element_type=jnp.float32)        # [HW, P]

    # ---- second membrane pre-state ----
    mem1 = mem1_ref[...].reshape(HW, P)
    fire1 = mem1 * rthr1 - 1.0 > 0.0
    out1 = fire1.astype(jnp.float32)

    # ---- SE layer on the VPU: global avg-pool -> fc1 -> relu -> fc2 -> sigmoid ----
    y = jnp.mean(conv2, axis=0, keepdims=True)                                    # [1, P]
    h = jnp.maximum(jnp.sum(se_w1t_ref[...] * y, axis=-1, keepdims=True), 0.0)    # [Pr, 1]
    se = jax.nn.sigmoid(jnp.sum(h * se_w2_ref[...], axis=0, keepdims=True))       # [1, P]

    mem1_out_ref[...] = (leak1 * mem1 + conv2 + identity
                         - (thr1 * out1) * se).reshape(1, H, W, P)
    spike1_out_ref[...] = jnp.where(
        fire1, t_m1, spike1_ref[...].reshape(HW, P)).reshape(1, H, W, P)
    out_ref[...] = out1.astype(jnp.bfloat16).reshape(1, H, W, P)


def basic_block_forward(out_prev, mem0, mem1, spike0, spike1, mask,
                        w1, w2, wid, se_w1, se_w2,
                        thr0, thr1, leak0, leak1, t):
    """All image tensors are NHWC (kept NHWC persistently, no per-call transposes).
    Spikes / mask / conv weights are bf16, membrane & spike-time state is f32.
    Returns (out_prev_new[bf16], mem[pos], mem[pos+1], spike[pos], spike[pos+1])."""
    B, H, W, Cin = out_prev.shape
    P = w1.shape[-1]
    Pr = se_w1.shape[-1]
    HW = H * W
    assert W % 8 == 0, "W must be a multiple of 8 (sublane tiling of the flat view)"
    # TODO(synk): stride != 1 and batch_flag=True (BatchNorm) variants are unsupported.

    # ---- host-side weight fusion (cheap; hoist out of the timestep loop in a model) ----
    # fused conv1 weight [9*Cin, 2P]: left half = 3x3 weight flattened (ky,kx,c),
    # right half = zeros except center-tap rows = 1x1 identity weight.
    w1_flat = w1.astype(jnp.float32).reshape(9 * Cin, P)
    wid_pad = jnp.zeros((9 * Cin, P), jnp.float32).at[4 * Cin:5 * Cin, :].set(
        wid.astype(jnp.float32))
    w1_fused = jnp.concatenate([w1_flat, wid_pad], axis=1).astype(jnp.bfloat16)
    w2_fused = w2.astype(jnp.float32).reshape(9 * P, P).astype(jnp.bfloat16)
    se_w1t = se_w1.T.astype(jnp.float32)                       # [Pr, P]
    se_w2f = se_w2.astype(jnp.float32)                         # [Pr, P]

    scal = jnp.array([1.0 / thr0, 1.0 / thr1, thr0, thr1,
                      leak0, leak1, float(t - 1)], jnp.float32)

    def state_spec(c):
        return pl.BlockSpec((1, H, W, c), lambda b, s: (b, 0, 0, 0))

    def weight_spec(shape):
        return pl.BlockSpec(tuple(shape), lambda b, s: (0,) * len(shape))

    out_shapes = (
        jax.ShapeDtypeStruct((B, H, W, P), jnp.bfloat16),   # out_prev (spikes)
        jax.ShapeDtypeStruct((B, H, W, P), jnp.float32),    # mem[pos]
        jax.ShapeDtypeStruct((B, H, W, P), jnp.float32),    # mem[pos+1]
        jax.ShapeDtypeStruct((B, H, W, P), jnp.float32),    # spike[pos]
        jax.ShapeDtypeStruct((B, H, W, P), jnp.float32),    # spike[pos+1]
    )

    grid_spec = pltpu.PrefetchScalarGridSpec(
        num_scalar_prefetch=1,
        grid=(B,),
        in_specs=[
            state_spec(Cin),                       # out_prev
            state_spec(P), state_spec(P),          # mem0, mem1
            state_spec(P), state_spec(P),          # spike0, spike1
            state_spec(P),                         # mask
            weight_spec(w1_fused.shape), weight_spec(w2_fused.shape),
            weight_spec(se_w1t.shape), weight_spec(se_w2f.shape),
        ],
        out_specs=tuple(state_spec(P) for _ in range(5)),
    )

    nbytes = lambda a: int(a.size) * a.dtype.itemsize
    flops = (B * HW * (2 * (9 * Cin) * (2 * P) + 2 * (9 * P) * P)
             + B * 4 * P * Pr)
    bytes_accessed = (sum(nbytes(a) for a in
                          (out_prev, mem0, mem1, spike0, spike1, mask,
                           w1_fused, w2_fused, se_w1t, se_w2f))
                      + B * HW * P * (2 + 4 * 4))
    cost = pl.CostEstimate(flops=flops, transcendentals=B * P,
                           bytes_accessed=bytes_accessed)

    return pl.pallas_call(
        basic_block_kernel,
        out_shape=out_shapes,
        grid_spec=grid_spec,
        # Alias recurrent state in place (input index counts the scalar-prefetch
        # operand as index 0): mem0->out1, mem1->out2, spike0->out3, spike1->out4.
        input_output_aliases={2: 1, 3: 2, 4: 3, 5: 4},
        compiler_params=pltpu.CompilerParams(
            dimension_semantics=("parallel",),
            vmem_limit_bytes=16 * 1024 * 1024,   # actual footprint is ~2-4 MiB
        ),
        cost_estimate=cost,
    )(scal, out_prev, mem0, mem1, spike0, spike1, mask,
      w1_fused, w2_fused, se_w1t, se_w2f)


def reference_forward(out_prev, mem0, mem1, spike0, spike1, mask,
                      w1, w2, wid, se_w1, se_w2,
                      thr0, thr1, leak0, leak1, t):
    """Pure-JAX NHWC mirror of BasicBlock.forward (matches PyTorch semantics)."""
    f32 = jnp.float32
    hi = jax.lax.Precision.HIGHEST
    inp = out_prev.astype(f32)
    w1f, w2f, widf = w1.astype(f32), w2.astype(f32), wid.astype(f32)
    maskf = mask.astype(f32)

    def conv(x, w_hwio, k):
        return jax.lax.conv_general_dilated(
            x, w_hwio, window_strides=(1, 1),
            padding=[(k // 2, k // 2)] * 2,
            dimension_numbers=('NHWC', 'HWIO', 'NHWC'),
            precision=hi)

    rthr0, rthr1 = 1.0 / thr0, 1.0 / thr1   # same reciprocal-multiply form as kernel
    mem_thr = mem0 * rthr0 - 1.0
    out = (mem_thr > 0).astype(f32)
    rst = thr0 * out
    residual_conv = conv(inp, w1f, 3)
    mem0_new = leak0 * mem0 + residual_conv - rst
    spike0_new = jnp.where(out > 0, float(t - 1), spike0)
    op = out * maskf

    mem_thr1 = mem1 * rthr1 - 1.0
    out1 = (mem_thr1 > 0).astype(f32)
    rst1 = thr1 * out1
    identity = conv(inp, widf[None, None], 1)
    rc2 = conv(op, w2f, 3)
    y = jnp.mean(rc2, axis=(1, 2))                             # [B, P]
    h = jnp.maximum(jnp.dot(y, se_w1.astype(f32), precision=hi), 0.0)
    se = jax.nn.sigmoid(jnp.dot(h, se_w2.astype(f32), precision=hi))
    mem1_new = leak1 * mem1 + rc2 + identity - rst1 * se[:, None, None, :]
    spike1_new = jnp.where(out1 > 0, float(t - 1), spike1)
    return out1, mem0_new, mem1_new, spike0_new, spike1_new


if __name__ == "__main__":
    key = jax.random.PRNGKey(0)
    B, Cin, H, W = 2, 16, 16, 16          # in_planes = 16
    P = 32                                # planes = 32 (expansion = 1), stride = 1
    Pr = P // 16                          # SE reduction = 16
    dropout = 0.2
    t = 10
    thr0, thr1 = 0.9, 1.1
    leak0, leak1 = 1.0, 0.95

    keys = jax.random.split(key, 9)
    # NHWC state tensors (kept NHWC persistently -> no per-call transposes)
    out_prev = (jax.random.uniform(keys[0], (B, H, W, Cin)) < 0.5).astype(jnp.bfloat16)
    mem0 = jax.random.normal(keys[1], (B, H, W, P), jnp.float32)
    mem1 = jax.random.normal(keys[2], (B, H, W, P), jnp.float32)
    spike0 = jnp.full((B, H, W, P), -1000.0, jnp.float32)
    spike1 = jnp.full((B, H, W, P), -1000.0, jnp.float32)
    mask = ((jax.random.uniform(keys[3], (B, H, W, P)) > dropout).astype(jnp.float32)
            / (1.0 - dropout)).astype(jnp.bfloat16)

    # deterministic synthetic parameters (HWIO conv weights in bf16, [in,out] SE fc in f32)
    w1 = (0.1 * jax.random.normal(keys[4], (3, 3, Cin, P), jnp.float32)).astype(jnp.bfloat16)
    w2 = (0.1 * jax.random.normal(keys[5], (3, 3, P, P), jnp.float32)).astype(jnp.bfloat16)
    wid = (0.1 * jax.random.normal(keys[6], (Cin, P), jnp.float32)).astype(jnp.bfloat16)
    se_w1 = 0.1 * jax.random.normal(keys[7], (P, Pr), jnp.float32)
    se_w2 = 0.1 * jax.random.normal(keys[8], (Pr, P), jnp.float32)

    args = (out_prev, mem0, mem1, spike0, spike1, mask,
            w1, w2, wid, se_w1, se_w2, thr0, thr1, leak0, leak1, t)

    # reference first (the kernel may alias / consume the state buffers in place)
    refs = reference_forward(*args)
    outs = jax.block_until_ready(basic_block_forward(*args))

    for o, r in zip(outs, refs):
        assert o.shape == r.shape
        err = float(jnp.max(jnp.abs(o.astype(jnp.float32) - r.astype(jnp.float32))))
        assert err < 2e-3, err

    print("KERNEL_OK")
</pallas_src>

<mosaic_0001>
module attributes {stable_mosaic.version = 11 : i64} {
  func.func @basic_block_kernel(%arg0: i32, %arg1: memref<7xf32, #tpu.memory_space<smem>>, %arg2: memref<1x16x16x16xbf16, #tpu.memory_space<vmem>>, %arg3: memref<1x16x16x32xf32, #tpu.memory_space<vmem>>, %arg4: memref<1x16x16x32xf32, #tpu.memory_space<vmem>>, %arg5: memref<1x16x16x32xf32, #tpu.memory_space<vmem>>, %arg6: memref<1x16x16x32xf32, #tpu.memory_space<vmem>>, %arg7: memref<1x16x16x32xbf16, #tpu.memory_space<vmem>>, %arg8: memref<144x64xbf16, #tpu.memory_space<vmem>>, %arg9: memref<288x32xbf16, #tpu.memory_space<vmem>>, %arg10: memref<2x32xf32, #tpu.memory_space<vmem>>, %arg11: memref<2x32xf32, #tpu.memory_space<vmem>>, %arg12: memref<1x16x16x32xbf16, #tpu.memory_space<vmem>>, %arg13: memref<1x16x16x32xf32, #tpu.memory_space<vmem>>, %arg14: memref<1x16x16x32xf32, #tpu.memory_space<vmem>>, %arg15: memref<1x16x16x32xf32, #tpu.memory_space<vmem>>, %arg16: memref<1x16x16x32xf32, #tpu.memory_space<vmem>>) attributes {dimension_semantics = [#tpu.dimension_semantics<parallel>], iteration_bounds = array<i64: 2>, scalar_prefetch = 1 : i64, scratch_operands = 0 : i64, tpu.core_type = #tpu.core_type<tc>, window_params = [{transform_indices = @transform_0, window_bounds = array<i64: 1, 16, 16, 16>}, {transform_indices = @transform_1, window_bounds = array<i64: 1, 16, 16, 32>}, {transform_indices = @transform_2, window_bounds = array<i64: 1, 16, 16, 32>}, {transform_indices = @transform_3, window_bounds = array<i64: 1, 16, 16, 32>}, {transform_indices = @transform_4, window_bounds = array<i64: 1, 16, 16, 32>}, {transform_indices = @transform_5, window_bounds = array<i64: 1, 16, 16, 32>}, {pipeline_mode = #tpu.pipeline_mode<synchronous>, transform_indices = @transform_6, window_bounds = array<i64: 144, 64>}, {pipeline_mode = #tpu.pipeline_mode<synchronous>, transform_indices = @transform_7, window_bounds = array<i64: 288, 32>}, {pipeline_mode = #tpu.pipeline_mode<synchronous>, transform_indices = @transform_8, window_bounds = array<i64: 2, 32>}, {pipeline_mode = #tpu.pipeline_mode<synchronous>, transform_indices = @transform_9, window_bounds = array<i64: 2, 32>}, {transform_indices = @transform_10, window_bounds = array<i64: 1, 16, 16, 32>}, {transform_indices = @transform_11, window_bounds = array<i64: 1, 16, 16, 32>}, {transform_indices = @transform_12, window_bounds = array<i64: 1, 16, 16, 32>}, {transform_indices = @transform_13, window_bounds = array<i64: 1, 16, 16, 32>}, {transform_indices = @transform_14, window_bounds = array<i64: 1, 16, 16, 32>}]} {
    %c0 = arith.constant 0 : index
    %0 = memref.load %arg1[%c0] : memref<7xf32, #tpu.memory_space<smem>>
    %c1 = arith.constant 1 : index
    %1 = memref.load %arg1[%c1] : memref<7xf32, #tpu.memory_space<smem>>
    %c2 = arith.constant 2 : index
    %2 = memref.load %arg1[%c2] : memref<7xf32, #tpu.memory_space<smem>>
    %c3 = arith.constant 3 : index
    %3 = memref.load %arg1[%c3] : memref<7xf32, #tpu.memory_space<smem>>
    %c4 = arith.constant 4 : index
    %4 = memref.load %arg1[%c4] : memref<7xf32, #tpu.memory_space<smem>>
    %c5 = arith.constant 5 : index
    %5 = memref.load %arg1[%c5] : memref<7xf32, #tpu.memory_space<smem>>
    %c6 = arith.constant 6 : index
    %6 = memref.load %arg1[%c6] : memref<7xf32, #tpu.memory_space<smem>>
    %7 = tpu.iota {dimensions = array<i32: 0>} : vector<256x1xi32>
    %8 = tpu.iota {dimensions = array<i32: 1>} : vector<16x16x1xi32>
    %9 = vector.shape_cast %8 : vector<16x16x1xi32> to vector<256x1xi32>
    %c0_0 = arith.constant 0 : index
    %c0_1 = arith.constant 0 : index
    %c0_2 = arith.constant 0 : index
    %c0_3 = arith.constant 0 : index
    %10 = vector.load %arg2[%c0_0, %c0_1, %c0_2, %c0_3] : memref<1x16x16x16xbf16, #tpu.memory_space<vmem>>, vector<1x16x16x16xbf16>
    %11 = vector.shape_cast %10 : vector<1x16x16x16xbf16> to vector<256x16xbf16>
    %12 = arith.extf %11 : vector<256x16xbf16> to vector<256x16xf32>
    %c17_i32 = arith.constant 17 : i32
    %13 = tpu.dynamic_rotate %12 by %c17_i32 dim 0 : vector<256x16xf32>, i32 -> vector<256x16xf32>
    %c16_i32 = arith.constant 16 : i32
    %14 = vector.broadcast %c16_i32 : i32 to vector<256x1xi32>
    %15 = arith.cmpi sge, %7, %14 : vector<256x1xi32>
    %c1_i32 = arith.constant 1 : i32
    %16 = vector.broadcast %c1_i32 : i32 to vector<256x1xi32>
    %17 = arith.cmpi sge, %9, %16 : vector<256x1xi32>
    %18 = arith.andi %15, %17 : vector<256x1xi1>
    %cst = arith.constant 0.000000e+00 : f32
    %19 = vector.shape_cast %18 : vector<256x1xi1> to vector<256x1xi1>
    %20 = vector.broadcast %19 : vector<256x1xi1> to vector<256x16xi1>
    %21 = vector.broadcast %cst : f32 to vector<256x16xf32>
    %22 = arith.select %20, %13, %21 : vector<256x16xi1>, vector<256x16xf32>
    %c16_i32_4 = arith.constant 16 : i32
    %23 = tpu.dynamic_rotate %12 by %c16_i32_4 dim 0 : vector<256x16xf32>, i32 -> vector<256x16xf32>
    %c16_i32_5 = arith.constant 16 : i32
    %24 = vector.broadcast %c16_i32_5 : i32 to vector<256x1xi32>
    %25 = arith.cmpi sge, %7, %24 : vector<256x1xi32>
    %cst_6 = arith.constant 0.000000e+00 : f32
    %26 = vector.shape_cast %25 : vector<256x1xi1> to vector<256x1xi1>
    %27 = vector.broadcast %26 : vector<256x1xi1> to vector<256x16xi1>
    %28 = vector.broadcast %cst_6 : f32 to vector<256x16xf32>
    %29 = arith.select %27, %23, %28 : vector<256x16xi1>, vector<256x16xf32>
    %c15_i32 = arith.constant 15 : i32
    %30 = tpu.dynamic_rotate %12 by %c15_i32 dim 0 : vector<256x16xf32>, i32 -> vector<256x16xf32>
    %c16_i32_7 = arith.constant 16 : i32
    %31 = vector.broadcast %c16_i32_7 : i32 to vector<256x1xi32>
    %32 = arith.cmpi sge, %7, %31 : vector<256x1xi32>
    %c14_i32 = arith.constant 14 : i32
    %33 = vector.broadcast %c14_i32 : i32 to vector<256x1xi32>
    %34 = arith.cmpi sle, %9, %33 : vector<256x1xi32>
    %35 = arith.andi %32, %34 : vector<256x1xi1>
    %cst_8 = arith.constant 0.000000e+00 : f32
    %36 = vector.shape_cast %35 : vector<256x1xi1> to vector<256x1xi1>
    %37 = vector.broadcast %36 : vector<256x1xi1> to vector<256x16xi1>
    %38 = vector.broadcast %cst_8 : f32 to vector<256x16xf32>
    %39 = arith.select %37, %30, %38 : vector<256x16xi1>, vector<256x16xf32>
    %c1_i32_9 = arith.constant 1 : i32
    %40 = tpu.dynamic_rotate %12 by %c1_i32_9 dim 0 : vector<256x16xf32>, i32 -> vector<256x16xf32>
    %c1_i32_10 = arith.constant 1 : i32
    %41 = vector.broadcast %c1_i32_10 : i32 to vector<256x1xi32>
    %42 = arith.cmpi sge, %9, %41 : vector<256x1xi32>
    %cst_11 = arith.constant 0.000000e+00 : f32
    %43 = vector.shape_cast %42 : vector<256x1xi1> to vector<256x1xi1>
    %44 = vector.broadcast %43 : vector<256x1xi1> to vector<256x16xi1>
    %45 = vector.broadcast %cst_11 : f32 to vector<256x16xf32>
    %46 = arith.select %44, %40, %45 : vector<256x16xi1>, vector<256x16xf32>
    %c255_i32 = arith.constant 255 : i32
    %47 = tpu.dynamic_rotate %12 by %c255_i32 dim 0 : vector<256x16xf32>, i32 -> vector<256x16xf32>
    %c14_i32_12 = arith.constant 14 : i32
    %48 = vector.broadcast %c14_i32_12 : i32 to vector<256x1xi32>
    %49 = arith.cmpi sle, %9, %48 : vector<256x1xi32>
    %cst_13 = arith.constant 0.000000e+00 : f32
    %50 = vector.shape_cast %49 : vector<256x1xi1> to vector<256x1xi1>
    %51 = vector.broadcast %50 : vector<256x1xi1> to vector<256x16xi1>
    %52 = vector.broadcast %cst_13 : f32 to vector<256x16xf32>
    %53 = arith.select %51, %47, %52 : vector<256x16xi1>, vector<256x16xf32>
    %c241_i32 = arith.constant 241 : i32
    %54 = tpu.dynamic_rotate %12 by %c241_i32 dim 0 : vector<256x16xf32>, i32 -> vector<256x16xf32>
    %c240_i32 = arith.constant 240 : i32
    %55 = vector.broadcast %c240_i32 : i32 to vector<256x1xi32>
    %56 = arith.cmpi slt, %7, %55 : vector<256x1xi32>
    %c1_i32_14 = arith.constant 1 : i32
    %57 = vector.broadcast %c1_i32_14 : i32 to vector<256x1xi32>
    %58 = arith.cmpi sge, %9, %57 : vector<256x1xi32>
    %59 = arith.andi %56, %58 : vector<256x1xi1>
    %cst_15 = arith.constant 0.000000e+00 : f32
    %60 = vector.shape_cast %59 : vector<256x1xi1> to vector<256x1xi1>
    %61 = vector.broadcast %60 : vector<256x1xi1> to vector<256x16xi1>
    %62 = vector.broadcast %cst_15 : f32 to vector<256x16xf32>
    %63 = arith.select %61, %54, %62 : vector<256x16xi1>, vector<256x16xf32>
    %c240_i32_16 = arith.constant 240 : i32
    %64 = tpu.dynamic_rotate %12 by %c240_i32_16 dim 0 : vector<256x16xf32>, i32 -> vector<256x16xf32>
    %c240_i32_17 = arith.constant 240 : i32
    %65 = vector.broadcast %c240_i32_17 : i32 to vector<256x1xi32>
    %66 = arith.cmpi slt, %7, %65 : vector<256x1xi32>
    %cst_18 = arith.constant 0.000000e+00 : f32
    %67 = vector.shape_cast %66 : vector<256x1xi1> to vector<256x1xi1>
    %68 = vector.broadcast %67 : vector<256x1xi1> to vector<256x16xi1>
    %69 = vector.broadcast %cst_18 : f32 to vector<256x16xf32>
    %70 = arith.select %68, %64, %69 : vector<256x16xi1>, vector<256x16xf32>
    %c239_i32 = arith.constant 239 : i32
    %71 = tpu.dynamic_rotate %12 by %c239_i32 dim 0 : vector<256x16xf32>, i32 -> vector<256x16xf32>
    %c240_i32_19 = arith.constant 240 : i32
    %72 = vector.broadcast %c240_i32_19 : i32 to vector<256x1xi32>
    %73 = arith.cmpi slt, %7, %72 : vector<256x1xi32>
    %c14_i32_20 = arith.constant 14 : i32
    %74 = vector.broadcast %c14_i32_20 : i32 to vector<256x1xi32>
    %75 = arith.cmpi sle, %9, %74 : vector<256x1xi32>
    %76 = arith.andi %73, %75 : vector<256x1xi1>
    %cst_21 = arith.constant 0.000000e+00 : f32
    %77 = vector.shape_cast %76 : vector<256x1xi1> to vector<256x1xi1>
    %78 = vector.broadcast %77 : vector<256x1xi1> to vector<256x16xi1>
    %79 = vector.broadcast %cst_21 : f32 to vector<256x16xf32>
    %80 = arith.select %78, %71, %79 : vector<256x16xi1>, vector<256x16xf32>
    %81 = tpu.concatenate %22, %29, %39, %46, %12, %53, %63, %70, %80 in 1 : vector<256x16xf32>, vector<256x16xf32>, vector<256x16xf32>, vector<256x16xf32>, vector<256x16xf32>, vector<256x16xf32>, vector<256x16xf32>, vector<256x16xf32>, vector<256x16xf32> -> vector<256x144xf32>
    %82 = arith.truncf %81 : vector<256x144xf32> to vector<256x144xbf16>
    %c0_22 = arith.constant 0 : index
    %c0_23 = arith.constant 0 : index
    %83 = vector.load %arg8[%c0_22, %c0_23] : memref<144x64xbf16, #tpu.memory_space<vmem>>, vector<144x64xbf16>
    %cst_24 = arith.constant dense<0.000000e+00> : vector<256x64xf32>
    %84 = tpu.matmul %82, %83, %cst_24 {dimension_numbers = #tpu.dot_dimension_numbers<[1], [0], [0], [1], [0, 0, 1, 1], [], []>} : vector<256x144xbf16>, vector<144x64xbf16>, vector<256x64xf32> -> vector<256x64xf32>
    %85 = vector.extract_strided_slice %84 {offsets = [0, 0], sizes = [256, 32], strides = [1, 1]} : vector<256x64xf32> to vector<256x32xf32>
    %86 = vector.extract_strided_slice %84 {offsets = [0, 32], sizes = [256, 32], strides = [1, 1]} : vector<256x64xf32> to vector<256x32xf32>
    %c0_25 = arith.constant 0 : index
    %c0_26 = arith.constant 0 : index
    %c0_27 = arith.constant 0 : index
    %c0_28 = arith.constant 0 : index
    %87 = vector.load %arg3[%c0_25, %c0_26, %c0_27, %c0_28] : memref<1x16x16x32xf32, #tpu.memory_space<vmem>>, vector<1x16x16x32xf32>
    %88 = vector.shape_cast %87 : vector<1x16x16x32xf32> to vector<256x32xf32>
    %89 = vector.broadcast %0 : f32 to vector<256x32xf32>
    %90 = arith.mulf %88, %89 : vector<256x32xf32>
    %cst_29 = arith.constant 1.000000e+00 : f32
    %91 = vector.broadcast %cst_29 : f32 to vector<256x32xf32>
    %92 = arith.subf %90, %91 : vector<256x32xf32>
    %cst_30 = arith.constant 0.000000e+00 : f32
    %93 = vector.broadcast %cst_30 : f32 to vector<256x32xf32>
    %94 = arith.cmpf ogt, %92, %93 : vector<256x32xf32>
    %95 = arith.extui %94 : vector<256x32xi1> to vector<256x32xi32>
    %96 = arith.sitofp %95 : vector<256x32xi32> to vector<256x32xf32>
    %97 = vector.broadcast %4 : f32 to vector<256x32xf32>
    %98 = arith.mulf %97, %88 : vector<256x32xf32>
    %99 = arith.addf %98, %85 : vector<256x32xf32>
    %100 = vector.broadcast %2 : f32 to vector<256x32xf32>
    %101 = arith.mulf %100, %96 : vector<256x32xf32>
    %102 = arith.subf %99, %101 : vector<256x32xf32>
    %103 = vector.shape_cast %102 : vector<256x32xf32> to vector<1x16x16x32xf32>
    %c0_31 = arith.constant 0 : index
    %c0_32 = arith.constant 0 : index
    %c0_33 = arith.constant 0 : index
    %c0_34 = arith.constant 0 : index
    %104 = vector.load %arg13[%c0_31, %c0_32, %c0_33, %c0_34] : memref<1x16x16x32xf32, #tpu.memory_space<vmem>>, vector<1x16x16x32xf32>
    tpu.vector_store %arg13[%c0_31, %c0_32, %c0_33, %c0_34], %103 {strides = array<i32>} : memref<1x16x16x32xf32, #tpu.memory_space<vmem>>, vector<1x16x16x32xf32>,
    %c0_35 = arith.constant 0 : index
    %c0_36 = arith.constant 0 : index
    %c0_37 = arith.constant 0 : index
    %c0_38 = arith.constant 0 : index
    %105 = vector.load %arg5[%c0_35, %c0_36, %c0_37, %c0_38] : memref<1x16x16x32xf32, #tpu.memory_space<vmem>>, vector<1x16x16x32xf32>
    %106 = vector.shape_cast %105 : vector<1x16x16x32xf32> to vector<256x32xf32>
    %107 = vector.broadcast %6 : f32 to vector<256x32xf32>
    %108 = arith.select %94, %107, %106 : vector<256x32xi1>, vector<256x32xf32>
    %109 = vector.shape_cast %108 : vector<256x32xf32> to vector<1x16x16x32xf32>
    %c0_39 = arith.constant 0 : index
    %c0_40 = arith.constant 0 : index
    %c0_41 = arith.constant 0 : index
    %c0_42 = arith.constant 0 : index
    %110 = vector.load %arg15[%c0_39, %c0_40, %c0_41, %c0_42] : memref<1x16x16x32xf32, #tpu.memory_space<vmem>>, vector<1x16x16x32xf32>
    tpu.vector_store %arg15[%c0_39, %c0_40, %c0_41, %c0_42], %109 {strides = array<i32>} : memref<1x16x16x32xf32, #tpu.memory_space<vmem>>, vector<1x16x16x32xf32>,
    %c0_43 = arith.constant 0 : index
    %c0_44 = arith.constant 0 : index
    %c0_45 = arith.constant 0 : index
    %c0_46 = arith.constant 0 : index
    %111 = vector.load %arg7[%c0_43, %c0_44, %c0_45, %c0_46] : memref<1x16x16x32xbf16, #tpu.memory_space<vmem>>, vector<1x16x16x32xbf16>
    %112 = vector.shape_cast %111 : vector<1x16x16x32xbf16> to vector<256x32xbf16>
    %113 = arith.extf %112 : vector<256x32xbf16> to vector<256x32xf32>
    %cst_47 = arith.constant 0.000000e+00 : f32
    %114 = vector.broadcast %cst_47 : f32 to vector<256x32xf32>
    %115 = arith.select %94, %113, %114 : vector<256x32xi1>, vector<256x32xf32>
    %c17_i32_48 = arith.constant 17 : i32
    %116 = tpu.dynamic_rotate %115 by %c17_i32_48 dim 0 : vector<256x32xf32>, i32 -> vector<256x32xf32>
    %c16_i32_49 = arith.constant 16 : i32
    %117 = vector.broadcast %c16_i32_49 : i32 to vector<256x1xi32>
    %118 = arith.cmpi sge, %7, %117 : vector<256x1xi32>
    %c1_i32_50 = arith.constant 1 : i32
    %119 = vector.broadcast %c1_i32_50 : i32 to vector<256x1xi32>
    %120 = arith.cmpi sge, %9, %119 : vector<256x1xi32>
    %121 = arith.andi %118, %120 : vector<256x1xi1>
    %cst_51 = arith.constant 0.000000e+00 : f32
    %122 = vector.shape_cast %121 : vector<256x1xi1> to vector<256x1xi1>
    %123 = vector.broadcast %122 : vector<256x1xi1> to vector<256x32xi1>
    %124 = vector.broadcast %cst_51 : f32 to vector<256x32xf32>
    %125 = arith.select %123, %116, %124 : vector<256x32xi1>, vector<256x32xf32>
    %c16_i32_52 = arith.constant 16 : i32
    %126 = tpu.dynamic_rotate %115 by %c16_i32_52 dim 0 : vector<256x32xf32>, i32 -> vector<256x32xf32>
    %c16_i32_53 = arith.constant 16 : i32
    %127 = vector.broadcast %c16_i32_53 : i32 to vector<256x1xi32>
    %128 = arith.cmpi sge, %7, %127 : vector<256x1xi32>
    %cst_54 = arith.constant 0.000000e+00 : f32
    %129 = vector.shape_cast %128 : vector<256x1xi1> to vector<256x1xi1>
    %130 = vector.broadcast %129 : vector<256x1xi1> to vector<256x32xi1>
    %131 = vector.broadcast %cst_54 : f32 to vector<256x32xf32>
    %132 = arith.select %130, %126, %131 : vector<256x32xi1>, vector<256x32xf32>
    %c15_i32_55 = arith.constant 15 : i32
    %133 = tpu.dynamic_rotate %115 by %c15_i32_55 dim 0 : vector<256x32xf32>, i32 -> vector<256x32xf32>
    %c16_i32_56 = arith.constant 16 : i32
    %134 = vector.broadcast %c16_i32_56 : i32 to vector<256x1xi32>
    %135 = arith.cmpi sge, %7, %134 : vector<256x1xi32>
    %c14_i32_57 = arith.constant 14 : i32
    %136 = vector.broadcast %c14_i32_57 : i32 to vector<256x1xi32>
    %137 = arith.cmpi sle, %9, %136 : vector<256x1xi32>
    %138 = arith.andi %135, %137 : vector<256x1xi1>
    %cst_58 = arith.constant 0.000000e+00 : f32
    %139 = vector.shape_cast %138 : vector<256x1xi1> to vector<256x1xi1>
    %140 = vector.broadcast %139 : vector<256x1xi1> to vector<256x32xi1>
    %141 = vector.broadcast %cst_58 : f32 to vector<256x32xf32>
    %142 = arith.select %140, %133, %141 : vector<256x32xi1>, vector<256x32xf32>
    %c1_i32_59 = arith.constant 1 : i32
    %143 = tpu.dynamic_rotate %115 by %c1_i32_59 dim 0 : vector<256x32xf32>, i32 -> vector<256x32xf32>
    %c1_i32_60 = arith.constant 1 : i32
    %144 = vector.broadcast %c1_i32_60 : i32 to vector<256x1xi32>
    %145 = arith.cmpi sge, %9, %144 : vector<256x1xi32>
    %cst_61 = arith.constant 0.000000e+00 : f32
    %146 = vector.shape_cast %145 : vector<256x1xi1> to vector<256x1xi1>
    %147 = vector.broadcast %146 : vector<256x1xi1> to vector<256x32xi1>
    %148 = vector.broadcast %cst_61 : f32 to vector<256x32xf32>
    %149 = arith.select %147, %143, %148 : vector<256x32xi1>, vector<256x32xf32>
    %c255_i32_62 = arith.constant 255 : i32
    %150 = tpu.dynamic_rotate %115 by %c255_i32_62 dim 0 : vector<256x32xf32>, i32 -> vector<256x32xf32>
    %c14_i32_63 = arith.constant 14 : i32
    %151 = vector.broadcast %c14_i32_63 : i32 to vector<256x1xi32>
    %152 = arith.cmpi sle, %9, %151 : vector<256x1xi32>
    %cst_64 = arith.constant 0.000000e+00 : f32
    %153 = vector.shape_cast %152 : vector<256x1xi1> to vector<256x1xi1>
    %154 = vector.broadcast %153 : vector<256x1xi1> to vector<256x32xi1>
    %155 = vector.broadcast %cst_64 : f32 to vector<256x32xf32>
    %156 = arith.select %154, %150, %155 : vector<256x32xi1>, vector<256x32xf32>
    %c241_i32_65 = arith.constant 241 : i32
    %157 = tpu.dynamic_rotate %115 by %c241_i32_65 dim 0 : vector<256x32xf32>, i32 -> vector<256x32xf32>
    %c240_i32_66 = arith.constant 240 : i32
    %158 = vector.broadcast %c240_i32_66 : i32 to vector<256x1xi32>
    %159 = arith.cmpi slt, %7, %158 : vector<256x1xi32>
    %c1_i32_67 = arith.constant 1 : i32
    %160 = vector.broadcast %c1_i32_67 : i32 to vector<256x1xi32>
    %161 = arith.cmpi sge, %9, %160 : vector<256x1xi32>
    %162 = arith.andi %159, %161 : vector<256x1xi1>
    %cst_68 = arith.constant 0.000000e+00 : f32
    %163 = vector.shape_cast %162 : vector<256x1xi1> to vector<256x1xi1>
    %164 = vector.broadcast %163 : vector<256x1xi1> to vector<256x32xi1>
    %165 = vector.broadcast %cst_68 : f32 to vector<256x32xf32>
    %166 = arith.select %164, %157, %165 : vector<256x32xi1>, vector<256x32xf32>
    %c240_i32_69 = arith.constant 240 : i32
    %167 = tpu.dynamic_rotate %115 by %c240_i32_69 dim 0 : vector<256x32xf32>, i32 -> vector<256x32xf32>
    %c240_i32_70 = arith.constant 240 : i32
    %168 = vector.broadcast %c240_i32_70 : i32 to vector<256x1xi32>
    %169 = arith.cmpi slt, %7, %168 : vector<256x1xi32>
    %cst_71 = arith.constant 0.000000e+00 : f32
    %170 = vector.shape_cast %169 : vector<256x1xi1> to vector<256x1xi1>
    %171 = vector.broadcast %170 : vector<256x1xi1> to vector<256x32xi1>
    %172 = vector.broadcast %cst_71 : f32 to vector<256x32xf32>
    %173 = arith.select %171, %167, %172 : vector<256x32xi1>, vector<256x32xf32>
    %c239_i32_72 = arith.constant 239 : i32
    %174 = tpu.dynamic_rotate %115 by %c239_i32_72 dim 0 : vector<256x32xf32>, i32 -> vector<256x32xf32>
    %c240_i32_73 = arith.constant 240 : i32
    %175 = vector.broadcast %c240_i32_73 : i32 to vector<256x1xi32>
    %176 = arith.cmpi slt, %7, %175 : vector<256x1xi32>
    %c14_i32_74 = arith.constant 14 : i32
    %177 = vector.broadcast %c14_i32_74 : i32 to vector<256x1xi32>
    %178 = arith.cmpi sle, %9, %177 : vector<256x1xi32>
    %179 = arith.andi %176, %178 : vector<256x1xi1>
    %cst_75 = arith.constant 0.000000e+00 : f32
    %180 = vector.shape_cast %179 : vector<256x1xi1> to vector<256x1xi1>
    %181 = vector.broadcast %180 : vector<256x1xi1> to vector<256x32xi1>
    %182 = vector.broadcast %cst_75 : f32 to vector<256x32xf32>
    %183 = arith.select %181, %174, %182 : vector<256x32xi1>, vector<256x32xf32>
    %184 = tpu.concatenate %125, %132, %142, %149, %115, %156, %166, %173, %183 in 1 : vector<256x32xf32>, vector<256x32xf32>, vector<256x32xf32>, vector<256x32xf32>, vector<256x32xf32>, vector<256x32xf32>, vector<256x32xf32>, vector<256x32xf32>, vector<256x32xf32> -> vector<256x288xf32>
    %185 = arith.truncf %184 : vector<256x288xf32> to vector<256x288xbf16>
    %c0_76 = arith.constant 0 : index
    %c0_77 = arith.constant 0 : index
    %186 = vector.load %arg9[%c0_76, %c0_77] : memref<288x32xbf16, #tpu.memory_space<vmem>>, vector<288x32xbf16>
    %cst_78 = arith.constant dense<0.000000e+00> : vector<256x32xf32>
    %187 = tpu.matmul %185, %186, %cst_78 {dimension_numbers = #tpu.dot_dimension_numbers<[1], [0], [0], [1], [0, 0, 1, 1], [], []>} : vector<256x288xbf16>, vector<288x32xbf16>, vector<256x32xf32> -> vector<256x32xf32>
    %c0_79 = arith.constant 0 : index
    %c0_80 = arith.constant 0 : index
    %c0_81 = arith.constant 0 : index
    %c0_82 = arith.constant 0 : index
    %188 = vector.load %arg4[%c0_79, %c0_80, %c0_81, %c0_82] : memref<1x16x16x32xf32, #tpu.memory_space<vmem>>, vector<1x16x16x32xf32>
    %189 = vector.shape_cast %188 : vector<1x16x16x32xf32> to vector<256x32xf32>
    %190 = vector.broadcast %1 : f32 to vector<256x32xf32>
    %191 = arith.mulf %189, %190 : vector<256x32xf32>
    %cst_83 = arith.constant 1.000000e+00 : f32
    %192 = vector.broadcast %cst_83 : f32 to vector<256x32xf32>
    %193 = arith.subf %191, %192 : vector<256x32xf32>
    %cst_84 = arith.constant 0.000000e+00 : f32
    %194 = vector.broadcast %cst_84 : f32 to vector<256x32xf32>
    %195 = arith.cmpf ogt, %193, %194 : vector<256x32xf32>
    %196 = arith.extui %195 : vector<256x32xi1> to vector<256x32xi32>
    %197 = arith.sitofp %196 : vector<256x32xi32> to vector<256x32xf32>
    %cst_85 = arith.constant dense<0.000000e+00> : vector<32xf32>
    %198 = vector.multi_reduction <add>, %187, %cst_85 [0] : vector<256x32xf32> to vector<32xf32>
    %199 = vector.shape_cast %198 : vector<32xf32> to vector<1x32xf32>
    %cst_86 = arith.constant 2.560000e+02 : f32
    %200 = vector.broadcast %cst_86 : f32 to vector<1x32xf32>
    %201 = arith.divf %199, %200 : vector<1x32xf32>
    %c0_87 = arith.constant 0 : index
    %c0_88 = arith.constant 0 : index
    %202 = vector.load %arg10[%c0_87, %c0_88] : memref<2x32xf32, #tpu.memory_space<vmem>>, vector<2x32xf32>
    %203 = vector.broadcast %201 : vector<1x32xf32> to vector<2x32xf32>
    %204 = arith.mulf %202, %203 : vector<2x32xf32>
    %cst_89 = arith.constant dense<0.000000e+00> : vector<2xf32>
    %205 = vector.multi_reduction <add>, %204, %cst_89 [1] : vector<2x32xf32> to vector<2xf32>
    %206 = vector.shape_cast %205 : vector<2xf32> to vector<2x1xf32>
    %cst_90 = arith.constant 0.000000e+00 : f32
    %207 = vector.broadcast %cst_90 : f32 to vector<2x1xf32>
    %208 = arith.maximumf %206, %207 : vector<2x1xf32>
    %c0_91 = arith.constant 0 : index
    %c0_92 = arith.constant 0 : index
    %209 = vector.load %arg11[%c0_91, %c0_92] : memref<2x32xf32, #tpu.memory_space<vmem>>, vector<2x32xf32>
    %210 = vector.broadcast %208 : vector<2x1xf32> to vector<2x32xf32>
    %211 = arith.mulf %210, %209 : vector<2x32xf32>
    %cst_93 = arith.constant dense<0.000000e+00> : vector<32xf32>
    %212 = vector.multi_reduction <add>, %211, %cst_93 [0] : vector<2x32xf32> to vector<32xf32>
    %213 = vector.shape_cast %212 : vector<32xf32> to vector<1x32xf32>
    %214 = arith.negf %213 : vector<1x32xf32>
    %215 = math.exp %214 : vector<1x32xf32>
    %cst_94 = arith.constant 1.000000e+00 : f32
    %216 = vector.broadcast %cst_94 : f32 to vector<1x32xf32>
    %217 = arith.addf %216, %215 : vector<1x32xf32>
    %218 = arith.divf %216, %217 : vector<1x32xf32>
    %219 = vector.broadcast %5 : f32 to vector<256x32xf32>
    %220 = arith.mulf %219, %189 : vector<256x32xf32>
    %221 = arith.addf %220, %187 : vector<256x32xf32>
    %222 = arith.addf %221, %86 : vector<256x32xf32>
    %223 = vector.broadcast %3 : f32 to vector<256x32xf32>
    %224 = arith.mulf %223, %197 : vector<256x32xf32>
    %225 = vector.broadcast %218 : vector<1x32xf32> to vector<256x32xf32>
    %226 = arith.mulf %224, %225 : vector<256x32xf32>
    %227 = arith.subf %222, %226 : vector<256x32xf32>
    %228 = vector.shape_cast %227 : vector<256x32xf32> to vector<1x16x16x32xf32>
    %c0_95 = arith.constant 0 : index
    %c0_96 = arith.constant 0 : index
    %c0_97 = arith.constant 0 : index
    %c0_98 = arith.constant 0 : index
    %229 = vector.load %arg14[%c0_95, %c0_96, %c0_97, %c0_98] : memref<1x16x16x32xf32, #tpu.memory_space<vmem>>, vector<1x16x16x32xf32>
    tpu.vector_store %arg14[%c0_95, %c0_96, %c0_97, %c0_98], %228 {strides = array<i32>} : memref<1x16x16x32xf32, #tpu.memory_space<vmem>>, vector<1x16x16x32xf32>,
    %c0_99 = arith.constant 0 : index
    %c0_100 = arith.constant 0 : index
    %c0_101 = arith.constant 0 : index
    %c0_102 = arith.constant 0 : index
    %230 = vector.load %arg6[%c0_99, %c0_100, %c0_101, %c0_102] : memref<1x16x16x32xf32, #tpu.memory_space<vmem>>, vector<1x16x16x32xf32>
    %231 = vector.shape_cast %230 : vector<1x16x16x32xf32> to vector<256x32xf32>
    %232 = vector.broadcast %6 : f32 to vector<256x32xf32>
    %233 = arith.select %195, %232, %231 : vector<256x32xi1>, vector<256x32xf32>
    %234 = vector.shape_cast %233 : vector<256x32xf32> to vector<1x16x16x32xf32>
    %c0_103 = arith.constant 0 : index
    %c0_104 = arith.constant 0 : index
    %c0_105 = arith.constant 0 : index
    %c0_106 = arith.constant 0 : index
    %235 = vector.load %arg16[%c0_103, %c0_104, %c0_105, %c0_106] : memref<1x16x16x32xf32, #tpu.memory_space<vmem>>, vector<1x16x16x32xf32>
    tpu.vector_store %arg16[%c0_103, %c0_104, %c0_105, %c0_106], %234 {strides = array<i32>} : memref<1x16x16x32xf32, #tpu.memory_space<vmem>>, vector<1x16x16x32xf32>,
    %236 = arith.truncf %197 : vector<256x32xf32> to vector<256x32xbf16>
    %237 = vector.shape_cast %236 : vector<256x32xbf16> to vector<1x16x16x32xbf16>
    %c0_107 = arith.constant 0 : index
    %c0_108 = arith.constant 0 : index
    %c0_109 = arith.constant 0 : index
    %c0_110 = arith.constant 0 : index
    %238 = vector.load %arg12[%c0_107, %c0_108, %c0_109, %c0_110] : memref<1x16x16x32xbf16, #tpu.memory_space<vmem>>, vector<1x16x16x32xbf16>
    tpu.vector_store %arg12[%c0_107, %c0_108, %c0_109, %c0_110], %237 {strides = array<i32>} : memref<1x16x16x32xbf16, #tpu.memory_space<vmem>>, vector<1x16x16x32xbf16>,
    return
  }
  func.func @transform_0(%arg0: i32, %arg1: memref<7xf32, #tpu.memory_space<smem>>) -> (i32, i32, i32, i32) {
    %c0_i32 = arith.constant 0 : i32
    %c0_i32_0 = arith.constant 0 : i32
    %c0_i32_1 = arith.constant 0 : i32
    %c0_i32_2 = arith.constant 0 : i32
    return %arg0, %c0_i32, %c0_i32_0, %c0_i32_1 : i32, i32, i32, i32
  }
  func.func @transform_1(%arg0: i32, %arg1: memref<7xf32, #tpu.memory_space<smem>>) -> (i32, i32, i32, i32) {
    %c0_i32 = arith.constant 0 : i32
    %c0_i32_0 = arith.constant 0 : i32
    %c0_i32_1 = arith.constant 0 : i32
    %c0_i32_2 = arith.constant 0 : i32
    return %arg0, %c0_i32, %c0_i32_0, %c0_i32_1 : i32, i32, i32, i32
  }
  func.func @transform_2(%arg0: i32, %arg1: memref<7xf32, #tpu.memory_space<smem>>) -> (i32, i32, i32, i32) {
    %c0_i32 = arith.constant 0 : i32
    %c0_i32_0 = arith.constant 0 : i32
    %c0_i32_1 = arith.constant 0 : i32
    %c0_i32_2 = arith.constant 0 : i32
    return %arg0, %c0_i32, %c0_i32_0, %c0_i32_1 : i32, i32, i32, i32
  }
  func.func @transform_3(%arg0: i32, %arg1: memref<7xf32, #tpu.memory_space<smem>>) -> (i32, i32, i32, i32) {
    %c0_i32 = arith.constant 0 : i32
    %c0_i32_0 = arith.constant 0 : i32
    %c0_i32_1 = arith.constant 0 : i32
    %c0_i32_2 = arith.constant 0 : i32
    return %arg0, %c0_i32, %c0_i32_0, %c0_i32_1 : i32, i32, i32, i32
  }
  func.func @transform_4(%arg0: i32, %arg1: memref<7xf32, #tpu.memory_space<smem>>) -> (i32, i32, i32, i32) {
    %c0_i32 = arith.constant 0 : i32
    %c0_i32_0 = arith.constant 0 : i32
    %c0_i32_1 = arith.constant 0 : i32
    %c0_i32_2 = arith.constant 0 : i32
    return %arg0, %c0_i32, %c0_i32_0, %c0_i32_1 : i32, i32, i32, i32
  }
  func.func @transform_5(%arg0: i32, %arg1: memref<7xf32, #tpu.memory_space<smem>>) -> (i32, i32, i32, i32) {
    %c0_i32 = arith.constant 0 : i32
    %c0_i32_0 = arith.constant 0 : i32
    %c0_i32_1 = arith.constant 0 : i32
    %c0_i32_2 = arith.constant 0 : i32
    return %arg0, %c0_i32, %c0_i32_0, %c0_i32_1 : i32, i32, i32, i32
  }
  func.func @transform_6(%arg0: i32, %arg1: memref<7xf32, #tpu.memory_space<smem>>) -> (i32, i32) {
    %c0_i32 = arith.constant 0 : i32
    %c0_i32_0 = arith.constant 0 : i32
    %c0_i32_1 = arith.constant 0 : i32
    return %c0_i32, %c0_i32_0 : i32, i32
  }
  func.func @transform_7(%arg0: i32, %arg1: memref<7xf32, #tpu.memory_space<smem>>) -> (i32, i32) {
    %c0_i32 = arith.constant 0 : i32
    %c0_i32_0 = arith.constant 0 : i32
    %c0_i32_1 = arith.constant 0 : i32
    return %c0_i32, %c0_i32_0 : i32, i32
  }
  func.func @transform_8(%arg0: i32, %arg1: memref<7xf32, #tpu.memory_space<smem>>) -> (i32, i32) {
    %c0_i32 = arith.constant 0 : i32
    %c0_i32_0 = arith.constant 0 : i32
    %c0_i32_1 = arith.constant 0 : i32
    return %c0_i32, %c0_i32_0 : i32, i32
  }
  func.func @transform_9(%arg0: i32, %arg1: memref<7xf32, #tpu.memory_space<smem>>) -> (i32, i32) {
    %c0_i32 = arith.constant 0 : i32
    %c0_i32_0 = arith.constant 0 : i32
    %c0_i32_1 = arith.constant 0 : i32
    return %c0_i32, %c0_i32_0 : i32, i32
  }
  func.func @transform_10(%arg0: i32, %arg1: memref<7xf32, #tpu.memory_space<smem>>) -> (i32, i32, i32, i32) {
    %c0_i32 = arith.constant 0 : i32
    %c0_i32_0 = arith.constant 0 : i32
    %c0_i32_1 = arith.constant 0 : i32
    %c0_i32_2 = arith.constant 0 : i32
    return %arg0, %c0_i32, %c0_i32_0, %c0_i32_1 : i32, i32, i32, i32
  }
  func.func @transform_11(%arg0: i32, %arg1: memref<7xf32, #tpu.memory_space<smem>>) -> (i32, i32, i32, i32) {
    %c0_i32 = arith.constant 0 : i32
    %c0_i32_0 = arith.constant 0 : i32
    %c0_i32_1 = arith.constant 0 : i32
    %c0_i32_2 = arith.constant 0 : i32
    return %arg0, %c0_i32, %c0_i32_0, %c0_i32_1 : i32, i32, i32, i32
  }
  func.func @transform_12(%arg0: i32, %arg1: memref<7xf32, #tpu.memory_space<smem>>) -> (i32, i32, i32, i32) {
    %c0_i32 = arith.constant 0 : i32
    %c0_i32_0 = arith.constant 0 : i32
    %c0_i32_1 = arith.constant 0 : i32
    %c0_i32_2 = arith.constant 0 : i32
    return %arg0, %c0_i32, %c0_i32_0, %c0_i32_1 : i32, i32, i32, i32
  }
  func.func @transform_13(%arg0: i32, %arg1: memref<7xf32, #tpu.memory_space<smem>>) -> (i32, i32, i32, i32) {
    %c0_i32 = arith.constant 0 : i32
    %c0_i32_0 = arith.constant 0 : i32
    %c0_i32_1 = arith.constant 0 : i32
    %c0_i32_2 = arith.constant 0 : i32
    return %arg0, %c0_i32, %c0_i32_0, %c0_i32_1 : i32, i32, i32, i32
  }
  func.func @transform_14(%arg0: i32, %arg1: memref<7xf32, #tpu.memory_space<smem>>) -> (i32, i32, i32, i32) {
    %c0_i32 = arith.constant 0 : i32
    %c0_i32_0 = arith.constant 0 : i32
    %c0_i32_1 = arith.constant 0 : i32
    %c0_i32_2 = arith.constant 0 : i32
    return %arg0, %c0_i32, %c0_i32_0, %c0_i32_1 : i32, i32, i32, i32
  }
}

</mosaic_0001>

<bundles_post_ra>
// kernel: tpu_custom_call.1
= control target key start
LH: loop header
LB: loop body
LE: loop exit
PB: predicated region body
PF: predicated region fallthrough
CT: control target
= control target key end

     0   :  { %s14873_s0 = inlined_call_operand.vmem [shape: f32[7], index: 0, kind: input, shape index: {}]   ;;  %s14874_s1 = inlined_call_operand.vmem [shape: bf16[2,16,16,16], index: 1, kind: input, shape index: {}]   ;;  %s14875_s2 = inlined_call_operand.hbm [shape: f32[2,16,16,32], index: 2, kind: input, shape index: {}, may-alias: {2,12}]   ;;  %s14876_s3 = inlined_call_operand.hbm [shape: f32[2,16,16,32], index: 3, kind: input, shape index: {}, may-alias: {3,13}]   ;;  %s14877_s4 = inlined_call_operand.hbm [shape: f32[2,16,16,32], index: 4, kind: input, shape index: {}, may-alias: {4,14}]   ;;  %s14878_s5 = inlined_call_operand.hbm [shape: f32[2,16,16,32], index: 5, kind: input, shape index: {}, may-alias: {5,15}]   ;;  %s14879_s6 = inlined_call_operand.vmem [shape: bf16[2,16,16,32], index: 6, kind: input, shape index: {}]   ;;  %s14880_s7 = inlined_call_operand.vmem [shape: bf16[144,64], index: 7, kind: input, shape index: {}]   ;;  %s14881_s8 = inlined_call_operand.vmem [shape: bf16[288,32], index: 8, kind: input, shape index: {}]   ;;  %s14882_s9 = inlined_call_operand.vmem [shape: f32[2,32], index: 9, kind: input, shape index: {}]   ;;  %s14883_s10 = inlined_call_operand.vmem [shape: f32[2,32], index: 10, kind: input, shape index: {}]   ;;  %s14884_s11 = inlined_call_operand.hbm [shape: bf16[2,16,16,32], index: 11, kind: output, shape index: {0}]   ;;  %s14885_s12 = inlined_call_operand.hbm [shape: f32[2,16,16,32], index: 12, kind: output, shape index: {1}, may-alias: {2,12}]   ;;  %s14886_s13 = inlined_call_operand.hbm [shape: f32[2,16,16,32], index: 13, kind: output, shape index: {2}, may-alias: {3,13}]   ;;  %s14887_s14 = inlined_call_operand.hbm [shape: f32[2,16,16,32], index: 14, kind: output, shape index: {3}, may-alias: {4,14}]   ;;  %s14888_s15 = inlined_call_operand.hbm [shape: f32[2,16,16,32], index: 15, kind: output, shape index: {4}, may-alias: {5,15}]  }
   0x1   :  { %15291 = sst [smem:[#allocation232_spill]] %s14874_s1  ;;  %s21_s20 = sshll.u32 %s14873_s0, 4  ;;  %s22_s20 = int_to_ptr.vmem [resolvable:$true] %s21_s20 }
   0x2   :  { %15292 = sst [smem:[#allocation233_spill]] %s14875_s2  ;;  %s8807_s21 = scalar_lea.vmem %s22_s20, 16 }
   0x3   :  { %15293 = sst [smem:[#allocation234_spill]] %s14876_s3  ;;  %p8808_p0 = scmp.ne.s32.totalorder %s22_s20, %s8807_s21 }
   0x4   :  { %15294 = sst [smem:[#allocation235_spill]] %s14877_s4  ;;  %p8812_p1 = scmp.lt.s32.totalorder %s22_s20, %s22_s20 }
   0x5   :  { %15295 = sst [smem:[#allocation236_spill]] %s14878_s5  ;;  %p8813_p2 = scmp.lt.s32.totalorder %s8807_s21, %s8807_s21 }
   0x6   :  { %15296 = sst [smem:[#allocation237_spill]] %s14879_s6 }
   0x7   :  { %15297 = sst [smem:[#allocation238_spill]] %s14880_s7  ;;  %p8814_p3 = por %p8813_p2, %p8812_p1 }
   0x8   :  { %15298 = sst [smem:[#allocation239_spill]] %s14883_s10 }
   0x9   :  { %15299 = sst [smem:[#allocation240_spill]] %s14884_s11  ;;  %p8815_p4 = pnand %p8814_p3, %p8808_p0 }
   0xa   :  { %15300 = sst [smem:[#allocation241_spill]] %s14885_s12 }
   0xb   :  { %15301 = sst [smem:[#allocation242_spill]] %s14886_s13 }
   0xc   :  { %15302 = sst [smem:[#allocation243_spill]] %s14887_s14 }
   0xd   :  { %15303 = sst [smem:[#allocation244_spill]] %s14888_s15 }
   0xe   :  { %8818 = shalt.err (!%p8815_p4)  }
   0xf   :  { %s9119_s22 = smov [#allocation3]  }
  0x10   :  { %24 = dma.vmem_to_smem %s22_s20, 16, %s9119_s22, [#allocation2] }
  0x11   :  { %9077 = dma.done.wait [#allocation2], 16 }
  0x12   :  { %9078 = vsyncadd [#allocation2], 4294967280 }
  0x13   :  { %26 = sfence }
  0x14   :  { %27 = vsyncpa [#allocation5], 0 }
  0x15   :  { %29 = vsyncpa [#allocation5 + $0x1], 0 }
  0x16   :  { %30 = vsyncpa [#allocation8], 0 }
  0x17   :  { %32 = vsyncpa [#allocation8 + $0x1], 0 }
  0x18   :  { %33 = vsyncpa [#allocation11], 0 }
  0x19   :  { %35 = vsyncpa [#allocation11 + $0x1], 0 }
  0x1a   :  { %36 = vsyncpa [#allocation6], 0 }
  0x1b   :  { %38 = vsyncpa [#allocation6 + $0x1], 0 }
  0x1c   :  { %39 = vsyncpa [#allocation14], 0 }
  0x1d   :  { %41 = vsyncpa [#allocation14 + $0x1], 0 }
  0x1e   :  { %42 = vsyncpa [#allocation17], 0 }
  0x1f   :  { %44 = vsyncpa [#allocation17 + $0x1], 0  ;;  %s9227_s0 = smov 0   ;;  %s9229_s23 = smov 0  }
  0x20   :  { %s9231_s24 = smov 0   ;;  %s9233_s25 = smov 0  }
  0x21 LB: > { %15304 = sst [smem:[#allocation26_spill]] %s9105_s0  ;;  %s9248_s26 = sadd.s32 4294967295, %s9117_s25   ;;  %s9117_s25 = sphi %s9233_s25, %s16194_s25   ;;  %s9113_s24 = sphi %s9231_s24, %s16196_s24   ;;  %s9109_s23 = sphi %s9229_s23, %s16198_s23   ;;  %s9105_s0 = sphi %s9227_s0, %s16197_s0  }
  0x22   : > { %15305 = sst [smem:[#allocation27_spill]] %s9113_s24  ;;  %s14889_s27 = sadd.s32 4294967294, %s9117_s25  }
  0x23   : > { %15306 = sst [smem:[#allocation28_spill]] %s9117_s25  ;;  %s9252_s28 = sadd.s32 1, %s9117_s25  }
  0x24   : > { %15307 = sst [smem:[#allocation29_spill]] %s9252_s28  ;;  %s83_s29 = sadd.s32 1, %s9113_s24 }
  0x25   : > { %s80_s30 = ssub.s32 %s9117_s25, %s9252_s28  ;;  %p90_p5 = scmp.ne.s32.totalorder %s9113_s24, %s9109_s23 }
  0x26   : > { %p81_p6 = scmp.eq.s32.totalorder %s80_s30, 0  ;;  %p91_p7 = scmp.eq.s32.totalorder %s9117_s25, 0 }
  0x27   : > { %p96_p8 = scmp.ne.s32.totalorder %s9109_s23, %s9105_s0  ;;  %p97_p9 = scmp.eq.s32.totalorder %s9248_s26, 0 }
  0x28   : > { %s9264_s16 = scalar_select %p81_p6, %s9113_s24, %s83_s29  }
  0x29   : > { %p92_p10 = por %p91_p7, %p90_p5  ;;  %p9266_p11 = por %p97_p9, %p96_p8 }
  0x2a   : > { %15308 = sst [smem:[#allocation30_spill]] %s9264_s16  ;;  %p308_p12 = scmp.eq.s32.totalorder %s9248_s26, 1 }
  0x2b   : > { %s15309_s17 = scalar_select %p9266_p11, 1, 0 }
  0x2c   : > { %p314_p13 = scmp.eq.s32.totalorder %s14889_s27, 1  ;;  %p7638_p1 = scmp.lt.s32.totalorder %s9117_s25, 2 }
  0x2d   : > { %p9275_p2 = por %p308_p12, %p90_p5  ;;  %s9284_s20 = sand.u32 1, %s9113_s24  }
  0x2e   : > { %p9279_p3 = por %p314_p13, %p96_p8  ;;  %s9287_s21 = sshll.u32 %s9117_s25, 12 }
  0x2f   : > { %s15310_s18 = scalar_select %p9275_p2, 1, 0 }
  0x30   : > { %s15312_s19 = scalar_select %p9279_p3, 1, 0 }
  0x31   : > { %15311 = sst [smem:[#allocation31_spill]] %s15310_s18  ;;  %s9290_s22 = sshll.u32 %s9284_s20, 8 }
  0x32   : > { %15313 = sst [smem:[#allocation32_spill]] %s15312_s19  ;;  %p9292_p4 = pnand %p7638_p1, %p92_p10 }
  0x33   : > { %s479_s30 = sand.u32 1, %s9117_s25   ;;  %s15315_s3 = sld [smem:[#allocation234_spill]] }
  0x34   : > { %s483_s24 = scalar_lea.vmem [#allocation7], %s9290_s22  ;;  %s9307_s0 = scalar_lea.sflag [#allocation8], %s479_s30 }
  0x35   : > { %s490_s19 = sshll.u32 %s483_s24, 4  ;;  %p9313_p7 = pneg %p9292_p4  ;;  %s9304_s19 = int_to_ptr.vmem [resolvable:$true] %s490_s19 }
  0x39   : > { %s9301_s28 = scalar_lea.hbm %s15315_s3, %s9287_s21  ;;  %s8824_s24 = scalar_lea.hbm %s15315_s3, 8192 }
  0x3a   : > { %s8819_s13 = scalar_lea.hbm %s9301_s28, 4096  ;;  %p8825_p10 = scmp.lt.s32.totalorder %s9301_s28, %s15315_s3 }
  0x3b   : > { %p8820_p6 = scmp.ne.s32.totalorder %s9301_s28, %s8819_s13  ;;  %p8826_p12 = scmp.lt.s32.totalorder %s8824_s24, %s8819_s13 }
  0x3d   : > { %p8822_p8 = pnand %p9313_p7, %p8820_p6  ;;  %p8827_p13 = por %p8826_p12, %p8825_p10 }
  0x3f   : > { %p8823_p9 = pneg %p8822_p8 }
  0x41   : > { %p8828_p1 = pnand %p8827_p13, %p8823_p9 }
  0x43   : > { %8831 = shalt.err (!%p8828_p1)
}
  0x44   : > { %s8832_s30 = scalar_lea.vmem %s9304_s19, 4096  ;;  %s9120_s14 = smov [#allocation7]  }
  0x45   : > { %p8833_p0 = scmp.ne.s32.totalorder %s9304_s19, %s8832_s30  ;;  %s8837_s27 = sshll.u32 %s9120_s14, 4  ;;  %s8838_s27 = int_to_ptr.vmem [resolvable:$false] %s8837_s27 }
  0x46   : > { %s8839_s16 = scalar_lea.vmem %s8838_s27, 8192  ;;  %p8840_p5 = scmp.lt.s32.totalorder %s9304_s19, %s8838_s27 }
  0x47   : > { %p8835_p6 = pnand %p8833_p0, %p9313_p7  ;;  %p8841_p3 = scmp.lt.s32.totalorder %s8839_s16, %s8832_s30 }
  0x49   : > { %p8836_p8 = pneg %p8835_p6  ;;  %p8842_p2 = por %p8841_p3, %p8840_p5 }
  0x4b   : > { %p8843_p11 = pnand %p8842_p2, %p8836_p8 }
  0x4d   : > { %8846 = shalt.err (!%p8843_p11)
}
  0x4e   : > { %s14901_s11 = smov 128   ;;  %s14903_s13 = smov 8  }
  0x4f   : > { %7615 = dma.hbm_to_vmem [thread:$0]  (!%p9292_p4), %s9301_s28, 4096, %s9304_s19, %s9307_s0, %s14901_s11, %s14901_s11, %s14903_s13  }
  0x50   : > { %p548_p0 = scmp.lt.s32.totalorder %s9117_s25, 3  ;;  %s15317_s2 = sld [smem:[#allocation233_spill]] }
  0x51   : > { %p15318_p11 = scmp.ge.s32.totalorder %s9117_s25, 1  ;;  %s462_s27 = scalar_lea.vmem [#allocation4], %s9290_s22 }
  0x52   : > { %s469_s16 = sshll.u32 %s462_s27, 4  ;;  %s459_s3 = scalar_lea.sflag [#allocation5], %s9284_s20  ;;  %s9353_s16 = int_to_ptr.vmem [resolvable:$true] %s469_s16 }
  0x53   : > { %p9348_p2 = pnand %p15318_p11, %p548_p0 }
  0x55   : > { %s15319_s30 = scalar_select %p9348_p2, 1, 0 }
  0x56   : > { %s9344_s24 = scalar_lea.hbm %s15317_s2, %s9287_s21  ;;  %s8852_s15 = scalar_lea.hbm %s15317_s2, 8192 }
  0x57   : > { %s8847_s28 = scalar_lea.hbm %s9344_s24, 4096  ;;  %p8853_p10 = scmp.lt.s32.totalorder %s9344_s24, %s15317_s2 }
  0x58   : > { %p8848_p3 = scmp.ne.s32.totalorder %s9344_s24, %s8847_s28  ;;  %p8854_p12 = scmp.lt.s32.totalorder %s8852_s15, %s8847_s28 }
  0x5a   : > { %p8850_p5 = pnand %p8848_p3, %p9313_p7  ;;  %p8855_p13 = por %p8854_p12, %p8853_p10 }
  0x5c   : > { %p8851_p9 = pneg %p8850_p5 }
  0x5e   : > { %p8856_p1 = pnand %p8855_p13, %p8851_p9 }
  0x60   : > { %8859 = shalt.err (!%p8856_p1)
}
  0x61   : > { %s8860_s27 = scalar_lea.vmem %s9353_s16, 4096  ;;  %s9123_s25 = smov [#allocation4]  }
  0x62   : > { %p8861_p6 = scmp.ne.s32.totalorder %s9353_s16, %s8860_s27  ;;  %s8865_s19 = sshll.u32 %s9123_s25, 4  ;;  %s8866_s19 = int_to_ptr.vmem [resolvable:$false] %s8865_s19 }
  0x63   : > { %s8867_s14 = scalar_lea.vmem %s8866_s19, 8192  ;;  %p8868_p11 = scmp.lt.s32.totalorder %s9353_s16, %s8866_s19 }
  0x64   : > { %p8863_p8 = pnand %p8861_p6, %p9313_p7  ;;  %p8869_p3 = scmp.lt.s32.totalorder %s8867_s14, %s8860_s27 }
  0x66   : > { %p8864_p0 = pneg %p8863_p8  ;;  %p8870_p5 = por %p8869_p3, %p8868_p11 }
  0x68   : > { %p8871_p2 = pnand %p8870_p5, %p8864_p0 }
  0x6a   : > { %8874 = shalt.err (!%p8871_p2)
}
  0x6b   : > { %s15320_s11 = smov 8   ;;  %s15321_s13 = smov 128  }
  0x6c   : > { %7612 = dma.hbm_to_vmem [thread:$0]  (!%p9292_p4), %s9344_s24, 4096, %s9353_s16, %s459_s3, %s15321_s13, %s15321_s13, %s15320_s11  }
  0x6d   : > { %s15322_s4 = sld [smem:[#allocation235_spill]]  ;;  %s504_s27 = scalar_lea.vmem [#allocation9], %s9290_s22 }
  0x6e   : > { %s511_s19 = sshll.u32 %s504_s27, 4  ;;  %s512_s19 = int_to_ptr.vmem [resolvable:$true] %s511_s19 }
  0x73   : > { %s9383_s15 = scalar_lea.hbm %s15322_s4, %s9287_s21  ;;  %s8880_s3 = scalar_lea.hbm %s15322_s4, 8192 }
  0x74   : > { %s8875_s14 = scalar_lea.hbm %s9383_s15, 4096  ;;  %p8881_p12 = scmp.lt.s32.totalorder %s9383_s15, %s15322_s4 }
  0x75   : > { %p8876_p2 = scmp.ne.s32.totalorder %s9383_s15, %s8875_s14  ;;  %p8882_p13 = scmp.lt.s32.totalorder %s8880_s3, %s8875_s14 }
  0x77   : > { %p8878_p9 = pnand %p8876_p2, %p9313_p7  ;;  %p8883_p1 = por %p8882_p13, %p8881_p12 }
  0x79   : > { %p8879_p10 = pneg %p8878_p9 }
  0x7b   : > { %p8884_p6 = pnand %p8883_p1, %p8879_p10 }
  0x7d   : > { %8887 = shalt.err (!%p8884_p6)
}
  0x7e   : > { %s8888_s28 = scalar_lea.vmem %s512_s19, 4096  ;;  %s9124_s25 = smov [#allocation9]  }
  0x7f   : > { %p8889_p8 = scmp.ne.s32.totalorder %s512_s19, %s8888_s28  ;;  %s8893_s27 = sshll.u32 %s9124_s25, 4  ;;  %s8894_s27 = int_to_ptr.vmem [resolvable:$false] %s8893_s27 }
  0x80   : > { %s8895_s12 = scalar_lea.vmem %s8894_s27, 8192  ;;  %p8896_p3 = scmp.lt.s32.totalorder %s512_s19, %s8894_s27 }
  0x81   : > { %p8891_p0 = pnand %p8889_p8, %p9313_p7  ;;  %p8897_p5 = scmp.lt.s32.totalorder %s8895_s12, %s8888_s28 }
  0x83   : > { %p8892_p11 = pneg %p8891_p0  ;;  %p8898_p2 = por %p8897_p5, %p8896_p3 }
  0x85   : > { %p8899_p9 = pnand %p8898_p2, %p8892_p11 }
  0x87   : > { %8902 = shalt.err (!%p8899_p9)
}
  0x88   : > { %7618 = dma.hbm_to_vmem [thread:$0]  (!%p9292_p4), %s9383_s15, 4096, %s512_s19, %s9307_s0, %s15321_s13, %s15321_s13, %s15320_s11  }
  0x89   : > { %s15323_s5 = sld [smem:[#allocation236_spill]]  ;;  %s525_s12 = scalar_lea.vmem [#allocation10], %s9290_s22 }
  0x8a   : > { %s532_s3 = sshll.u32 %s525_s12, 4  ;;  %s522_s24 = scalar_lea.sflag [#allocation11], %s9284_s20  ;;  %s9413_s3 = int_to_ptr.vmem [resolvable:$true] %s532_s3 }
  0x8f   : > { %s9410_s14 = scalar_lea.hbm %s15323_s5, %s9287_s21  ;;  %s8908_s15 = scalar_lea.hbm %s15323_s5, 8192 }
  0x90   : > { %s8903_s16 = scalar_lea.hbm %s9410_s14, 4096  ;;  %p8909_p1 = scmp.lt.s32.totalorder %s9410_s14, %s15323_s5 }
  0x91   : > { %p8904_p10 = scmp.ne.s32.totalorder %s9410_s14, %s8903_s16  ;;  %p8910_p6 = scmp.lt.s32.totalorder %s8908_s15, %s8903_s16 }
  0x93   : > { %p8906_p12 = pnand %p8904_p10, %p9313_p7  ;;  %p8911_p8 = por %p8910_p6, %p8909_p1 }
  0x95   : > { %p8907_p13 = pneg %p8906_p12 }
  0x97   : > { %p8912_p0 = pnand %p8911_p8, %p8907_p13 }
  0x99   : > { %8915 = shalt.err (!%p8912_p0)
}
  0x9a   : > { %s8916_s20 = scalar_lea.vmem %s9413_s3, 4096  ;;  %s9125_s22 = smov [#allocation10]  }
  0x9b   : > { %p8917_p11 = scmp.ne.s32.totalorder %s9413_s3, %s8916_s20  ;;  %s8921_s25 = sshll.u32 %s9125_s22, 4  ;;  %s8922_s25 = int_to_ptr.vmem [resolvable:$false] %s8921_s25 }
  0x9c   : > { %s8923_s27 = scalar_lea.vmem %s8922_s25, 8192  ;;  %p8924_p2 = scmp.lt.s32.totalorder %s9413_s3, %s8922_s25 }
  0x9d   : > { %p8919_p3 = pnand %p8917_p11, %p9313_p7  ;;  %p8925_p9 = scmp.lt.s32.totalorder %s8923_s27, %s8916_s20 }
  0x9f   : > { %p8920_p5 = pneg %p8919_p3  ;;  %p8926_p10 = por %p8925_p9, %p8924_p2 }
  0xa1   : > { %p8927_p12 = pnand %p8926_p10, %p8920_p5 }
  0xa3   : > { %8930 = shalt.err (!%p8927_p12)
}
  0xa4   : > { %7621 = dma.hbm_to_vmem [thread:$0]  (!%p9292_p4), %s9410_s14, 4096, %s9413_s3, %s522_s24, %s15321_s13, %s15321_s13, %s15320_s11  }
  0xa5   : > { %p15324_p7 = scmp.ne.s32.totalorder %s15319_s30, 0 }
  0xa7   : > { %552 = sbr.rel (%p15324_p7) target bundleno = 1254 (0x4e6), region = 60 }
  0xac   : > { %s9442_s10 = sand.u32 1, %s9109_s23   ;;  %p15325_p13 = scmp.ne.s32.totalorder %s15309_s17, 0 }
  0xad   : > { %s9445_s2 = sshll.u32 %s9442_s10, 8  ;;  %s555_s18 = scalar_lea.sflag [#allocation5], %s9442_s10 }
  0xae   : > { %s9449_s29 = scalar_lea.vmem [#allocation4], %s9445_s2 }
  0xaf   : > { %9080 = dma.done.wait (%p15325_p13), %s555_s18, 4096  }
  0xb0   : > { %9082 = vsyncadd (%p15325_p13), %s555_s18, 4294963200  ;;  %s9456_s30 = sand.u32 1, %s9248_s26   ;;  %s9460_s13 = scalar_lea.vmem [#allocation7], %s9445_s2 }
  0xb1   : > { %s564_s11 = scalar_lea.sflag [#allocation8], %s9456_s30 }
  0xb2   : > { %9084 = dma.done.wait (%p15325_p13), %s564_s11, 8192  }
  0xb3   : > { %9086 = vsyncadd (%p15325_p13), %s564_s11, 4294959104  ;;  %s9467_s14 = scalar_lea.vmem [#allocation9], %s9445_s2  ;;  %s582_s12 = scalar_lea.sflag [#allocation11], %s9442_s10 }
  0xb4   : > { %s9471_s3 = scalar_lea.vmem [#allocation10], %s9445_s2 }
  0xb5   : > { %9088 = dma.done.wait (%p15325_p13), %s582_s12, 4096  }
  0xb6   : > { %9090 = vsyncadd (%p15325_p13), %s582_s12, 4294963200  ;;  %p675_p4 = scmp.lt.s32.totalorder %s9248_s26, 1  ;;  %v14910_v0 = vmov 0.0   ;;  %s9127_s16 = smov 16   ;;  %v693_v33 = vlaneseq  ;;  %vm2693_vm5 = vcmask 261120  }
  0xb7   : > { %7689 = vrot.lane.b32.xlu0 %v14910_v0, %s9127_s16  ;;  %s15326_s1 = sld [smem:[#allocation232_spill]]  ;;  %s9128_s17 = smov 32  }
  0xb8   : > { %s9479_s24 = scalar_select %p675_p4, %s9248_s26, 1  ;;  %v9588_v43 = vshrl.u32 %v693_v33, 7 }
  0xb9   : > { %s9986_s21 = sld [smem:[#allocation3]]  ;;  %s9129_s22 = smov 48  }
  0xba   : > { %s7212_s28 = sshll.u32 %s9479_s24, 7  ;;  %v9612_v51 = vadd.s32 8, %v9588_v43  ;;  %vm1145_vm0 = vcmp.lt.s32.totalorder %v9588_v43, 7  ;;  %vm822_vm2 = vcmp.lt.s32.totalorder %v9588_v43, 1  ;;  %vm887_vm3 = vcmp.ge.s32.totalorder %v9588_v43, 1  ;;  %s10030_s20 = sld [smem:[#allocation3 + $0x6]] }
  0xbb   : > { %s10169_s25 = scalar_lea.vmem [#allocation16], %s9445_s2  ;;  %s15283_s27 = smov 64  }
  0xbc   : > { %vm1179_vm1 = vcmp.le.s32.totalorder %v9612_v51, 14  ;;  %s15428_s7 = sld [smem:[#allocation238_spill]]  ;;  %s9133_s15 = smov 96  }
  0xbd   : > { %s9489_s19 = scalar_lea.vmem %s15326_s1, %s7212_s28  ;;  %s15457_s6 = sld [smem:[#allocation237_spill]] }
  0xbe   : > { %v7379_v1 = vld [vmem:[%s9489_s19 + $0x8] sm:$0xff]   ;;  %v7252_v2 = vld [vmem:[%s9489_s19] sm:$0xff]   ;;  %v7380_v3 = vld [vmem:[%s9489_s19 + $0x10] sm:$0xff]   ;;  %s12989_s24 = scalar_lea.vmem [#allocation13], %s9445_s2 }
  0xbf   : > { %v9494_v4 = vunpack.c.l.bf16 %v7379_v1  ;;  %v9496_v5 = vunpack.c.h.bf16 %v7379_v1  ;;  %v9498_v6 = vunpack.c.l.bf16 %v7252_v2  ;;  %v9500_v7 = vunpack.c.h.bf16 %v7252_v2  ;;  %v7381_v8 = vld [vmem:[%s9489_s19 + $0x18] sm:$0xff]   ;;  %v7382_v9 = vld [vmem:[%s9489_s19 + $0x20] sm:$0xff]   ;;  %v7383_v14 = vld [vmem:[%s9489_s19 + $0x28] sm:$0xff]  }
  0xc0   : > { %v9504_v10 = vunpack.c.l.bf16 %v7380_v3  ;;  %v9506_v11 = vunpack.c.h.bf16 %v7380_v3  ;;  %v9508_v12 = vunpack.c.l.bf16 %v7381_v8  ;;  %v9510_v13 = vunpack.c.h.bf16 %v7381_v8  ;;  %v7384_v19 = vld [vmem:[%s9489_s19 + $0x30] sm:$0xff]   ;;  %v7385_v24 = vld [vmem:[%s9489_s19 + $0x38] sm:$0xff]   ;;  %v7386_v25 = vld [vmem:[%s9489_s19 + $0x40] sm:$0xff]  }
  0xc1   : > { %15327 = vst [vmem:[#allocation33_spill] sm:$0xff] %v9498_v6  ;;  %v9515_v15 = vpack.i.bf16 %v9496_v5, %v9494_v4  ;;  %v9519_v16 = vpack.i.bf16 %v9500_v7, %v9498_v6  ;;  %v9521_v17 = vunpack.c.l.bf16 %v7382_v9  ;;  %v9523_v18 = vunpack.c.h.bf16 %v7382_v9  ;;  %v7387_v28 = vld [vmem:[%s9489_s19 + $0x48] sm:$0xff]   ;;  %v7388_v40 = vld [vmem:[%s9489_s19 + $0x50] sm:$0xff]   ;;  %v7389_v41 = vld [vmem:[%s9489_s19 + $0x58] sm:$0xff]  }
  0xc2   : > { %v9532_v20 = vpack.i.bf16 %v9506_v11, %v9504_v10  ;;  %v9536_v21 = vpack.i.bf16 %v9510_v13, %v9508_v12  ;;  %v9538_v22 = vunpack.c.l.bf16 %v7383_v14  ;;  %v9540_v23 = vunpack.c.h.bf16 %v7383_v14  ;;  %v7390_v42 = vld [vmem:[%s9489_s19 + $0x60] sm:$0xff]   ;;  %v7391_v46 = vld [vmem:[%s9489_s19 + $0x68] sm:$0xff]   ;;  %v7392_v56 = vld [vmem:[%s9489_s19 + $0x70] sm:$0xff]  }
  0xc3   : > { %7699 = vrot.lane.b32.xlu1 %v9515_v15, %s9127_s16  ;;  %7694 = vrot.lane.b32.xlu0 %v9519_v16, %s9127_s16  ;;  %v9546_v26 = vpack.i.bf16 %v9523_v18, %v9521_v17  ;;  %v9548_v27 = vunpack.c.l.bf16 %v7384_v19  ;;  %v9559_v30 = vunpack.c.h.bf16 %v7384_v19  ;;  %v9561_v31 = vunpack.c.l.bf16 %v7385_v24  ;;  %s10557_s12 = scalar_lea.vmem %s15457_s6, %s7212_s28  ;;  %s6967_s28 = sld [smem:[#allocation3 + $0x1]] }
  0xc4   : > { %v9557_v29 = vpack.i.bf16 %v9540_v23, %v9538_v22  ;;  %v9563_v32 = vunpack.c.h.bf16 %v7385_v24  ;;  %v9565_v34 = vunpack.c.l.bf16 %v7386_v25  ;;  %v9567_v35 = vunpack.c.h.bf16 %v7386_v25 }
  0xc5   : > { %v9575_v36 = vpack.i.bf16 %v9559_v30, %v9548_v27  ;;  %v9581_v38 = vunpack.c.l.bf16 %v7387_v28  ;;  %v9583_v39 = vunpack.c.h.bf16 %v7387_v28  ;;  %v9590_v44 = vunpack.c.l.bf16 %v7388_v40 }
  0xc6   : > { %v9579_v37 = vpack.i.bf16 %v9563_v32, %v9561_v31  ;;  %v9592_v45 = vunpack.c.h.bf16 %v7388_v40  ;;  %v9601_v47 = vpack.i.bf16 %v9567_v35, %v9565_v34  ;;  %v9607_v49 = vunpack.c.l.bf16 %v7389_v41 }
  0xc7   : > { %7704 = vrot.lane.b32.xlu1 %v9532_v20, %s9127_s16  ;;  %7709 = vrot.lane.b32.xlu0 %v9536_v21, %s9127_s16  ;;  %v9605_v48 = vpack.i.bf16 %v9583_v39, %v9581_v38  ;;  %v9609_v50 = vunpack.c.h.bf16 %v7389_v41  ;;  %v9619_v53 = vunpack.c.l.bf16 %v7390_v42  ;;  %v9621_v54 = vunpack.c.h.bf16 %v7390_v42 }
  0xc8   : > { %15328 = vst [vmem:[#allocation34_spill] sm:$0xff] %v9579_v37  ;;  %15329 = vst [vmem:[#allocation35_spill] sm:$0xff] %v9601_v47  ;;  %v9617_v52 = vpack.i.bf16 %v9592_v45, %v9590_v44  ;;  %v9623_v55 = vunpack.c.l.bf16 %v7391_v46  ;;  %v9634_v58 = vunpack.c.h.bf16 %v7391_v46  ;;  %v1116_v59 = vrot.slane %v9496_v5, 1 }
  0xc9   : > { %15330 = vst [vmem:[#allocation36_spill] sm:$0xff] %v9605_v48  ;;  %v9632_v57 = vpack.i.bf16 %v9609_v50, %v9607_v49  ;;  %v1117_v60 = vrot.slane %v9504_v10, 1  ;;  %v1115_v61 = vrot.slane %v9494_v4, 1  ;;  %v1114_v62 = vrot.slane %v9500_v7, 1 }
  0xca   : > { %15331 = vst [vmem:[#allocation37_spill] sm:$0xff] %v9617_v52  ;;  %v9640_v63 = vunpack.c.l.bf16 %v7392_v56  ;;  %v14916_v1 = vrot.slane %v9498_v6, 1  ;;  %v9646_v2 = vpack.i.bf16 %v9621_v54, %v9619_v53  ;;  %v9648_v3 = vunpack.c.h.bf16 %v7392_v56 }
  0xcb   : > { %7714 = vrot.lane.b32.xlu1 %v9546_v26, %s9127_s16  ;;  %7719 = vrot.lane.b32.xlu0 %v9557_v29, %s9127_s16  ;;  %15332 = vst [vmem:[#allocation38_spill] sm:$0xff] %v9632_v57  ;;  %v1119_v8 = vrot.slane %v9508_v12, 1  ;;  %v1120_v9 = vrot.slane %v9510_v13, 1  ;;  %v9658_v14 = vpack.i.bf16 %v9634_v58, %v9623_v55  ;;  %v1173_v19 = vsel %vm1145_vm0, %v1116_v59, %v1117_v60 }
  0xcc   : > { %15333 = vst [vmem:[#allocation39_spill] sm:$0xff] %v9646_v2  ;;  %v1121_v24 = vrot.slane %v9521_v17, 1  ;;  %v1118_v25 = vrot.slane %v9506_v11, 1  ;;  %v1175_v28 = vsel %vm1145_vm0, %v1114_v62, %v1115_v61  ;;  %v9668_v33 = vpack.i.bf16 %v9648_v3, %v9640_v63 }
  0xcd   : > { %15334 = vst [vmem:[#allocation40_spill] sm:$0xff] %v9658_v14  ;;  %v9672_v40 = vsel %vm1145_vm0, %v1115_v61, %v1116_v59  ;;  %v9676_v41 = vsel %vm1179_vm1, %v1173_v19, 0.0  ;;  %v1176_v42 = vsel %vm1145_vm0, %v14916_v1, %v1114_v62  ;;  %v1279_v46 = vsel %vm1179_vm1, %v1175_v28, 0.0 }
  0xce   : > { %15335 = vst [vmem:[#allocation41_spill] sm:$0xff] %v9668_v33  ;;  %15336 = vst [vmem:[#allocation42_spill] sm:$0xff] %v9672_v40  ;;  %v1169_v56 = vsel %vm1145_vm0, %v1120_v9, %v1121_v24  ;;  %v1171_v59 = vsel %vm1145_vm0, %v1118_v25, %v1119_v8  ;;  %v1123_v61 = vrot.slane %v9538_v22, 1  ;;  %v1124_v19 = vrot.slane %v9540_v23, 1 }
  0xcf   : > { %7724 = vrot.lane.b32.xlu1 %v9575_v36, %s9127_s16  ;;  %7729 = vrot.lane.b32.xlu0 %v9579_v37, %s9127_s16  ;;  %15337 = vst [vmem:[#allocation43_spill] sm:$0xff] %v9676_v41  ;;  %v1125_v0 = vrot.slane %v9548_v27, 1  ;;  %v1129_v62 = vrot.slane %v9565_v34, 1  ;;  %v9700_v28 = vsel %vm1145_vm0, %v1119_v8, %v1120_v9  ;;  %v9704_v1 = vsel %vm1179_vm1, %v1169_v56, 0.0 }
  0xd0   : > { %15338 = vst [vmem:[#allocation44_spill] sm:$0xff] %v9700_v28  ;;  %15339 = vst [vmem:[#allocation45_spill] sm:$0xff] %v9704_v1  ;;  %v9716_v8 = vpack.i.bf16 %v1279_v46, %v1176_v42  ;;  %v9720_v9 = vsel %vm1145_vm0, %v1117_v60, %v1118_v25  ;;  %v9724_v56 = vsel %vm1179_vm1, %v1171_v59, 0.0  ;;  %v1132_v46 = vrot.slane %v9583_v39, 1 }
  0xd1   : > { %15343 = vst [vmem:[#allocation48_spill] sm:$0xff] %v9720_v9  ;;  %15344 = vst [vmem:[#allocation49_spill] sm:$0xff] %v9724_v56  ;;  %v9738_v60 = vpack.i.bf16 %v9724_v56, %v9720_v9  ;;  %v1133_v59 = vrot.slane %v9590_v44, 1  ;;  %v1131_v9 = vrot.slane %v9581_v38, 1 }
  0xd2   : > { %15342 = vst [vmem:[#allocation47_spill] sm:$0xff] %v9716_v8 }
  0xd3   : > { %7734 = vrot.lane.b32.xlu1 %v9601_v47, %s9127_s16  ;;  %7739 = vrot.lane.b32.xlu0 %v9605_v48, %s9127_s16  ;;  %v15340_v48 = vmov 0.0   ;;  %v9714_v47 = vpack.i.bf16 %v9676_v41, %v9672_v40  ;;  %15346 = vst [vmem:[#allocation51_spill] sm:$0xff] %v9738_v60 }
  0xd5   : > { %15341 = vst [vmem:[#allocation46_spill] sm:$0xff] %v9714_v47 }
  0xd7   : > { %7744 = vrot.lane.b32.xlu1 %v9617_v52, %s9127_s16  ;;  %7749 = vrot.lane.b32.xlu0 %v9632_v57, %s9127_s16  ;;  %v1127_v57 = vrot.slane %v9561_v31, 1  ;;  %v1126_v52 = vrot.slane %v9559_v30, 1 }
  0xd9   : > { %v1163_v25 = vsel %vm1145_vm0, %v1126_v52, %v1127_v57 }
  0xdb   : > { %7754 = vrot.lane.b32.xlu1 %v9646_v2, %s9127_s16  ;;  %7759 = vrot.lane.b32.xlu0 %v9658_v14, %s9127_s16  ;;  %v1122_v14 = vrot.slane %v9523_v18, 1  ;;  %v1128_v2 = vrot.slane %v9563_v32, 1 }
  0xdd   : > { %v1167_v41 = vsel %vm1145_vm0, %v1122_v14, %v1123_v61  ;;  %v1161_v42 = vsel %vm1145_vm0, %v1128_v2, %v1129_v62  ;;  %v9758_v56 = vsel %vm1145_vm0, %v1121_v24, %v1122_v14  ;;  %v9777_v14 = vsel %vm1145_vm0, %v1125_v0, %v1126_v52 }
  0xde   : > { %15349 = vst [vmem:[#allocation54_spill] sm:$0xff] %v9758_v56  ;;  %v9763_v40 = vsel %vm1179_vm1, %v1167_v41, 0.0  ;;  %15353 = vst [vmem:[#allocation58_spill] sm:$0xff] %v9777_v14  ;;  %v9781_v24 = vsel %vm1179_vm1, %v1163_v25, 0.0  ;;  %v1157_v41 = vsel %vm1145_vm0, %v1132_v46, %v1133_v59 }
  0xdf   : > { %7764 = vrot.lane.b32.xlu1 %v9668_v33, %s9127_s16  ;;  %7769 = vrot.lane.b32.xlu0 %v15340_v48, %s9128_s17  ;;  %v1165_v33 = vsel %vm1145_vm0, %v1124_v19, %v1125_v0  ;;  %v9730_v48 = vpack.i.bf16 %v9704_v1, %v9700_v28  ;;  %v9750_v1 = vsel %vm1145_vm0, %v1123_v61, %v1124_v19  ;;  %v9771_v61 = vsel %vm1179_vm1, %v1161_v42, 0.0  ;;  %v7393_v19 = vld [vmem:[%s9489_s19 + $0x78] sm:$0xff]   ;;  %s9132_s19 = smov 80  }
  0xe0   : > { %15347 = vst [vmem:[#allocation52_spill] sm:$0xff] %v9750_v1  ;;  %v9754_v28 = vsel %vm1179_vm1, %v1165_v33, 0.0  ;;  %15350 = vst [vmem:[#allocation55_spill] sm:$0xff] %v9763_v40  ;;  %v1130_v33 = vrot.slane %v9567_v35, 1  ;;  %v9797_v52 = vpack.i.bf16 %v9763_v40, %v9758_v56  ;;  %v9803_v25 = vunpack.c.l.bf16 %v7393_v19 }
  0xe1   : > { %15345 = vst [vmem:[#allocation50_spill] sm:$0xff] %v9730_v48  ;;  %15348 = vst [vmem:[#allocation53_spill] sm:$0xff] %v9754_v28  ;;  %v9793_v0 = vpack.i.bf16 %v9754_v28, %v9750_v1  ;;  %v9815_v1 = vunpack.c.h.bf16 %v7393_v19  ;;  %v9819_v40 = vsel %vm1179_vm1, %v1157_v41, 0.0  ;;  %v1141_v19 = vrot.slane %v9640_v63, 1 }
  0xe2   : > { %15352 = vst [vmem:[#allocation57_spill] sm:$0xff] %v9771_v61  ;;  %15354 = vst [vmem:[#allocation59_spill] sm:$0xff] %v9781_v24  ;;  %v1159_v28 = vsel %vm1145_vm0, %v1130_v33, %v1131_v9  ;;  %v1142_v41 = vrot.slane %v9648_v3, 1 }
  0xe3   : > { %7779 = vrot.lane.b32.xlu0 %v9714_v47, %s9128_s17  ;;  %7774 = vrot.lane.b32.xlu1 %v9716_v8, %s9128_s17  ;;  %v9767_v47 = vsel %vm1145_vm0, %v1127_v57, %v1128_v2  ;;  %v1136_v57 = vrot.slane %v9609_v50, 1  ;;  %v1137_v2 = vrot.slane %v9619_v53, 1  ;;  %15355 = vst [vmem:[#allocation60_spill] sm:$0xff] %v9793_v0  ;;  %15356 = vst [vmem:[#allocation61_spill] sm:$0xff] %v9797_v52  ;;  %v790_v8 = vrot.slane %v9498_v6, 7 }
  0xe4   : > { %15351 = vst [vmem:[#allocation56_spill] sm:$0xff] %v9767_v47  ;;  %v9801_v42 = vpack.i.bf16 %v9771_v61, %v9767_v47  ;;  %15358 = vst [vmem:[#allocation63_spill] sm:$0xff] %v9803_v25  ;;  %v9823_v61 = vsel %vm1145_vm0, %v1129_v62, %v1130_v33  ;;  %v1135_v47 = vrot.slane %v9607_v49, 1  ;;  %v9838_v62 = vsel %vm1179_vm1, %v1159_v28, 0.0 }
  0xe5   : > { %15361 = vst [vmem:[#allocation66_spill] sm:$0xff] %v9815_v1  ;;  %15362 = vst [vmem:[#allocation67_spill] sm:$0xff] %v9819_v40  ;;  %v1138_v33 = vrot.slane %v9621_v54, 1  ;;  %v821_v37 = vrot.slane %v9815_v1, 7  ;;  %v9863_v6 = vpack.i.bf16 %v9838_v62, %v9823_v61 }
  0xe6   : > { %15357 = vst [vmem:[#allocation62_spill] sm:$0xff] %v9801_v42  ;;  %15363 = vst [vmem:[#allocation68_spill] sm:$0xff] %v9823_v61 }
  0xe7   : > { %7789 = vrot.lane.b32.xlu0 %v9730_v48, %s9128_s17  ;;  %7784 = vrot.lane.b32.xlu1 %v9738_v60, %s9128_s17  ;;  %v9807_v48 = vpack.i.bf16 %v9781_v24, %v9777_v14  ;;  %v9811_v60 = vsel %vm1145_vm0, %v1131_v9, %v1132_v46  ;;  %v1134_v24 = vrot.slane %v9592_v45, 1  ;;  %v1153_v46 = vsel %vm1145_vm0, %v1136_v57, %v1137_v2 }
  0xe8   : > { %15360 = vst [vmem:[#allocation65_spill] sm:$0xff] %v9811_v60  ;;  %v1139_v14 = vrot.slane %v9623_v55, 1  ;;  %v1140_v9 = vrot.slane %v9634_v58, 1  ;;  %15364 = vst [vmem:[#allocation69_spill] sm:$0xff] %v9838_v62  ;;  %v9852_v28 = vsel %vm1179_vm1, %v1153_v46, 0.0  ;;  %v9859_v56 = vpack.i.bf16 %v9819_v40, %v9811_v60 }
  0xe9   : > { %15359 = vst [vmem:[#allocation64_spill] sm:$0xff] %v9807_v48  ;;  %15366 = vst [vmem:[#allocation71_spill] sm:$0xff] %v9852_v28  ;;  %v15368_v40 = vrot.slane %v9803_v25, 1 }
  0xea   : > { %v1149_v46 = vsel %vm1145_vm0, %v1140_v9, %v1141_v19 }
  0xeb   : > { %7799 = vrot.lane.b32.xlu0 %v9793_v0, %s9128_s17  ;;  %7794 = vrot.lane.b32.xlu1 %v9797_v52, %s9128_s17  ;;  %v9848_v0 = vsel %vm1145_vm0, %v1135_v47, %v1136_v57  ;;  %v1155_v52 = vsel %vm1145_vm0, %v1134_v24, %v1135_v47  ;;  %v9867_v57 = vsel %vm1145_vm0, %v1133_v59, %v1134_v24  ;;  %v791_v59 = vrot.slane %v9500_v7, 7 }
  0xec   : > { %15365 = vst [vmem:[#allocation70_spill] sm:$0xff] %v9848_v0  ;;  %15367 = vst [vmem:[#allocation72_spill] sm:$0xff] %v9867_v57  ;;  %v1151_v47 = vsel %vm1145_vm0, %v1138_v33, %v1139_v14  ;;  %v1147_v60 = vsel %vm1145_vm0, %v1142_v41, %v15368_v40  ;;  %v792_v24 = vrot.slane %v9494_v4, 7  ;;  %v9885_v62 = vpack.i.bf16 %v9852_v28, %v9848_v0 }
  0xed   : > { %v9889_v61 = vsel %vm1179_vm1, %v1155_v52, 0.0  ;;  %v9899_v7 = vsel %vm1179_vm1, %v1149_v46, 0.0  ;;  %v9903_v4 = vsel %vm1145_vm0, %v1137_v2, %v1138_v33  ;;  %v793_v40 = vrot.slane %v9496_v5, 7 }
  0xee   : > { %15369 = vst [vmem:[#allocation73_spill] sm:$0xff] %v9889_v61  ;;  %15371 = vst [vmem:[#allocation75_spill] sm:$0xff] %v9899_v7  ;;  %v794_v52 = vrot.slane %v9504_v10, 7  ;;  %v9909_v28 = vsel %vm1179_vm1, %v1151_v47, 0.0  ;;  %v795_v46 = vrot.slane %v9506_v11, 7  ;;  %v9926_v5 = vpack.i.bf16 %v9889_v61, %v9867_v57 }
  0xef   : > { %7809 = vrot.lane.b32.xlu0 %v9801_v42, %s9128_s17  ;;  %7804 = vrot.lane.b32.xlu1 %v9807_v48, %s9128_s17  ;;  %v9893_v42 = vsel %vm1145_vm0, %v1139_v14, %v1140_v9  ;;  %v854_v48 = vsel %vm822_vm2, %v821_v37, %v790_v8  ;;  %15372 = vst [vmem:[#allocation76_spill] sm:$0xff] %v9903_v4  ;;  %15373 = vst [vmem:[#allocation77_spill] sm:$0xff] %v9909_v28  ;;  %v9917_v9 = vsel %vm1179_vm1, %v1147_v60, 0.0 }
  0xf0   : > { %15370 = vst [vmem:[#allocation74_spill] sm:$0xff] %v9893_v42  ;;  %v9913_v14 = vsel %vm1145_vm0, %v1141_v19, %v1142_v41  ;;  %15375 = vst [vmem:[#allocation79_spill] sm:$0xff] %v9917_v9  ;;  %v9930_v10 = vsel %vm822_vm2, %v790_v8, %v791_v59  ;;  %v9934_v60 = vsel %vm887_vm3, %v854_v48, 0.0  ;;  %v852_v11 = vsel %vm822_vm2, %v791_v59, %v792_v24 }
  0xf1   : > { %15374 = vst [vmem:[#allocation78_spill] sm:$0xff] %v9913_v14  ;;  %v9940_v2 = vpack.i.bf16 %v9899_v7, %v9893_v42  ;;  %v9944_v19 = vpack.i.bf16 %v9909_v28, %v9903_v4  ;;  %v9948_v33 = vpack.i.bf16 %v9917_v9, %v9913_v14  ;;  %v850_v8 = vsel %vm822_vm2, %v793_v40, %v794_v52 }
  0xf2   : > { %v7848_v48 = vpack.i.bf16 %v9930_v10, %v9934_v60  ;;  %v9956_v41 = vsel %vm822_vm2, %v792_v24, %v793_v40  ;;  %v9960_v47 = vsel %vm887_vm3, %v852_v11, 0.0  ;;  %v9964_v59 = vsel %vm822_vm2, %v794_v52, %v795_v46 }
  0xf3   : > { %7819 = vrot.lane.b32.xlu0 %v9859_v56, %s9128_s17  ;;  %7814 = vrot.lane.b32.xlu1 %v9863_v6, %s9128_s17  ;;  %v796_v9 = vrot.slane %v9508_v12, 7  ;;  %v14975_v14 = vrot.slane %v9648_v3, 7  ;;  %v820_v24 = vrot.slane %v9803_v25, 7  ;;  %v9975_v40 = vsel %vm887_vm3, %v850_v8, 0.0 }
  0xf4   : > { %15376 = vst [vmem:[#allocation80_spill] sm:$0xff] %v9975_v40  ;;  %v797_v11 = vrot.slane %v9510_v13, 7  ;;  %v798_v52 = vrot.slane %v9521_v17, 7  ;;  %v800_v7 = vrot.slane %v9538_v22, 7  ;;  %v801_v42 = vrot.slane %v9540_v23, 7 }
  0xf5   : > { %v802_v28 = vrot.slane %v9548_v27, 7  ;;  %v824_v12 = vsel %vm822_vm2, %v14975_v14, %v820_v24  ;;  %v799_v8 = vrot.slane %v9523_v18, 7  ;;  %v804_v4 = vrot.slane %v9561_v31, 7 }
  0xf6   : > { %v823_v13 = vsel %vm822_vm2, %v820_v24, %v821_v37  ;;  %v1342_v17 = vsel %vm887_vm3, %v824_v12, 0.0  ;;  %v848_v22 = vsel %vm822_vm2, %v795_v46, %v796_v9  ;;  %v805_v23 = vrot.slane %v9563_v32, 7 }
  0xf7   : > { %7829 = vrot.lane.b32.xlu0 %v9885_v62, %s9128_s17  ;;  %7824 = vrot.lane.b32.xlu1 %v9926_v5, %s9128_s17  ;;  %v806_v18 = vrot.slane %v9565_v34, 7  ;;  %v10002_v27 = vpack.i.bf16 %v823_v13, %v1342_v17  ;;  %v10006_v31 = vpack.i.bf16 %v9956_v41, %v9960_v47  ;;  %v846_v37 = vsel %vm822_vm2, %v797_v11, %v798_v52 }
  0xf8   : > { %v803_v24 = vrot.slane %v9559_v30, 7  ;;  %v10013_v12 = vpack.i.bf16 %v9964_v59, %v9975_v40  ;;  %v10017_v32 = vsel %vm822_vm2, %v796_v9, %v797_v11  ;;  %v844_v34 = vsel %vm822_vm2, %v799_v8, %v800_v7 }
  0xf9   : > { %15377 = vst [vmem:[#allocation81_spill] sm:$0xff] %v10002_v27  ;;  %15378 = vst [vmem:[#allocation82_spill] sm:$0xff] %v10017_v32  ;;  %v842_v46 = vsel %vm822_vm2, %v801_v42, %v802_v28  ;;  %v10025_v13 = vsel %vm887_vm3, %v848_v22, 0.0  ;;  %v807_v17 = vrot.slane %v9567_v35, 7  ;;  %v10037_v9 = vsel %vm822_vm2, %v798_v52, %v799_v8 }
  0xfa   : > { %15379 = vst [vmem:[#allocation83_spill] sm:$0xff] %v10025_v13  ;;  %v840_v30 = vsel %vm822_vm2, %v803_v24, %v804_v4  ;;  %15380 = vst [vmem:[#allocation84_spill] sm:$0xff] %v10037_v9  ;;  %v10041_v11 = vsel %vm887_vm3, %v846_v37, 0.0  ;;  %v10045_v35 = vsel %vm822_vm2, %v800_v7, %v801_v42  ;;  %v838_v22 = vsel %vm822_vm2, %v805_v23, %v806_v18 }
  0xfb   : > { %7839 = vrot.lane.b32.xlu0 %v9940_v2, %s9128_s17  ;;  %7834 = vrot.lane.b32.xlu1 %v9944_v19, %s9128_s17  ;;  %15381 = vst [vmem:[#allocation85_spill] sm:$0xff] %v10041_v11  ;;  %15382 = vst [vmem:[#allocation86_spill] sm:$0xff] %v10045_v35  ;;  %v10051_v14 = vsel %vm887_vm3, %v844_v34, 0.0  ;;  %v10059_v52 = vsel %vm887_vm3, %v842_v46, 0.0  ;;  %v10063_v8 = vsel %vm822_vm2, %v804_v4, %v805_v23  ;;  %v10067_v42 = vsel %vm887_vm3, %v840_v30, 0.0  ;;  %v3210_v34 = vld [vmem:[%s9449_s29 + $0x30] sm:$0xff] }
  0xfc   : > { %15383 = vst [vmem:[#allocation87_spill] sm:$0xff] %v10051_v14  ;;  %15385 = vst [vmem:[#allocation89_spill] sm:$0xff] %v10059_v52  ;;  %v808_v7 = vrot.slane %v9581_v38, 7  ;;  %v809_v37 = vrot.slane %v9583_v39, 7  ;;  %v10078_v46 = vsel %vm822_vm2, %v806_v18, %v807_v17  ;;  %v10082_v4 = vsel %vm887_vm3, %v838_v22, 0.0  ;;  %v3212_v23 = vld [vmem:[%s9449_s29 + $0x40] sm:$0xff] }
  0xfd   : > { %15386 = vst [vmem:[#allocation90_spill] sm:$0xff] %v10063_v8  ;;  %15387 = vst [vmem:[#allocation91_spill] sm:$0xff] %v10067_v42  ;;  %v10091_v38 = vpack.i.bf16 %v10017_v32, %v10025_v13  ;;  %v10095_v39 = vpack.i.bf16 %v10037_v9, %v10041_v11  ;;  %v10099_v18 = vpack.i.bf16 %v10045_v35, %v10051_v14  ;;  %v810_v30 = vrot.slane %v9590_v44, 7  ;;  %v3208_v11 = vld [vmem:[%s9449_s29 + $0x20] sm:$0xff]  ;;  %v3209_v14 = vld [vmem:[%s9449_s29 + $0x28] sm:$0xff] }
  0xfe   : > { %15388 = vst [vmem:[#allocation92_spill] sm:$0xff] %v10078_v46  ;;  %15389 = vst [vmem:[#allocation93_spill] sm:$0xff] %v10082_v4  ;;  %v10108_v0 = vpack.i.bf16 %v10063_v8, %v10067_v42  ;;  %v10116_v35 = vpack.i.bf16 %v10078_v46, %v10082_v4  ;;  %v10120_v44 = vsel %vm822_vm2, %v808_v7, %v809_v37  ;;  %v3213_v8 = vld [vmem:[%s9449_s29 + $0x48] sm:$0xff]  ;;  %v3566_v9 = vld [vmem:[%s9467_s14 + $0x38] sm:$0xff]  ;;  %v10133_v4 = vstv %s10030_s20  ;;  %s6958_s20 = sshll.u32 %s9442_s10, 7 }
  0xff   : > { %7844 = vrot.lane.b32.xlu1 %v9948_v33, %s9128_s17  ;;  %7849 = vrot.lane.b32.xlu0 %v7848_v48, %s9129_s22  ;;  %v10055_v48 = vsel %vm822_vm2, %v802_v28, %v803_v24  ;;  %v3211_v28 = vld [vmem:[%s9449_s29 + $0x38] sm:$0xff]  ;;  %v10074_v24 = vstv %s9986_s21  ;;  %15391 = vst [vmem:[#allocation95_spill] sm:$0xff] %v10120_v44  ;;  %15394 = vst [vmem:[#allocation98_spill] sm:$0xff] %v10133_v4  ;;  %v813_v46 = vrot.slane %v9609_v50, 7  ;;  %v814_v40 = vrot.slane %v9619_v53, 7  ;;  %s9134_s21 = smov 112  }
 0x100   : > { %15384 = vst [vmem:[#allocation88_spill] sm:$0xff] %v10055_v48  ;;  %v10104_v22 = vpack.i.bf16 %v10055_v48, %v10059_v52  ;;  %v3243_v61 = vmul.f32 %v10074_v24, %v3210_v34  ;;  %v3244_v57 = vmul.f32 %v10074_v24, %v3211_v28  ;;  %15390 = vst [vmem:[#allocation94_spill] sm:$0xff] %v10116_v35  ;;  %v811_v34 = vrot.slane %v9592_v45, 7  ;;  %v3565_v13 = vld [vmem:[%s9467_s14 + $0x30] sm:$0xff] }
 0x101   : > { %v836_v52 = vsel %vm822_vm2, %v807_v17, %v808_v7  ;;  %v3245_v42 = vmul.f32 %v10074_v24, %v3212_v23  ;;  %v834_v17 = vsel %vm822_vm2, %v809_v37, %v810_v30  ;;  %v3567_v23 = vld [vmem:[%s9467_s14 + $0x40] sm:$0xff]  ;;  %v3241_v45 = vmul.f32 %v10074_v24, %v3208_v11 }
 0x102   : > { %v10127_v28 = vadd.f32 -1.0, %v3243_v61  ;;  %v10129_v48 = vadd.f32 -1.0, %v3244_v57  ;;  %v3242_v61 = vmul.f32 %v10074_v24, %v3209_v14  ;;  %v812_v57 = vrot.slane %v9607_v49, 7 }
 0x103   : > { %7854 = vrot.lane.b32.xlu1 %v10006_v31, %s9129_s22  ;;  %7859 = vrot.lane.b32.xlu0 %v10013_v12, %s9129_s22  ;;  %v10141_v7 = vadd.f32 -1.0, %v3245_v42  ;;  %v3246_v32 = vmul.f32 %v10074_v24, %v3213_v8  ;;  %v10158_v49 = vsel %vm887_vm3, %v836_v52, 0.0  ;;  %v10162_v50 = vsel %vm822_vm2, %v810_v30, %v811_v34  ;;  %v3564_v42 = vld [vmem:[%s9467_s14 + $0x28] sm:$0xff] }
 0x104   : > { %15392 = vst [vmem:[#allocation96_spill] sm:$0xff] %v10127_v28  ;;  %15393 = vst [vmem:[#allocation97_spill] sm:$0xff] %v10129_v48  ;;  %vm15045_vm4 = vcmp.gt.f32.partialorder %v10129_v48, 0.0  ;;  %vm15050_vm7 = vcmp.gt.f32.partialorder %v10127_v28, 0.0  ;;  %v10179_v14 = vsel %vm887_vm3, %v834_v17, 0.0  ;;  %v10186_v52 = vadd.f32 -1.0, %v3241_v45 }
 0x105   : > { %15395 = vst [vmem:[#allocation99_spill] sm:$0xff] %v10141_v7  ;;  %vm15038_vm6 = vcmp.gt.f32.partialorder %v10141_v7, 0.0  ;;  %v3599_v11 = vsel %vm15045_vm4, %v10133_v4, %v3566_v9  ;;  %15396 = vst [vmem:[#allocation100_spill] sm:$0xff] %v10158_v49  ;;  %v3598_v9 = vsel %vm15050_vm7, %v10133_v4, %v3565_v13  ;;  %v10188_v8 = vadd.f32 -1.0, %v3242_v61 }
 0x106   : > { %15397 = vst [vmem:[#allocation101_spill] sm:$0xff] %v10162_v50  ;;  %v3600_v53 = vsel %vm15038_vm6, %v10133_v4, %v3567_v23  ;;  %3631 = vst.msk [vmem:[%s10169_s25 + $0x38] sm:$0xff] %vm2693_vm5, %v3599_v11  ;;  %v832_v37 = vsel %vm822_vm2, %v811_v34, %v812_v57  ;;  %v815_v30 = vrot.slane %v9621_v54, 7  ;;  %v816_v17 = vrot.slane %v9623_v55, 7  ;;  %v3563_v23 = vld [vmem:[%s9467_s14 + $0x20] sm:$0xff]  ;;  %v3568_v54 = vld [vmem:[%s9467_s14 + $0x48] sm:$0xff] }
 0x107   : > { %7864 = vrot.lane.b32.xlu1 %v10091_v38, %s9129_s22  ;;  %7869 = vrot.lane.b32.xlu0 %v10095_v39, %s9129_s22  ;;  %15398 = vst [vmem:[#allocation102_spill] sm:$0xff] %v10179_v14  ;;  %3632 = vst.msk [vmem:[%s10169_s25 + $0x40] sm:$0xff] %vm2693_vm5, %v3600_v53  ;;  %v10198_v11 = vadd.f32 -1.0, %v3246_v32  ;;  %v830_v13 = vsel %vm822_vm2, %v813_v46, %v814_v40  ;;  %v817_v45 = vrot.slane %v9634_v58, 7  ;;  %v818_v61 = vrot.slane %v9640_v63, 7  ;;  %v3214_v53 = vld [vmem:[%s9449_s29 + $0x50] sm:$0xff] }
 0x108   : > { %15399 = vst [vmem:[#allocation103_spill] sm:$0xff] %v10186_v52  ;;  %15400 = vst [vmem:[#allocation104_spill] sm:$0xff] %v10188_v8  ;;  %vm15104_vm8 = vcmp.gt.f32.partialorder %v10188_v8, 0.0  ;;  %v10208_v55 = vpack.i.bf16 %v10120_v44, %v10158_v49  ;;  %vm15127_vm9 = vcmp.gt.f32.partialorder %v10186_v52, 0.0  ;;  %v10220_v58 = vpack.i.bf16 %v10162_v50, %v10179_v14  ;;  %v15427_v14 = vld [vmem:[#allocation37_spill] sm:$0xff]  ;;  %v8728_v50 = vld [vmem:[%s15428_s7 + $0x38] sm:$0xff]  }
 0x109   : > { %3630 = vst.msk [vmem:[%s10169_s25 + $0x30] sm:$0xff] %vm2693_vm5, %v3598_v9  ;;  %15401 = vst [vmem:[#allocation105_spill] sm:$0xff] %v10198_v11  ;;  %v3597_v32 = vsel %vm15104_vm8, %v10133_v4, %v3564_v42  ;;  %v10224_v63 = vsel %vm822_vm2, %v812_v57, %v813_v46  ;;  %v3596_v34 = vsel %vm15127_vm9, %v10133_v4, %v3563_v23  ;;  %vm15071_vm10 = vcmp.gt.f32.partialorder %v10198_v11, 0.0  ;;  %v15440_v44 = vld [vmem:[#allocation51_spill] sm:$0xff] }
 0x10a   : > { %15402 = vst [vmem:[#allocation106_spill] sm:$0xff] %v10208_v55  ;;  %15403 = vst [vmem:[#allocation107_spill] sm:$0xff] %v10220_v58  ;;  %v10235_v9 = vsel %vm887_vm3, %v832_v37, 0.0  ;;  %v10239_v42 = vsel %vm822_vm2, %v814_v40, %v815_v30  ;;  %v10243_v46 = vsel %vm887_vm3, %v830_v13, 0.0  ;;  %v3601_v57 = vsel %vm15071_vm10, %v10133_v4, %v3568_v54 }
 0x10b   : > { %7874 = vrot.lane.b32.xlu1 %v10099_v18, %s9129_s22  ;;  %7879 = vrot.lane.b32.xlu0 %v10104_v22, %s9129_s22  ;;  %15404 = vst [vmem:[#allocation108_spill] sm:$0xff] %v10224_v63  ;;  %3629 = vst.msk [vmem:[%s10169_s25 + $0x28] sm:$0xff] %vm2693_vm5, %v3597_v32  ;;  %v828_v37 = vsel %vm822_vm2, %v815_v30, %v816_v17  ;;  %v826_v23 = vsel %vm822_vm2, %v817_v45, %v818_v61 }
 0x10c   : > { %15405 = vst [vmem:[#allocation109_spill] sm:$0xff] %v10235_v9  ;;  %15406 = vst [vmem:[#allocation110_spill] sm:$0xff] %v10239_v42  ;;  %v3247_v40 = vmul.f32 %v10074_v24, %v3214_v53  ;;  %v10263_v13 = vpack.i.bf16 %v10224_v63, %v10235_v9  ;;  %v10267_v30 = vpack.i.bf16 %v10239_v42, %v10243_v46  ;;  %v10275_v32 = vsel %vm887_vm3, %v828_v37, 0.0  ;;  %v3216_v37 = vld [vmem:[%s9449_s29 + $0x60] sm:$0xff]  ;;  %v15425_v9 = vld [vmem:[#allocation35_spill] sm:$0xff] }
 0x10d   : > { %15407 = vst [vmem:[#allocation111_spill] sm:$0xff] %v10243_v46  ;;  %3628 = vst.msk [vmem:[%s10169_s25 + $0x20] sm:$0xff] %vm2693_vm5, %v3596_v34  ;;  %v10271_v54 = vsel %vm822_vm2, %v816_v17, %v817_v45  ;;  %v15412_v34 = vrot.slane %v9648_v3, 7  ;;  %v3215_v46 = vld [vmem:[%s9449_s29 + $0x58] sm:$0xff]  ;;  %v3569_v17 = vld [vmem:[%s9467_s14 + $0x50] sm:$0xff] }
 0x10e   : > { %3633 = vst.msk [vmem:[%s10169_s25 + $0x48] sm:$0xff] %vm2693_vm5, %v3601_v57  ;;  %15408 = vst [vmem:[#allocation112_spill] sm:$0xff] %v10263_v13  ;;  %v10285_v57 = vsel %vm887_vm3, %v826_v23, 0.0  ;;  %v10288_v42 = vadd.f32 -1.0, %v3247_v40  ;;  %v10297_v3 = vpack.i.bf16 %v10271_v54, %v10275_v32 }
 0x10f   : > { %7884 = vrot.lane.b32.xlu1 %v10108_v0, %s9129_s22  ;;  %7889 = vrot.lane.b32.xlu0 %v10116_v35, %s9129_s22  ;;  %15409 = vst [vmem:[#allocation113_spill] sm:$0xff] %v10267_v30  ;;  %15410 = vst [vmem:[#allocation114_spill] sm:$0xff] %v10271_v54  ;;  %v10281_v53 = vsel %vm822_vm2, %v818_v61, %v15412_v34  ;;  %v3248_v61 = vmul.f32 %v10074_v24, %v3215_v46  ;;  %v3570_v34 = vld [vmem:[%s9467_s14 + $0x58] sm:$0xff]  ;;  %v3217_v46 = vld [vmem:[%s9449_s29 + $0x68] sm:$0xff] }
 0x110   : > { %15411 = vst [vmem:[#allocation115_spill] sm:$0xff] %v10275_v32  ;;  %15413 = vst [vmem:[#allocation116_spill] sm:$0xff] %v10281_v53  ;;  %v10301_v45 = vpack.i.bf16 %v10281_v53, %v10285_v57  ;;  %vm15067_vm11 = vcmp.gt.f32.partialorder %v10288_v42, 0.0  ;;  %v3249_v32 = vmul.f32 %v10074_v24, %v3216_v37  ;;  %v3572_v53 = vld [vmem:[%s9467_s14 + $0x68] sm:$0xff] }
 0x111   : > { %15414 = vst [vmem:[#allocation117_spill] sm:$0xff] %v10285_v57  ;;  %15415 = vst [vmem:[#allocation118_spill] sm:$0xff] %v10288_v42  ;;  %v3602_v23 = vsel %vm15067_vm11, %v10133_v4, %v3569_v17  ;;  %v10311_v40 = vadd.f32 -1.0, %v3248_v61  ;;  %v3218_v61 = vld [vmem:[%s9449_s29 + $0x70] sm:$0xff]  ;;  %v3250_v57 = vmul.f32 %v10074_v24, %v3217_v46  ;;  %v3228_v42 = vld [vmem:[%s9449_s29 + $0xc0] sm:$0xff] }
 0x112   : > { %15416 = vst [vmem:[#allocation119_spill] sm:$0xff] %v10297_v3  ;;  %15417 = vst [vmem:[#allocation120_spill] sm:$0xff] %v10301_v45  ;;  %v10327_v37 = vadd.f32 -1.0, %v3249_v32 }
 0x113   : > { %7894 = vrot.lane.b32.xlu1 %v10208_v55, %s9129_s22  ;;  %7899 = vrot.lane.b32.xlu0 %v10220_v58, %s9129_s22  ;;  %3634 = vst.msk [vmem:[%s10169_s25 + $0x50] sm:$0xff] %vm2693_vm5, %v3602_v23  ;;  %15418 = vst [vmem:[#allocation121_spill] sm:$0xff] %v10311_v40  ;;  %vm15087_vm12 = vcmp.gt.f32.partialorder %v10311_v40, 0.0  ;;  %v3571_v23 = vld [vmem:[%s9467_s14 + $0x60] sm:$0xff]  ;;  %v10343_v46 = vadd.f32 -1.0, %v3250_v57 }
 0x114   : > { %v3603_v17 = vsel %vm15087_vm12, %v10133_v4, %v3570_v34  ;;  %15419 = vst [vmem:[#allocation122_spill] sm:$0xff] %v10327_v37  ;;  %vm15085_vm13 = vcmp.gt.f32.partialorder %v10327_v37, 0.0  ;;  %v3251_v34 = vmul.f32 %v10074_v24, %v3218_v61 }
 0x115   : > { %3635 = vst.msk [vmem:[%s10169_s25 + $0x58] sm:$0xff] %vm2693_vm5, %v3603_v17  ;;  %v3604_v32 = vsel %vm15085_vm13, %v10133_v4, %v3571_v23  ;;  %v3219_v17 = vld [vmem:[%s9449_s29 + $0x78] sm:$0xff]  ;;  %15420 = vst [vmem:[#allocation123_spill] sm:$0xff] %v10343_v46  ;;  %vm14998_vm14 = vcmp.gt.f32.partialorder %v10343_v46, 0.0 }
 0x116   : > { %3636 = vst.msk [vmem:[%s10169_s25 + $0x60] sm:$0xff] %vm2693_vm5, %v3604_v32  ;;  %v10346_v54 = vadd.f32 -1.0, %v3251_v34  ;;  %v3252_v61 = vmul.f32 %v10074_v24, %v3219_v17  ;;  %v3605_v57 = vsel %vm14998_vm14, %v10133_v4, %v3572_v53  ;;  %v3574_v53 = vld [vmem:[%s9467_s14 + $0x78] sm:$0xff]  ;;  %v3220_v32 = vld [vmem:[%s9449_s29 + $0x80] sm:$0xff] }
 0x117   : > { %7904 = vrot.lane.b32.xlu1 %v10263_v13, %s9129_s22  ;;  %7909 = vrot.lane.b32.xlu0 %v10267_v30, %s9129_s22  ;;  %3637 = vst.msk [vmem:[%s10169_s25 + $0x68] sm:$0xff] %vm2693_vm5, %v3605_v57  ;;  %v15431_v30 = vld [vmem:[#allocation39_spill] sm:$0xff]  ;;  %v3576_v13 = vld [vmem:[%s9467_s14 + $0x88] sm:$0xff] }
 0x118   : > { %15421 = vst [vmem:[#allocation124_spill] sm:$0xff] %v10346_v54  ;;  %vm15033_vm15 = vcmp.gt.f32.partialorder %v10346_v54, 0.0  ;;  %v10364_v34 = vadd.f32 -1.0, %v3252_v61  ;;  %v3221_v61 = vld [vmem:[%s9449_s29 + $0x88] sm:$0xff] }
 0x119   : > { %v3254_v63 = vmul.f32 %v10074_v24, %v3221_v61 }
 0x11a   : > { %15422 = vst [vmem:[#allocation125_spill] sm:$0xff] %v10364_v34  ;;  %vm15000_vm14 = vcmp.gt.f32.partialorder %v10364_v34, 0.0 }
 0x11b   : > { %7914 = vrot.lane.b32.xlu1 %v10297_v3, %s9129_s22  ;;  %7919 = vrot.lane.b32.xlu0 %v10301_v45, %s9129_s22  ;;  %v3607_v17 = vsel %vm15000_vm14, %v10133_v4, %v3574_v53  ;;  %v10410_v61 = vadd.f32 -1.0, %v3254_v63  ;;  %v3222_v45 = vld [vmem:[%s9449_s29 + $0x90] sm:$0xff]  ;;  %v15430_v3 = vld [vmem:[#allocation38_spill] sm:$0xff] }
 0x11c   : > { %3639 = vst.msk [vmem:[%s10169_s25 + $0x78] sm:$0xff] %vm2693_vm5, %v3607_v17  ;;  %v3575_v17 = vld [vmem:[%s9467_s14 + $0x80] sm:$0xff]  ;;  %v8729_v63 = vld [vmem:[%s15428_s7 + $0x30] sm:$0xff]  }
 0x11f   : > { %7924 = vrot.lane.b32.xlu1 %v10002_v27, %s9129_s22  ;;  %7929 = vrot.lane.b32.xlu0 %v9519_v16, %s15283_s27  ;;  %v3573_v16 = vld [vmem:[%s9467_s14 + $0x70] sm:$0xff]  ;;  %v15011_v27 = vmov 0   ;;  %s13374_s22 = scalar_lea.vmem [#allocation18], %s9445_s2 }
 0x120   : > { %v3606_v23 = vsel %vm15033_vm15, %v10133_v4, %v3573_v16  ;;  %v3253_v16 = vmul.f32 %v10074_v24, %v3220_v32  ;;  %3043 = vmatprep.subr.bf16.mxu0 %v15011_v27  ;;  %vm2660_vm15 = vcmask 130048  }
 0x121   : > { %3638 = vst.msk [vmem:[%s10169_s25 + $0x70] sm:$0xff] %vm2693_vm5, %v3606_v23  ;;  %v15424_v23 = vld [vmem:[#allocation34_spill] sm:$0xff]  ;;  %3044 = vmatpush1.bf16.msra.mxu0 %v8728_v50 }
 0x122   : > { %v10386_v57 = vadd.f32 -1.0, %v3253_v16  ;;  %v15426_v16 = vld [vmem:[#allocation36_spill] sm:$0xff]  ;;  %15429 = vst [vmem:[#allocation34_spill] sm:$0xff] %v10410_v61  ;;  %3045 = vmatprep.subr.bf16.mxu0 %v15011_v27 }
 0x123   : > { %7934 = vrot.lane.b32.xlu1 %v9515_v15, %s15283_s27  ;;  %7939 = vrot.lane.b32.xlu0 %v9532_v20, %s15283_s27 }
 0x124   : > { %15423 = vst [vmem:[#allocation126_spill] sm:$0xff] %v10386_v57  ;;  %vm15008_vm14 = vcmp.gt.f32.partialorder %v10386_v57, 0.0 }
 0x125   : > { %v3608_v32 = vsel %vm15008_vm14, %v10133_v4, %v3575_v17  ;;  %vm15015_vm14 = vcmp.gt.f32.partialorder %v10410_v61, 0.0  ;;  %3046 = vmatpush1.bf16.msra.mxu0 %v8729_v63 }
 0x126   : > { %3640 = vst.msk [vmem:[%s10169_s25 + $0x80] sm:$0xff] %vm2693_vm5, %v3608_v32  ;;  %v3609_v27 = vsel %vm15015_vm14, %v10133_v4, %v3576_v13  ;;  %v8730_v13 = vld [vmem:[%s15428_s7 + $0x28] sm:$0xff]  }
 0x127   : > { %7944 = vrot.lane.b32.xlu1 %v9536_v21, %s15283_s27  ;;  %7949 = vrot.lane.b32.xlu0 %v9546_v26, %s15283_s27  ;;  %3641 = vst.msk [vmem:[%s10169_s25 + $0x88] sm:$0xff] %vm2693_vm5, %v3609_v27 }
 0x129   : > { %v10392_v53 = vpop.permute.xlu0 %7689 }
 0x12b   : > { %7954 = vrot.lane.b32.xlu1 %v9557_v29, %s15283_s27  ;;  %7959 = vrot.lane.b32.xlu0 %v9575_v36, %s15283_s27 }
 0x12f   : > { %7964 = vrot.lane.b32.xlu1 %v15424_v23, %s15283_s27  ;;  %7969 = vrot.lane.b32.xlu0 %v15425_v9, %s15283_s27 }
 0x133   : > { %7974 = vrot.lane.b32.xlu1 %v15426_v16, %s15283_s27  ;;  %7979 = vrot.lane.b32.xlu0 %v15427_v14, %s15283_s27  ;;  %v3255_v14 = vmul.f32 %v10074_v24, %v3222_v45  ;;  %v15434_v16 = vld [vmem:[#allocation41_spill] sm:$0xff]  ;;  %v10444_v45 = vpack.i.bf16 %v9815_v1, %v9803_v25  ;;  %v15437_v25 = vld [vmem:[#allocation47_spill] sm:$0xff] }
 0x135   : > { %v10412_v17 = vpop.permute.xlu1 %7699  ;;  %v10414_v32 = vpop.permute.xlu0 %7694  ;;  %15435 = vst [vmem:[#allocation127_spill] sm:$0xff] %v10444_v45  ;;  %v10449_v63 = vadd.f32 -1.0, %v3255_v14  ;;  %v8731_v14 = vld [vmem:[%s15428_s7 + $0x20] sm:$0xff]  }
 0x137   : > { %7984 = vrot.lane.b32.xlu1 %v15430_v3, %s15283_s27  ;;  %7989 = vrot.lane.b32.xlu0 %v15431_v30, %s15283_s27  ;;  %v15432_v30 = vmov 0   ;;  %v15433_v3 = vld [vmem:[#allocation40_spill] sm:$0xff]  ;;  %15436 = vst [vmem:[#allocation128_spill] sm:$0xff] %v10449_v63  ;;  %vm15020_vm14 = vcmp.gt.f32.partialorder %v10449_v63, 0.0 }
 0x138   : > { %3047 = vmatprep.subr.bf16.mxu0 %v15432_v30 }
 0x139   : > { %v10428_v50 = vpop.permute.xlu1 %7704  ;;  %v10430_v58 = vpop.permute.xlu0 %7709  ;;  %3048 = vmatpush1.bf16.msra.mxu0 %v8730_v13 }
 0x13a   : > { %3049 = vmatprep.subr.bf16.mxu0 %v15432_v30 }
 0x13b   : > { %7994 = vrot.lane.b32.xlu1 %v15433_v3, %s15283_s27  ;;  %7999 = vrot.lane.b32.xlu0 %v15434_v16, %s15283_s27  ;;  %v3223_v3 = vld [vmem:[%s9449_s29 + $0x98] sm:$0xff]  ;;  %v3577_v16 = vld [vmem:[%s9467_s14 + $0x90] sm:$0xff] }
 0x13c   : > { %v3256_v13 = vmul.f32 %v10074_v24, %v3223_v3  ;;  %v8732_v3 = vld [vmem:[%s15428_s7 + $0x18] sm:$0xff]  }
 0x13d   : > { %v10451_v27 = vpop.permute.xlu1 %7714  ;;  %v10453_v55 = vpop.permute.xlu0 %7719  ;;  %3050 = vmatpush1.bf16.msra.mxu0 %v8731_v14 }
 0x13e   : > { %3051 = vmatprep.subr.bf16.mxu0 %v15432_v30  ;;  %v10484_v9 = vadd.f32 -1.0, %v3256_v13  ;;  %v8733_v13 = vld [vmem:[%s15428_s7 + $0x10] sm:$0xff]  }
 0x13f   : > { %8004 = vrot.lane.b32.xlu1 %v10444_v45, %s15283_s27  ;;  %8009 = vrot.lane.b32.xlu0 %v15437_v25, %s9132_s19  ;;  %v3610_v45 = vsel %vm15020_vm14, %v10133_v4, %v3577_v16  ;;  %v15439_v25 = vld [vmem:[#allocation46_spill] sm:$0xff] }
 0x140   : > { %3642 = vst.msk [vmem:[%s10169_s25 + $0x90] sm:$0xff] %vm2693_vm5, %v3610_v45  ;;  %15441 = vst [vmem:[#allocation46_spill] sm:$0xff] %v10484_v9  ;;  %v3224_v45 = vld [vmem:[%s9449_s29 + $0xa0] sm:$0xff]  ;;  %vm15027_vm14 = vcmp.gt.f32.partialorder %v10484_v9, 0.0 }
 0x141   : > { %v10467_v1 = vpop.permute.xlu1 %7724  ;;  %v10469_v49 = vpop.permute.xlu0 %7729  ;;  %3052 = vmatpush1.bf16.msra.mxu0 %v8732_v3 }
 0x142   : > { %15438 = vst [vmem:[#allocation47_spill] sm:$0xff] %v10469_v49  ;;  %3053 = vmatprep.subr.bf16.mxu0 %v15432_v30  ;;  %v15449_v49 = vld [vmem:[#allocation64_spill] sm:$0xff] }
 0x143   : > { %8014 = vrot.lane.b32.xlu1 %v15439_v25, %s9132_s19  ;;  %8019 = vrot.lane.b32.xlu0 %v15440_v44, %s9132_s19  ;;  %v15444_v25 = vld [vmem:[#allocation50_spill] sm:$0xff]  ;;  %v15445_v44 = vld [vmem:[#allocation61_spill] sm:$0xff] }
 0x145   : > { %v10486_v16 = vpop.permute.xlu1 %7734  ;;  %v10488_v14 = vpop.permute.xlu0 %7739  ;;  %3054 = vmatpush1.bf16.msra.mxu0 %v8733_v13 }
 0x146   : > { %15442 = vst [vmem:[#allocation51_spill] sm:$0xff] %v10486_v16  ;;  %15443 = vst [vmem:[#allocation129_spill] sm:$0xff] %v10488_v14  ;;  %v3578_v16 = vld [vmem:[%s9467_s14 + $0x98] sm:$0xff]  ;;  %v3257_v14 = vmul.f32 %v10074_v24, %v3224_v45  ;;  %3055 = vmatprep.subr.bf16.mxu0 %v15432_v30  ;;  %v8734_v45 = vld [vmem:[%s15428_s7 + $0x8] sm:$0xff]  }
 0x147   : > { %8024 = vrot.lane.b32.xlu1 %v15444_v25, %s9132_s19  ;;  %8029 = vrot.lane.b32.xlu0 %v15445_v44, %s9132_s19  ;;  %v3611_v25 = vsel %vm15027_vm14, %v10133_v4, %v3578_v16  ;;  %v15448_v44 = vld [vmem:[#allocation60_spill] sm:$0xff] }
 0x148   : > { %3643 = vst.msk [vmem:[%s10169_s25 + $0x98] sm:$0xff] %vm2693_vm5, %v3611_v25 }
 0x149   : > { %v10502_v3 = vpop.permute.xlu1 %7744  ;;  %v10504_v35 = vpop.permute.xlu0 %7749  ;;  %3056 = vmatpush1.bf16.msra.mxu0 %v8734_v45 }
 0x14a   : > { %15446 = vst [vmem:[#allocation50_spill] sm:$0xff] %v10502_v3  ;;  %15447 = vst [vmem:[#allocation61_spill] sm:$0xff] %v10504_v35  ;;  %v3225_v35 = vld [vmem:[%s9449_s29 + $0xa8] sm:$0xff]  ;;  %v10520_v3 = vadd.f32 -1.0, %v3257_v14  ;;  %3057 = vmatprep.subr.bf16.mxu0 %v15432_v30  ;;  %v8735_v14 = vld [vmem:[%s15428_s7] sm:$0xff]  }
 0x14b   : > { %8034 = vrot.lane.b32.xlu1 %v15448_v44, %s9132_s19  ;;  %8039 = vrot.lane.b32.xlu0 %v15449_v49, %s9132_s19  ;;  %v3258_v25 = vmul.f32 %v10074_v24, %v3225_v35  ;;  %v15453_v49 = vld [vmem:[#allocation62_spill] sm:$0xff]  ;;  %v3579_v44 = vld [vmem:[%s9467_s14 + $0xa0] sm:$0xff] }
 0x14c   : > { %15450 = vst [vmem:[#allocation60_spill] sm:$0xff] %v10520_v3  ;;  %vm15030_vm14 = vcmp.gt.f32.partialorder %v10520_v3, 0.0 }
 0x14d   : > { %v10522_v16 = vpop.permute.xlu1 %7754  ;;  %v10524_v13 = vpop.permute.xlu0 %7759  ;;  %v3612_v35 = vsel %vm15030_vm14, %v10133_v4, %v3579_v44  ;;  %3058 = vmatpush1.bf16.msra.mxu0 %v8735_v14 }
 0x14e   : > { %15451 = vst [vmem:[#allocation64_spill] sm:$0xff] %v10522_v16  ;;  %15452 = vst [vmem:[#allocation130_spill] sm:$0xff] %v10524_v13  ;;  %3073 = vmatprep.subr.bf16.mxu0 %v15432_v30  ;;  %v8737_v30 = vld [vmem:[%s15428_s7 + $0x40] sm:$0xff]   ;;  %v3580_v16 = vld [vmem:[%s9467_s14 + $0xa8] sm:$0xff] }
 0x14f   : > { %8044 = vrot.lane.b32.xlu1 %v15453_v49, %s9132_s19  ;;  %8049 = vrot.lane.b32.xlu0 %v9863_v6, %s9132_s19  ;;  %3644 = vst.msk [vmem:[%s10169_s25 + $0xa0] sm:$0xff] %vm2693_vm5, %v3612_v35  ;;  %v8736_v6 = vld [vmem:[%s14881_s8 + $0x78] sm:$0xff]   ;;  %v10550_v49 = vadd.f32 -1.0, %v3258_v25  ;;  %v15461_v35 = vld [vmem:[#allocation43_spill] sm:$0xff] }
 0x150   : > { %v8738_v25 = vld [vmem:[%s14881_s8 + $0x38] sm:$0xff]   ;;  %7575 = vmatprep.subr.bf16.mxu1 %v8736_v6 }
 0x151   : > { %v10537_v13 = vpop.permute.xlu1 %7764  ;;  %v10539_v45 = vpop.permute.xlu0 %7769  ;;  %15456 = vst [vmem:[#allocation132_spill] sm:$0xff] %v10550_v49  ;;  %3074 = vmatpush2.bf16.msra.mxu0 %v8737_v30  ;;  %7583 = vmatpush3.bf16.msra.mxu1 %v8738_v25  ;;  %vm15182_vm14 = vcmp.gt.f32.partialorder %v10550_v49, 0.0  ;;  %v8739_v25 = vld [vmem:[%s14881_s8 + $0x70] sm:$0xff]  }
 0x152   : > { %15454 = vst [vmem:[#allocation62_spill] sm:$0xff] %v10537_v13  ;;  %15455 = vst [vmem:[#allocation131_spill] sm:$0xff] %v10539_v45  ;;  %v7396_v13 = vld [vmem:[%s10557_s12 + $0x18] sm:$0xff]   ;;  %v3226_v45 = vld [vmem:[%s9449_s29 + $0xb0] sm:$0xff]  ;;  %7409 = vmatprep.subr.bf16.mxu0 %v8736_v6  ;;  %v3613_v30 = vsel %vm15182_vm14, %v10133_v4, %v3580_v16  ;;  %7576 = vmatprep.subr.bf16.mxu1 %v8739_v25 }
 0x153   : > { %8054 = vrot.lane.b32.xlu1 %v9859_v56, %s9132_s19  ;;  %8059 = vrot.lane.b32.xlu0 %v9926_v5, %s9132_s19  ;;  %v15460_v56 = vld [vmem:[#allocation42_spill] sm:$0xff]  ;;  %3645 = vst.msk [vmem:[%s10169_s25 + $0xa8] sm:$0xff] %vm2693_vm5, %v3613_v30  ;;  %v3259_v16 = vmul.f32 %v10074_v24, %v3226_v45  ;;  %v3589_v49 = vld [vmem:[%s9467_s14 + $0xf0] sm:$0xff] }
 0x154   : > { %v2892_v5 = vpack.c.bf16 %v15461_v35, %v15460_v56  ;;  %v7330_v56 = vunpack.c.h.bf16 %v7396_v13  ;;  %v8742_v45 = vld [vmem:[%s14881_s8 + $0x28] sm:$0xff]  }
 0x155   : > { %v10569_v14 = vpop.permute.xlu0 %7779  ;;  %v10571_v44 = vpop.permute.xlu1 %7774  ;;  %v10614_v30 = vadd.f32 -1.0, %v3259_v16  ;;  %v8743_v16 = vld [vmem:[%s14881_s8 + $0x60] sm:$0xff]  }
 0x156   : > { %15458 = vst [vmem:[#allocation133_spill] sm:$0xff] %v10569_v14  ;;  %15459 = vst [vmem:[#allocation134_spill] sm:$0xff] %v10571_v44  ;;  %v10584_v44 = vld [vmem:[%s10557_s12 + $0x20] sm:$0xff]   ;;  %6982 = vmatprep.mubr.msk.bf16.mxu0 %vm2660_vm15, %v2892_v5  ;;  %v8741_v5 = vld [vmem:[%s14881_s8 + $0x68] sm:$0xff]  }
 0x157   : > { %8064 = vrot.lane.b32.xlu1 %v9885_v62, %s9132_s19  ;;  %8069 = vrot.lane.b32.xlu0 %v9944_v19, %s9132_s19  ;;  %v8740_v62 = vld [vmem:[%s14881_s8 + $0x30] sm:$0xff]   ;;  %v7333_v35 = vunpack.c.l.bf16 %v10584_v44  ;;  %15464 = vst [vmem:[#allocation135_spill] sm:$0xff] %v10614_v30 }
 0x158   : > { %7584 = vmatpush3.bf16.msra.mxu1 %v8740_v62  ;;  %v7395_v14 = vld [vmem:[%s10557_s12 + $0x10] sm:$0xff]  }
 0x159   : > { %v10598_v6 = vpop.permute.xlu0 %7789  ;;  %v10600_v19 = vpop.permute.xlu1 %7784  ;;  %7577 = vmatprep.subr.bf16.mxu1 %v8741_v5  ;;  %v7325_v28 = vunpack.c.l.bf16 %v7395_v14 }
 0x15a   : > { %15462 = vst [vmem:[#allocation42_spill] sm:$0xff] %v10598_v6  ;;  %15463 = vst [vmem:[#allocation43_spill] sm:$0xff] %v10600_v19  ;;  %v7329_v19 = vunpack.c.l.bf16 %v7396_v13  ;;  %v10627_v6 = vsel %vm15038_vm6, %v7333_v35, 0.0  ;;  %v3581_v13 = vld [vmem:[%s9467_s14 + $0xb0] sm:$0xff]  ;;  %vm15181_vm6 = vcmp.gt.f32.partialorder %v10614_v30, 0.0 }
 0x15b   : > { %8074 = vrot.lane.b32.xlu1 %v9940_v2, %s9132_s19  ;;  %8079 = vrot.lane.b32.xlu0 %v9948_v33, %s9132_s19  ;;  %v3227_v2 = vld [vmem:[%s9449_s29 + $0xb8] sm:$0xff]  ;;  %v10623_v33 = vsel %vm15045_vm4, %v7330_v56, 0.0  ;;  %15467 = vst [vmem:[#allocation138_spill] sm:$0xff] %v10627_v6  ;;  %v8744_v56 = vld [vmem:[%s14881_s8 + $0x20] sm:$0xff]   ;;  %v3614_v48 = vsel %vm15181_vm6, %v10133_v4, %v3581_v13 }
 0x15c   : > { %15466 = vst [vmem:[#allocation137_spill] sm:$0xff] %v10623_v33  ;;  %7585 = vmatpush3.bf16.msra.mxu1 %v8742_v45  ;;  %v3260_v35 = vmul.f32 %v10074_v24, %v3227_v2  ;;  %v3887_v45 = vrot.slane %v10623_v33, 1  ;;  %3646 = vst.msk [vmem:[%s10169_s25 + $0xb0] sm:$0xff] %vm2693_vm5, %v3614_v48  ;;  %v3207_v2 = vld [vmem:[%s9449_s29 + $0x18] sm:$0xff] }
 0x15d   : > { %v10616_v25 = vpop.permute.xlu0 %7799  ;;  %v10618_v62 = vpop.permute.xlu1 %7794  ;;  %7578 = vmatprep.subr.bf16.mxu1 %v8743_v16  ;;  %v8746_v13 = vld [vmem:[%s14881_s8 + $0x18] sm:$0xff]  }
 0x15e   : > { %15465 = vst [vmem:[#allocation136_spill] sm:$0xff] %v10618_v62  ;;  %v7326_v62 = vunpack.c.h.bf16 %v7395_v14  ;;  %v10670_v48 = vadd.f32 -1.0, %v3260_v35  ;;  %v10692_v14 = vld [vmem:[%s10557_s12 + $0x28] sm:$0xff]   ;;  %v7802_v30 = vunpack.i.h.bf16 %v10616_v25 }
 0x15f   : > { %8084 = vrot.lane.b32.xlu1 %v10006_v31, %s9133_s15  ;;  %8089 = vrot.lane.b32.xlu0 %v9515_v15, %s9134_s21  ;;  %v10649_v15 = vsel %vm15050_vm7, %v7329_v19, 0.0  ;;  %v8745_v19 = vld [vmem:[%s14881_s8 + $0x58] sm:$0xff]  }
 0x160   : > { %15470 = vst [vmem:[#allocation141_spill] sm:$0xff] %v10649_v15  ;;  %7586 = vmatpush3.bf16.msra.mxu1 %v8744_v56  ;;  %v3886_v16 = vrot.slane %v10649_v15, 1  ;;  %15471 = vst [vmem:[#allocation142_spill] sm:$0xff] %v10670_v48  ;;  %v10684_v35 = vsel %vm15104_vm8, %v7326_v62, 0.0  ;;  %vm15180_vm4 = vcmp.gt.f32.partialorder %v10670_v48, 0.0 }
 0x161   : > { %v10643_v31 = vpop.permute.xlu0 %7809  ;;  %v10645_v5 = vpop.permute.xlu1 %7804  ;;  %7579 = vmatprep.subr.bf16.mxu1 %v8745_v19  ;;  %15475 = vst [vmem:[#allocation145_spill] sm:$0xff] %v10684_v35  ;;  %v3562_v19 = vld [vmem:[%s9467_s14 + $0x18] sm:$0xff]  ;;  %v15494_v52 = vrot.slane %v10684_v35, 7 }
 0x162   : > { %15468 = vst [vmem:[#allocation139_spill] sm:$0xff] %v10643_v31  ;;  %15469 = vst [vmem:[#allocation140_spill] sm:$0xff] %v10645_v5  ;;  %v7334_v5 = vunpack.c.h.bf16 %v10584_v44  ;;  %v3240_v31 = vmul.f32 %v10074_v24, %v3207_v2  ;;  %v8747_v2 = vld [vmem:[%s14881_s8 + $0x50] sm:$0xff]   ;;  %v10701_v62 = vsel %vm1145_vm0, %v3886_v16, %v3887_v45 }
 0x163   : > { %8094 = vrot.lane.b32.xlu1 %v10013_v12, %s9133_s15  ;;  %8099 = vrot.lane.b32.xlu0 %v9532_v20, %s9134_s21  ;;  %v15474_v12 = vrot.slane %v10627_v6, 1  ;;  %15477 = vst [vmem:[#allocation147_spill] sm:$0xff] %v10701_v62 }
 0x164   : > { %7587 = vmatpush3.bf16.msra.mxu1 %v8746_v13  ;;  %v10694_v44 = vadd.f32 -1.0, %v3240_v31  ;;  %v3582_v31 = vld [vmem:[%s9467_s14 + $0xb8] sm:$0xff]  ;;  %v8748_v13 = vld [vmem:[%s14881_s8 + $0x10] sm:$0xff]  }
 0x165   : > { %v10672_v56 = vpop.permute.xlu0 %7819  ;;  %v10674_v7 = vpop.permute.xlu1 %7814  ;;  %v3935_v20 = vsel %vm1145_vm0, %v3887_v45, %v15474_v12  ;;  %v10720_v45 = vsel %vm15127_vm9, %v7325_v28, 0.0  ;;  %7580 = vmatprep.subr.bf16.mxu1 %v8747_v2  ;;  %v8749_v2 = vld [vmem:[%s14881_s8 + $0x48] sm:$0xff]  }
 0x166   : > { %15472 = vst [vmem:[#allocation143_spill] sm:$0xff] %v10672_v56  ;;  %15473 = vst [vmem:[#allocation144_spill] sm:$0xff] %v10674_v7  ;;  %v3885_v56 = vrot.slane %v10684_v35, 1  ;;  %v3615_v7 = vsel %vm15180_vm4, %v10133_v4, %v3582_v31  ;;  %vm15187_vm7 = vcmp.gt.f32.partialorder %v10694_v44, 0.0 }
 0x167   : > { %8104 = vrot.lane.b32.xlu1 %v10091_v38, %s9133_s15  ;;  %8109 = vrot.lane.b32.xlu0 %v9536_v21, %s9134_s21  ;;  %15476 = vst [vmem:[#allocation146_spill] sm:$0xff] %v10694_v44  ;;  %v10705_v38 = vsel %vm1179_vm1, %v3935_v20, 0.0  ;;  %v3760_v21 = vrot.slane %v10627_v6, 7  ;;  %15481 = vst [vmem:[#allocation151_spill] sm:$0xff] %v10720_v45  ;;  %v10724_v20 = vsel %vm15071_vm10, %v7334_v5, 0.0  ;;  %v3595_v5 = vsel %vm15187_vm7, %v10133_v4, %v3562_v19 }
 0x168   : > { %15478 = vst [vmem:[#allocation148_spill] sm:$0xff] %v10705_v38  ;;  %15482 = vst [vmem:[#allocation152_spill] sm:$0xff] %v10724_v20  ;;  %7588 = vmatpush3.bf16.msra.mxu1 %v8748_v13  ;;  %v10740_v28 = vpack.i.bf16 %v10705_v38, %v10701_v62  ;;  %v15485_v19 = vrot.slane %v10623_v33, 7  ;;  %v3937_v62 = vsel %vm1145_vm0, %v3885_v56, %v3886_v16 }
 0x169   : > { %v10714_v12 = vpop.permute.xlu0 %7829  ;;  %v10716_v8 = vpop.permute.xlu1 %7824  ;;  %3647 = vst.msk [vmem:[%s10169_s25 + $0xb8] sm:$0xff] %vm2693_vm5, %v3615_v7  ;;  %v8750_v7 = vld [vmem:[%s14881_s8 + $0x8] sm:$0xff]   ;;  %3627 = vst.msk [vmem:[%s10169_s25 + $0x18] sm:$0xff] %vm2693_vm5, %v3595_v5  ;;  %7581 = vmatprep.subr.bf16.mxu1 %v8749_v2  ;;  %v10777_v16 = vpack.i.bf16 %v10684_v35, %v10720_v45  ;;  %v8751_v2 = vld [vmem:[%s14881_s8 + $0x40] sm:$0xff]   ;;  %v10800_v11 = vsel %vm1179_vm1, %v3937_v62, 0.0  ;;  %v3261_v62 = vmul.f32 %v10074_v24, %v3228_v42 }
 0x16a   : > { %15479 = vst [vmem:[#allocation149_spill] sm:$0xff] %v10714_v12  ;;  %15480 = vst [vmem:[#allocation150_spill] sm:$0xff] %v10716_v8  ;;  %v7337_v12 = vunpack.c.l.bf16 %v10692_v14  ;;  %v3807_v38 = vsel %vm822_vm2, %v15485_v19, %v3760_v21  ;;  %v15488_v19 = vrot.slane %v10724_v20, 7 }
 0x16b   : > { %8114 = vrot.lane.b32.xlu1 %v10095_v39, %s9133_s15  ;;  %8119 = vrot.lane.b32.xlu0 %v9546_v26, %s9134_s21  ;;  %v15056_v26 = vrot.slane %v10720_v45, 1  ;;  %v3758_v39 = vrot.slane %v10649_v15, 7  ;;  %15487 = vst [vmem:[#allocation156_spill] sm:$0xff] %v10777_v16  ;;  %15492 = vst [vmem:[#allocation160_spill] sm:$0xff] %v10800_v11 }
 0x16c   : > { %v10769_v5 = vsel %vm15067_vm11, %v7337_v12, 0.0  ;;  %7589 = vmatpush3.bf16.msra.mxu1 %v8750_v7  ;;  %v10786_v12 = vsel %vm822_vm2, %v3760_v21, %v15488_v19  ;;  %v8752_v21 = vld [vmem:[%s14881_s8] sm:$0xff]  }
 0x16d   : > { %v10755_v31 = vpop.permute.xlu0 %7839  ;;  %v10757_v13 = vpop.permute.xlu1 %7834  ;;  %15486 = vst [vmem:[#allocation155_spill] sm:$0xff] %v10769_v5  ;;  %15489 = vst [vmem:[#allocation157_spill] sm:$0xff] %v10786_v12  ;;  %v10796_v7 = vsel %vm1145_vm0, %v15056_v26, %v3885_v56  ;;  %v3809_v56 = vsel %vm822_vm2, %v15494_v52, %v3758_v39  ;;  %v3889_v26 = vrot.slane %v10724_v20, 1  ;;  %7582 = vmatprep.subr.bf16.mxu1 %v8751_v2  ;;  %v15496_v2 = vrot.slane %v10623_v33, 7 }
 0x16e   : > { %15483 = vst [vmem:[#allocation153_spill] sm:$0xff] %v10755_v31  ;;  %15484 = vst [vmem:[#allocation154_spill] sm:$0xff] %v10757_v13  ;;  %v3229_v31 = vld [vmem:[%s9449_s29 + $0xc8] sm:$0xff]  ;;  %v10827_v52 = vpack.i.bf16 %v10800_v11, %v10796_v7  ;;  %v7399_v13 = vld [vmem:[%s10557_s12 + $0x30] sm:$0xff]   ;;  %v7338_v11 = vunpack.c.h.bf16 %v10692_v14  ;;  %v15501_v42 = vrot.slane %v10769_v5, 1  ;;  %v10860_v14 = vpack.i.bf16 %v10724_v20, %v10627_v6 }
 0x16f   : > { %8124 = vrot.lane.b32.xlu1 %v10099_v18, %s9133_s15  ;;  %8129 = vrot.lane.b32.xlu0 %v10740_v28, %s9128_s17  ;;  %v10790_v18 = vsel %vm887_vm3, %v3807_v38, 0.0  ;;  %15491 = vst [vmem:[#allocation159_spill] sm:$0xff] %v10796_v7 }
 0x170   : > { %15490 = vst [vmem:[#allocation158_spill] sm:$0xff] %v10790_v18  ;;  %7590 = vmatpush3.bf16.msra.mxu1 %v8752_v21  ;;  %15495 = vst [vmem:[#allocation162_spill] sm:$0xff] %v10827_v52  ;;  %v10834_v21 = vsel %vm822_vm2, %v3758_v39, %v15496_v2  ;;  %v3933_v7 = vsel %vm1145_vm0, %v3889_v26, %v15501_v42  ;;  %v3262_v39 = vmul.f32 %v10074_v24, %v3229_v31  ;;  %v3583_v2 = vld [vmem:[%s9467_s14 + $0xc0] sm:$0xff] }
 0x171   : > { %v10806_v19 = vpop.permute.xlu1 %7844  ;;  %v10808_v38 = vpop.permute.xlu0 %7849  ;;  %15497 = vst [vmem:[#allocation163_spill] sm:$0xff] %v10834_v21  ;;  %v15505_v31 = vrot.slane %v10627_v6, 1  ;;  %v3230_v6 = vld [vmem:[%s9449_s29 + $0xd0] sm:$0xff] }
 0x172   : > { %15493 = vst [vmem:[#allocation161_spill] sm:$0xff] %v10806_v19  ;;  %v10823_v19 = vpack.i.bf16 %v10786_v12, %v10790_v18  ;;  %v10850_v18 = vadd.f32 -1.0, %v3261_v62  ;;  %v7341_v62 = vunpack.c.l.bf16 %v7399_v13  ;;  %v10866_v42 = vadd.f32 -1.0, %v3262_v39 }
 0x173   : > { %8134 = vrot.lane.b32.xlu1 %v9557_v29, %s9134_s21  ;;  %8139 = vrot.lane.b32.xlu0 %v10777_v16, %s9128_s17  ;;  %v10838_v29 = vsel %vm887_vm3, %v3809_v56, 0.0  ;;  %v10872_v12 = vsel %vm1145_vm0, %v15505_v31, %v3889_v26  ;;  %v10886_v39 = vsel %vm15087_vm12, %v7338_v11, 0.0  ;;  %v3762_v26 = vrot.slane %v10769_v5, 7  ;;  %v7400_v31 = vld [vmem:[%s10557_s12 + $0x38] sm:$0xff]  }
 0x174   : > { %15498 = vst [vmem:[#allocation164_spill] sm:$0xff] %v10838_v29  ;;  %15502 = vst [vmem:[#allocation167_spill] sm:$0xff] %v10850_v18  ;;  %v10864_v56 = vpack.i.bf16 %v10834_v21, %v10838_v29  ;;  %vm15205_vm11 = vcmp.gt.f32.partialorder %v10850_v18, 0.0  ;;  %vm15211_vm10 = vcmp.gt.f32.partialorder %v10866_v42, 0.0  ;;  %v10906_v40 = vsel %vm15085_vm13, %v7341_v62, 0.0 }
 0x175   : > { %v10841_v16 = vpop.permute.xlu1 %7854  ;;  %v10843_v8 = vpop.permute.xlu0 %7859  ;;  %15504 = vst [vmem:[#allocation169_spill] sm:$0xff] %v10866_v42  ;;  %15506 = vst [vmem:[#allocation170_spill] sm:$0xff] %v10872_v12  ;;  %v7345_v62 = vunpack.c.l.bf16 %v7400_v31  ;;  %v3891_v37 = vrot.slane %v10886_v39, 1  ;;  %v3892_v42 = vrot.slane %v10906_v40, 1  ;;  %vm15520_vm13 = vcmp.gt.f32.partialorder %v10346_v54, 0.0 }
 0x176   : > { %15499 = vst [vmem:[#allocation165_spill] sm:$0xff] %v10841_v16  ;;  %15500 = vst [vmem:[#allocation166_spill] sm:$0xff] %v10843_v8  ;;  %v3584_v8 = vld [vmem:[%s9467_s14 + $0xc8] sm:$0xff]  ;;  %vm15522_vm12 = vcmp.gt.f32.partialorder %v10343_v46, 0.0  ;;  %v3585_v16 = vld [vmem:[%s9467_s14 + $0xd0] sm:$0xff] }
 0x177   : > { %8144 = vrot.lane.b32.xlu1 %v10823_v19, %s15283_s27  ;;  %8149 = vrot.lane.b32.xlu0 %v10827_v52, %s15283_s27  ;;  %15503 = vst [vmem:[#allocation168_spill] sm:$0xff] %v10864_v56  ;;  %v10876_v52 = vsel %vm1179_vm1, %v3933_v7, 0.0  ;;  %15510 = vst [vmem:[#allocation174_spill] sm:$0xff] %v10886_v39  ;;  %v3616_v7 = vsel %vm15205_vm11, %v10133_v4, %v3583_v2  ;;  %v3617_v2 = vsel %vm15211_vm10, %v10133_v4, %v3584_v8 }
 0x178   : > { %15507 = vst [vmem:[#allocation171_spill] sm:$0xff] %v10876_v52  ;;  %3648 = vst.msk [vmem:[%s10169_s25 + $0xc0] sm:$0xff] %vm2693_vm5, %v3616_v7  ;;  %v10902_v11 = vpack.i.bf16 %v10876_v52, %v10872_v12  ;;  %v3763_v7 = vrot.slane %v10886_v39, 7  ;;  %v15514_v52 = vrot.slane %v10724_v20, 7  ;;  %v7342_v8 = vunpack.c.h.bf16 %v7399_v13  ;;  %v7401_v20 = vld [vmem:[%s10557_s12 + $0x40] sm:$0xff]  }
 0x179   : > { %v10880_v29 = vpop.permute.xlu1 %7864  ;;  %v10882_v21 = vpop.permute.xlu0 %7869  ;;  %15511 = vst [vmem:[#allocation175_spill] sm:$0xff] %v10906_v40  ;;  %3649 = vst.msk [vmem:[%s10169_s25 + $0xc8] sm:$0xff] %vm2693_vm5, %v3617_v2  ;;  %v10931_v2 = vpack.i.bf16 %v10623_v33, %v10649_v15  ;;  %v10950_v33 = vsel %vm15520_vm13, %v7345_v62, 0.0  ;;  %v3231_v15 = vld [vmem:[%s9449_s29 + $0xd8] sm:$0xff]  ;;  %v10969_v62 = vpack.i.bf16 %v10886_v39, %v10769_v5 }
 0x17a   : > { %15508 = vst [vmem:[#allocation172_spill] sm:$0xff] %v10880_v29  ;;  %15509 = vst [vmem:[#allocation173_spill] sm:$0xff] %v10882_v21  ;;  %v3805_v12 = vsel %vm822_vm2, %v15514_v52, %v3762_v26  ;;  %v3263_v52 = vmul.f32 %v10074_v24, %v3230_v6  ;;  %v3764_v29 = vrot.slane %v10906_v40, 7  ;;  %v3931_v6 = vsel %vm1145_vm0, %v3891_v37, %v3892_v42 }
 0x17b   : > { %8154 = vrot.lane.b32.xlu1 %v10860_v14, %s9133_s15  ;;  %8159 = vrot.lane.b32.xlu0 %v10864_v56, %s9133_s15  ;;  %15515 = vst [vmem:[#allocation178_spill] sm:$0xff] %v10931_v2  ;;  %v10941_v13 = vsel %vm887_vm3, %v3805_v12, 0.0  ;;  %15521 = vst [vmem:[#allocation183_spill] sm:$0xff] %v10950_v33  ;;  %v7349_v12 = vunpack.c.l.bf16 %v7401_v20 }
 0x17c   : > { %15517 = vst [vmem:[#allocation180_spill] sm:$0xff] %v10941_v13 }
 0x17d   : > { %v10915_v21 = vpop.permute.xlu1 %7874  ;;  %v10917_v56 = vpop.permute.xlu0 %7879 }
 0x17e   : > { %15512 = vst [vmem:[#allocation176_spill] sm:$0xff] %v10915_v21  ;;  %15513 = vst [vmem:[#allocation177_spill] sm:$0xff] %v10917_v56  ;;  %v10937_v56 = vsel %vm822_vm2, %v3762_v26, %v3763_v7  ;;  %v10956_v26 = vsel %vm15522_vm12, %v7342_v8, 0.0  ;;  %v15525_v8 = vrot.slane %v10769_v5, 1  ;;  %vm15530_vm12 = vcmp.gt.f32.partialorder %v10386_v57, 0.0 }
 0x17f   : > { %8164 = vrot.lane.b32.xlu1 %v10104_v22, %s9133_s15  ;;  %8169 = vrot.lane.b32.xlu0 %v10902_v11, %s9128_s17  ;;  %15516 = vst [vmem:[#allocation179_spill] sm:$0xff] %v10937_v56  ;;  %15523 = vst [vmem:[#allocation184_spill] sm:$0xff] %v10956_v26  ;;  %v10965_v54 = vpack.i.bf16 %v10937_v56, %v10941_v13  ;;  %v3765_v5 = vrot.slane %v10956_v26, 7  ;;  %v10997_v39 = vsel %vm15530_vm12, %v7349_v12, 0.0  ;;  %vm15534_vm12 = vcmp.gt.f32.partialorder %v10364_v34, 0.0 }
 0x180   : > { %v10977_v46 = vsel %vm1145_vm0, %v15525_v8, %v3891_v37  ;;  %v3803_v37 = vsel %vm822_vm2, %v3763_v7, %v3764_v29  ;;  %v3264_v8 = vmul.f32 %v10074_v24, %v3231_v15  ;;  %15531 = vst [vmem:[#allocation190_spill] sm:$0xff] %v10997_v39 }
 0x181   : > { %v10943_v21 = vpop.permute.xlu1 %7884  ;;  %v10945_v22 = vpop.permute.xlu0 %7889  ;;  %15526 = vst [vmem:[#allocation186_spill] sm:$0xff] %v10977_v46 }
 0x182   : > { %15518 = vst [vmem:[#allocation181_spill] sm:$0xff] %v10943_v21  ;;  %15519 = vst [vmem:[#allocation182_spill] sm:$0xff] %v10945_v22  ;;  %v10971_v22 = vadd.f32 -1.0, %v3263_v52  ;;  %v7346_v21 = vunpack.c.h.bf16 %v7400_v31  ;;  %v10988_v52 = vsel %vm1179_vm1, %v3931_v6, 0.0  ;;  %v3766_v31 = vrot.slane %v10950_v33, 7 }
 0x183   : > { %8174 = vrot.lane.b32.xlu1 %v9575_v36, %s9134_s21  ;;  %8179 = vrot.lane.b32.xlu0 %v10931_v2, %s9128_s17  ;;  %v3893_v36 = vrot.slane %v10956_v26, 1  ;;  %v3894_v2 = vrot.slane %v10950_v33, 1  ;;  %15529 = vst [vmem:[#allocation189_spill] sm:$0xff] %v10988_v52  ;;  %v11007_v15 = vadd.f32 -1.0, %v3264_v8  ;;  %v11011_v6 = vsel %vm887_vm3, %v3803_v37, 0.0 }
 0x184   : > { %15524 = vst [vmem:[#allocation185_spill] sm:$0xff] %v10971_v22  ;;  %vm3327_vm13 = vcmp.gt.f32.partialorder %v10971_v22, 0.0  ;;  %15533 = vst [vmem:[#allocation192_spill] sm:$0xff] %v11011_v6  ;;  %v11017_v12 = vsel %vm15534_vm12, %v7346_v21, 0.0  ;;  %v11032_v37 = vsel %vm822_vm2, %v3764_v29, %v3765_v5  ;;  %vm15539_vm12 = vcmp.gt.f32.partialorder %v10410_v61, 0.0 }
 0x185   : > { %v10982_v13 = vpop.permute.xlu1 %7894  ;;  %v10984_v56 = vpop.permute.xlu0 %7899  ;;  %v3618_v7 = vsel %vm3327_vm13, %v10133_v4, %v3585_v16  ;;  %15532 = vst [vmem:[#allocation191_spill] sm:$0xff] %v11007_v15  ;;  %15535 = vst [vmem:[#allocation193_spill] sm:$0xff] %v11017_v12  ;;  %v11028_v16 = vpack.i.bf16 %v10988_v52, %v10977_v46  ;;  %v3895_v21 = vrot.slane %v11017_v12, 1  ;;  %v3768_v52 = vrot.slane %v10997_v39, 7 }
 0x186   : > { %15527 = vst [vmem:[#allocation187_spill] sm:$0xff] %v10982_v13  ;;  %15528 = vst [vmem:[#allocation188_spill] sm:$0xff] %v10984_v56  ;;  %v7350_v56 = vunpack.c.h.bf16 %v7401_v20  ;;  %v3929_v20 = vsel %vm1145_vm0, %v3893_v36, %v3894_v2  ;;  %vm15228_vm8 = vcmp.gt.f32.partialorder %v11007_v15, 0.0  ;;  %v11050_v29 = vsel %vm1145_vm0, %v3892_v42, %v3893_v36  ;;  %v11069_v42 = vld [vmem:[%s10557_s12 + $0x48] sm:$0xff]  }
 0x187   : > { %8184 = vrot.lane.b32.xlu1 %v10965_v54, %s15283_s27  ;;  %8189 = vrot.lane.b32.xlu0 %v10740_v28, %s15283_s27  ;;  %3650 = vst.msk [vmem:[%s10169_s25 + $0xd0] sm:$0xff] %vm2693_vm5, %v3618_v7  ;;  %v3586_v28 = vld [vmem:[%s9467_s14 + $0xd8] sm:$0xff]  ;;  %15538 = vst [vmem:[#allocation196_spill] sm:$0xff] %v11032_v37  ;;  %v3801_v7 = vsel %vm822_vm2, %v3765_v5, %v3766_v31  ;;  %v11054_v5 = vsel %vm1179_vm1, %v3929_v20, 0.0  ;;  %v11062_v61 = vpack.i.bf16 %v11032_v37, %v11011_v6 }
 0x188   : > { %v11040_v34 = vsel %vm15539_vm12, %v7350_v56, 0.0  ;;  %15541 = vst [vmem:[#allocation198_spill] sm:$0xff] %v11050_v29  ;;  %15542 = vst [vmem:[#allocation199_spill] sm:$0xff] %v11054_v5  ;;  %v3767_v56 = vrot.slane %v11017_v12, 7  ;;  %v3619_v8 = vsel %vm15228_vm8, %v10133_v4, %v3586_v28  ;;  %v11079_v46 = vsel %vm887_vm3, %v3801_v7, 0.0  ;;  %v3232_v7 = vld [vmem:[%s9449_s29 + $0xe0] sm:$0xff] }
 0x189   : > { %v11022_v57 = vpop.permute.xlu1 %7904  ;;  %v11024_v13 = vpop.permute.xlu0 %7909  ;;  %15540 = vst [vmem:[#allocation197_spill] sm:$0xff] %v11040_v34  ;;  %3651 = vst.msk [vmem:[%s10169_s25 + $0xd8] sm:$0xff] %vm2693_vm5, %v3619_v8  ;;  %v15546_v28 = vrot.slane %v10997_v39, 1  ;;  %v11088_v6 = vpack.i.bf16 %v11054_v5, %v11050_v29  ;;  %v11092_v8 = vpack.i.bf16 %v11017_v12, %v10950_v33  ;;  %v7702_v5 = vunpack.i.h.bf16 %v10412_v17 }
 0x18a   : > { %15536 = vst [vmem:[#allocation194_spill] sm:$0xff] %v11022_v57  ;;  %15537 = vst [vmem:[#allocation195_spill] sm:$0xff] %v11024_v13  ;;  %v7353_v57 = vunpack.c.l.bf16 %v11069_v42  ;;  %v7701_v29 = vunpack.i.l.bf16 %v10412_v17  ;;  %v11112_v37 = vsel %vm1145_vm0, %v3894_v2, %v3895_v21  ;;  %v7696_v33 = vunpack.i.l.bf16 %v10414_v32 }
 0x18b   : > { %8194 = vrot.lane.b32.xlu1 %v10969_v62, %s9133_s15  ;;  %8199 = vrot.lane.b32.xlu0 %v10823_v19, %s9133_s15  ;;  %v11066_v19 = vpack.i.bf16 %v10956_v26, %v10906_v40  ;;  %15545 = vst [vmem:[#allocation202_spill] sm:$0xff] %v11079_v46  ;;  %v3927_v13 = vsel %vm1145_vm0, %v3895_v21, %v15546_v28  ;;  %15548 = vst [vmem:[#allocation204_spill] sm:$0xff] %v11112_v37  ;;  %v7697_v21 = vunpack.i.h.bf16 %v10414_v32  ;;  %v3233_v40 = vld [vmem:[%s9449_s29 + $0xe8] sm:$0xff] }
 0x18c   : > { %v11105_v28 = vsel %vm822_vm2, %v3766_v31, %v3767_v56  ;;  %vm15555_vm12 = vcmp.gt.f32.partialorder %v10449_v63, 0.0  ;;  %v11152_v32 = vsel %vm2660_vm15, %v9960_v47, %v7701_v29  ;;  %v7707_v47 = vunpack.i.h.bf16 %v10428_v50 }
 0x18d   : > { %v11073_v36 = vpop.permute.xlu1 %7914  ;;  %v11075_v20 = vpop.permute.xlu0 %7919  ;;  %15547 = vst [vmem:[#allocation203_spill] sm:$0xff] %v11105_v28  ;;  %v7706_v29 = vunpack.i.l.bf16 %v10428_v50  ;;  %v11180_v63 = vsel %vm2660_vm15, %v9930_v10, %v7697_v21  ;;  %v7712_v50 = vunpack.i.h.bf16 %v10430_v58  ;;  %v7717_v21 = vunpack.i.h.bf16 %v10451_v27 }
 0x18e   : > { %15543 = vst [vmem:[#allocation200_spill] sm:$0xff] %v11073_v36  ;;  %15544 = vst [vmem:[#allocation201_spill] sm:$0xff] %v11075_v20  ;;  %v3799_v20 = vsel %vm822_vm2, %v3767_v56, %v3768_v52  ;;  %v7692_v36 = vunpack.i.h.bf16 %v10392_v53  ;;  %v15552_v56 = vrot.slane %v11040_v34, 7  ;;  %v15586_v15 = vrot.slane %v11040_v34, 7 }
 0x18f   : > { %8204 = vrot.lane.b32.xlu1 %v10108_v0, %s9133_s15  ;;  %8209 = vrot.lane.b32.xlu0 %v11028_v16, %s9128_s17  ;;  %v11116_v0 = vsel %vm1179_vm1, %v3927_v13, 0.0  ;;  %v11131_v2 = vsel %vm887_vm3, %v3799_v20, 0.0  ;;  %v3265_v13 = vmul.f32 %v10074_v24, %v3232_v7  ;;  %v11156_v7 = vsel %vm2660_vm15, %v9956_v41, %v7702_v5 }
 0x190   : > { %15549 = vst [vmem:[#allocation205_spill] sm:$0xff] %v11116_v0  ;;  %v11127_v17 = vsel %vm822_vm2, %v3768_v52, %v15552_v56  ;;  %15554 = vst [vmem:[#allocation209_spill] sm:$0xff] %v11131_v2  ;;  %v11146_v52 = vsel %vm15555_vm12, %v7353_v57, 0.0  ;;  %v3587_v57 = vld [vmem:[%s9467_s14 + $0xe0] sm:$0xff]  ;;  %v11169_v56 = vsel %vm2660_vm15, %v9934_v60, %v7696_v33  ;;  %v3266_v5 = vmul.f32 %v10074_v24, %v3233_v40  ;;  %v11185_v33 = vld [vmem:[%s10557_s12 + $0x50] sm:$0xff]  }
 0x191   : > { %v11119_v12 = vpop.permute.xlu1 %7924  ;;  %v11121_v31 = vpop.permute.xlu0 %7929  ;;  %15553 = vst [vmem:[#allocation208_spill] sm:$0xff] %v11127_v17  ;;  %15556 = vst [vmem:[#allocation210_spill] sm:$0xff] %v11146_v52  ;;  %v11148_v20 = vadd.f32 -1.0, %v3265_v13  ;;  %v7716_v60 = vunpack.i.l.bf16 %v10451_v27  ;;  %v15564_v26 = vrot.slane %v11146_v52, 1  ;;  %v15589_v22 = vunpack.i.l.bf16 %v10392_v53  ;;  %v15593_v53 = vld [vmem:[#allocation92_spill] sm:$0xff] }
 0x192   : > { %15550 = vst [vmem:[#allocation206_spill] sm:$0xff] %v11119_v12  ;;  %15551 = vst [vmem:[#allocation207_spill] sm:$0xff] %v11121_v31  ;;  %v11137_v12 = vpack.i.bf16 %v11105_v28, %v11079_v46  ;;  %v11197_v40 = vadd.f32 -1.0, %v3266_v5  ;;  %v7722_v5 = vunpack.i.h.bf16 %v10453_v55  ;;  %v7357_v28 = vunpack.c.l.bf16 %v11185_v33  ;;  %v15590_v31 = vld [vmem:[#allocation90_spill] sm:$0xff] }
 0x193   : > { %8214 = vrot.lane.b32.xlu1 %v15424_v23, %s9134_s21  ;;  %8219 = vrot.lane.b32.xlu0 %v10860_v14, %s9128_s17  ;;  %15557 = vst [vmem:[#allocation211_spill] sm:$0xff] %v11148_v20  ;;  %v11160_v23 = vpack.i.bf16 %v11116_v0, %v11112_v37  ;;  %v11164_v14 = vpack.i.bf16 %v11127_v17, %v11131_v2  ;;  %v3897_v0 = vrot.slane %v11040_v34, 1  ;;  %vm15134_vm12 = vcmp.gt.f32.partialorder %v11148_v20, 0.0  ;;  %v15561_v17 = vld [vmem:[#allocation80_spill] sm:$0xff] }
 0x194   : > { %v7711_v37 = vunpack.i.l.bf16 %v10430_v58  ;;  %v3620_v10 = vsel %vm15134_vm12, %v10133_v4, %v3587_v57  ;;  %15560 = vst [vmem:[#allocation214_spill] sm:$0xff] %v11197_v40  ;;  %v11203_v2 = vpack.i.bf16 %v11040_v34, %v10997_v39  ;;  %v3588_v58 = vld [vmem:[%s9467_s14 + $0xe8] sm:$0xff]  ;;  %v11214_v57 = vsel %vm2660_vm15, %v15561_v17, %v7706_v29 }
 0x195   : > { %v11173_v13 = vpop.permute.xlu1 %7934  ;;  %v11175_v41 = vpop.permute.xlu0 %7939  ;;  %3652 = vst.msk [vmem:[%s10169_s25 + $0xe0] sm:$0xff] %vm2693_vm5, %v3620_v10  ;;  %v7721_v10 = vunpack.i.l.bf16 %v10453_v55  ;;  %vm15132_vm9 = vcmp.gt.f32.partialorder %v11197_v40, 0.0  ;;  %v11230_v17 = vsel %vm2660_vm15, 0.0, %v7692_v36  ;;  %v15565_v29 = vld [vmem:[#allocation82_spill] sm:$0xff]  ;;  %v15568_v36 = vld [vmem:[#allocation85_spill] sm:$0xff]  ;;  %vm15578_vm12 = vcmp.gt.f32.partialorder %v10484_v9, 0.0 }
 0x196   : > { %15558 = vst [vmem:[#allocation212_spill] sm:$0xff] %v11173_v13  ;;  %15559 = vst [vmem:[#allocation213_spill] sm:$0xff] %v11175_v41  ;;  %v11234_v20 = vsel %vm2660_vm15, %v15565_v29, %v7712_v50  ;;  %v3621_v55 = vsel %vm15132_vm9, %v10133_v4, %v3588_v58  ;;  %v11253_v50 = vsel %vm2660_vm15, %v15568_v36, %v7716_v60  ;;  %v3770_v60 = vrot.slane %v11146_v52, 7  ;;  %v15577_v36 = vld [vmem:[#allocation87_spill] sm:$0xff]  ;;  %v15583_v9 = vld [vmem:[#allocation88_spill] sm:$0xff] }
 0x197   : > { %8224 = vrot.lane.b32.xlu1 %v11062_v61, %s15283_s27  ;;  %8229 = vrot.lane.b32.xlu0 %v10902_v11, %s15283_s27  ;;  %v11210_v11 = vsel %vm2660_vm15, %v9964_v59, %v7707_v47  ;;  %v3925_v59 = vsel %vm1145_vm0, %v3897_v0, %v15564_v26  ;;  %v7354_v47 = vunpack.c.h.bf16 %v11069_v42  ;;  %v15567_v26 = vld [vmem:[#allocation84_spill] sm:$0xff]  ;;  %3653 = vst.msk [vmem:[%s10169_s25 + $0xe8] sm:$0xff] %vm2693_vm5, %v3621_v55  ;;  %vm15574_vm9 = vcmp.gt.f32.partialorder %v10520_v3, 0.0 }
 0x198   : > { %v11249_v42 = vsel %vm2660_vm15, %v15567_v26, %v7717_v21  ;;  %v11270_v21 = vsel %vm1179_vm1, %v3925_v59, 0.0  ;;  %v11275_v26 = vsel %vm15574_vm9, %v7357_v28, 0.0  ;;  %v15581_v28 = vld [vmem:[#allocation94_spill] sm:$0xff]  ;;  %v2661_v34 = vsel %vm2660_vm15, 0.0, %v15589_v22 }
 0x199   : > { %v11217_v46 = vpop.permute.xlu1 %7944  ;;  %v11219_v27 = vpop.permute.xlu0 %7949  ;;  %15573 = vst [vmem:[#allocation85_spill] sm:$0xff] %v11270_v21  ;;  %15575 = vst [vmem:[#allocation216_spill] sm:$0xff] %v11275_v26  ;;  %v11288_v59 = vsel %vm15578_vm12, %v7354_v47, 0.0  ;;  %v15587_v47 = vld [vmem:[#allocation89_spill] sm:$0xff] }
 0x19a   : > { %15562 = vst [vmem:[#allocation80_spill] sm:$0xff] %v11217_v46  ;;  %15563 = vst [vmem:[#allocation215_spill] sm:$0xff] %v11219_v27  ;;  %v15566_v27 = vld [vmem:[#allocation83_spill] sm:$0xff]  ;;  %v3771_v41 = vrot.slane %v11288_v59, 7 }
 0x19b   : > { %v11238_v46 = vsel %vm2660_vm15, %v15566_v27, %v7711_v37  ;;  %8234 = vrot.lane.b32.xlu1 %v11066_v19, %s9133_s15  ;;  %8239 = vrot.lane.b32.xlu0 %v10965_v54, %s9133_s15  ;;  %v15569_v37 = vrot.slane %v10997_v39, 1  ;;  %v7727_v54 = vunpack.i.h.bf16 %v10467_v1  ;;  %v7726_v39 = vunpack.i.l.bf16 %v10467_v1 }
 0x19c   : > { %v3899_v1 = vrot.slane %v11288_v59, 1 }
 0x19d   : > { %v11259_v27 = vsel %vm1145_vm0, %v15569_v37, %v3897_v0  ;;  %v11264_v29 = vpop.permute.xlu1 %7954  ;;  %v11266_v58 = vpop.permute.xlu0 %7959  ;;  %v15576_v0 = vld [vmem:[#allocation86_spill] sm:$0xff]  ;;  %v11283_v37 = vsel %vm2660_vm15, %v15577_v36, %v7721_v10  ;;  %v3234_v36 = vld [vmem:[%s9449_s29 + $0xf0] sm:$0xff]  ;;  %v11320_v13 = vsel %vm2660_vm15, %v15587_v47, %v7726_v39  ;;  %v3235_v47 = vld [vmem:[%s9449_s29 + $0xf8] sm:$0xff] }
 0x19e   : > { %15570 = vst [vmem:[#allocation82_spill] sm:$0xff] %v11259_v27  ;;  %15571 = vst [vmem:[#allocation83_spill] sm:$0xff] %v11264_v29  ;;  %v11279_v55 = vsel %vm2660_vm15, %v15576_v0, %v7722_v5  ;;  %v15582_v5 = vld [vmem:[#allocation51_spill] sm:$0xff]  ;;  %v11299_v10 = vpack.i.bf16 %v11270_v21, %v11259_v27  ;;  %v3797_v21 = vsel %vm822_vm2, %v15586_v15, %v3770_v60  ;;  %v7358_v27 = vunpack.c.h.bf16 %v11185_v33 }
 0x19f   : > { %15572 = vst [vmem:[#allocation84_spill] sm:$0xff] %v11266_v58  ;;  %15579 = vst [vmem:[#allocation86_spill] sm:$0xff] %v11288_v59  ;;  %v15580_v58 = vld [vmem:[#allocation47_spill] sm:$0xff]  ;;  %8244 = vrot.lane.b32.xlu1 %v15581_v28, %s9133_s15  ;;  %8249 = vrot.lane.b32.xlu0 %v11088_v6, %s9128_s17  ;;  %v7737_v0 = vunpack.i.h.bf16 %v15582_v5 }
 0x1a0   : > { %v7732_v40 = vunpack.i.h.bf16 %v15580_v58  ;;  %v7731_v3 = vunpack.i.l.bf16 %v15580_v58  ;;  %v11306_v58 = vsel %vm2660_vm15, %v15583_v9, %v7727_v54  ;;  %v7736_v9 = vunpack.i.l.bf16 %v15582_v5  ;;  %v15588_v54 = vld [vmem:[#allocation129_spill] sm:$0xff]  ;;  %v15591_v15 = vld [vmem:[#allocation91_spill] sm:$0xff] }
 0x1a1   : > { %v11308_v29 = vpop.permute.xlu1 %7964  ;;  %v11310_v28 = vpop.permute.xlu0 %7969  ;;  %v15592_v39 = vld [vmem:[#allocation35_spill] sm:$0xff]  ;;  %v3267_v5 = vmul.f32 %v10074_v24, %v3234_v36  ;;  %v11343_v22 = vsel %vm2660_vm15, %v15593_v53, %v7737_v0  ;;  %v11360_v36 = vsel %vm822_vm2, %v3770_v60, %v3771_v41  ;;  %v11364_v0 = vsel %vm15182_vm14, %v7358_v27, 0.0 }
 0x1a2   : > { %15584 = vst [vmem:[#allocation87_spill] sm:$0xff] %v11308_v29  ;;  %15585 = vst [vmem:[#allocation47_spill] sm:$0xff] %v11310_v28  ;;  %v7742_v29 = vunpack.i.h.bf16 %v15588_v54  ;;  %v7741_v28 = vunpack.i.l.bf16 %v15588_v54  ;;  %v11330_v18 = vsel %vm2660_vm15, %v15590_v31, %v7732_v40  ;;  %v11334_v33 = vsel %vm2660_vm15, %v15591_v15, %v7731_v3 }
 0x1a3   : > { %8254 = vrot.lane.b32.xlu1 %v15592_v39, %s9134_s21  ;;  %8259 = vrot.lane.b32.xlu0 %v10969_v62, %s9128_s17  ;;  %15594 = vst [vmem:[#allocation94_spill] sm:$0xff] %v11343_v22  ;;  %v11347_v31 = vsel %vm887_vm3, %v3797_v21, 0.0  ;;  %v15596_v3 = vrot.slane %v11275_v26, 1  ;;  %15599 = vst [vmem:[#allocation129_spill] sm:$0xff] %v11360_v36  ;;  %v3772_v21 = vrot.slane %v11275_v26, 7  ;;  %v11367_v15 = vadd.f32 -1.0, %v3267_v5 }
 0x1a4   : > { %15595 = vst [vmem:[#allocation51_spill] sm:$0xff] %v11347_v31  ;;  %15600 = vst [vmem:[#allocation90_spill] sm:$0xff] %v11364_v0  ;;  %v15602_v39 = vld [vmem:[#allocation93_spill] sm:$0xff]  ;;  %v11383_v27 = vpack.i.bf16 %v11288_v59, %v11146_v52  ;;  %v3268_v5 = vmul.f32 %v10074_v24, %v3235_v47  ;;  %v15616_v59 = vld [vmem:[#allocation134_spill] sm:$0xff]  ;;  %vm2726_vm14 = vcmask 392192  }
 0x1a5   : > { %v3923_v40 = vsel %vm1145_vm0, %v3899_v1, %v15596_v3  ;;  %v11354_v54 = vpop.permute.xlu1 %7974  ;;  %v11356_v62 = vpop.permute.xlu0 %7979  ;;  %15601 = vst [vmem:[#allocation91_spill] sm:$0xff] %v11367_v15  ;;  %v11371_v53 = vsel %vm2660_vm15, %v15602_v39, %v7736_v9  ;;  %v15603_v3 = vld [vmem:[#allocation95_spill] sm:$0xff]  ;;  %v15607_v9 = vrot.slane %v11146_v52, 1  ;;  %vm3331_vm9 = vcmp.gt.f32.partialorder %v11367_v15, 0.0 }
 0x1a6   : > { %15597 = vst [vmem:[#allocation88_spill] sm:$0xff] %v11354_v54  ;;  %15598 = vst [vmem:[#allocation89_spill] sm:$0xff] %v11356_v62  ;;  %v11375_v22 = vsel %vm2660_vm15, %v15603_v3, %v7742_v29  ;;  %v15605_v62 = vld [vmem:[#allocation100_spill] sm:$0xff]  ;;  %v11416_v47 = vadd.f32 -1.0, %v3268_v5 }
 0x1a7   : > { %15604 = vst [vmem:[#allocation35_spill] sm:$0xff] %v11375_v22  ;;  %v11379_v60 = vsel %vm2660_vm15, %v15605_v62, %v7741_v28  ;;  %8264 = vrot.lane.b32.xlu1 %v11137_v12, %s15283_s27  ;;  %8269 = vrot.lane.b32.xlu0 %v11028_v16, %s15283_s27  ;;  %v11394_v29 = vsel %vm1145_vm0, %v15607_v9, %v3899_v1  ;;  %v11398_v28 = vsel %vm1179_vm1, %v3923_v40, 0.0  ;;  %v15613_v9 = vld [vmem:[#allocation131_spill] sm:$0xff]  ;;  %v7777_v22 = vunpack.i.h.bf16 %v15616_v59  ;;  %v7404_v5 = vld [vmem:[%s10557_s12 + $0x58] sm:$0xff]  }
 0x1a8   : > { %15606 = vst [vmem:[#allocation92_spill] sm:$0xff] %v11379_v60  ;;  %15608 = vst [vmem:[#allocation93_spill] sm:$0xff] %v11394_v29  ;;  %v11403_v62 = vpack.i.bf16 %v11360_v36, %v11347_v31  ;;  %v3795_v1 = vsel %vm822_vm2, %v3771_v41, %v3772_v21  ;;  %v3622_v40 = vsel %vm3331_vm9, %v10133_v4, %v3589_v49  ;;  %v7772_v31 = vunpack.i.h.bf16 %v15613_v9  ;;  %v15621_v60 = vld [vmem:[#allocation43_spill] sm:$0xff] }
 0x1a9   : > { %15609 = vst [vmem:[#allocation95_spill] sm:$0xff] %v11398_v28  ;;  %v11407_v16 = vpop.permute.xlu1 %7984  ;;  %v11409_v3 = vpop.permute.xlu0 %7989  ;;  %15612 = vst [vmem:[#allocation218_spill] sm:$0xff] %v11416_v47  ;;  %v7771_v39 = vunpack.i.l.bf16 %v15613_v9  ;;  %v11422_v36 = vpack.i.bf16 %v11398_v28, %v11394_v29  ;;  %v7776_v49 = vunpack.i.l.bf16 %v15616_v59  ;;  %v15617_v9 = vld [vmem:[#allocation42_spill] sm:$0xff]  ;;  %vm3332_vm12 = vcmp.gt.f32.partialorder %v11416_v47, 0.0 }
 0x1aa   : > { %15610 = vst [vmem:[#allocation100_spill] sm:$0xff] %v11407_v16  ;;  %15611 = vst [vmem:[#allocation217_spill] sm:$0xff] %v11409_v3  ;;  %v3590_v3 = vld [vmem:[%s9467_s14 + $0xf8] sm:$0xff]  ;;  %v15615_v16 = vld [vmem:[#allocation133_spill] sm:$0xff]  ;;  %v7792_v28 = vunpack.i.h.bf16 %v15617_v9  ;;  %v7791_v59 = vunpack.i.l.bf16 %v15617_v9  ;;  %v7786_v54 = vunpack.i.l.bf16 %v15621_v60 }
 0x1ab   : > { %15614 = vst [vmem:[#allocation131_spill] sm:$0xff] %v11422_v36  ;;  %3654 = vst.msk [vmem:[%s10169_s25 + $0xf0] sm:$0xff] %vm2693_vm5, %v3622_v40  ;;  %v7782_v52 = vunpack.i.h.bf16 %v15615_v16  ;;  %v7781_v41 = vunpack.i.l.bf16 %v15615_v16  ;;  %8274 = vrot.lane.b32.xlu1 %v11092_v8, %s9133_s15  ;;  %8279 = vrot.lane.b32.xlu0 %v11062_v61, %s9133_s15  ;;  %v15618_v40 = vrot.slane %v11364_v0, 7  ;;  %v11445_v16 = vsel %vm887_vm3, %v3795_v1, 0.0 }
 0x1ac   : > { %15620 = vst [vmem:[#allocation134_spill] sm:$0xff] %v11445_v16  ;;  %v7787_v61 = vunpack.i.h.bf16 %v15621_v60  ;;  %v11460_v1 = vsel %vm2693_vm5, %v11230_v17, %v7772_v31  ;;  %v11463_v9 = vsel %vm2693_vm5, %v2661_v34, %v7771_v39  ;;  %v15624_v17 = vld [vmem:[#allocation106_spill] sm:$0xff]  ;;  %v3204_v34 = vld [vmem:[%s9449_s29] sm:$0xff]  ;;  %v11486_v31 = vsel %vm2693_vm5, %v11180_v63, %v7777_v22  ;;  %v3206_v39 = vld [vmem:[%s9449_s29 + $0x10] sm:$0xff] }
 0x1ad   : > { %v11441_v29 = vsel %vm822_vm2, %v3772_v21, %v15618_v40  ;;  %v11451_v15 = vpop.permute.xlu1 %7994  ;;  %v11453_v36 = vpop.permute.xlu0 %7999  ;;  %v3623_v21 = vsel %vm3332_vm12, %v10133_v4, %v3590_v3  ;;  %v7361_v40 = vunpack.c.l.bf16 %v7404_v5  ;;  %v11469_v60 = vsel %vm2693_vm5, %v11156_v7, %v7782_v52  ;;  %v7394_v7 = vld [vmem:[%s10557_s12 + $0x8] sm:$0xff]  }
 0x1ae   : > { %15619 = vst [vmem:[#allocation133_spill] sm:$0xff] %v11441_v29  ;;  %15622 = vst [vmem:[#allocation42_spill] sm:$0xff] %v11451_v15  ;;  %v11477_v3 = vsel %vm2693_vm5, %v11169_v56, %v7776_v49  ;;  %v11490_v52 = vpack.i.bf16 %v11441_v29, %v11445_v16  ;;  %v3205_v56 = vld [vmem:[%s9449_s29 + $0x8] sm:$0xff]  ;;  %v11505_v49 = vsel %vm2693_vm5, %v11234_v20, %v7792_v28  ;;  %v7362_v20 = vunpack.c.h.bf16 %v7404_v5  ;;  %v15629_v5 = vld [vmem:[#allocation136_spill] sm:$0xff] }
 0x1af   : > { %15623 = vst [vmem:[#allocation43_spill] sm:$0xff] %v11453_v36  ;;  %3655 = vst.msk [vmem:[%s10169_s25 + $0xf8] sm:$0xff] %vm2693_vm5, %v3623_v21  ;;  %v11473_v36 = vsel %vm2693_vm5, %v11152_v32, %v7781_v41  ;;  %8284 = vrot.lane.b32.xlu1 %v15624_v17, %s9133_s15  ;;  %8289 = vrot.lane.b32.xlu0 %v11160_v23, %s9128_s17  ;;  %v11494_v32 = vpack.i.bf16 %v11364_v0, %v11275_v26  ;;  %v15645_v29 = vrot.slane %v11364_v0, 7  ;;  %v15831_v43 = vld [vmem:[#allocation35_spill] sm:$0xff] }
 0x1b0   : > { %v11501_v41 = vsel %vm2693_vm5, %v11238_v46, %v7791_v59  ;;  %v11509_v63 = vsel %vm2693_vm5, %v11210_v11, %v7787_v61  ;;  %v11513_v22 = vsel %vm2693_vm5, %v11214_v57, %v7786_v54  ;;  %v11521_v46 = vsel %vm15181_vm6, %v7361_v40, 0.0  ;;  %v15628_v61 = vld [vmem:[#allocation36_spill] sm:$0xff] }
 0x1b1   : > { %15625 = vst [vmem:[#allocation106_spill] sm:$0xff] %v11494_v32  ;;  %v11515_v21 = vpop.permute.xlu1 %8004  ;;  %v11517_v17 = vpop.permute.xlu0 %8009  ;;  %15627 = vst [vmem:[#allocation220_spill] sm:$0xff] %v11521_v46  ;;  %v3901_v59 = vrot.slane %v11364_v0, 1  ;;  %v3237_v28 = vmul.f32 %v10074_v24, %v3204_v34  ;;  %v7801_v11 = vunpack.i.l.bf16 %v10616_v25  ;;  %v7322_v57 = vunpack.c.h.bf16 %v7394_v7 }
 0x1b2   : > { %15626 = vst [vmem:[#allocation219_spill] sm:$0xff] %v11515_v21  ;;  %v3238_v54 = vmul.f32 %v10074_v24, %v3205_v56  ;;  %v3239_v40 = vmul.f32 %v10074_v24, %v3206_v39  ;;  %v7797_v21 = vunpack.i.h.bf16 %v15629_v5  ;;  %v7796_v34 = vunpack.i.l.bf16 %v15629_v5 }
 0x1b3   : > { %8294 = vrot.lane.b32.xlu1 %v15628_v61, %s9134_s21  ;;  %8299 = vrot.lane.b32.xlu0 %v11066_v19, %s9128_s17  ;;  %v15635_v24 = vrot.slane %v11275_v26, 1  ;;  %v11554_v39 = vsel %vm15180_vm4, %v7362_v20, 0.0  ;;  %v3774_v5 = vrot.slane %v11521_v46, 7  ;;  %v11557_v15 = vadd.f32 -1.0, %v3237_v28  ;;  %v3560_v19 = vld [vmem:[%s9467_s14 + $0x8] sm:$0xff]  ;;  %v15639_v26 = vld [vmem:[#allocation139_spill] sm:$0xff] }
 0x1b4   : > { %v11542_v7 = vadd.f32 -1.0, %v3238_v54  ;;  %v11544_v56 = vadd.f32 -1.0, %v3239_v40  ;;  %15637 = vst [vmem:[#allocation223_spill] sm:$0xff] %v11554_v39  ;;  %v3561_v54 = vld [vmem:[%s9467_s14 + $0x10] sm:$0xff]  ;;  %v11563_v40 = vsel %vm2693_vm5, %v11283_v37, %v7801_v11  ;;  %v11573_v20 = vsel %vm15187_vm7, %v7322_v57, 0.0  ;;  %v15641_v28 = vld [vmem:[#allocation140_spill] sm:$0xff] }
 0x1b5   : > { %v11537_v61 = vpop.permute.xlu1 %8014  ;;  %v11539_v47 = vpop.permute.xlu0 %8019  ;;  %v11550_v25 = vsel %vm1145_vm0, %v15635_v24, %v3901_v59  ;;  %15638 = vst [vmem:[#allocation224_spill] sm:$0xff] %v11557_v15  ;;  %v7811_v24 = vunpack.i.l.bf16 %v15639_v26  ;;  %15640 = vst [vmem:[#allocation139_spill] sm:$0xff] %v11573_v20  ;;  %v7807_v48 = vunpack.i.h.bf16 %v15641_v28  ;;  %v7806_v37 = vunpack.i.l.bf16 %v15641_v28 }
 0x1b6   : > { %15632 = vst [vmem:[#allocation36_spill] sm:$0xff] %v11539_v47  ;;  %15633 = vst [vmem:[#allocation136_spill] sm:$0xff] %v11542_v7  ;;  %v7812_v47 = vunpack.i.h.bf16 %v15639_v26  ;;  %vm3302_vm4 = vcmp.gt.f32.partialorder %v11542_v7, 0.0  ;;  %vm15214_vm6 = vcmp.gt.f32.partialorder %v11544_v56, 0.0  ;;  %v3559_v26 = vld [vmem:[%s9467_s14] sm:$0xff]  ;;  %v15644_v57 = vrot.slane %v11521_v46, 1 }
 0x1b7   : > { %15634 = vst [vmem:[#allocation221_spill] sm:$0xff] %v11544_v56  ;;  %15636 = vst [vmem:[#allocation222_spill] sm:$0xff] %v11550_v25  ;;  %8304 = vrot.lane.b32.xlu1 %v11164_v14, %s15283_s27  ;;  %8309 = vrot.lane.b32.xlu0 %v11088_v6, %s15283_s27  ;;  %v3593_v28 = vsel %vm3302_vm4, %v10133_v4, %v3560_v19  ;;  %v3594_v16 = vsel %vm15214_vm6, %v10133_v4, %v3561_v54  ;;  %vm15213_vm7 = vcmp.gt.f32.partialorder %v11557_v15, 0.0  ;;  %v15675_v56 = vld [vmem:[#allocation173_spill] sm:$0xff]  ;;  %vm2858_vm6 = vcmask 916480   ;;  %s13395_s14 = scalar_lea.vmem [#allocation12], %s6958_s20 }
 0x1b8   : > { %v3921_v44 = vsel %vm1145_vm0, %v3901_v59, %v15644_v57  ;;  %v3793_v59 = vsel %vm822_vm2, %v15645_v29, %v3774_v5  ;;  %v7405_v57 = vld [vmem:[%s10557_s12 + $0x60] sm:$0xff]   ;;  %3625 = vst.msk [vmem:[%s10169_s25 + $0x8] sm:$0xff] %vm2693_vm5, %v3593_v28  ;;  %3626 = vst.msk [vmem:[%s10169_s25 + $0x10] sm:$0xff] %vm2693_vm5, %v3594_v16  ;;  %v11609_v19 = vsel %vm2693_vm5, %v11279_v55, %v7802_v30  ;;  %v3903_v0 = vrot.slane %v11554_v39, 1 }
 0x1b9   : > { %v11580_v11 = vpop.permute.xlu1 %8024  ;;  %v11582_v6 = vpop.permute.xlu0 %8029  ;;  %v11613_v54 = vsel %vm2693_vm5, %v11249_v42, %v7797_v21  ;;  %v3592_v29 = vsel %vm15213_vm7, %v10133_v4, %v3559_v26  ;;  %v11625_v30 = vsel %vm2693_vm5, %v11253_v50, %v7796_v34  ;;  %v11629_v42 = vsel %vm1179_vm1, %v3921_v44, 0.0 }
 0x1ba   : > { %15642 = vst [vmem:[#allocation140_spill] sm:$0xff] %v11580_v11  ;;  %15643 = vst [vmem:[#allocation225_spill] sm:$0xff] %v11582_v6  ;;  %v3756_v6 = vrot.slane %v10720_v45, 7  ;;  %v15646_v11 = vld [vmem:[#allocation144_spill] sm:$0xff]  ;;  %v11635_v55 = vsel %vm2693_vm5, %v11334_v33, %v7811_v24  ;;  %v15649_v21 = vrot.slane %v11554_v39, 7  ;;  %v11649_v44 = vsel %vm887_vm3, %v3793_v59, 0.0 }
 0x1bb   : > { %v7816_v32 = vunpack.i.l.bf16 %v15646_v11  ;;  %8314 = vrot.lane.b32.xlu1 %v11203_v2, %s9133_s15  ;;  %8319 = vrot.lane.b32.xlu0 %v11137_v12, %s9133_s15  ;;  %15647 = vst [vmem:[#allocation144_spill] sm:$0xff] %v11629_v42  ;;  %3624 = vst.msk [vmem:[%s10169_s25] sm:$0xff] %vm2693_vm5, %v3592_v29  ;;  %v7365_v34 = vunpack.c.l.bf16 %v7405_v57  ;;  %v11653_v26 = vsel %vm2693_vm5, %v11330_v18, %v7812_v47  ;;  %v15655_v18 = vld [vmem:[#allocation107_spill] sm:$0xff]  ;;  %v15664_v45 = vld [vmem:[#allocation165_spill] sm:$0xff]  ;;  %vm2825_vm7 = vcmask 785408  }
 0x1bc   : > { %v11645_v50 = vsel %vm822_vm2, %v3774_v5, %v15649_v21  ;;  %15651 = vst [vmem:[#allocation228_spill] sm:$0xff] %v11649_v44  ;;  %v11657_v33 = vsel %vm2693_vm5, %v11306_v58, %v7807_v48  ;;  %v11661_v24 = vsel %vm2693_vm5, %v11320_v13, %v7806_v37  ;;  %v15652_v5 = vrot.slane %v11573_v20, 7  ;;  %v15656_v13 = vld [vmem:[#allocation44_spill] sm:$0xff]  ;;  %v15657_v58 = vld [vmem:[#allocation45_spill] sm:$0xff] }
 0x1bd   : > { %v11637_v16 = vpop.permute.xlu1 %8034  ;;  %v11639_v12 = vpop.permute.xlu0 %8039  ;;  %15650 = vst [vmem:[#allocation227_spill] sm:$0xff] %v11645_v50  ;;  %v11670_v21 = vsel %vm2693_vm5, %v11371_v53, %v7816_v32  ;;  %v11678_v48 = vpack.i.bf16 %v11629_v42, %v11550_v25  ;;  %v7852_v37 = vunpack.i.h.bf16 %v10808_v38  ;;  %v11691_v32 = vpack.i.bf16 %v11645_v50, %v11649_v44  ;;  %v15663_v44 = vld [vmem:[#allocation55_spill] sm:$0xff]  ;;  %v15667_v20 = vld [vmem:[#allocation172_spill] sm:$0xff] }
 0x1be   : > { %15648 = vst [vmem:[#allocation226_spill] sm:$0xff] %v11639_v12  ;;  %v3811_v28 = vsel %vm822_vm2, %v15652_v5, %v3756_v6  ;;  %15654 = vst [vmem:[#allocation229_spill] sm:$0xff] %v11670_v21  ;;  %v15658_v5 = vrot.slane %v10684_v35, 7  ;;  %v11703_v47 = vpack.i.bf16 %v11554_v39, %v11521_v46  ;;  %v7851_v25 = vunpack.i.l.bf16 %v10808_v38  ;;  %v15662_v35 = vld [vmem:[#allocation54_spill] sm:$0xff] }
 0x1bf   : > { %8324 = vrot.lane.b32.xlu1 %v15655_v18, %s9133_s15  ;;  %8329 = vrot.lane.b32.xlu0 %v11299_v10, %s9128_s17  ;;  %v11699_v4 = vsel %vm887_vm3, %v3811_v28, 0.0  ;;  %v7856_v21 = vunpack.i.l.bf16 %v15664_v45  ;;  %v15665_v28 = vld [vmem:[#allocation37_spill] sm:$0xff]  ;;  %v15666_v38 = vld [vmem:[#allocation166_spill] sm:$0xff] }
 0x1c0   : > { %v11687_v53 = vsel %vm822_vm2, %v3756_v6, %v15658_v5  ;;  %v11707_v6 = vsel %vm15205_vm11, %v7365_v34, 0.0  ;;  %v7366_v5 = vunpack.c.h.bf16 %v7405_v57  ;;  %v11720_v34 = vsel %vm2726_vm14, %v11460_v1, %v7852_v37 }
 0x1c1   : > { %v11693_v18 = vpop.permute.xlu1 %8044  ;;  %v11695_v29 = vpop.permute.xlu0 %8049  ;;  %v7857_v57 = vunpack.i.h.bf16 %v15664_v45  ;;  %v7862_v42 = vunpack.i.h.bf16 %v15666_v38  ;;  %v7861_v59 = vunpack.i.l.bf16 %v15666_v38  ;;  %v3776_v1 = vrot.slane %v11707_v6, 7 }
 0x1c2   : > { %15659 = vst [vmem:[#allocation107_spill] sm:$0xff] %v11693_v18  ;;  %15660 = vst [vmem:[#allocation44_spill] sm:$0xff] %v11695_v29  ;;  %v7866_v29 = vunpack.i.l.bf16 %v15667_v20  ;;  %v2727_v45 = vsel %vm2726_vm14, %v11463_v9, %v7851_v25  ;;  %v7867_v37 = vunpack.i.h.bf16 %v15667_v20  ;;  %vm2759_vm11 = vcmask 523264   ;;  %v15676_v20 = vld [vmem:[#allocation176_spill] sm:$0xff] }
 0x1c3   : > { %8334 = vrot.lane.b32.xlu1 %v15665_v28, %s9134_s21  ;;  %8339 = vrot.lane.b32.xlu0 %v11092_v8, %s9128_s17  ;;  %v11733_v8 = vsel %vm15211_vm10, %v7366_v5, 0.0  ;;  %v15671_v38 = vrot.slane %v11521_v46, 1  ;;  %v11749_v5 = vsel %vm2726_vm14, %v11477_v3, %v7856_v21  ;;  %v7872_v18 = vunpack.i.h.bf16 %v15675_v56 }
 0x1c4   : > { %v7871_v9 = vunpack.i.l.bf16 %v15675_v56  ;;  %v11759_v25 = vsel %vm2726_vm14, %v11486_v31, %v7857_v57  ;;  %vm2792_vm10 = vcmask 654336   ;;  %v15677_v3 = vrot.slane %v11707_v6, 1 }
 0x1c5   : > { %v11727_v15 = vpop.permute.xlu1 %8054  ;;  %v11729_v28 = vpop.permute.xlu0 %8059  ;;  %v11743_v50 = vsel %vm1145_vm0, %v15671_v38, %v3903_v0  ;;  %v7876_v38 = vunpack.i.l.bf16 %v15676_v20  ;;  %v11769_v7 = vsel %vm2726_vm14, %v11469_v60, %v7862_v42  ;;  %v11777_v31 = vsel %vm2726_vm14, %v11513_v22, %v7866_v29  ;;  %v15681_v42 = vld [vmem:[#allocation177_spill] sm:$0xff]  ;;  %v11795_v29 = vld [vmem:[%s10557_s12 + $0x68] sm:$0xff]  }
 0x1c6   : > { %15668 = vst [vmem:[#allocation45_spill] sm:$0xff] %v11727_v15  ;;  %15669 = vst [vmem:[#allocation54_spill] sm:$0xff] %v11729_v28  ;;  %v15673_v15 = vld [vmem:[#allocation52_spill] sm:$0xff]  ;;  %v15674_v28 = vld [vmem:[#allocation53_spill] sm:$0xff]  ;;  %v3919_v21 = vsel %vm1145_vm0, %v3903_v0, %v15677_v3  ;;  %v15680_v0 = vrot.slane %v11554_v39, 7  ;;  %v11789_v60 = vsel %vm2726_vm14, %v11509_v63, %v7867_v37  ;;  %v7881_v22 = vunpack.i.l.bf16 %v15681_v42 }
 0x1c7   : > { %15672 = vst [vmem:[#allocation55_spill] sm:$0xff] %v11743_v50  ;;  %8344 = vrot.lane.b32.xlu1 %v11403_v62, %s15283_s27  ;;  %8349 = vrot.lane.b32.xlu0 %v11160_v23, %s15283_s27  ;;  %v11773_v23 = vsel %vm2726_vm14, %v11473_v36, %v7861_v59  ;;  %v7877_v36 = vunpack.i.h.bf16 %v15676_v20  ;;  %v7882_v59 = vunpack.i.h.bf16 %v15681_v42  ;;  %v11799_v56 = vsel %vm2726_vm14, %v11505_v49, %v7872_v18 }
 0x1c8   : > { %v3791_v3 = vsel %vm822_vm2, %v15680_v0, %v3776_v1  ;;  %v11803_v0 = vsel %vm2726_vm14, %v11501_v41, %v7871_v9  ;;  %v11811_v63 = vsel %vm1179_vm1, %v3919_v21, 0.0  ;;  %v11815_v37 = vpack.i.bf16 %v11733_v8, %v11707_v6  ;;  %v15687_v9 = vld [vmem:[#allocation207_spill] sm:$0xff] }
 0x1c9   : > { %v11779_v57 = vpop.permute.xlu1 %8064  ;;  %v11781_v46 = vpop.permute.xlu0 %8069  ;;  %15682 = vst [vmem:[#allocation166_spill] sm:$0xff] %v11811_v63  ;;  %v11819_v49 = vsel %vm2726_vm14, %v11625_v30, %v7876_v38  ;;  %v15684_v41 = vrot.slane %v11733_v8, 7  ;;  %v7932_v20 = vunpack.i.h.bf16 %v15687_v9  ;;  %v7931_v21 = vunpack.i.l.bf16 %v15687_v9 }
 0x1ca   : > { %15678 = vst [vmem:[#allocation165_spill] sm:$0xff] %v11779_v57  ;;  %15679 = vst [vmem:[#allocation37_spill] sm:$0xff] %v11781_v46  ;;  %v7369_v30 = vunpack.c.l.bf16 %v11795_v29  ;;  %v11840_v38 = vpack.i.bf16 %v11687_v53, %v11699_v4  ;;  %v11856_v9 = vpack.i.bf16 %v11811_v63, %v11743_v50  ;;  %v15694_v46 = vld [vmem:[#allocation112_spill] sm:$0xff]  ;;  %v15700_v57 = vld [vmem:[#allocation182_spill] sm:$0xff] }
 0x1cb   : > { %8354 = vrot.lane.b32.xlu1 %v11383_v27, %s9133_s15  ;;  %8359 = vrot.lane.b32.xlu0 %v11164_v14, %s9133_s15  ;;  %15683 = vst [vmem:[#allocation172_spill] sm:$0xff] %v11815_v37  ;;  %v11825_v18 = vsel %vm822_vm2, %v3776_v1, %v15684_v41  ;;  %v11829_v14 = vsel %vm887_vm3, %v3791_v3, 0.0  ;;  %v11844_v1 = vsel %vm2726_vm14, %v11613_v54, %v7877_v36  ;;  %v15695_v54 = vld [vmem:[#allocation131_spill] sm:$0xff] }
 0x1cc   : > { %15685 = vst [vmem:[#allocation52_spill] sm:$0xff] %v11825_v18  ;;  %15686 = vst [vmem:[#allocation53_spill] sm:$0xff] %v11829_v14  ;;  %v11848_v3 = vsel %vm2726_vm14, %v11609_v19, %v7882_v59  ;;  %v11852_v41 = vsel %vm2726_vm14, %v11563_v40, %v7881_v22  ;;  %v11866_v19 = vpack.i.bf16 %v11825_v18, %v11829_v14  ;;  %v15699_v22 = vld [vmem:[#allocation181_spill] sm:$0xff]  ;;  %v11878_v14 = vsel %vm3327_vm13, %v7369_v30, 0.0 }
 0x1cd   : > { %v11833_v42 = vpop.permute.xlu1 %8074  ;;  %v11835_v39 = vpop.permute.xlu0 %8079  ;;  %15690 = vst [vmem:[#allocation177_spill] sm:$0xff] %v11840_v38  ;;  %15691 = vst [vmem:[#allocation207_spill] sm:$0xff] %v11844_v1  ;;  %v7887_v63 = vunpack.i.h.bf16 %v15699_v22  ;;  %v7886_v50 = vunpack.i.l.bf16 %v15699_v22  ;;  %v7892_v38 = vunpack.i.h.bf16 %v15700_v57  ;;  %v7370_v18 = vunpack.c.h.bf16 %v11795_v29  ;;  %v15702_v22 = vld [vmem:[#allocation212_spill] sm:$0xff] }
 0x1ce   : > { %15688 = vst [vmem:[#allocation173_spill] sm:$0xff] %v11833_v42  ;;  %15689 = vst [vmem:[#allocation176_spill] sm:$0xff] %v11835_v39  ;;  %v8012_v39 = vunpack.i.h.bf16 %v11517_v17  ;;  %v8011_v42 = vunpack.i.l.bf16 %v11517_v17  ;;  %v2760_v17 = vsel %vm2759_vm11, %v2727_v45, %v7931_v21  ;;  %v7936_v1 = vunpack.i.l.bf16 %v15702_v22 }
 0x1cf   : > { %15692 = vst [vmem:[#allocation230_spill] sm:$0xff] %v11848_v3  ;;  %15693 = vst [vmem:[#allocation231_spill] sm:$0xff] %v11852_v41  ;;  %8364 = vrot.lane.b32.xlu1 %v15694_v46, %s9133_s15  ;;  %8369 = vrot.lane.b32.xlu0 %v15695_v54, %s9128_s17  ;;  %v2761_v46 = vsel %vm2759_vm11, %v11720_v34, %v7932_v20  ;;  %v15703_v20 = vld [vmem:[#allocation38_spill] sm:$0xff]  ;;  %v8017_v29 = vunpack.i.h.bf16 %v11537_v61  ;;  %v8016_v21 = vunpack.i.l.bf16 %v11537_v61  ;;  %v3906_v12 = vrot.slane %v11878_v14, 1 }
 0x1d0   : > { %15696 = vst [vmem:[#allocation112_spill] sm:$0xff] %v11866_v19  ;;  %v7937_v19 = vunpack.i.h.bf16 %v15702_v22  ;;  %v2793_v45 = vsel %vm2792_vm10, %v2760_v17, %v8011_v42  ;;  %v2794_v34 = vsel %vm2792_vm10, %v2761_v46, %v8012_v39  ;;  %v3905_v46 = vrot.slane %v11733_v8, 1 }
 0x1d1   : > { %v8085_v3 = vpop.permute.xlu1 %8084  ;;  %v8090_v41 = vpop.permute.xlu0 %8089  ;;  %v3778_v61 = vrot.slane %v11878_v14, 7 }
 0x1d2   : > { %v8087_v59 = vunpack.i.h.bf16 %v8085_v3  ;;  %v8086_v37 = vunpack.i.l.bf16 %v8085_v3  ;;  %v8092_v40 = vunpack.i.h.bf16 %v8090_v41  ;;  %v8091_v36 = vunpack.i.l.bf16 %v8090_v41 }
 0x1d3   : > { %8374 = vrot.lane.b32.xlu1 %v15703_v20, %s9134_s21  ;;  %8379 = vrot.lane.b32.xlu0 %v11203_v2, %s9128_s17  ;;  %v7891_v41 = vunpack.i.l.bf16 %v15700_v57  ;;  %v2763_v57 = vsel %vm2759_vm11, %v11759_v25, %v7937_v19  ;;  %v11915_v25 = vsel %vm2726_vm14, %v11661_v24, %v7886_v50  ;;  %v15706_v50 = vld [vmem:[#allocation49_spill] sm:$0xff]  ;;  %v15707_v24 = vld [vmem:[#allocation48_spill] sm:$0xff] }
 0x1d4   : > { %v2826_v30 = vsel %vm2825_vm7, %v2793_v45, %v8086_v37  ;;  %v2827_v3 = vsel %vm2825_vm7, %v2794_v34, %v8087_v59  ;;  %v2762_v37 = vsel %vm2759_vm11, %v11749_v5, %v7936_v1  ;;  %v11909_v59 = vsel %vm15228_vm8, %v7370_v18, 0.0 }
 0x1d5   : > { %v8095_v22 = vpop.permute.xlu1 %8094  ;;  %v8100_v42 = vpop.permute.xlu0 %8099  ;;  %v2859_v39 = vsel %vm2858_vm6, %v2826_v30, %v8091_v36  ;;  %v2860_v17 = vsel %vm2858_vm6, %v2827_v3, %v8092_v40  ;;  %v2795_v45 = vsel %vm2792_vm10, %v2762_v37, %v8016_v21  ;;  %v2796_v34 = vsel %vm2792_vm10, %v2763_v57, %v8017_v29  ;;  %v15705_v21 = vld [vmem:[#allocation213_spill] sm:$0xff] }
 0x1d6   : > { %v8097_v20 = vunpack.i.h.bf16 %v8095_v22  ;;  %v8096_v2 = vunpack.i.l.bf16 %v8095_v22  ;;  %v2891_v40 = vpack.c.bf16 %v2860_v17, %v2859_v39  ;;  %v8102_v30 = vunpack.i.h.bf16 %v8100_v42  ;;  %v8759_v17 = vld [vmem:[%s14881_s8 + $0x38] sm:$0xff]  }
 0x1d7   : > { %8384 = vrot.lane.b32.xlu1 %v11490_v52, %s15283_s27  ;;  %8389 = vrot.lane.b32.xlu0 %v11299_v10, %s15283_s27  ;;  %v8101_v5 = vunpack.i.l.bf16 %v8100_v42  ;;  %v11923_v18 = vsel %vm2726_vm14, %v11657_v33, %v7887_v63  ;;  %v11927_v29 = vsel %vm2726_vm14, %v11653_v26, %v7892_v38  ;;  %v7941_v22 = vunpack.i.l.bf16 %v15705_v21  ;;  %v15709_v63 = vld [vmem:[#allocation106_spill] sm:$0xff] }
 0x1d8   : > { %3076 = vmatmul.mubr.bf16.vlgmr.msra.gmra.mxu0 %v2891_v40  ;;  %v2828_v10 = vsel %vm2825_vm7, %v2795_v45, %v8096_v2  ;;  %v2829_v3 = vsel %vm2825_vm7, %v2796_v34, %v8097_v20  ;;  %v15708_v42 = vpack.c.bf16 %v15706_v50, %v15707_v24  ;;  %v15229_v39 = vrot.slane %v11909_v59, 7 }
 0x1d9   : > { %v8105_v1 = vpop.permute.xlu1 %8104  ;;  %v11917_v19 = vpop.permute.xlu0 %8109  ;;  %7410 = vmatpush3.bf16.msra.mxu0 %v8759_v17  ;;  %v11940_v33 = vsel %vm2726_vm14, %v11635_v55, %v7891_v41  ;;  %v7942_v26 = vunpack.i.h.bf16 %v15705_v21  ;;  %v3917_v38 = vsel %vm1145_vm0, %v3905_v46, %v3906_v12  ;;  %v15710_v20 = vrot.slane %v11733_v8, 7  ;;  %v15711_v55 = vld [vmem:[#allocation36_spill] sm:$0xff] }
 0x1da   : > { %6983 = vmatprep.mubr.msk.bf16.mxu0 %vm2660_vm15, %v15708_v42  ;;  %v8022_v41 = vunpack.i.h.bf16 %v15711_v55  ;;  %v8021_v37 = vunpack.i.l.bf16 %v15711_v55  ;;  %v2861_v57 = vsel %vm2858_vm6, %v2828_v10, %v8101_v5  ;;  %v2862_v40 = vsel %vm2858_vm6, %v2829_v3, %v8102_v30  ;;  %v15714_v3 = vld [vmem:[#allocation113_spill] sm:$0xff] }
 0x1db   : > { %8394 = vrot.lane.b32.xlu1 %v15709_v63, %s9133_s15  ;;  %8399 = vrot.lane.b32.xlu0 %v11403_v62, %s9133_s15  ;;  %v3789_v2 = vsel %vm822_vm2, %v15710_v20, %v3778_v61  ;;  %v8760_v62 = vld [vmem:[%s14881_s8 + $0x70] sm:$0xff]   ;;  %v8107_v45 = vunpack.i.h.bf16 %v8105_v1  ;;  %v8106_v34 = vunpack.i.l.bf16 %v8105_v1  ;;  %v15712_v24 = vrot.slane %v11707_v6, 1 }
 0x1dc   : > { %7411 = vmatprep.subr.bf16.mxu0 %v8760_v62  ;;  %v2764_v30 = vsel %vm2759_vm11, %v11773_v23, %v7941_v22  ;;  %v11976_v5 = vsel %vm1179_vm1, %v3917_v38, 0.0  ;;  %v11982_v1 = vsel %vm822_vm2, %v3778_v61, %v15229_v39  ;;  %v11986_v10 = vsel %vm887_vm3, %v3789_v2, 0.0  ;;  %v15724_v39 = vld [vmem:[#allocation215_spill] sm:$0xff] }
 0x1dd   : > { %v11962_v21 = vpop.permute.xlu1 %8114  ;;  %v11964_v50 = vpop.permute.xlu0 %8119  ;;  %v11970_v42 = vsel %vm1145_vm0, %v15712_v24, %v3905_v46  ;;  %15713 = vst [vmem:[#allocation131_spill] sm:$0xff] %v11976_v5  ;;  %v8761_v46 = vld [vmem:[%s14881_s8 + $0x30] sm:$0xff]   ;;  %v2765_v23 = vsel %vm2759_vm11, %v11769_v7, %v7942_v26  ;;  %v2893_v61 = vpack.c.bf16 %v2862_v40, %v2861_v57  ;;  %v15230_v22 = vrot.slane %v11909_v59, 1  ;;  %v8762_v7 = vld [vmem:[%s14881_s8 + $0x68] sm:$0xff]   ;;  %v15715_v26 = vld [vmem:[#allocation80_spill] sm:$0xff] }
 0x1de   : > { %7412 = vmatpush3.bf16.msra.mxu0 %v8761_v46  ;;  %v2797_v17 = vsel %vm2792_vm10, %v2764_v30, %v8021_v37  ;;  %v2798_v38 = vsel %vm2792_vm10, %v2765_v23, %v8022_v41  ;;  %v8112_v20 = vunpack.i.h.bf16 %v11917_v19  ;;  %v8111_v2 = vunpack.i.l.bf16 %v11917_v19  ;;  %v12014_v24 = vld [vmem:[%s10557_s12 + $0x70] sm:$0xff]   ;;  %v15716_v19 = vld [vmem:[#allocation140_spill] sm:$0xff] }
 0x1df   : > { %8404 = vrot.lane.b32.xlu1 %v15714_v3, %s9133_s15  ;;  %8409 = vrot.lane.b32.xlu0 %v11678_v48, %s9128_s17  ;;  %v7947_v55 = vunpack.i.h.bf16 %v15715_v26  ;;  %v7946_v62 = vunpack.i.l.bf16 %v15715_v26  ;;  %v2830_v41 = vsel %vm2825_vm7, %v2797_v17, %v8106_v34  ;;  %v2831_v37 = vsel %vm2825_vm7, %v2798_v38, %v8107_v45  ;;  %v15718_v3 = vld [vmem:[#allocation56_spill] sm:$0xff]  ;;  %v8763_v34 = vld [vmem:[%s14881_s8 + $0x28] sm:$0xff]   ;;  %v15720_v38 = vld [vmem:[#allocation39_spill] sm:$0xff] }
 0x1e0   : > { %7413 = vmatprep.subr.bf16.mxu0 %v8762_v7  ;;  %3084 = vmatmul.mubr.bf16.gmra.mxu0 %v2893_v61  ;;  %v8027_v30 = vunpack.i.h.bf16 %v15716_v19  ;;  %v8026_v46 = vunpack.i.l.bf16 %v15716_v19  ;;  %v15717_v23 = vpack.c.bf16 %v15657_v58, %v15656_v13  ;;  %v15719_v61 = vld [vmem:[#allocation57_spill] sm:$0xff]  ;;  %v8117_v45 = vunpack.i.h.bf16 %v11962_v21  ;;  %v15722_v7 = vld [vmem:[#allocation211_spill] sm:$0xff] }
 0x1e1   : > { %v12007_v57 = vpop.permute.xlu1 %8124  ;;  %v12009_v40 = vpop.permute.xlu0 %8129  ;;  %v8116_v17 = vunpack.i.l.bf16 %v11962_v21  ;;  %v12035_v13 = vpack.i.bf16 %v11976_v5, %v11970_v42  ;;  %v12039_v58 = vpack.i.bf16 %v11909_v59, %v11878_v14  ;;  %v2863_v26 = vsel %vm2858_vm6, %v2830_v41, %v8111_v2 }
 0x1e2   : > { %6984 = vmatprep.mubr.msk.bf16.mxu0 %vm2660_vm15, %v15717_v23  ;;  %7414 = vmatpush3.bf16.msra.mxu0 %v8763_v34  ;;  %v2864_v19 = vsel %vm2858_vm6, %v2831_v37, %v8112_v20  ;;  %v12045_v21 = vpack.i.bf16 %v11982_v1, %v11986_v10  ;;  %v7373_v23 = vunpack.c.l.bf16 %v12014_v24  ;;  %v2766_v34 = vsel %vm2759_vm11, %v11777_v31, %v7946_v62 }
 0x1e3   : > { %8414 = vrot.lane.b32.xlu1 %v15720_v38, %s9134_s21  ;;  %8419 = vrot.lane.b32.xlu0 %v11383_v27, %s9128_s17  ;;  %v8764_v27 = vld [vmem:[%s14881_s8 + $0x60] sm:$0xff]   ;;  %v2767_v38 = vsel %vm2759_vm11, %v11789_v60, %v7947_v55  ;;  %v12063_v41 = vsel %vm1145_vm0, %v3906_v12, %v15230_v22  ;;  %v2799_v37 = vsel %vm2792_vm10, %v2766_v34, %v8026_v46  ;;  %v8122_v31 = vunpack.i.h.bf16 %v11964_v50  ;;  %v8766_v55 = vld [vmem:[%s14881_s8 + $0x58] sm:$0xff]  }
 0x1e4   : > { %7415 = vmatprep.subr.bf16.mxu0 %v8764_v27  ;;  %15721 = vst [vmem:[#allocation181_spill] sm:$0xff] %v12063_v41  ;;  %v2800_v27 = vsel %vm2792_vm10, %v2767_v38, %v8027_v30  ;;  %v8121_v62 = vunpack.i.l.bf16 %v11964_v50  ;;  %v8765_v60 = vld [vmem:[%s14881_s8 + $0x20] sm:$0xff]   ;;  %v2895_v12 = vpack.c.bf16 %v2864_v19, %v2863_v26  ;;  %v2832_v30 = vsel %vm2825_vm7, %v2799_v37, %v8116_v17 }
 0x1e5   : > { %v12055_v2 = vpop.permute.xlu1 %8134  ;;  %v8140_v20 = vpop.permute.xlu0 %8139  ;;  %v2833_v46 = vsel %vm2825_vm7, %v2800_v27, %v8117_v45  ;;  %v8131_v50 = vunpack.i.l.bf16 %v12009_v40  ;;  %vm15723_vm8 = vcmp.gt.f32.partialorder %v15722_v7, 0.0  ;;  %v7951_v26 = vunpack.i.l.bf16 %v15724_v39  ;;  %v15725_v17 = vld [vmem:[#allocation225_spill] sm:$0xff] }
 0x1e6   : > { %7416 = vmatpush3.bf16.msra.mxu0 %v8765_v60  ;;  %v8142_v34 = vunpack.i.h.bf16 %v8140_v20  ;;  %v8141_v38 = vunpack.i.l.bf16 %v8140_v20  ;;  %v12082_v60 = vsel %vm15723_vm8, %v7373_v23, 0.0  ;;  %v8032_v19 = vunpack.i.h.bf16 %v15725_v17  ;;  %v12094_v23 = vld [vmem:[%s14881_s8 + $0x88] sm:$0xff]  }
 0x1e7   : > { %8424 = vrot.lane.b32.xlu1 %v11691_v32, %s15283_s27  ;;  %8429 = vrot.lane.b32.xlu0 %v15695_v54, %s15283_s27  ;;  %v7952_v54 = vunpack.i.h.bf16 %v15724_v39  ;;  %v8132_v45 = vunpack.i.h.bf16 %v12009_v40  ;;  %v8031_v27 = vunpack.i.l.bf16 %v15725_v17  ;;  %v2865_v39 = vsel %vm2858_vm6, %v2832_v30, %v8121_v62  ;;  %v15727_v62 = vld [vmem:[#allocation141_spill] sm:$0xff] }
 0x1e8   : > { %7417 = vmatprep.subr.bf16.mxu0 %v8766_v55  ;;  %3092 = vmatmul.mubr.bf16.gmra.mxu0 %v2895_v12  ;;  %v15726_v55 = vpack.c.bf16 %v15663_v44, %v15662_v35  ;;  %v2866_v40 = vsel %vm2858_vm6, %v2833_v46, %v8122_v31  ;;  %v8767_v12 = vld [vmem:[%s14881_s8 + $0x18] sm:$0xff]   ;;  %v8127_v7 = vunpack.i.h.bf16 %v12007_v57  ;;  %v8126_v35 = vunpack.i.l.bf16 %v12007_v57 }
 0x1e9   : > { %v8145_v37 = vpop.permute.xlu1 %8144  ;;  %v8150_v20 = vpop.permute.xlu0 %8149  ;;  %v4910_v44 = vsel %vm2693_vm5, %v11699_v4, %v8141_v38  ;;  %v4911_v31 = vsel %vm2693_vm5, %v11687_v53, %v8142_v34  ;;  %v5006_v30 = vsel %vm2693_vm5, %v15727_v62, %v8131_v50  ;;  %7539 = vmatprep.subr.bf16.mxu1 %v12094_v23  ;;  %v8137_v46 = vunpack.i.h.bf16 %v12055_v2  ;;  %v8768_v4 = vld [vmem:[%s14881_s8 + $0x50] sm:$0xff]  }
 0x1ea   : > { %v8146_v22 = vunpack.i.l.bf16 %v8145_v37  ;;  %6985 = vmatprep.mubr.msk.bf16.mxu0 %vm2660_vm15, %v15726_v55  ;;  %7418 = vmatpush3.bf16.msra.mxu0 %v8767_v12  ;;  %v8147_v36 = vunpack.i.h.bf16 %v8145_v37  ;;  %v8152_v5 = vunpack.i.h.bf16 %v8150_v20  ;;  %v8151_v17 = vunpack.i.l.bf16 %v8150_v20  ;;  %v15728_v12 = vld [vmem:[#allocation137_spill] sm:$0xff]  ;;  %v8769_v62 = vld [vmem:[%s14881_s8 + $0x10] sm:$0xff]  }
 0x1eb   : > { %8434 = vrot.lane.b32.xlu1 %v11703_v47, %s9133_s15  ;;  %8439 = vrot.lane.b32.xlu0 %v11490_v52, %s9133_s15  ;;  %v2897_v55 = vpack.c.bf16 %v2866_v40, %v2865_v39  ;;  %v5007_v52 = vsel %vm2693_vm5, %v15728_v12, %v8132_v45  ;;  %v8136_v39 = vunpack.i.l.bf16 %v12055_v2  ;;  %v15729_v45 = vld [vmem:[#allocation119_spill] sm:$0xff] }
 0x1ec   : > { %v5038_v57 = vsel %vm2759_vm11, %v5006_v30, %v8146_v22  ;;  %7419 = vmatprep.subr.bf16.mxu0 %v8768_v4  ;;  %v5039_v22 = vsel %vm2759_vm11, %v5007_v52, %v8147_v36  ;;  %v4942_v40 = vsel %vm2759_vm11, %v4910_v44, %v8151_v17  ;;  %v4943_v30 = vsel %vm2759_vm11, %v4911_v31, %v8152_v5  ;;  %v8770_v4 = vld [vmem:[%s14881_s8 + $0x48] sm:$0xff]  }
 0x1ed   : > { %v8155_v37 = vpop.permute.xlu1 %8154  ;;  %v8160_v20 = vpop.permute.xlu0 %8159  ;;  %v2768_v36 = vsel %vm2759_vm11, %v11803_v0, %v7951_v26  ;;  %v2769_v17 = vsel %vm2759_vm11, %v11799_v56, %v7952_v54  ;;  %v3908_v0 = vrot.slane %v12082_v60, 1  ;;  %v7374_v26 = vunpack.c.h.bf16 %v12014_v24  ;;  %v8771_v56 = vld [vmem:[%s14881_s8 + $0x8] sm:$0xff]   ;;  %v15731_v54 = vld [vmem:[#allocation83_spill] sm:$0xff] }
 0x1ee   : > { %v8157_v53 = vunpack.i.h.bf16 %v8155_v37  ;;  %v8156_v34 = vunpack.i.l.bf16 %v8155_v37  ;;  %v8162_v50 = vunpack.i.h.bf16 %v8160_v20  ;;  %v8161_v38 = vunpack.i.l.bf16 %v8160_v20  ;;  %7420 = vmatpush3.bf16.msra.mxu0 %v8769_v62 }
 0x1ef   : > { %8444 = vrot.lane.b32.xlu1 %v15729_v45, %s9133_s15  ;;  %8449 = vrot.lane.b32.xlu0 %v11856_v9, %s9128_s17  ;;  %v8036_v24 = vunpack.i.l.bf16 %v11637_v16 }
 0x1f0   : > { %v5070_v37 = vsel %vm2825_vm7, %v5038_v57, %v8156_v34  ;;  %v5071_v20 = vsel %vm2825_vm7, %v5039_v22, %v8157_v53  ;;  %v4974_v12 = vsel %vm2825_vm7, %v4942_v40, %v8161_v38  ;;  %v4975_v2 = vsel %vm2825_vm7, %v4943_v30, %v8162_v50  ;;  %7421 = vmatprep.subr.bf16.mxu0 %v8770_v4 }
 0x1f1   : > { %3100 = vmatmul.mubr.bf16.gmra.mxu0 %v2897_v55  ;;  %v8165_v5 = vpop.permute.xlu1 %8164  ;;  %v12148_v44 = vpop.permute.xlu0 %8169  ;;  %v5106_v31 = vpack.c.bf16 %v5071_v20, %v5070_v37  ;;  %v5105_v52 = vpack.c.bf16 %v4975_v2, %v4974_v12  ;;  %v2801_v57 = vsel %vm2792_vm10, %v2768_v36, %v8031_v27  ;;  %v2802_v53 = vsel %vm2792_vm10, %v2769_v17, %v8032_v19  ;;  %v15732_v19 = vld [vmem:[#allocation40_spill] sm:$0xff]  ;;  %v15734_v20 = vld [vmem:[#allocation207_spill] sm:$0xff]  ;;  %v15736_v36 = vld [vmem:[#allocation214_spill] sm:$0xff] }
 0x1f2   : > { %v15730_v34 = vpack.c.bf16 %v15674_v28, %v15673_v15  ;;  %7422 = vmatpush3.bf16.msra.mxu0 %v8771_v56  ;;  %v7957_v55 = vunpack.i.h.bf16 %v15731_v54  ;;  %v7956_v27 = vunpack.i.l.bf16 %v15731_v54  ;;  %v2834_v15 = vsel %vm2825_vm7, %v2801_v57, %v8126_v35  ;;  %v15735_v2 = vld [vmem:[#allocation112_spill] sm:$0xff] }
 0x1f3   : > { %8454 = vrot.lane.b32.xlu1 %v15732_v19, %s9134_s21  ;;  %5392 = vmatprep.mubr.bf16.mxu1 %v5106_v31  ;;  %v2835_v28 = vsel %vm2825_vm7, %v2802_v53, %v8127_v7  ;;  %v8037_v50 = vunpack.i.h.bf16 %v11637_v16  ;;  %v2867_v38 = vsel %vm2858_vm6, %v2834_v15, %v8136_v39  ;;  %v8167_v45 = vunpack.i.h.bf16 %v8165_v5  ;;  %v8772_v7 = vld [vmem:[%s14881_s8 + $0x40] sm:$0xff]  }
 0x1f4   : > { %6986 = vmatprep.mubr.msk.bf16.mxu0 %vm2660_vm15, %v15730_v34  ;;  %8459 = vrot.lane.b32.xlu0 %v15709_v63, %s9128_s17  ;;  %v2868_v62 = vsel %vm2858_vm6, %v2835_v28, %v8137_v46  ;;  %v8166_v22 = vunpack.i.l.bf16 %v8165_v5  ;;  %v15733_v63 = vrot.slane %v11909_v59, 1  ;;  %v3780_v39 = vrot.slane %v12082_v60, 7 }
 0x1f5   : > { %5393 = vmatmul.mubr.bf16.vlgmr.msra.gmra.mxu1 %v5105_v52  ;;  %v8175_v40 = vpop.permute.xlu1 %8174  ;;  %v8180_v30 = vpop.permute.xlu0 %8179  ;;  %7423 = vmatprep.subr.bf16.mxu0 %v8772_v7  ;;  %v2770_v37 = vsel %vm2759_vm11, %v11819_v49, %v7956_v27  ;;  %v2771_v12 = vsel %vm2759_vm11, %v15734_v20, %v7957_v55  ;;  %v2899_v4 = vpack.c.bf16 %v2868_v62, %v2867_v38  ;;  %vm15737_vm8 = vcmp.gt.f32.partialorder %v15736_v36, 0.0  ;;  %v15738_v55 = vld [vmem:[#allocation59_spill] sm:$0xff]  ;;  %v15739_v27 = vld [vmem:[#allocation58_spill] sm:$0xff] }
 0x1f6   : > { %7540 = vmatpush3.bf16.msra.mxu1 %v12094_v23  ;;  %v8177_v16 = vunpack.i.h.bf16 %v8175_v40  ;;  %v8176_v35 = vunpack.i.l.bf16 %v8175_v40  ;;  %v3915_v46 = vsel %vm1145_vm0, %v15733_v63, %v3908_v0  ;;  %v8773_v23 = vld [vmem:[%s14881_s8] sm:$0xff]   ;;  %v12195_v17 = vsel %vm15737_vm8, %v7374_v26, 0.0  ;;  %v15746_v63 = vld [vmem:[#allocation84_spill] sm:$0xff]  ;;  %v15802_v36 = vld [vmem:[#allocation183_spill] sm:$0xff] }
 0x1f7   : > { %7424 = vmatpush3.bf16.msra.mxu0 %v8773_v23  ;;  %8464 = vrot.lane.b32.xlu1 %v15735_v2, %s15283_s27  ;;  %v2803_v5 = vsel %vm2792_vm10, %v2770_v37, %v8036_v24  ;;  %v2804_v31 = vsel %vm2792_vm10, %v2771_v12, %v8037_v50  ;;  %v8182_v52 = vunpack.i.h.bf16 %v8180_v30  ;;  %v8181_v57 = vunpack.i.l.bf16 %v8180_v30  ;;  %v15744_v30 = vld [vmem:[#allocation164_spill] sm:$0xff]  ;;  %v15748_v12 = vld [vmem:[#allocation138_spill] sm:$0xff] }
 0x1f8   : > { %8469 = vrot.lane.b32.xlu0 %v11678_v48, %s15283_s27  ;;  %v8172_v49 = vunpack.i.h.bf16 %v12148_v44  ;;  %v8171_v53 = vunpack.i.l.bf16 %v12148_v44  ;;  %v2836_v54 = vsel %vm2825_vm7, %v2803_v5, %v8166_v22  ;;  %v2837_v26 = vsel %vm2825_vm7, %v2804_v31, %v8167_v45  ;;  %v15742_v45 = vld [vmem:[#allocation172_spill] sm:$0xff]  ;;  %v15743_v22 = vld [vmem:[#allocation163_spill] sm:$0xff] }
 0x1f9   : > { %3108 = vmatmul.mubr.bf16.gmra.mxu0 %v2899_v4  ;;  %v8185_v34 = vpop.permute.xlu1 %8184  ;;  %v8190_v56 = vpop.permute.xlu0 %8189  ;;  %v15740_v19 = vpack.c.bf16 %v15738_v55, %v15739_v27  ;;  %v2869_v15 = vsel %vm2858_vm6, %v2836_v54, %v8176_v35  ;;  %v2870_v48 = vsel %vm2858_vm6, %v2837_v26, %v8177_v16  ;;  %v15741_v44 = vrot.slane %v11909_v59, 7  ;;  %v15747_v37 = vld [vmem:[#allocation152_spill] sm:$0xff] }
 0x1fa   : > { %v8187_v50 = vunpack.i.h.bf16 %v8185_v34  ;;  %v8186_v24 = vunpack.i.l.bf16 %v8185_v34  ;;  %v8192_v38 = vunpack.i.h.bf16 %v8190_v56  ;;  %v8191_v62 = vunpack.i.l.bf16 %v8190_v56 }
 0x1fb   : > { %6987 = vmatprep.mubr.msk.bf16.mxu0 %vm2660_vm15, %v15740_v19  ;;  %v3787_v28 = vsel %vm822_vm2, %v15741_v44, %v3780_v39  ;;  %8474 = vrot.lane.b32.xlu1 %v15742_v45, %s9133_s15  ;;  %v4913_v40 = vsel %vm2693_vm5, %v15743_v22, %v8182_v52  ;;  %v4912_v7 = vsel %vm2693_vm5, %v15744_v30, %v8181_v57  ;;  %v12227_v16 = vsel %vm1179_vm1, %v3915_v46, 0.0  ;;  %v15749_v46 = vld [vmem:[#allocation120_spill] sm:$0xff] }
 0x1fc   : > { %8479 = vrot.lane.b32.xlu0 %v11691_v32, %s9133_s15  ;;  %15745 = vst [vmem:[#allocation182_spill] sm:$0xff] %v12227_v16  ;;  %v3781_v35 = vrot.slane %v12195_v17, 7  ;;  %v7961_v23 = vunpack.i.l.bf16 %v15746_v63  ;;  %v5009_v20 = vsel %vm2693_vm5, %v15747_v37, %v8172_v49  ;;  %v5008_v4 = vsel %vm2693_vm5, %v15748_v12, %v8171_v53 }
 0x1fd   : > { %v8195_v5 = vpop.permute.xlu1 %8194  ;;  %v8200_v31 = vpop.permute.xlu0 %8199  ;;  %v2901_v52 = vpack.c.bf16 %v2870_v48, %v2869_v15  ;;  %v5040_v54 = vsel %vm2759_vm11, %v5008_v4, %v8186_v24  ;;  %v5041_v26 = vsel %vm2759_vm11, %v5009_v20, %v8187_v50  ;;  %v4944_v55 = vsel %vm2759_vm11, %v4912_v7, %v8191_v62 }
 0x1fe   : > { %v8197_v57 = vunpack.i.h.bf16 %v8195_v5  ;;  %v8196_v34 = vunpack.i.l.bf16 %v8195_v5  ;;  %v8202_v32 = vunpack.i.h.bf16 %v8200_v31  ;;  %v8201_v56 = vunpack.i.l.bf16 %v8200_v31  ;;  %v15753_v5 = vld [vmem:[#allocation41_spill] sm:$0xff] }
 0x1ff   : > { %8484 = vrot.lane.b32.xlu1 %v15749_v46, %s9133_s15  ;;  %v4945_v49 = vsel %vm2759_vm11, %v4913_v40, %v8192_v38  ;;  %v7962_v48 = vunpack.i.h.bf16 %v15746_v63  ;;  %v15750_v38 = vld [vmem:[#allocation66_spill] sm:$0xff]  ;;  %v15752_v37 = vpack.c.bf16 %v15719_v61, %v15718_v3  ;;  %v12263_v63 = vsel %vm822_vm2, %v3780_v39, %v3781_v35  ;;  %v15754_v3 = vld [vmem:[#allocation68_spill] sm:$0xff]  ;;  %v15755_v61 = vld [vmem:[#allocation69_spill] sm:$0xff] }
 0x200   : > { %8489 = vrot.lane.b32.xlu0 %v12035_v13, %s9128_s17  ;;  %v5072_v53 = vsel %vm2825_vm7, %v5040_v54, %v8196_v34  ;;  %v5073_v27 = vsel %vm2825_vm7, %v5041_v26, %v8197_v57  ;;  %v4976_v19 = vsel %vm2825_vm7, %v4944_v55, %v8201_v56  ;;  %v4977_v15 = vsel %vm2825_vm7, %v4945_v49, %v8202_v32  ;;  %v15751_v40 = vld [vmem:[#allocation226_spill] sm:$0xff]  ;;  %v15756_v57 = vld [vmem:[#allocation187_spill] sm:$0xff] }
 0x201   : > { %3116 = vmatmul.mubr.bf16.gmra.mxu0 %v2901_v52  ;;  %v8205_v44 = vpop.permute.xlu1 %8204  ;;  %v12248_v50 = vpop.permute.xlu0 %8209  ;;  %v5109_v24 = vpack.c.bf16 %v5073_v27, %v5072_v53  ;;  %v5108_v62 = vpack.c.bf16 %v4977_v15, %v4976_v19  ;;  %v1144_v22 = vrot.slane %v15750_v38, 1  ;;  %v8042_v30 = vunpack.i.h.bf16 %v15751_v40  ;;  %v15757_v34 = vld [vmem:[#allocation231_spill] sm:$0xff]  ;;  %v15758_v56 = vld [vmem:[#allocation230_spill] sm:$0xff] }
 0x202   : > { %v8041_v7 = vunpack.i.l.bf16 %v15751_v40  ;;  %6988 = vmatprep.mubr.msk.bf16.mxu0 %vm2660_vm15, %v15752_v37  ;;  %v12267_v20 = vsel %vm887_vm3, %v3787_v28, 0.0  ;;  %v8207_v12 = vunpack.i.h.bf16 %v8205_v44  ;;  %v8206_v4 = vunpack.i.l.bf16 %v8205_v44  ;;  %v15759_v49 = vld [vmem:[#allocation63_spill] sm:$0xff] }
 0x203   : > { %8494 = vrot.lane.b32.xlu1 %v15753_v5, %s9134_s21  ;;  %5400 = vmatprep.mubr.bf16.mxu1 %v5109_v24  ;;  %v2906_v31 = vpack.c.bf16 %v15755_v61, %v15754_v3  ;;  %v12275_v52 = vpack.i.bf16 %v12195_v17, %v12082_v60  ;;  %v2772_v28 = vsel %vm2759_vm11, %v15757_v34, %v7961_v23  ;;  %v15760_v53 = vrot.slane %v15759_v49, 1  ;;  %v15763_v38 = vld [vmem:[#allocation87_spill] sm:$0xff] }
 0x204   : > { %8499 = vrot.lane.b32.xlu0 %v11703_v47, %s9128_s17  ;;  %5401 = vmatmul.mubr.bf16.gmra.mxu1 %v5108_v62  ;;  %v12284_v32 = vpack.i.bf16 %v12227_v16, %v12063_v41  ;;  %v2773_v46 = vsel %vm2759_vm11, %v15758_v56, %v7962_v48  ;;  %v12290_v55 = vpack.i.bf16 %v12263_v63, %v12267_v20  ;;  %v15761_v47 = vld [vmem:[#allocation33_spill] sm:$0xff]  ;;  %v12305_v62 = vld [vmem:[%s10557_s12 + $0x78] sm:$0xff]   ;;  %v7967_v40 = vunpack.i.h.bf16 %v15763_v38  ;;  %v15764_v49 = vld [vmem:[#allocation47_spill] sm:$0xff] }
 0x205   : > { %v8215_v54 = vpop.permute.xlu1 %8214  ;;  %v8220_v26 = vpop.permute.xlu0 %8219  ;;  %v12296_v23 = vsel %vm1145_vm0, %v15760_v53, %v1144_v22  ;;  %v15762_v27 = vrot.slane %v15761_v47, 1  ;;  %v2805_v15 = vsel %vm2792_vm10, %v2772_v28, %v8041_v7  ;;  %v2806_v48 = vsel %vm2792_vm10, %v2773_v46, %v8042_v30 }
 0x206   : > { %v8217_v44 = vunpack.i.h.bf16 %v8215_v54  ;;  %v8216_v24 = vunpack.i.l.bf16 %v8215_v54  ;;  %v7966_v37 = vunpack.i.l.bf16 %v15763_v38  ;;  %v2838_v5 = vsel %vm2825_vm7, %v2805_v15, %v8206_v4 }
 0x207   : > { %v1177_v19 = vsel %vm1145_vm0, %v1144_v22, %v15762_v27  ;;  %8504 = vrot.lane.b32.xlu1 %v12045_v21, %s15283_s27  ;;  %v2839_v3 = vsel %vm2825_vm7, %v2806_v48, %v8207_v12  ;;  %v8222_v22 = vunpack.i.h.bf16 %v8220_v26  ;;  %v8221_v61 = vunpack.i.l.bf16 %v8220_v26  ;;  %v15765_v48 = vld [vmem:[#allocation157_spill] sm:$0xff] }
 0x208   : > { %8509 = vrot.lane.b32.xlu0 %v11856_v9, %s15283_s27  ;;  %v2871_v30 = vsel %vm2858_vm6, %v2838_v5, %v8216_v24  ;;  %v2872_v7 = vsel %vm2858_vm6, %v2839_v3, %v8217_v44  ;;  %v8212_v34 = vunpack.i.h.bf16 %v12248_v50  ;;  %v8211_v28 = vunpack.i.l.bf16 %v12248_v50  ;;  %v15766_v24 = vld [vmem:[#allocation158_spill] sm:$0xff] }
 0x209   : > { %v8225_v56 = vpop.permute.xlu1 %8224  ;;  %v8230_v46 = vpop.permute.xlu0 %8229  ;;  %v2903_v54 = vpack.c.bf16 %v2872_v7, %v2871_v30  ;;  %v7377_v4 = vunpack.c.l.bf16 %v12305_v62  ;;  %v7972_v12 = vunpack.i.h.bf16 %v15764_v49  ;;  %v7971_v26 = vunpack.i.l.bf16 %v15764_v49  ;;  %v15767_v3 = vld [vmem:[#allocation174_spill] sm:$0xff]  ;;  %v15768_v7 = vld [vmem:[#allocation155_spill] sm:$0xff] }
 0x20a   : > { %v12324_v9 = vsel %vm1179_vm1, %v1177_v19, 0.0  ;;  %v8227_v53 = vunpack.i.h.bf16 %v8225_v56  ;;  %v8226_v47 = vunpack.i.l.bf16 %v8225_v56  ;;  %v8232_v27 = vunpack.i.h.bf16 %v8230_v46 }
 0x20b   : > { %v8231_v15 = vunpack.i.l.bf16 %v8230_v46  ;;  %8514 = vrot.lane.b32.xlu1 %v12039_v58, %s9133_s15  ;;  %3124 = vmatmul.mubr.bf16.gmra.mxu0 %v2903_v54  ;;  %v2774_v50 = vsel %vm2759_vm11, %v11915_v25, %v7966_v37  ;;  %v4915_v44 = vsel %vm2693_vm5, %v15765_v48, %v8222_v22  ;;  %v4914_v38 = vsel %vm2693_vm5, %v15766_v24, %v8221_v61 }
 0x20c   : > { %8519 = vrot.lane.b32.xlu0 %v15735_v2, %s9133_s15  ;;  %v3909_v19 = vrot.slane %v12195_v17, 1  ;;  %v2775_v5 = vsel %vm2759_vm11, %v11923_v18, %v7967_v40  ;;  %v5011_v30 = vsel %vm2693_vm5, %v15767_v3, %v8212_v34  ;;  %v5010_v25 = vsel %vm2693_vm5, %v15768_v7, %v8211_v28  ;;  %6989 = vmatprep.mubr.msk.bf16.mxu0 %vm2660_vm15, %v2906_v31  ;;  %v15770_v18 = vld [vmem:[#allocation81_spill] sm:$0xff] }
 0x20d   : > { %v8235_v37 = vpop.permute.xlu1 %8234  ;;  %v8240_v56 = vpop.permute.xlu0 %8239  ;;  %v12346_v61 = vsel %vm3331_vm9, %v7377_v4, 0.0  ;;  %v5042_v40 = vsel %vm2759_vm11, %v5010_v25, %v8226_v47  ;;  %v5043_v34 = vsel %vm2759_vm11, %v5011_v30, %v8227_v53  ;;  %v4946_v28 = vsel %vm2759_vm11, %v4914_v38, %v8231_v15  ;;  %v15771_v25 = vld [vmem:[#allocation107_spill] sm:$0xff] }
 0x20e   : > { %v8237_v2 = vunpack.i.h.bf16 %v8235_v37  ;;  %v8236_v46 = vunpack.i.l.bf16 %v8235_v37  ;;  %v8242_v54 = vunpack.i.h.bf16 %v8240_v56  ;;  %v8241_v49 = vunpack.i.l.bf16 %v8240_v56 }
 0x20f   : > { %8524 = vrot.lane.b32.xlu1 %v15770_v18, %s9133_s15  ;;  %v4947_v48 = vsel %vm2759_vm11, %v4915_v44, %v8232_v27  ;;  %v15232_v15 = vrot.slane %v12346_v61, 1  ;;  %v7378_v27 = vunpack.c.h.bf16 %v12305_v62  ;;  %v12366_v44 = vsel %vm2759_vm11, %v11940_v33, %v7971_v26  ;;  %v15774_v26 = vld [vmem:[#allocation65_spill] sm:$0xff]  ;;  %v15775_v18 = vld [vmem:[#allocation67_spill] sm:$0xff] }
 0x210   : > { %8529 = vrot.lane.b32.xlu0 %v12284_v32, %s9128_s17  ;;  %v5074_v31 = vsel %vm2825_vm7, %v5042_v40, %v8236_v46  ;;  %v5075_v4 = vsel %vm2825_vm7, %v5043_v34, %v8237_v2  ;;  %v4978_v24 = vsel %vm2825_vm7, %v4946_v28, %v8241_v49  ;;  %v4979_v3 = vsel %vm2825_vm7, %v4947_v48, %v8242_v54  ;;  %v7316_v2 = vld [vmem:[%s10557_s12] sm:$0xff]   ;;  %v15772_v49 = vld [vmem:[#allocation127_spill] sm:$0xff] }
 0x211   : > { %v8245_v7 = vpop.permute.xlu1 %8244  ;;  %v12360_v47 = vpop.permute.xlu0 %8249  ;;  %v5112_v53 = vpack.c.bf16 %v5075_v4, %v5074_v31  ;;  %v5111_v30 = vpack.c.bf16 %v4979_v3, %v4978_v24  ;;  %v12370_v38 = vsel %vm2759_vm11, %v11927_v29, %v7972_v12  ;;  %v8047_v37 = vunpack.i.h.bf16 %v15771_v25  ;;  %v8774_v24 = vld [vmem:[%s10557_s12 + $0x8] sm:$0xff]  }
 0x212   : > { %v8046_v56 = vunpack.i.l.bf16 %v15771_v25  ;;  %v8247_v46 = vunpack.i.h.bf16 %v8245_v7  ;;  %v8246_v54 = vunpack.i.l.bf16 %v8245_v7  ;;  %v8563_v33 = vpack.i.bf16 %v12324_v9, %v12296_v23 }
 0x213   : > { %8534 = vrot.lane.b32.xlu1 %v15772_v49, %s9134_s21  ;;  %5408 = vmatprep.mubr.bf16.mxu1 %v5112_v53  ;;  %v15233_v62 = vrot.slane %v12346_v61, 7  ;;  %v12387_v12 = vsel %vm1145_vm0, %v3908_v0, %v3909_v19  ;;  %v2908_v40 = vpack.c.bf16 %v15775_v18, %v15774_v26  ;;  %v3913_v48 = vsel %vm1145_vm0, %v3909_v19, %v15232_v15 }
 0x214   : > { %8539 = vrot.lane.b32.xlu0 %v15742_v45, %s9128_s17  ;;  %5409 = vmatmul.mubr.bf16.gmra.mxu1 %v5111_v30  ;;  %15773 = vst [vmem:[#allocation212_spill] sm:$0xff] %v12387_v12  ;;  %v12397_v45 = vsel %vm3332_vm12, %v7378_v27, 0.0  ;;  %v7318_v4 = vunpack.c.h.bf16 %v7316_v2  ;;  %v7321_v3 = vunpack.c.l.bf16 %v8774_v24  ;;  %v2807_v0 = vsel %vm2792_vm10, %v2774_v50, %v8046_v56 }
 0x215   : > { %v8255_v34 = vpop.permute.xlu1 %8254  ;;  %v8260_v28 = vpop.permute.xlu0 %8259  ;;  %v2808_v7 = vsel %vm2792_vm10, %v2775_v5, %v8047_v37  ;;  %v2840_v25 = vsel %vm2825_vm7, %v2807_v0, %v8246_v54  ;;  %v3785_v27 = vsel %vm822_vm2, %v3781_v35, %v15233_v62  ;;  %v7317_v49 = vunpack.c.l.bf16 %v7316_v2  ;;  %v15779_v0 = vld [vmem:[#allocation221_spill] sm:$0xff] }
 0x216   : > { %v8257_v53 = vunpack.i.h.bf16 %v8255_v34  ;;  %v8256_v30 = vunpack.i.l.bf16 %v8255_v34  ;;  %v2841_v19 = vsel %vm2825_vm7, %v2808_v7, %v8247_v46  ;;  %v8262_v50 = vunpack.i.h.bf16 %v8260_v28 }
 0x217   : > { %8544 = vrot.lane.b32.xlu1 %v12290_v55, %s15283_s27  ;;  %v8261_v56 = vunpack.i.l.bf16 %v8260_v28  ;;  %v8252_v54 = vunpack.i.h.bf16 %v12360_v47  ;;  %v8251_v46 = vunpack.i.l.bf16 %v12360_v47  ;;  %v12420_v35 = vsel %vm1179_vm1, %v3913_v48, 0.0  ;;  %v15781_v48 = vld [vmem:[#allocation179_spill] sm:$0xff] }
 0x218   : > { %8549 = vrot.lane.b32.xlu0 %v12035_v13, %s15283_s27  ;;  %v2873_v5 = vsel %vm2858_vm6, %v2840_v25, %v8256_v30  ;;  %v2874_v37 = vsel %vm2858_vm6, %v2841_v19, %v8257_v53  ;;  %15777 = vst [vmem:[#allocation38_spill] sm:$0xff] %v12420_v35  ;;  %v4006_v13 = vsel %vm887_vm3, %v3785_v27, 0.0  ;;  %v12427_v24 = vsel %vm3302_vm4, %v7318_v4, 0.0  ;;  %v15782_v27 = vld [vmem:[#allocation180_spill] sm:$0xff] }
 0x219   : > { %v8265_v26 = vpop.permute.xlu1 %8264  ;;  %v8270_v18 = vpop.permute.xlu0 %8269  ;;  %v2905_v34 = vpack.c.bf16 %v2874_v37, %v2873_v5  ;;  %vm15780_vm8 = vcmp.gt.f32.partialorder %v15779_v0, 0.0  ;;  %v4917_v19 = vsel %vm2693_vm5, %v15781_v48, %v8262_v50  ;;  %v4916_v5 = vsel %vm2693_vm5, %v15782_v27, %v8261_v56 }
 0x21a   : > { %v12431_v7 = vsel %vm15780_vm8, %v7321_v3, 0.0  ;;  %v8267_v47 = vunpack.i.h.bf16 %v8265_v26  ;;  %v8266_v53 = vunpack.i.l.bf16 %v8265_v26  ;;  %v8272_v30 = vunpack.i.h.bf16 %v8270_v18  ;;  %v15783_v3 = vld [vmem:[#allocation224_spill] sm:$0xff] }
 0x21b   : > { %v8271_v25 = vunpack.i.l.bf16 %v8270_v18  ;;  %8554 = vrot.lane.b32.xlu1 %v12275_v52, %s9133_s15  ;;  %3132 = vmatmul.mubr.bf16.gmra.mxu0 %v2905_v34  ;;  %v12443_v4 = vpack.i.bf16 %v12420_v35, %v12387_v12  ;;  %vm15784_vm8 = vcmp.gt.f32.partialorder %v15783_v3, 0.0  ;;  %v15785_v26 = vld [vmem:[#allocation184_spill] sm:$0xff]  ;;  %v15786_v34 = vld [vmem:[#allocation175_spill] sm:$0xff] }
 0x21c   : > { %8559 = vrot.lane.b32.xlu0 %v12045_v21, %s9133_s15  ;;  %v12447_v37 = vsel %vm15784_vm8, %v7317_v49, 0.0  ;;  %v5013_v18 = vsel %vm2693_vm5, %v15785_v26, %v8252_v54  ;;  %v5012_v50 = vsel %vm2693_vm5, %v15786_v34, %v8251_v46  ;;  %6990 = vmatprep.mubr.msk.bf16.mxu0 %vm2660_vm15, %v2908_v40  ;;  %v3881_v21 = vrot.slane %v12427_v24, 1  ;;  %v15823_v12 = vld [vmem:[#allocation151_spill] sm:$0xff] }
 0x21d   : > { %v8275_v48 = vpop.permute.xlu1 %8274  ;;  %v8280_v39 = vpop.permute.xlu0 %8279  ;;  %v5044_v49 = vsel %vm2759_vm11, %v5012_v50, %v8266_v53  ;;  %v5045_v54 = vsel %vm2759_vm11, %v5013_v18, %v8267_v47  ;;  %v4948_v46 = vsel %vm2759_vm11, %v4916_v5, %v8271_v25  ;;  %v4949_v26 = vsel %vm2759_vm11, %v4917_v19, %v8272_v30  ;;  %v15790_v5 = vld [vmem:[#allocation88_spill] sm:$0xff] }
 0x21e   : > { %v8277_v27 = vunpack.i.h.bf16 %v8275_v48  ;;  %v8276_v29 = vunpack.i.l.bf16 %v8275_v48  ;;  %v8282_v15 = vunpack.i.h.bf16 %v8280_v39  ;;  %v8281_v62 = vunpack.i.l.bf16 %v8280_v39  ;;  %v15791_v50 = vld [vmem:[#allocation44_spill] sm:$0xff] }
 0x21f   : > { %8564 = vrot.lane.b32.xlu1 %v8563_v33, %s9132_s19  ;;  %v15787_v40 = vmov 0.0   ;;  %v15788_v25 = vrot.slane %v12397_v45, 7  ;;  %v15789_v30 = vrot.slane %v12346_v61, 7  ;;  %v15824_v16 = vrot.slane %v15823_v12, 1  ;;  %s16052_s19 = sld [smem:[#allocation241_spill]] }
 0x220   : > { %8569 = vrot.lane.b32.xlu0 %v15787_v40, %s9133_s15  ;;  %v5076_v34 = vsel %vm2825_vm7, %v5044_v49, %v8276_v29  ;;  %v5077_v56 = vsel %vm2825_vm7, %v5045_v54, %v8277_v27  ;;  %v4980_v48 = vsel %vm2825_vm7, %v4948_v46, %v8281_v62  ;;  %v4981_v39 = vsel %vm2825_vm7, %v4949_v26, %v8282_v15 }
 0x221   : > { %v8285_v33 = vpop.permute.xlu1 %8284  ;;  %v12467_v2 = vpop.permute.xlu0 %8289  ;;  %v5115_v53 = vpack.c.bf16 %v5077_v56, %v5076_v34  ;;  %v5114_v47 = vpack.c.bf16 %v4981_v39, %v4980_v48  ;;  %v3784_v19 = vsel %vm822_vm2, %v15789_v30, %v15788_v25  ;;  %v3880_v29 = vrot.slane %v12447_v37, 1  ;;  %v8754_v56 = vld [vmem:[%s14881_s8 + $0x80] sm:$0xff]  }
 0x222   : > { %v8052_v62 = vunpack.i.h.bf16 %v15791_v50  ;;  %v8051_v15 = vunpack.i.l.bf16 %v15791_v50  ;;  %v8287_v27 = vunpack.i.h.bf16 %v8285_v33  ;;  %v8286_v49 = vunpack.i.l.bf16 %v8285_v33  ;;  %7541 = vmatprep.subr.bf16.mxu1 %v8754_v56 }
 0x223   : > { %8574 = vrot.lane.b32.xlu1 %v12443_v4, %s9128_s17  ;;  %5416 = vmatprep.mubr.bf16.mxu1 %v5115_v53  ;;  %v15234_v54 = vrot.slane %v12427_v24, 7  ;;  %v3754_v46 = vrot.slane %v12431_v7, 7  ;;  %v12489_v34 = vpack.i.bf16 %v3784_v19, %v4006_v13  ;;  %v15792_v48 = vrot.slane %v12431_v7, 1 }
 0x224   : > { %8579 = vrot.lane.b32.xlu0 %v15787_v40, %s9134_s21  ;;  %5417 = vmatmul.mubr.bf16.gmra.mxu1 %v5114_v47  ;;  %v8598_v53 = vpack.i.bf16 %v12397_v45, %v12346_v61  ;;  %v3942_v30 = vsel %vm1145_vm0, %v3880_v29, %v3881_v21  ;;  %v3911_v50 = vrot.slane %v12397_v45, 1  ;;  %v2809_v13 = vsel %vm2792_vm10, %v12366_v44, %v8051_v15  ;;  %s12933_s21 = sld [smem:[#allocation3 + $0x2]] }
 0x225   : > { %v3941_v39 = vsel %vm1145_vm0, %v3881_v21, %v15792_v48  ;;  %v8295_v33 = vpop.permute.xlu1 %8294  ;;  %v8300_v25 = vpop.permute.xlu0 %8299  ;;  %v2810_v47 = vsel %vm2792_vm10, %v12370_v38, %v8052_v62  ;;  %7542 = vmatpush3.bf16.msra.mxu1 %v8754_v56  ;;  %v2842_v48 = vsel %vm2825_vm7, %v2809_v13, %v8286_v49  ;;  %v3813_v44 = vsel %vm822_vm2, %v15234_v54, %v3754_v46  ;;  %v15793_v13 = vld [vmem:[#allocation72_spill] sm:$0xff]  ;;  %v15795_v54 = vld [vmem:[#allocation139_spill] sm:$0xff] }
 0x226   : > { %v8297_v19 = vunpack.i.h.bf16 %v8295_v33  ;;  %v8296_v18 = vunpack.i.l.bf16 %v8295_v33  ;;  %v2843_v26 = vsel %vm2825_vm7, %v2810_v47, %v8287_v27  ;;  %v3947_v21 = vsel %vm1179_vm1, %v3941_v39, 0.0  ;;  %v15794_v47 = vld [vmem:[#allocation73_spill] sm:$0xff] }
 0x227   : > { %8584 = vrot.lane.b32.xlu1 %v12039_v58, %s9128_s17  ;;  %v8302_v15 = vunpack.i.h.bf16 %v8300_v25  ;;  %v8301_v38 = vunpack.i.l.bf16 %v8300_v25  ;;  %v8292_v56 = vunpack.i.h.bf16 %v12467_v2  ;;  %v8291_v27 = vunpack.i.l.bf16 %v12467_v2 }
 0x228   : > { %8589 = vrot.lane.b32.xlu0 %v12489_v34, %s15283_s27  ;;  %v2875_v62 = vsel %vm2858_vm6, %v2842_v48, %v8296_v18  ;;  %v2876_v58 = vsel %vm2858_vm6, %v2843_v26, %v8297_v19  ;;  %v2910_v31 = vpack.c.bf16 %v15794_v47, %v15793_v13  ;;  %v15796_v22 = vrot.slane %v15795_v54, 7  ;;  %v15800_v13 = vld [vmem:[#allocation192_spill] sm:$0xff] }
 0x229   : > { %v8305_v49 = vpop.permute.xlu1 %8304  ;;  %v8310_v39 = vpop.permute.xlu0 %8309  ;;  %v2907_v33 = vpack.c.bf16 %v2876_v58, %v2875_v62  ;;  %v12530_v18 = vsel %vm887_vm3, %v3813_v44, 0.0  ;;  %v15797_v26 = vrot.slane %v12346_v61, 1  ;;  %v4918_v44 = vsel %vm2693_vm5, %v15800_v13, %v8301_v38 }
 0x22a   : > { %v12526_v25 = vsel %vm822_vm2, %v3754_v46, %v15796_v22  ;;  %v8307_v19 = vunpack.i.h.bf16 %v8305_v49  ;;  %v8306_v48 = vunpack.i.l.bf16 %v8305_v49  ;;  %v8312_v62 = vunpack.i.h.bf16 %v8310_v39  ;;  %v15799_v22 = vld [vmem:[#allocation196_spill] sm:$0xff]  ;;  %v15801_v49 = vld [vmem:[#allocation193_spill] sm:$0xff] }
 0x22b   : > { %v12536_v2 = vsel %vm1145_vm0, %v15797_v26, %v3911_v50  ;;  %v8311_v58 = vunpack.i.l.bf16 %v8310_v39  ;;  %8594 = vrot.lane.b32.xlu1 %v12284_v32, %s15283_s27  ;;  %3140 = vmatmul.mubr.bf16.gmra.mxu0 %v2907_v33  ;;  %v4919_v46 = vsel %vm2693_vm5, %v15799_v22, %v8302_v15  ;;  %v12545_v47 = vpack.i.bf16 %v3947_v21, %v3942_v30 }
 0x22c   : > { %15798 = vst [vmem:[#allocation213_spill] sm:$0xff] %v12536_v2  ;;  %8599 = vrot.lane.b32.xlu0 %v8598_v53, %s9133_s15  ;;  %v3943_v26 = vsel %vm1145_vm0, %v3911_v50, %v3880_v29  ;;  %v5015_v39 = vsel %vm2693_vm5, %v15801_v49, %v8292_v56  ;;  %v5014_v32 = vsel %vm2693_vm5, %v15802_v36, %v8291_v27  ;;  %v3752_v53 = vrot.slane %v12447_v37, 7 }
 0x22d   : > { %v8315_v33 = vpop.permute.xlu1 %8314  ;;  %v8320_v35 = vpop.permute.xlu0 %8319  ;;  %v12555_v15 = vpack.i.bf16 %v12526_v25, %v12530_v18  ;;  %6991 = vmatprep.mubr.msk.bf16.mxu0 %vm2660_vm15, %v2910_v31  ;;  %v5046_v50 = vsel %vm2759_vm11, %v5014_v32, %v8306_v48  ;;  %v5047_v36 = vsel %vm2759_vm11, %v5015_v39, %v8307_v19  ;;  %v4950_v56 = vsel %vm2759_vm11, %v4918_v44, %v8311_v58  ;;  %v15805_v58 = vld [vmem:[#allocation143_spill] sm:$0xff] }
 0x22e   : > { %v8317_v30 = vunpack.i.h.bf16 %v8315_v33  ;;  %v8316_v21 = vunpack.i.l.bf16 %v8315_v33  ;;  %v8322_v38 = vunpack.i.h.bf16 %v8320_v35  ;;  %v8321_v29 = vunpack.i.l.bf16 %v8320_v35  ;;  %v15807_v33 = vld [vmem:[#allocation94_spill] sm:$0xff] }
 0x22f   : > { %8604 = vrot.lane.b32.xlu1 %v12290_v55, %s9133_s15  ;;  %v4951_v27 = vsel %vm2759_vm11, %v4919_v46, %v8312_v62  ;;  %v15803_v55 = vld [vmem:[#allocation45_spill] sm:$0xff]  ;;  %v12574_v62 = vsel %vm1179_vm1, %v3943_v26, 0.0  ;;  %v15806_v44 = vunpack.i.h.bf16 %v15646_v11  ;;  %v15811_v11 = vld [vmem:[#allocation188_spill] sm:$0xff]  ;;  %v7030_v3 = vsel %vm3302_vm4, 1.0, %v15787_v40 }
 0x230   : > { %8609 = vrot.lane.b32.xlu0 %v12545_v47, %s9128_s17  ;;  %v5078_v31 = vsel %vm2825_vm7, %v5046_v50, %v8316_v21  ;;  %v5079_v22 = vsel %vm2825_vm7, %v5047_v36, %v8317_v30  ;;  %v4982_v35 = vsel %vm2825_vm7, %v4950_v56, %v8321_v29  ;;  %v4983_v13 = vsel %vm2825_vm7, %v4951_v27, %v8322_v38  ;;  %v15809_v38 = vld [vmem:[#allocation229_spill] sm:$0xff] }
 0x231   : > { %v8056_v49 = vunpack.i.l.bf16 %v15803_v55  ;;  %v8325_v48 = vpop.permute.xlu1 %8324  ;;  %v8330_v32 = vpop.permute.xlu0 %8329  ;;  %v5118_v19 = vpack.c.bf16 %v5079_v22, %v5078_v31  ;;  %v5117_v39 = vpack.c.bf16 %v4983_v13, %v4982_v35  ;;  %15804 = vst [vmem:[#allocation49_spill] sm:$0xff] %v12574_v62  ;;  %v2713_v30 = vsel %vm2693_vm5, %v15807_v33, %v15806_v44  ;;  %v15818_v46 = vld [vmem:[#allocation89_spill] sm:$0xff] }
 0x232   : > { %v15808_v21 = vunpack.i.l.bf16 %v15756_v57  ;;  %v8057_v50 = vunpack.i.h.bf16 %v15803_v55  ;;  %v15810_v36 = vunpack.i.h.bf16 %v15756_v57  ;;  %v8327_v26 = vunpack.i.h.bf16 %v8325_v48 }
 0x233   : > { %v8326_v27 = vunpack.i.l.bf16 %v8325_v48  ;;  %8614 = vrot.lane.b32.xlu1 %v15787_v40, %s9128_s17  ;;  %5424 = vmatprep.mubr.bf16.mxu1 %v5118_v19  ;;  %v15812_v22 = vunpack.i.l.bf16 %v15790_v5  ;;  %v8628_v57 = vpack.i.bf16 %v12574_v62, %v12536_v2  ;;  %v15813_v13 = vrot.slane %v12397_v45, 7  ;;  %v15822_v2 = vld [vmem:[#allocation190_spill] sm:$0xff] }
 0x234   : > { %v2745_v29 = vsel %vm2726_vm14, %v15809_v38, %v15808_v21  ;;  %v2746_v56 = vsel %vm2726_vm14, %v2713_v30, %v15810_v36  ;;  %8619 = vrot.lane.b32.xlu0 %v12555_v15, %s15283_s27  ;;  %5425 = vmatmul.mubr.bf16.gmra.mxu1 %v5117_v39  ;;  %v15814_v48 = vunpack.i.h.bf16 %v15790_v5  ;;  %v12609_v21 = vpack.i.bf16 %v15795_v54, %v12431_v7 }
 0x235   : > { %v2778_v35 = vsel %vm2759_vm11, %v2745_v29, %v15812_v22  ;;  %v3815_v55 = vsel %vm822_vm2, %v15813_v13, %v3752_v53  ;;  %v8335_v33 = vpop.permute.xlu1 %8334  ;;  %v8340_v30 = vpop.permute.xlu0 %8339  ;;  %v15815_v36 = vrot.slane %v12427_v24, 7  ;;  %v7982_v62 = vunpack.i.h.bf16 %v15818_v46 }
 0x236   : > { %v2779_v19 = vsel %vm2759_vm11, %v2746_v56, %v15814_v48  ;;  %v2811_v44 = vsel %vm2792_vm10, %v2778_v35, %v8056_v49  ;;  %v8337_v38 = vunpack.i.h.bf16 %v8335_v33  ;;  %v8336_v29 = vunpack.i.l.bf16 %v8335_v33 }
 0x237   : > { %v2812_v39 = vsel %vm2792_vm10, %v2779_v19, %v8057_v50  ;;  %v12616_v22 = vsel %vm822_vm2, %v3752_v53, %v15815_v36  ;;  %8624 = vrot.lane.b32.xlu1 %v15787_v40, %s15283_s27  ;;  %v2844_v5 = vsel %vm2825_vm7, %v2811_v44, %v8326_v27  ;;  %v12624_v56 = vsel %vm887_vm3, %v3815_v55, 0.0 }
 0x238   : > { %v2845_v49 = vsel %vm2825_vm7, %v2812_v39, %v8327_v26  ;;  %v3883_v50 = vrot.slane %v15795_v54, 1  ;;  %v8342_v35 = vunpack.i.h.bf16 %v8340_v30  ;;  %v8341_v13 = vunpack.i.l.bf16 %v8340_v30  ;;  %8629 = vrot.lane.b32.xlu0 %v8628_v57, %s9128_s17  ;;  %v15816_v26 = vld [vmem:[#allocation70_spill] sm:$0xff]  ;;  %v15817_v39 = vld [vmem:[#allocation71_spill] sm:$0xff] }
 0x239   : > { %v2877_v53 = vsel %vm2858_vm6, %v2844_v5, %v8336_v29  ;;  %v2878_v48 = vsel %vm2858_vm6, %v2845_v49, %v8337_v38  ;;  %v8332_v19 = vunpack.i.h.bf16 %v8330_v32  ;;  %v8331_v33 = vunpack.i.l.bf16 %v8330_v32  ;;  %v8345_v36 = vpop.permute.xlu1 %8344  ;;  %v8350_v27 = vpop.permute.xlu0 %8349  ;;  %v15819_v32 = vld [vmem:[#allocation203_spill] sm:$0xff] }
 0x23a   : > { %v2909_v44 = vpack.c.bf16 %v2878_v48, %v2877_v53  ;;  %v2912_v31 = vpack.c.bf16 %v15817_v39, %v15816_v26  ;;  %v7901_v55 = vunpack.i.l.bf16 %v15811_v11  ;;  %v7981_v30 = vunpack.i.l.bf16 %v15818_v46  ;;  %v15820_v48 = vld [vmem:[#allocation202_spill] sm:$0xff]  ;;  %v15821_v46 = vld [vmem:[#allocation197_spill] sm:$0xff] }
 0x23b   : > { %v8643_v57 = vpack.i.bf16 %v12616_v22, %v12624_v56  ;;  %v8347_v29 = vunpack.i.h.bf16 %v8345_v36  ;;  %v8346_v5 = vunpack.i.l.bf16 %v8345_v36  ;;  %v8352_v38 = vunpack.i.h.bf16 %v8350_v27  ;;  %8634 = vrot.lane.b32.xlu1 %v12609_v21, %s9133_s15 }
 0x23c   : > { %v8351_v49 = vunpack.i.l.bf16 %v8350_v27  ;;  %3148 = vmatmul.mubr.bf16.gmra.mxu0 %v2909_v44  ;;  %v4921_v53 = vsel %vm2693_vm5, %v15819_v32, %v8342_v35  ;;  %v4920_v26 = vsel %vm2693_vm5, %v15820_v48, %v8341_v13  ;;  %8639 = vrot.lane.b32.xlu0 %v12275_v52, %s9128_s17  ;;  %v5017_v39 = vsel %vm2693_vm5, %v15821_v46, %v8332_v19 }
 0x23d   : > { %v5016_v36 = vsel %vm2693_vm5, %v15822_v2, %v8331_v33  ;;  %v8355_v27 = vpop.permute.xlu1 %8354  ;;  %v8360_v44 = vpop.permute.xlu0 %8359  ;;  %v3939_v41 = vsel %vm1145_vm0, %v3883_v50, %v15824_v16  ;;  %6992 = vmatprep.mubr.msk.bf16.mxu0 %vm2660_vm15, %v2912_v31  ;;  %v4953_v19 = vsel %vm2759_vm11, %v4921_v53, %v8352_v38  ;;  %v5049_v33 = vsel %vm2759_vm11, %v5017_v39, %v8347_v29  ;;  %v15826_v39 = vld [vmem:[#allocation50_spill] sm:$0xff] }
 0x23e   : > { %v8357_v35 = vunpack.i.h.bf16 %v8355_v27  ;;  %v8356_v13 = vunpack.i.l.bf16 %v8355_v27  ;;  %v8362_v32 = vunpack.i.h.bf16 %v8360_v44  ;;  %v8361_v48 = vunpack.i.l.bf16 %v8360_v44 }
 0x23f   : > { %v4952_v52 = vsel %vm2759_vm11, %v4920_v26, %v8351_v49  ;;  %8644 = vrot.lane.b32.xlu1 %v8643_v57, %s9133_s15  ;;  %v5048_v2 = vsel %vm2759_vm11, %v5016_v36, %v8346_v5  ;;  %v15825_v57 = vrot.slane %v12431_v7, 1  ;;  %v12673_v5 = vsel %vm1179_vm1, %v3939_v41, 0.0 }
 0x240   : > { %8649 = vrot.lane.b32.xlu0 %v15787_v40, %s15283_s27  ;;  %v5080_v16 = vsel %vm2825_vm7, %v5048_v2, %v8356_v13  ;;  %v5081_v31 = vsel %vm2825_vm7, %v5049_v33, %v8357_v35  ;;  %v4984_v46 = vsel %vm2825_vm7, %v4952_v52, %v8361_v48  ;;  %v4985_v27 = vsel %vm2825_vm7, %v4953_v19, %v8362_v32  ;;  %v15828_v35 = vld [vmem:[#allocation92_spill] sm:$0xff]  ;;  %v15829_v32 = vld [vmem:[#allocation54_spill] sm:$0xff] }
 0x241   : > { %v8365_v49 = vpop.permute.xlu1 %8364  ;;  %v8370_v26 = vpop.permute.xlu0 %8369  ;;  %v5121_v38 = vpack.c.bf16 %v5081_v31, %v5080_v16  ;;  %v5120_v53 = vpack.c.bf16 %v4985_v27, %v4984_v46  ;;  %v12669_v29 = vsel %vm1145_vm0, %v15825_v57, %v3883_v50  ;;  %v7747_v36 = vunpack.i.h.bf16 %v15826_v39  ;;  %vm15893_vm0 = vmmov %vm15784_vm8 }
 0x242   : > { %v15827_v44 = vunpack.i.l.bf16 %v15805_v58  ;;  %v8062_v48 = vunpack.i.h.bf16 %v15829_v32  ;;  %v8061_v52 = vunpack.i.l.bf16 %v15829_v32  ;;  %v15830_v19 = vunpack.i.h.bf16 %v15805_v58 }
 0x243   : > { %v8367_v2 = vunpack.i.h.bf16 %v8365_v49  ;;  %v8366_v51 = vunpack.i.l.bf16 %v8365_v49  ;;  %5432 = vmatprep.mubr.bf16.mxu1 %v5121_v38  ;;  %8654 = vrot.lane.b32.xlu1 %v12443_v4, %s15283_s27  ;;  %v15832_v41 = vunpack.i.h.bf16 %v15811_v11  ;;  %v12696_v58 = vpack.i.bf16 %v12673_v5, %v12669_v29 }
 0x244   : > { %v2714_v13 = vsel %vm2693_vm5, %v15828_v35, %v15827_v44  ;;  %v2715_v50 = vsel %vm2693_vm5, %v15831_v43, %v15830_v19  ;;  %8659 = vrot.lane.b32.xlu0 %v15787_v40, %s9133_s15  ;;  %5433 = vmatmul.mubr.bf16.gmra.mxu1 %v5120_v53  ;;  %v7746_v31 = vunpack.i.l.bf16 %v15826_v39  ;;  %v15833_v44 = vld [vmem:[#allocation101_spill] sm:$0xff]  ;;  %v8371_v19 = vunpack.i.l.bf16 %v8370_v26 }
 0x245   : > { %v2748_v33 = vsel %vm2726_vm14, %v2715_v50, %v15832_v41  ;;  %v2747_v16 = vsel %vm2726_vm14, %v2714_v13, %v7901_v55  ;;  %v8375_v27 = vpop.permute.xlu1 %8374  ;;  %v8380_v11 = vpop.permute.xlu0 %8379  ;;  %v2684_v53 = vsel %vm2660_vm15, %v15833_v44, %v7747_v36  ;;  %v8372_v36 = vunpack.i.h.bf16 %v8370_v26  ;;  %v15835_v41 = vld [vmem:[#allocation77_spill] sm:$0xff] }
 0x246   : > { %v2780_v46 = vsel %vm2759_vm11, %v2747_v16, %v7981_v30  ;;  %v2781_v4 = vsel %vm2759_vm11, %v2748_v33, %v7982_v62  ;;  %v8377_v38 = vunpack.i.h.bf16 %v8375_v27  ;;  %v8376_v57 = vunpack.i.l.bf16 %v8375_v27  ;;  %v15836_v33 = vld [vmem:[#allocation150_spill] sm:$0xff] }
 0x247   : > { %v2813_v49 = vsel %vm2792_vm10, %v2780_v46, %v8061_v52  ;;  %v2814_v55 = vsel %vm2792_vm10, %v2781_v4, %v8062_v48  ;;  %8664 = vrot.lane.b32.xlu1 %v12489_v34, %s9133_s15  ;;  %v8673_v62 = vpack.i.bf16 %v12427_v24, %v12447_v37  ;;  %v8382_v13 = vunpack.i.h.bf16 %v8380_v11  ;;  %v15837_v4 = vld [vmem:[#allocation194_spill] sm:$0xff] }
 0x248   : > { %v2846_v35 = vsel %vm2825_vm7, %v2813_v49, %v8366_v51  ;;  %v2847_v30 = vsel %vm2825_vm7, %v2814_v55, %v8367_v2  ;;  %v8381_v32 = vunpack.i.l.bf16 %v8380_v11  ;;  %8669 = vrot.lane.b32.xlu0 %v12696_v58, %s9128_s17  ;;  %v15834_v51 = vld [vmem:[#allocation76_spill] sm:$0xff]  ;;  %v7827_v16 = vunpack.i.h.bf16 %v15836_v33 }
 0x249   : > { %v2879_v48 = vsel %vm2858_vm6, %v2846_v35, %v8376_v57  ;;  %v2880_v52 = vsel %vm2858_vm6, %v2847_v30, %v8377_v38  ;;  %v8385_v43 = vpop.permute.xlu1 %8384  ;;  %v8390_v34 = vpop.permute.xlu0 %8389  ;;  %v2914_v2 = vpack.c.bf16 %v15835_v41, %v15834_v51  ;;  %v7826_v46 = vunpack.i.l.bf16 %v15836_v33  ;;  %v15838_v38 = vld [vmem:[#allocation208_spill] sm:$0xff]  ;;  %v15839_v35 = vld [vmem:[#allocation209_spill] sm:$0xff] }
 0x24a   : > { %v2911_v50 = vpack.c.bf16 %v2880_v52, %v2879_v48  ;;  %v7907_v27 = vunpack.i.h.bf16 %v15837_v4  ;;  %v8387_v11 = vunpack.i.h.bf16 %v8385_v43  ;;  %v8386_v49 = vunpack.i.l.bf16 %v8385_v43  ;;  %v15840_v48 = vld [vmem:[#allocation177_spill] sm:$0xff]  ;;  %v15841_v52 = vld [vmem:[#allocation86_spill] sm:$0xff] }
 0x24b   : > { %v8392_v55 = vunpack.i.h.bf16 %v8390_v34  ;;  %v8391_v57 = vunpack.i.l.bf16 %v8390_v34  ;;  %8674 = vrot.lane.b32.xlu1 %v8673_v62, %s9128_s17  ;;  %v7906_v26 = vunpack.i.l.bf16 %v15837_v4  ;;  %v4923_v44 = vsel %vm2693_vm5, %v15838_v38, %v8382_v13  ;;  %v15842_v43 = vld [vmem:[#allocation210_spill] sm:$0xff] }
 0x24c   : > { %3156 = vmatmul.mubr.bf16.gmra.mxu0 %v2911_v50  ;;  %v4922_v30 = vsel %vm2693_vm5, %v15839_v35, %v8381_v32  ;;  %8679 = vrot.lane.b32.xlu0 %v15840_v48, %s15283_s27  ;;  %v5019_v51 = vsel %vm2693_vm5, %v15841_v52, %v8372_v36  ;;  %v5018_v34 = vsel %vm2693_vm5, %v15842_v43, %v8371_v19  ;;  %v15843_v19 = vld [vmem:[#allocation156_spill] sm:$0xff]  ;;  %vm15894_vm1 = vcmp.gt.f32.partialorder %v15779_v0, 0.0 }
 0x24d   : > { %v8395_v50 = vpop.permute.xlu1 %8394  ;;  %v8400_v41 = vpop.permute.xlu0 %8399  ;;  %6993 = vmatprep.mubr.msk.bf16.mxu0 %vm2660_vm15, %v2914_v2  ;;  %v4954_v38 = vsel %vm2759_vm11, %v4922_v30, %v8391_v57  ;;  %v4955_v32 = vsel %vm2759_vm11, %v4923_v44, %v8392_v55  ;;  %v5050_v36 = vsel %vm2759_vm11, %v5018_v34, %v8386_v49  ;;  %v5051_v35 = vsel %vm2759_vm11, %v5019_v51, %v8387_v11  ;;  %v15844_v30 = vld [vmem:[#allocation100_spill] sm:$0xff]  ;;  %v15845_v11 = vld [vmem:[#allocation102_spill] sm:$0xff] }
 0x24e   : > { %v8397_v62 = vunpack.i.h.bf16 %v8395_v50  ;;  %v8396_v33 = vunpack.i.l.bf16 %v8395_v50  ;;  %v8402_v4 = vunpack.i.h.bf16 %v8400_v41  ;;  %v8401_v13 = vunpack.i.l.bf16 %v8400_v41 }
 0x24f   : > { %8684 = vrot.lane.b32.xlu1 %v12545_v47, %s15283_s27  ;;  %v7987_v55 = vunpack.i.h.bf16 %v15844_v30  ;;  %v7986_v44 = vunpack.i.l.bf16 %v15844_v30  ;;  %v2683_v51 = vsel %vm2660_vm15, %v15845_v11, %v7746_v31  ;;  %v2717_v41 = vsel %vm2693_vm5, %v2684_v53, %v7827_v16  ;;  %v15847_v31 = vld [vmem:[#allocation162_spill] sm:$0xff]  ;;  %v15848_v30 = vld [vmem:[#allocation168_spill] sm:$0xff] }
 0x250   : > { %8689 = vrot.lane.b32.xlu0 %v15843_v19, %s9133_s15  ;;  %v5082_v2 = vsel %vm2825_vm7, %v5050_v36, %v8396_v33  ;;  %v5083_v52 = vsel %vm2825_vm7, %v5051_v35, %v8397_v62  ;;  %v4986_v43 = vsel %vm2825_vm7, %v4954_v38, %v8401_v13  ;;  %v4987_v57 = vsel %vm2825_vm7, %v4955_v32, %v8402_v4  ;;  %v15846_v62 = vld [vmem:[#allocation165_spill] sm:$0xff] }
 0x251   : > { %v8405_v47 = vpop.permute.xlu1 %8404  ;;  %v8410_v50 = vpop.permute.xlu0 %8409  ;;  %v5124_v49 = vpack.c.bf16 %v5083_v52, %v5082_v2  ;;  %v5123_v34 = vpack.c.bf16 %v4987_v57, %v4986_v43  ;;  %v8067_v33 = vunpack.i.h.bf16 %v15846_v62  ;;  %v8066_v13 = vunpack.i.l.bf16 %v15846_v62 }
 0x252   : > { %v2716_v4 = vsel %vm2693_vm5, %v2683_v51, %v7826_v46  ;;  %v8407_v38 = vunpack.i.h.bf16 %v8405_v47  ;;  %v8406_v32 = vunpack.i.l.bf16 %v8405_v47  ;;  %v2750_v39 = vsel %vm2726_vm14, %v2717_v41, %v7907_v27  ;;  %v15849_v41 = vld [vmem:[#allocation74_spill] sm:$0xff] }
 0x253   : > { %5440 = vmatprep.mubr.bf16.mxu1 %v5124_v49  ;;  %8694 = vrot.lane.b32.xlu1 %v12555_v15, %s9133_s15  ;;  %v2749_v36 = vsel %vm2726_vm14, %v2716_v4, %v7906_v26  ;;  %v2783_v16 = vsel %vm2759_vm11, %v2750_v39, %v7987_v55  ;;  %v8412_v47 = vunpack.i.h.bf16 %v8410_v50  ;;  %v8411_v49 = vunpack.i.l.bf16 %v8410_v50 }
 0x254   : > { %8699 = vrot.lane.b32.xlu0 %v15847_v31, %s9128_s17  ;;  %5441 = vmatmul.mubr.bf16.gmra.mxu1 %v5123_v34  ;;  %v2782_v53 = vsel %vm2759_vm11, %v2749_v36, %v7986_v44  ;;  %v2816_v2 = vsel %vm2792_vm10, %v2783_v16, %v8067_v33  ;;  %v15851_v33 = vld [vmem:[#allocation61_spill] sm:$0xff] }
 0x255   : > { %v8415_v35 = vpop.permute.xlu1 %8414  ;;  %v8420_v46 = vpop.permute.xlu0 %8419  ;;  %v2815_v19 = vsel %vm2792_vm10, %v2782_v53, %v8066_v13  ;;  %v2849_v26 = vsel %vm2825_vm7, %v2816_v2, %v8407_v38  ;;  %v7752_v13 = vunpack.i.h.bf16 %v15851_v33  ;;  %v7751_v4 = vunpack.i.l.bf16 %v15851_v33  ;;  %v15852_v31 = vld [vmem:[#allocation149_spill] sm:$0xff]  ;;  %v15855_v2 = vld [vmem:[#allocation178_spill] sm:$0xff] }
 0x256   : > { %v8417_v52 = vunpack.i.h.bf16 %v8415_v35  ;;  %v8416_v15 = vunpack.i.l.bf16 %v8415_v35  ;;  %v2848_v27 = vsel %vm2825_vm7, %v2815_v19, %v8406_v32  ;;  %v8422_v43 = vunpack.i.h.bf16 %v8420_v46  ;;  %v15853_v16 = vld [vmem:[#allocation129_spill] sm:$0xff] }
 0x257   : > { %8704 = vrot.lane.b32.xlu1 %v12609_v21, %s9128_s17  ;;  %v8421_v57 = vunpack.i.l.bf16 %v8420_v46  ;;  %v15850_v21 = vld [vmem:[#allocation75_spill] sm:$0xff]  ;;  %v7832_v50 = vunpack.i.h.bf16 %v15852_v31  ;;  %v7831_v53 = vunpack.i.l.bf16 %v15852_v31  ;;  %s12922_s17 = sld [smem:[#allocation3 + $0x4]] }
 0x258   : > { %8709 = vrot.lane.b32.xlu0 %v15848_v30, %s15283_s27  ;;  %v2881_v55 = vsel %vm2858_vm6, %v2848_v27, %v8416_v15  ;;  %v2882_v44 = vsel %vm2858_vm6, %v2849_v26, %v8417_v52  ;;  %v2916_v62 = vpack.c.bf16 %v15850_v21, %v15849_v41  ;;  %v4925_v35 = vsel %vm2693_vm5, %v15853_v16, %v8422_v43  ;;  %v15854_v46 = vld [vmem:[#allocation51_spill] sm:$0xff]  ;;  %v15857_v26 = vld [vmem:[#allocation90_spill] sm:$0xff]  ;;  %v15858_v30 = vld [vmem:[#allocation216_spill] sm:$0xff] }
 0x259   : > { %v8425_v34 = vpop.permute.xlu1 %8424  ;;  %v8430_v11 = vpop.permute.xlu0 %8429  ;;  %v2913_v51 = vpack.c.bf16 %v2882_v44, %v2881_v55  ;;  %v4924_v19 = vsel %vm2693_vm5, %v15854_v46, %v8421_v57  ;;  %v15856_v52 = vld [vmem:[#allocation195_spill] sm:$0xff]  ;;  %v5020_v55 = vsel %vm2693_vm5, %v15858_v30, %v8411_v49  ;;  %v15859_v46 = vld [vmem:[#allocation217_spill] sm:$0xff] }
 0x25a   : > { %v8427_v38 = vunpack.i.h.bf16 %v8425_v34  ;;  %v8426_v32 = vunpack.i.l.bf16 %v8425_v34  ;;  %v8432_v36 = vunpack.i.h.bf16 %v8430_v11  ;;  %v8431_v39 = vunpack.i.l.bf16 %v8430_v11 }
 0x25b   : > { %3164 = vmatmul.mubr.bf16.gmra.mxu0 %v2913_v51  ;;  %8714 = vrot.lane.b32.xlu1 %v12696_v58, %s15283_s27  ;;  %v7912_v15 = vunpack.i.h.bf16 %v15856_v52  ;;  %v7911_v27 = vunpack.i.l.bf16 %v15856_v52  ;;  %v5021_v58 = vsel %vm2693_vm5, %v15857_v26, %v8412_v47  ;;  %v15860_v52 = vld [vmem:[#allocation108_spill] sm:$0xff] }
 0x25c   : > { %8719 = vrot.lane.b32.xlu0 %v15855_v2, %s9133_s15  ;;  %6994 = vmatprep.mubr.msk.bf16.mxu0 %vm2660_vm15, %v2916_v62  ;;  %v4956_v41 = vsel %vm2759_vm11, %v4924_v19, %v8431_v39  ;;  %v4957_v21 = vsel %vm2759_vm11, %v4925_v35, %v8432_v36  ;;  %v5052_v47 = vsel %vm2759_vm11, %v5020_v55, %v8426_v32  ;;  %v7992_v2 = vunpack.i.h.bf16 %v15859_v46 }
 0x25d   : > { %v8435_v44 = vpop.permute.xlu1 %8434  ;;  %v8440_v34 = vpop.permute.xlu0 %8439  ;;  %v5053_v33 = vsel %vm2759_vm11, %v5021_v58, %v8427_v38  ;;  %v7991_v39 = vunpack.i.l.bf16 %v15859_v46  ;;  %v2686_v32 = vsel %vm2660_vm15, %v15860_v52, %v7752_v13  ;;  %v15861_v38 = vld [vmem:[#allocation109_spill] sm:$0xff]  ;;  %v15864_v46 = vld [vmem:[#allocation78_spill] sm:$0xff] }
 0x25e   : > { %v8437_v43 = vunpack.i.h.bf16 %v8435_v44  ;;  %v8436_v11 = vunpack.i.l.bf16 %v8435_v44  ;;  %v8442_v57 = vunpack.i.h.bf16 %v8440_v34  ;;  %v8441_v51 = vunpack.i.l.bf16 %v8440_v34  ;;  %v15862_v58 = vld [vmem:[#allocation37_spill] sm:$0xff] }
 0x25f   : > { %8724 = vrot.lane.b32.xlu1 %v15840_v48, %s9133_s15  ;;  %v2685_v26 = vsel %vm2660_vm15, %v15861_v38, %v7751_v4  ;;  %v8072_v30 = vunpack.i.h.bf16 %v15862_v58  ;;  %v8071_v55 = vunpack.i.l.bf16 %v15862_v58  ;;  %v2719_v34 = vsel %vm2693_vm5, %v2686_v32, %v7832_v50 }
 0x260   : > { %v5084_v49 = vsel %vm2825_vm7, %v5052_v47, %v8436_v11  ;;  %v5085_v31 = vsel %vm2825_vm7, %v5053_v33, %v8437_v43  ;;  %v4988_v62 = vsel %vm2825_vm7, %v4956_v41, %v8441_v51  ;;  %v4989_v16 = vsel %vm2825_vm7, %v4957_v21, %v8442_v57 }
 0x261   : > { %v8445_v36 = vpop.permute.xlu1 %8444  ;;  %v8450_v35 = vpop.permute.xlu0 %8449  ;;  %v5127_v19 = vpack.c.bf16 %v5085_v31, %v5084_v49  ;;  %v5126_v48 = vpack.c.bf16 %v4989_v16, %v4988_v62  ;;  %v2718_v44 = vsel %vm2693_vm5, %v2685_v26, %v7831_v53  ;;  %v2752_v57 = vsel %vm2726_vm14, %v2719_v34, %v7912_v15  ;;  %v15863_v49 = vld [vmem:[#allocation64_spill] sm:$0xff] }
 0x262   : > { %v8447_v43 = vunpack.i.h.bf16 %v8445_v36  ;;  %v8446_v11 = vunpack.i.l.bf16 %v8445_v36  ;;  %v2751_v51 = vsel %vm2726_vm14, %v2718_v44, %v7911_v27  ;;  %v2785_v4 = vsel %vm2759_vm11, %v2752_v57, %v7992_v2  ;;  %v15865_v2 = vld [vmem:[#allocation79_spill] sm:$0xff]  ;;  %v15867_v44 = vld [vmem:[#allocation154_spill] sm:$0xff] }
 0x263   : > { %5448 = vmatprep.mubr.bf16.mxu1 %v5127_v19  ;;  %v2784_v13 = vsel %vm2759_vm11, %v2751_v51, %v7991_v39  ;;  %v2818_v47 = vsel %vm2792_vm10, %v2785_v4, %v8072_v30  ;;  %v7757_v31 = vunpack.i.h.bf16 %v15863_v49  ;;  %v2918_v39 = vpack.c.bf16 %v15865_v2, %v15864_v46  ;;  %v15866_v30 = vld [vmem:[#allocation110_spill] sm:$0xff]  ;;  %v15868_v51 = vld [vmem:[#allocation200_spill] sm:$0xff] }
 0x264   : > { %5449 = vmatmul.mubr.bf16.gmra.mxu1 %v5126_v48  ;;  %v2817_v21 = vsel %vm2792_vm10, %v2784_v13, %v8071_v55  ;;  %v2851_v15 = vsel %vm2825_vm7, %v2818_v47, %v8447_v43  ;;  %v7756_v32 = vunpack.i.l.bf16 %v15863_v49  ;;  %v8452_v38 = vunpack.i.h.bf16 %v8450_v35 }
 0x265   : > { %v8455_v41 = vpop.permute.xlu1 %8454  ;;  %v2850_v62 = vsel %vm2825_vm7, %v2817_v21, %v8446_v11  ;;  %v8451_v26 = vunpack.i.l.bf16 %v8450_v35  ;;  %v2688_v55 = vsel %vm2660_vm15, %v15866_v30, %v7757_v31  ;;  %v7837_v34 = vunpack.i.h.bf16 %v15867_v44  ;;  %v15869_v35 = vld [vmem:[#allocation42_spill] sm:$0xff] }
 0x266   : > { %v8457_v53 = vunpack.i.h.bf16 %v8455_v41  ;;  %v8456_v33 = vunpack.i.l.bf16 %v8455_v41  ;;  %v8460_v50 = vpop.permute.xlu0 %8459  ;;  %v7836_v57 = vunpack.i.l.bf16 %v15867_v44  ;;  %v7917_v13 = vunpack.i.h.bf16 %v15868_v51 }
 0x267   : > { %v8462_v36 = vunpack.i.h.bf16 %v8460_v50  ;;  %v8461_v19 = vunpack.i.l.bf16 %v8460_v50  ;;  %v7916_v21 = vunpack.i.l.bf16 %v15868_v51  ;;  %v7997_v47 = vunpack.i.h.bf16 %v15869_v35  ;;  %v15871_v50 = vld [vmem:[#allocation134_spill] sm:$0xff] }
 0x268   : > { %v2883_v27 = vsel %vm2858_vm6, %v2850_v62, %v8456_v33  ;;  %v2884_v16 = vsel %vm2858_vm6, %v2851_v15, %v8457_v53  ;;  %v15870_v53 = vld [vmem:[#allocation133_spill] sm:$0xff]  ;;  %v15872_v62 = vld [vmem:[#allocation223_spill] sm:$0xff]  ;;  %v7996_v51 = vunpack.i.l.bf16 %v15869_v35 }
 0x269   : > { %v8465_v48 = vpop.permute.xlu1 %8464  ;;  %v2915_v52 = vpack.c.bf16 %v2884_v16, %v2883_v27  ;;  %v4927_v33 = vsel %vm2693_vm5, %v15870_v53, %v8462_v36  ;;  %v4926_v49 = vsel %vm2693_vm5, %v15871_v50, %v8461_v19  ;;  %v5023_v15 = vsel %vm2693_vm5, %v15872_v62, %v8452_v38  ;;  %v15873_v27 = vld [vmem:[#allocation220_spill] sm:$0xff]  ;;  %v15875_v62 = vld [vmem:[#allocation173_spill] sm:$0xff] }
 0x26a   : > { %v8470_v58 = vpop.permute.xlu0 %8469  ;;  %v8467_v43 = vunpack.i.h.bf16 %v8465_v48  ;;  %v8466_v11 = vunpack.i.l.bf16 %v8465_v48  ;;  %v5022_v16 = vsel %vm2693_vm5, %v15873_v27, %v8451_v26 }
 0x26b   : > { %3172 = vmatmul.mubr.bf16.gmra.mxu0 %v2915_v52  ;;  %v8472_v4 = vunpack.i.h.bf16 %v8470_v58  ;;  %v8471_v41 = vunpack.i.l.bf16 %v8470_v58 }
 0x26c   : > { %6995 = vmatprep.mubr.msk.bf16.mxu0 %vm2660_vm15, %v2918_v39  ;;  %v5054_v48 = vsel %vm2759_vm11, %v5022_v16, %v8466_v11  ;;  %v5055_v52 = vsel %vm2759_vm11, %v5023_v15, %v8467_v43  ;;  %v8077_v15 = vunpack.i.h.bf16 %v15875_v62 }
 0x26d   : > { %v8475_v31 = vpop.permute.xlu1 %8474  ;;  %v4958_v36 = vsel %vm2759_vm11, %v4926_v49, %v8471_v41  ;;  %v4959_v19 = vsel %vm2759_vm11, %v4927_v33, %v8472_v4  ;;  %v8076_v41 = vunpack.i.l.bf16 %v15875_v62  ;;  %v2721_v49 = vsel %vm2693_vm5, %v2688_v55, %v7837_v34  ;;  %v15877_v62 = vld [vmem:[#allocation114_spill] sm:$0xff] }
 0x26e   : > { %v8477_v46 = vunpack.i.h.bf16 %v8475_v31  ;;  %v8476_v2 = vunpack.i.l.bf16 %v8475_v31  ;;  %v8480_v39 = vpop.permute.xlu0 %8479  ;;  %v15874_v31 = vld [vmem:[#allocation111_spill] sm:$0xff] }
 0x26f   : > { %v8482_v58 = vunpack.i.h.bf16 %v8480_v39  ;;  %v8481_v30 = vunpack.i.l.bf16 %v8480_v39  ;;  %v2687_v43 = vsel %vm2660_vm15, %v15874_v31, %v7756_v32 }
 0x270   : > { %v5086_v44 = vsel %vm2825_vm7, %v5054_v48, %v8476_v2  ;;  %v5087_v38 = vsel %vm2825_vm7, %v5055_v52, %v8477_v46  ;;  %v2720_v27 = vsel %vm2693_vm5, %v2687_v43, %v7836_v57  ;;  %v2754_v2 = vsel %vm2726_vm14, %v2721_v49, %v7917_v13 }
 0x271   : > { %v8485_v26 = vpop.permute.xlu1 %8484  ;;  %v5130_v53 = vpack.c.bf16 %v5087_v38, %v5086_v44  ;;  %v4990_v50 = vsel %vm2825_vm7, %v4958_v36, %v8481_v30  ;;  %v4991_v11 = vsel %vm2825_vm7, %v4959_v19, %v8482_v58  ;;  %v2753_v46 = vsel %vm2726_vm14, %v2720_v27, %v7916_v21  ;;  %v15876_v30 = vld [vmem:[#allocation130_spill] sm:$0xff] }
 0x272   : > { %v8490_v4 = vpop.permute.xlu0 %8489  ;;  %v5129_v33 = vpack.c.bf16 %v4991_v11, %v4990_v50  ;;  %v8487_v35 = vunpack.i.h.bf16 %v8485_v26  ;;  %v8486_v16 = vunpack.i.l.bf16 %v8485_v26  ;;  %v2786_v32 = vsel %vm2759_vm11, %v2753_v46, %v7996_v51 }
 0x273   : > { %5456 = vmatprep.mubr.bf16.mxu1 %v5130_v53  ;;  %v2787_v39 = vsel %vm2759_vm11, %v2754_v2, %v7997_v47  ;;  %v2819_v52 = vsel %vm2792_vm10, %v2786_v32, %v8076_v41  ;;  %v7762_v36 = vunpack.i.h.bf16 %v15876_v30  ;;  %v2920_v47 = vpack.c.bf16 %v12324_v9, %v12296_v23  ;;  %v15878_v41 = vld [vmem:[#allocation153_spill] sm:$0xff] }
 0x274   : > { %5457 = vmatmul.mubr.bf16.gmra.mxu1 %v5129_v33  ;;  %v2820_v58 = vsel %vm2792_vm10, %v2787_v39, %v8077_v15  ;;  %v2852_v21 = vsel %vm2825_vm7, %v2819_v52, %v8486_v16  ;;  %v7761_v50 = vunpack.i.l.bf16 %v15876_v30  ;;  %v8492_v11 = vunpack.i.h.bf16 %v8490_v4  ;;  %v15879_v23 = vld [vmem:[#allocation201_spill] sm:$0xff]  ;;  %v15881_v39 = vld [vmem:[#allocation227_spill] sm:$0xff]  ;;  %v15882_v52 = vld [vmem:[#allocation228_spill] sm:$0xff] }
 0x275   : > { %v8495_v48 = vpop.permute.xlu1 %8494  ;;  %v2853_v19 = vsel %vm2825_vm7, %v2820_v58, %v8487_v35  ;;  %v8491_v31 = vunpack.i.l.bf16 %v8490_v4  ;;  %v2690_v15 = vsel %vm2660_vm15, %v15877_v62, %v7762_v36  ;;  %v7842_v33 = vunpack.i.h.bf16 %v15878_v41  ;;  %v15880_v4 = vld [vmem:[#allocation43_spill] sm:$0xff] }
 0x276   : > { %v8497_v55 = vunpack.i.h.bf16 %v8495_v48  ;;  %v8496_v34 = vunpack.i.l.bf16 %v8495_v48  ;;  %v8500_v57 = vpop.permute.xlu0 %8499  ;;  %v7841_v35 = vunpack.i.l.bf16 %v15878_v41  ;;  %v7922_v9 = vunpack.i.h.bf16 %v15879_v23  ;;  %v15883_v62 = vld [vmem:[#allocation115_spill] sm:$0xff] }
 0x277   : > { %v8502_v38 = vunpack.i.h.bf16 %v8500_v57  ;;  %v8501_v51 = vunpack.i.l.bf16 %v8500_v57  ;;  %v7921_v2 = vunpack.i.l.bf16 %v15879_v23  ;;  %v8002_v32 = vunpack.i.h.bf16 %v15880_v4 }
 0x278   : > { %v2885_v13 = vsel %vm2858_vm6, %v2852_v21, %v8496_v34  ;;  %v2886_v44 = vsel %vm2858_vm6, %v2853_v19, %v8497_v55  ;;  %v5025_v34 = vsel %vm2693_vm5, %v11733_v8, %v8492_v11  ;;  %v5024_v57 = vsel %vm2693_vm5, %v11707_v6, %v8491_v31 }
 0x279   : > { %v8505_v26 = vpop.permute.xlu1 %8504  ;;  %v2917_v53 = vpack.c.bf16 %v2886_v44, %v2885_v13  ;;  %v4929_v48 = vsel %vm2693_vm5, %v15881_v39, %v8502_v38  ;;  %v4928_v58 = vsel %vm2693_vm5, %v15882_v52, %v8501_v51  ;;  %v2689_v41 = vsel %vm2660_vm15, %v15883_v62, %v7761_v50 }
 0x27a   : > { %v8510_v43 = vpop.permute.xlu0 %8509  ;;  %v8507_v49 = vunpack.i.h.bf16 %v8505_v26  ;;  %v8506_v27 = vunpack.i.l.bf16 %v8505_v26  ;;  %v2722_v39 = vsel %vm2693_vm5, %v2689_v41, %v7841_v35  ;;  %v15888_v41 = vld [vmem:[#allocation161_spill] sm:$0xff] }
 0x27b   : > { %3180 = vmatmul.mubr.bf16.gmra.mxu0 %v2917_v53  ;;  %v8512_v16 = vunpack.i.h.bf16 %v8510_v43  ;;  %v8511_v46 = vunpack.i.l.bf16 %v8510_v43  ;;  %v8001_v53 = vunpack.i.l.bf16 %v15880_v4 }
 0x27c   : > { %6996 = vmatprep.mubr.msk.bf16.mxu0 %vm2660_vm15, %v2920_v47  ;;  %v5056_v21 = vsel %vm2759_vm11, %v5024_v57, %v8506_v27  ;;  %v5057_v13 = vsel %vm2759_vm11, %v5025_v34, %v8507_v49  ;;  %v15884_v49 = vld [vmem:[#allocation176_spill] sm:$0xff]  ;;  %v15885_v34 = vld [vmem:[#allocation62_spill] sm:$0xff] }
 0x27d   : > { %v8515_v55 = vpop.permute.xlu1 %8514  ;;  %v4960_v38 = vsel %vm2759_vm11, %v4928_v58, %v8511_v46  ;;  %v4961_v51 = vsel %vm2759_vm11, %v4929_v48, %v8512_v16  ;;  %v8082_v27 = vunpack.i.h.bf16 %v15884_v49  ;;  %v8081_v23 = vunpack.i.l.bf16 %v15884_v49 }
 0x27e   : > { %v8517_v30 = vunpack.i.h.bf16 %v8515_v55  ;;  %v8516_v36 = vunpack.i.l.bf16 %v8515_v55  ;;  %v8520_v19 = vpop.permute.xlu0 %8519  ;;  %v2723_v48 = vsel %vm2693_vm5, %v2690_v15, %v7842_v33  ;;  %v2755_v55 = vsel %vm2726_vm14, %v2722_v39, %v7921_v2  ;;  %v15889_v39 = vld [vmem:[#allocation206_spill] sm:$0xff] }
 0x27f   : > { %v8522_v44 = vunpack.i.h.bf16 %v8520_v19  ;;  %v8521_v47 = vunpack.i.l.bf16 %v8520_v19  ;;  %v2756_v58 = vsel %vm2726_vm14, %v2723_v48, %v7922_v9  ;;  %v7767_v50 = vunpack.i.h.bf16 %v15885_v34 }
 0x280   : > { %v5088_v26 = vsel %vm2825_vm7, %v5056_v21, %v8516_v36  ;;  %v5089_v8 = vsel %vm2825_vm7, %v5057_v13, %v8517_v30  ;;  %v7766_v57 = vunpack.i.l.bf16 %v15885_v34  ;;  %v2788_v30 = vsel %vm2759_vm11, %v2755_v55, %v8001_v53 }
 0x281   : > { %v8525_v6 = vpop.permute.xlu1 %8524  ;;  %v5133_v11 = vpack.c.bf16 %v5089_v8, %v5088_v26  ;;  %v4992_v31 = vsel %vm2825_vm7, %v4960_v38, %v8521_v47  ;;  %v4993_v43 = vsel %vm2825_vm7, %v4961_v51, %v8522_v44  ;;  %v2789_v36 = vsel %vm2759_vm11, %v2756_v58, %v8002_v32  ;;  %v15886_v8 = vld [vmem:[#allocation116_spill] sm:$0xff] }
 0x282   : > { %v8530_v16 = vpop.permute.xlu0 %8529  ;;  %v5132_v46 = vpack.c.bf16 %v4993_v43, %v4992_v31  ;;  %v8527_v4 = vunpack.i.h.bf16 %v8525_v6  ;;  %v8526_v52 = vunpack.i.l.bf16 %v8525_v6  ;;  %v2821_v35 = vsel %vm2792_vm10, %v2788_v30, %v8081_v23  ;;  %v15887_v6 = vld [vmem:[#allocation117_spill] sm:$0xff] }
 0x283   : > { %5464 = vmatprep.mubr.bf16.mxu1 %v5133_v11  ;;  %v2822_v15 = vsel %vm2792_vm10, %v2789_v36, %v8082_v27  ;;  %v2692_v53 = vsel %vm2660_vm15, %v15886_v8, %v7767_v50  ;;  %v2691_v11 = vsel %vm2660_vm15, %v15887_v6, %v7766_v57  ;;  %v8532_v31 = vunpack.i.h.bf16 %v8530_v16  ;;  %v15891_v57 = vld [vmem:[#allocation52_spill] sm:$0xff]  ;;  %v15892_v36 = vld [vmem:[#allocation53_spill] sm:$0xff] }
 0x284   : > { %5465 = vmatmul.mubr.bf16.gmra.mxu1 %v5132_v46  ;;  %v2855_v9 = vsel %vm2825_vm7, %v2822_v15, %v8527_v4  ;;  %v2854_v2 = vsel %vm2825_vm7, %v2821_v35, %v8526_v52  ;;  %v8531_v43 = vunpack.i.l.bf16 %v8530_v16  ;;  %v7847_v49 = vunpack.i.h.bf16 %v15888_v41  ;;  %v15890_v16 = vld [vmem:[#allocation219_spill] sm:$0xff] }
 0x285   : > { %v8535_v19 = vpop.permute.xlu1 %8534  ;;  %v7846_v27 = vunpack.i.l.bf16 %v15888_v41  ;;  %v7927_v48 = vunpack.i.h.bf16 %v15889_v39  ;;  %v7926_v4 = vunpack.i.l.bf16 %v15889_v39  ;;  %v9135_v55 = vmov 0.0|0.0  }
 0x286   : > { %v8537_v33 = vunpack.i.h.bf16 %v8535_v19  ;;  %v8536_v21 = vunpack.i.l.bf16 %v8535_v19  ;;  %v8540_v13 = vpop.permute.xlu0 %8539  ;;  %v8007_v34 = vunpack.i.h.bf16 %v15890_v16  ;;  %v8006_v50 = vunpack.i.l.bf16 %v15890_v16 }
 0x287   : > { %v8542_v38 = vunpack.i.h.bf16 %v8540_v13  ;;  %v8541_v51 = vunpack.i.l.bf16 %v8540_v13  ;;  %v5027_v15 = vsel %vm2693_vm5, %v11909_v59, %v8532_v31 }
 0x288   : > { %v2887_v44 = vsel %vm2858_vm6, %v2854_v2, %v8536_v21  ;;  %v2888_v47 = vsel %vm2858_vm6, %v2855_v9, %v8537_v33  ;;  %v5026_v33 = vsel %vm2693_vm5, %v11878_v14, %v8531_v43  ;;  %v2725_v14 = vsel %vm2693_vm5, %v2692_v53, %v7847_v49 }
 0x289   : > { %v8545_v26 = vpop.permute.xlu1 %8544  ;;  %v2919_v32 = vpack.c.bf16 %v2888_v47, %v2887_v44  ;;  %v4931_v30 = vsel %vm2693_vm5, %v15891_v57, %v8542_v38  ;;  %v4930_v19 = vsel %vm2693_vm5, %v15892_v36, %v8541_v51  ;;  %v12952_v53 = vstv %s12922_s17  ;;  %s16053_s17 = sld [smem:[#allocation31_spill]] }
 0x28a   : > { %v8550_v62 = vpop.permute.xlu0 %8549  ;;  %v8547_v23 = vunpack.i.h.bf16 %v8545_v26  ;;  %v8546_v46 = vunpack.i.l.bf16 %v8545_v26 }
 0x28b   : > { %3188 = vmatmul.mubr.bf16.gmra.mxu0 %v2919_v32  ;;  %v8552_v52 = vunpack.i.h.bf16 %v8550_v62  ;;  %v8551_v58 = vunpack.i.l.bf16 %v8550_v62  ;;  %v2724_v62 = vsel %vm2693_vm5, %v2691_v11, %v7846_v27 }
 0x28c   : > { %3195 = vmatprep.mubr.bf16.mxu0 %v9135_v55  ;;  %v5058_v2 = vsel %vm2759_vm11, %v5026_v33, %v8546_v46  ;;  %v5059_v44 = vsel %vm2759_vm11, %v5027_v15, %v8547_v23 }
 0x28d   : > { %v8555_v35 = vpop.permute.xlu1 %8554  ;;  %v4962_v51 = vsel %vm2759_vm11, %v4930_v19, %v8551_v58  ;;  %v4963_v26 = vsel %vm2759_vm11, %v4931_v30, %v8552_v52  ;;  %v2757_v52 = vsel %vm2726_vm14, %v2724_v62, %v7926_v4  ;;  %v2758_v58 = vsel %vm2726_vm14, %v2725_v14, %v7927_v48 }
 0x28e   : > { %v8557_v21 = vunpack.i.h.bf16 %v8555_v35  ;;  %v8556_v13 = vunpack.i.l.bf16 %v8555_v35  ;;  %v8560_v9 = vpop.permute.xlu0 %8559  ;;  %v2790_v49 = vsel %vm2759_vm11, %v2757_v52, %v8006_v50  ;;  %v2791_v16 = vsel %vm2759_vm11, %v2758_v58, %v8007_v34  ;;  %v8775_v35 = vld [vmem:[%s9449_s29] sm:$0xff]  ;;  %v8777_v52 = vld [vmem:[%s9449_s29 + $0x10] sm:$0xff] }
 0x28f   : > { %v8562_v47 = vunpack.i.h.bf16 %v8560_v9  ;;  %v8561_v38 = vunpack.i.l.bf16 %v8560_v9  ;;  %v7029_v48 = vsel %vm15893_vm0, 1.0, %v15787_v40  ;;  %v12962_v4 = vstv %s12933_s21  ;;  %p16055_p6 = scmp.ne.s32.totalorder %s16053_s17, 0 }
 0x290   : > { %v5090_v32 = vsel %vm2825_vm7, %v5058_v2, %v8556_v13  ;;  %v5091_v59 = vsel %vm2825_vm7, %v5059_v44, %v8557_v21  ;;  %v3398_v50 = vmul.f32 %v8775_v35, %v12952_v53  ;;  %v3463_v13 = vmul.f32 %v7029_v48, %v12962_v4 }
 0x291   : > { %v8565_v8 = vpop.permute.xlu1 %8564  ;;  %v5136_v6 = vpack.c.bf16 %v5091_v59, %v5090_v32  ;;  %v4994_v31 = vsel %vm2825_vm7, %v4962_v51, %v8561_v38  ;;  %v4995_v43 = vsel %vm2825_vm7, %v4963_v26, %v8562_v47  ;;  %v8776_v38 = vld [vmem:[%s9449_s29 + $0x8] sm:$0xff]  ;;  %v7031_v26 = vsel %vm15894_vm1, 1.0, %v15787_v40 }
 0x292   : > { %v8567_v41 = vunpack.i.h.bf16 %v8565_v8  ;;  %v8566_v23 = vunpack.i.l.bf16 %v8565_v8  ;;  %v8570_v46 = vpop.permute.xlu0 %8569  ;;  %v5135_v39 = vpack.c.bf16 %v4995_v43, %v4994_v31  ;;  %v3399_v51 = vmul.f32 %v8776_v38, %v12952_v53 }
 0x293   : > { %5472 = vmatprep.mubr.bf16.mxu1 %v5136_v6  ;;  %v8572_v57 = vunpack.i.h.bf16 %v8570_v46  ;;  %v8571_v30 = vunpack.i.l.bf16 %v8570_v46  ;;  %v3400_v58 = vmul.f32 %v8777_v52, %v12952_v53  ;;  %v8779_v52 = vld [vmem:[%s9449_s29 + $0x20] sm:$0xff] }
 0x294   : > { %5473 = vmatmul.mubr.bf16.gmra.mxu1 %v5135_v39  ;;  %v2824_v11 = vsel %vm2792_vm10, %v2791_v16, %v8567_v41  ;;  %v2823_v27 = vsel %vm2792_vm10, %v2790_v49, %v8566_v23  ;;  %v3464_v41 = vmul.f32 %v7030_v3, %v12962_v4  ;;  %v3465_v49 = vmul.f32 %v7031_v26, %v12962_v4 }
 0x295   : > { %v8575_v36 = vpop.permute.xlu1 %8574  ;;  %v2857_v33 = vsel %vm2825_vm7, %v2824_v11, %v8572_v57  ;;  %v2856_v21 = vsel %vm2825_vm7, %v2823_v27, %v8571_v30  ;;  %v15895_v27 = vld [vmem:[#allocation146_spill] sm:$0xff] }
 0x296   : > { %v8580_v19 = vpop.permute.xlu0 %8579  ;;  %v8577_v32 = vunpack.i.h.bf16 %v8575_v36  ;;  %v8576_v59 = vunpack.i.l.bf16 %v8575_v36  ;;  %vm15896_vm2 = vcmp.gt.f32.partialorder %v15895_v27, 0.0  ;;  %v15899_v27 = vld [vmem:[#allocation104_spill] sm:$0xff] }
 0x297   : > { %v8582_v34 = vunpack.i.h.bf16 %v8580_v19  ;;  %v8581_v15 = vunpack.i.l.bf16 %v8580_v19  ;;  %v7032_v36 = vsel %vm15896_vm2, 1.0, %v15787_v40  ;;  %vm15900_vm4 = vcmp.gt.f32.partialorder %v15899_v27, 0.0 }
 0x298   : > { %v3077_v9 = vpop.f32.mrf.mxu0  ;;  %v5029_v16 = vsel %vm2693_vm5, %v12195_v17, %v8577_v32  ;;  %v5028_v57 = vsel %vm2693_vm5, %v12082_v60, %v8576_v59 }
 0x299   : > { %v8585_v2 = vpop.permute.xlu1 %8584  ;;  %v2889_v44 = vsel %vm2858_vm6, %v2856_v21, %v8581_v15  ;;  %v2890_v47 = vsel %vm2858_vm6, %v2857_v33, %v8582_v34  ;;  %v3430_v14 = vadd.f32 %v3398_v50, %v3077_v9  ;;  %6041 = vrot.lane.b32.xlu1 %v3077_v9, %s9133_s15  ;;  %v8778_v33 = vld [vmem:[%s9449_s29 + $0x18] sm:$0xff] }
 0x29a   : > { %v8590_v8 = vpop.permute.xlu0 %8589  ;;  %v2921_v28 = vpack.c.bf16 %v2890_v47, %v2889_v44  ;;  %v3079_v6 = vpop.f32.mrf.mxu0  ;;  %v8587_v23 = vunpack.i.h.bf16 %v8585_v2  ;;  %v8586_v46 = vunpack.i.l.bf16 %v8585_v2  ;;  %v3401_v21 = vmul.f32 %v8778_v33, %v12952_v53  ;;  %v15903_v33 = vld [vmem:[#allocation97_spill] sm:$0xff] }
 0x29b   : > { %v3495_v31 = vsub.f32 %v3430_v14, %v3463_v13  ;;  %v8592_v43 = vunpack.i.h.bf16 %v8590_v8  ;;  %v8591_v62 = vunpack.i.l.bf16 %v8590_v8  ;;  %v3466_v8 = vmul.f32 %v7032_v36, %v12962_v4 }
 0x29c   : > { %3196 = vmatmul.mubr.bf16.gmra.mxu0 %v2921_v28  ;;  %v3080_v0 = vpop.f32.mrf.mxu0  ;;  %v4933_v13 = vsel %vm2693_vm5, %v11982_v1, %v8587_v23  ;;  %v4932_v3 = vsel %vm2693_vm5, %v11986_v10, %v8586_v46  ;;  %v7034_v36 = vsel %vm15900_vm4, 1.0, %v15787_v40  ;;  %vm15904_vm10 = vcmp.gt.f32.partialorder %v15903_v33, 0.0 }
 0x29d   : > { %v8595_v39 = vpop.permute.xlu1 %8594  ;;  %3527 = vst.msk [vmem:[%s12989_s24] sm:$0xff] %vm2693_vm5, %v3495_v31  ;;  %v3431_v30 = vadd.f32 %v3399_v51, %v3080_v0  ;;  %6043 = vrot.lane.b32.xlu1 %v3080_v0, %s9133_s15  ;;  %v5061_v60 = vsel %vm2759_vm11, %v5029_v16, %v8592_v43  ;;  %v5060_v34 = vsel %vm2759_vm11, %v5028_v57, %v8591_v62  ;;  %v15897_v43 = vld [vmem:[#allocation103_spill] sm:$0xff] }
 0x29e   : > { %v8600_v11 = vpop.permute.xlu0 %8599  ;;  %v8597_v48 = vunpack.i.h.bf16 %v8595_v39  ;;  %v8596_v17 = vunpack.i.l.bf16 %v8595_v39  ;;  %v3082_v50 = vpop.f32.mrf.mxu0  ;;  %vm15898_vm3 = vcmp.gt.f32.partialorder %v15897_v43, 0.0 }
 0x29f   : > { %v8602_v19 = vunpack.i.h.bf16 %v8600_v11  ;;  %v8601_v35 = vunpack.i.l.bf16 %v8600_v11  ;;  %v3496_v15 = vsub.f32 %v3431_v30, %v3464_v41  ;;  %v7033_v62 = vsel %vm15898_vm3, 1.0, %v15787_v40 }
 0x2a0   : > { %v3085_v9 = vpop.f32.mrf.mxu0  ;;  %v4964_v1 = vsel %vm2759_vm11, %v4932_v3, %v8596_v17  ;;  %v4965_v10 = vsel %vm2759_vm11, %v4933_v13, %v8597_v48  ;;  %v3467_v16 = vmul.f32 %v7033_v62, %v12962_v4  ;;  %v15905_v62 = vld [vmem:[#allocation99_spill] sm:$0xff] }
 0x2a1   : > { %v8605_v2 = vpop.permute.xlu1 %8604  ;;  %v5092_v44 = vsel %vm2825_vm7, %v5060_v34, %v8601_v35  ;;  %v5093_v47 = vsel %vm2825_vm7, %v5061_v60, %v8602_v19  ;;  %3528 = vst.msk [vmem:[%s12989_s24 + $0x8] sm:$0xff] %vm2693_vm5, %v3496_v15  ;;  %v3432_v38 = vadd.f32 %v3400_v58, %v3085_v9  ;;  %6045 = vrot.lane.b32.xlu1 %v3085_v9, %s9133_s15  ;;  %v15901_v19 = vld [vmem:[#allocation96_spill] sm:$0xff]  ;;  %v8780_v34 = vld [vmem:[%s9449_s29 + $0x28] sm:$0xff]  ;;  %vm15906_vm14 = vcmp.gt.f32.partialorder %v15905_v62, 0.0 }
 0x2a2   : > { %v8607_v51 = vunpack.i.h.bf16 %v8605_v2  ;;  %v8606_v26 = vunpack.i.l.bf16 %v8605_v2  ;;  %v8610_v32 = vpop.permute.xlu0 %8609  ;;  %v5139_v59 = vpack.c.bf16 %v5093_v47, %v5092_v44  ;;  %v3087_v14 = vpop.f32.mrf.mxu0  ;;  %v3402_v58 = vmul.f32 %v8779_v52, %v12952_v53  ;;  %v8781_v44 = vld [vmem:[%s9449_s29 + $0x30] sm:$0xff] }
 0x2a3   : > { %v3497_v28 = vsub.f32 %v3432_v38, %v3465_v49  ;;  %v8612_v57 = vunpack.i.h.bf16 %v8610_v32  ;;  %v8611_v30 = vunpack.i.l.bf16 %v8610_v32  ;;  %vm15902_vm6 = vcmp.gt.f32.partialorder %v15901_v19, 0.0 }
 0x2a4   : > { %5480 = vmatprep.mubr.bf16.mxu1 %v5139_v59  ;;  %v4996_v6 = vsel %vm2825_vm7, %v4964_v1, %v8606_v26  ;;  %v4997_v31 = vsel %vm2825_vm7, %v4965_v10, %v8607_v51  ;;  %v3088_v41 = vpop.f32.mrf.mxu0  ;;  %v7035_v35 = vsel %vm15902_vm6, 1.0, %v15787_v40  ;;  %v3403_v15 = vmul.f32 %v8780_v34, %v12952_v53 }
 0x2a5   : > { %v8615_v23 = vpop.permute.xlu1 %8614  ;;  %v5138_v46 = vpack.c.bf16 %v4997_v31, %v4996_v6  ;;  %3529 = vst.msk [vmem:[%s12989_s24 + $0x10] sm:$0xff] %vm2693_vm5, %v3497_v28  ;;  %v3433_v0 = vadd.f32 %v3401_v21, %v3088_v41  ;;  %6047 = vrot.lane.b32.xlu1 %v3088_v41, %s9133_s15  ;;  %v7036_v21 = vsel %vm15904_vm10, 1.0, %v15787_v40  ;;  %v3468_v2 = vmul.f32 %v7034_v36, %v12962_v4 }
 0x2a6   : > { %v8620_v39 = vpop.permute.xlu0 %8619  ;;  %v3090_v49 = vpop.f32.mrf.mxu0  ;;  %v3404_v47 = vmul.f32 %v8781_v44, %v12952_v53  ;;  %v5001_v38 = vsel %vm2693_vm5, %v12427_v24, %v8612_v57  ;;  %v5000_v51 = vsel %vm2693_vm5, %v12447_v37, %v8611_v30  ;;  %v3469_v32 = vmul.f32 %v7035_v35, %v12962_v4  ;;  %v8783_v57 = vld [vmem:[%s9449_s29 + $0x40] sm:$0xff] }
 0x2a7   : > { %5481 = vmatmul.mubr.bf16.gmra.mxu1 %v5138_v46  ;;  %v3498_v11 = vsub.f32 %v3433_v0, %v3466_v8  ;;  %v8622_v13 = vunpack.i.h.bf16 %v8620_v39  ;;  %v8621_v3 = vunpack.i.l.bf16 %v8620_v39  ;;  %v8617_v59 = vunpack.i.h.bf16 %v8615_v23  ;;  %v8782_v8 = vld [vmem:[%s9449_s29 + $0x38] sm:$0xff] }
 0x2a8   : > { %v3093_v48 = vpop.f32.mrf.mxu0  ;;  %v8616_v1 = vunpack.i.l.bf16 %v8615_v23  ;;  %v3405_v28 = vmul.f32 %v8782_v8, %v12952_v53  ;;  %v13051_v6 = vmul.f32 %v7036_v21, %v12962_v4  ;;  %v7037_v41 = vsel %vm15906_vm14, 1.0, %v15787_v40  ;;  %v15907_v8 = vld [vmem:[#allocation105_spill] sm:$0xff] }
 0x2a9   : > { %v8625_v17 = vpop.permute.xlu1 %8624  ;;  %3530 = vst.msk [vmem:[%s12989_s24 + $0x18] sm:$0xff] %vm2693_vm5, %v3498_v11  ;;  %v3434_v50 = vadd.f32 %v3402_v58, %v3093_v48  ;;  %6049 = vrot.lane.b32.xlu1 %v3093_v48, %s9133_s15  ;;  %v5032_v23 = vsel %vm2759_vm11, %v5000_v51, %v8621_v3  ;;  %v5033_v46 = vsel %vm2759_vm11, %v5001_v38, %v8622_v13  ;;  %v4905_v11 = vsel %vm2693_vm5, 0.0, %v8617_v59 }
 0x2aa   : > { %v13032_v60 = vpop.permute.xlu0 %8629  ;;  %v3095_v9 = vpop.f32.mrf.mxu0  ;;  %v8627_v0 = vunpack.i.h.bf16 %v8625_v17  ;;  %v8626_v39 = vunpack.i.l.bf16 %v8625_v17  ;;  %v3406_v30 = vmul.f32 %v8783_v57, %v12952_v53  ;;  %v4904_v27 = vsel %vm2693_vm5, 0.0, %v8616_v1 }
 0x2ab   : > { %v3499_v26 = vsub.f32 %v3434_v50, %v3467_v16  ;;  %v8632_v36 = vunpack.i.h.bf16 %v13032_v60  ;;  %v8631_v17 = vunpack.i.l.bf16 %v13032_v60  ;;  %vm15908_vm15 = vcmp.gt.f32.partialorder %v15907_v8, 0.0 }
 0x2ac   : > { %v3096_v10 = vpop.f32.mrf.mxu0  ;;  %v4936_v21 = vsel %vm2759_vm11, %v4904_v27, %v8626_v39  ;;  %v4937_v13 = vsel %vm2759_vm11, %v4905_v11, %v8627_v0 }
 0x2ad   : > { %v8635_v14 = vpop.permute.xlu1 %8634  ;;  %3531 = vst.msk [vmem:[%s12989_s24 + $0x20] sm:$0xff] %vm2693_vm5, %v3499_v26  ;;  %v3435_v24 = vadd.f32 %v3403_v15, %v3096_v10  ;;  %6051 = vrot.lane.b32.xlu1 %v3096_v10, %s9133_s15 }
 0x2ae   : > { %v8637_v31 = vunpack.i.h.bf16 %v8635_v14  ;;  %v8636_v43 = vunpack.i.l.bf16 %v8635_v14  ;;  %v13055_v37 = vpop.permute.xlu0 %8639  ;;  %v3098_v52 = vpop.f32.mrf.mxu0 }
 0x2af   : > { %v3500_v58 = vsub.f32 %v3435_v24, %v3468_v2  ;;  %v13077_v2 = vmul.f32 %v7037_v41, %v12962_v4  ;;  %v8642_v26 = vunpack.i.h.bf16 %v13055_v37  ;;  %v8641_v59 = vunpack.i.l.bf16 %v13055_v37 }
 0x2b0   : > { %v5064_v49 = vsel %vm2825_vm7, %v5032_v23, %v8636_v43  ;;  %v5065_v16 = vsel %vm2825_vm7, %v5033_v46, %v8637_v31  ;;  %v7038_v24 = vsel %vm15908_vm15, 1.0, %v15787_v40  ;;  %v5030_v31 = vsel %vm2693_vm5, %v12346_v61, %v8631_v17 }
 0x2b1   : > { %v3101_v48 = vpop.f32.mrf.mxu0  ;;  %v8645_v19 = vpop.permute.xlu1 %8644  ;;  %v5097_v35 = vpack.c.bf16 %v5065_v16, %v5064_v49  ;;  %3532 = vst.msk [vmem:[%s12989_s24 + $0x28] sm:$0xff] %vm2693_vm5, %v3500_v58  ;;  %v8784_v49 = vld [vmem:[%s9449_s29 + $0x48] sm:$0xff]  ;;  %v4935_v57 = vsel %vm2693_vm5, %v12263_v63, %v8642_v26  ;;  %v4934_v11 = vsel %vm2693_vm5, %v12267_v20, %v8641_v59 }
 0x2b2   : > { %v3436_v50 = vadd.f32 %v3404_v47, %v3101_v48  ;;  %v8650_v34 = vpop.permute.xlu0 %8649  ;;  %6053 = vrot.lane.b32.xlu1 %v3101_v48, %s9133_s15  ;;  %v8647_v15 = vunpack.i.h.bf16 %v8645_v19  ;;  %v8646_v33 = vunpack.i.l.bf16 %v8645_v19  ;;  %v3407_v16 = vmul.f32 %v8784_v49, %v12952_v53  ;;  %v15909_v59 = vld [vmem:[#allocation118_spill] sm:$0xff] }
 0x2b3   : > { %v8652_v3 = vunpack.i.h.bf16 %v8650_v34  ;;  %v3103_v9 = vpop.f32.mrf.mxu0  ;;  %5368 = vmatprep.mubr.bf16.mxu0 %v5097_v35  ;;  %v8651_v44 = vunpack.i.l.bf16 %v8650_v34  ;;  %vm15910_vm8 = vcmp.gt.f32.partialorder %v15909_v59, 0.0 }
 0x2b4   : > { %v3501_v60 = vsub.f32 %v3436_v50, %v3469_v32  ;;  %v4969_v47 = vsel %vm2825_vm7, %v4937_v13, %v8647_v15  ;;  %v4968_v38 = vsel %vm2825_vm7, %v4936_v21, %v8646_v33  ;;  %v5031_v32 = vsel %vm2693_vm5, %v12397_v45, %v8632_v36 }
 0x2b5   : > { %v7443_v51 = vpop.f32.mrf.mxu1  ;;  %v5096_v1 = vpack.c.bf16 %v4969_v47, %v4968_v38  ;;  %v3104_v10 = vpop.f32.mrf.mxu0  ;;  %v5062_v45 = vsel %vm2759_vm11, %v5030_v31, %v8651_v44  ;;  %v5063_v61 = vsel %vm2759_vm11, %v5031_v32, %v8652_v3  ;;  %v3472_v13 = vmul.f32 %v7038_v24, %v12962_v4  ;;  %v15911_v24 = vld [vmem:[#allocation159_spill] sm:$0xff]  ;;  %v15913_v31 = vld [vmem:[#allocation121_spill] sm:$0xff] }
 0x2b6   : > { %v8655_v14 = vpop.permute.xlu1 %8654  ;;  %3533 = vst.msk [vmem:[%s12989_s24 + $0x30] sm:$0xff] %vm2693_vm5, %v3501_v60  ;;  %v3437_v43 = vadd.f32 %v3405_v28, %v3104_v10  ;;  %v8660_v62 = vpop.permute.xlu0 %8659  ;;  %6055 = vrot.lane.b32.xlu1 %v3104_v10, %s9133_s15  ;;  %v5098_v60 = vpack.c.bf16 %v12673_v5, %v12669_v29  ;;  %v15912_v29 = vld [vmem:[#allocation160_spill] sm:$0xff]  ;;  %vm15914_vm0 = vcmp.gt.f32.partialorder %v15913_v31, 0.0 }
 0x2b7   : > { %v8657_v37 = vunpack.i.h.bf16 %v8655_v14  ;;  %v7444_v41 = vpop.f32.mrf.mxu1  ;;  %v8662_v23 = vunpack.i.h.bf16 %v8660_v62  ;;  %v8661_v46 = vunpack.i.l.bf16 %v8660_v62  ;;  %v8656_v0 = vunpack.i.l.bf16 %v8655_v14  ;;  %v3106_v39 = vpop.f32.mrf.mxu0  ;;  %5369 = vmatmul.mubr.bf16.vlgmr.msra.gmra.mxu0 %v5096_v1  ;;  %v8785_v14 = vld [vmem:[%s9449_s29 + $0x50] sm:$0xff] }
 0x2b8   : > { %v13093_v52 = vadd.f32 %v7444_v41, %v7443_v51  ;;  %v3502_v58 = vsub.f32 %v3437_v43, %v13051_v6  ;;  %v7039_v1 = vsel %vm15910_vm8, 1.0, %v15787_v40  ;;  %v3408_v8 = vmul.f32 %v8785_v14, %v12952_v53 }
 0x2b9   : > { %v7446_v28 = vpop.f32.mrf.mxu1  ;;  %v3109_v27 = vpop.f32.mrf.mxu0  ;;  %v5094_v48 = vsel %vm2825_vm7, %v5062_v45, %v8661_v46  ;;  %v5095_v19 = vsel %vm2825_vm7, %v5063_v61, %v8662_v23  ;;  %v4967_v63 = vsel %vm2759_vm11, %v4935_v57, %v8657_v37  ;;  %v4966_v20 = vsel %vm2759_vm11, %v4934_v11, %v8656_v0 }
 0x2ba   : > { %v8665_v36 = vpop.permute.xlu1 %8664  ;;  %3534 = vst.msk [vmem:[%s12989_s24 + $0x38] sm:$0xff] %vm2693_vm5, %v3502_v58  ;;  %v3438_v35 = vadd.f32 %v3406_v30, %v3109_v27  ;;  %6057 = vrot.lane.b32.xlu0 %v3109_v27, %s9133_s15  ;;  %v8670_v6 = vpop.permute.xlu0 %8669  ;;  %v5142_v15 = vpack.c.bf16 %v5095_v19, %v5094_v48  ;;  %v5101_v5 = vpack.c.bf16 %v15912_v29, %v15911_v24  ;;  %v7040_v43 = vsel %vm15914_vm0, 1.0, %v15787_v40  ;;  %v8787_v27 = vld [vmem:[%s9449_s29 + $0x60] sm:$0xff] }
 0x2bb   : > { %v8667_v17 = vunpack.i.h.bf16 %v8665_v36  ;;  %v8666_v50 = vunpack.i.l.bf16 %v8665_v36  ;;  %v7447_v34 = vpop.f32.mrf.mxu1  ;;  %v3111_v33 = vpop.f32.mrf.mxu0  ;;  %v8672_v44 = vunpack.i.h.bf16 %v8670_v6  ;;  %v8671_v47 = vunpack.i.l.bf16 %v8670_v6 }
 0x2bc   : > { %v13111_v21 = vadd.f32 %v7447_v34, %v7446_v28  ;;  %v3503_v30 = vsub.f32 %v3438_v35, %v13077_v2  ;;  %5488 = vmatprep.mubr.bf16.mxu1 %v5142_v15  ;;  %v3473_v23 = vmul.f32 %v7039_v1, %v12962_v4  ;;  %v3474_v11 = vmul.f32 %v7040_v43, %v12962_v4  ;;  %v15915_v15 = vld [vmem:[#allocation147_spill] sm:$0xff] }
 0x2bd   : > { %v4998_v3 = vsel %vm2825_vm7, %v4966_v20, %v8666_v50  ;;  %v4999_v9 = vsel %vm2825_vm7, %v4967_v63, %v8667_v17  ;;  %v3112_v38 = vpop.f32.mrf.mxu0  ;;  %v5003_v46 = vsel %vm2693_vm5, %v15795_v54, %v8672_v44  ;;  %v5002_v0 = vsel %vm2693_vm5, %v12431_v7, %v8671_v47  ;;  %v15916_v63 = vld [vmem:[#allocation148_spill] sm:$0xff] }
 0x2be   : > { %v8675_v51 = vpop.permute.xlu1 %8674  ;;  %v5141_v26 = vpack.c.bf16 %v4999_v9, %v4998_v3  ;;  %3535 = vst.msk [vmem:[%s12989_s24 + $0x40] sm:$0xff] %vm2693_vm5, %v3503_v30  ;;  %v3439_v2 = vadd.f32 %v3407_v16, %v3112_v38  ;;  %v8680_v10 = vpop.permute.xlu0 %8679  ;;  %6059 = vrot.lane.b32.xlu1 %v3112_v38, %s9133_s15  ;;  %v8786_v16 = vld [vmem:[%s9449_s29 + $0x58] sm:$0xff]  ;;  %v3410_v54 = vmul.f32 %v8787_v27, %v12952_v53  ;;  %vm6522_vm0 = vcmask 257024  }
 0x2bf   : > { %v3114_v32 = vpop.f32.mrf.mxu0  ;;  %v8682_v37 = vunpack.i.h.bf16 %v8680_v10  ;;  %v8681_v41 = vunpack.i.l.bf16 %v8680_v10  ;;  %v8677_v39 = vunpack.i.h.bf16 %v8675_v51  ;;  %v8676_v45 = vunpack.i.l.bf16 %v8675_v51  ;;  %v15917_v10 = vld [vmem:[#allocation122_spill] sm:$0xff] }
 0x2c0   : > { %5489 = vmatmul.mubr.bf16.gmra.mxu1 %v5141_v26  ;;  %v3504_v62 = vsub.f32 %v3439_v2, %v3472_v13  ;;  %v3409_v57 = vmul.f32 %v8786_v16, %v12952_v53  ;;  %v5104_v20 = vpack.c.bf16 %v15916_v63, %v15915_v15  ;;  %vm15918_vm1 = vcmp.gt.f32.partialorder %v15917_v10, 0.0 }
 0x2c1   : > { %7543 = vmatprep.mubr.msk.bf16.mxu1 %vm2693_vm5, %v5098_v60  ;;  %v3117_v61 = vpop.f32.mrf.mxu0  ;;  %v5034_v6 = vsel %vm2759_vm11, %v5002_v0, %v8681_v41  ;;  %v5035_v17 = vsel %vm2759_vm11, %v5003_v46, %v8682_v37  ;;  %v4907_v33 = vsel %vm2693_vm5, %v12616_v22, %v8677_v39  ;;  %v4906_v13 = vsel %vm2693_vm5, %v12624_v56, %v8676_v45  ;;  %v15919_v39 = vld [vmem:[#allocation123_spill] sm:$0xff] }
 0x2c2   : > { %v8685_v58 = vpop.permute.xlu1 %8684  ;;  %3536 = vst.msk [vmem:[%s12989_s24 + $0x48] sm:$0xff] %vm2693_vm5, %v3504_v62  ;;  %v3440_v28 = vadd.f32 %v3408_v8, %v3117_v61  ;;  %v8690_v49 = vpop.permute.xlu0 %8689  ;;  %6061 = vrot.lane.b32.xlu1 %v3117_v61, %s9133_s15  ;;  %v7041_v14 = vsel %vm15918_vm1, 1.0, %v15787_v40  ;;  %vm15920_vm2 = vcmp.gt.f32.partialorder %v15919_v39, 0.0  ;;  %v8788_v61 = vld [vmem:[%s9449_s29 + $0x68] sm:$0xff]  ;;  %v15930_v39 = vld [vmem:[#allocation124_spill] sm:$0xff] }
 0x2c3   : > { %v8692_v36 = vunpack.i.h.bf16 %v8690_v49  ;;  %v8691_v7 = vunpack.i.l.bf16 %v8690_v49  ;;  %v8687_v48 = vunpack.i.h.bf16 %v8685_v58  ;;  %v8686_v19 = vunpack.i.l.bf16 %v8685_v58  ;;  %v3119_v35 = vpop.f32.mrf.mxu0  ;;  %v15922_v49 = vld [vmem:[#allocation171_spill] sm:$0xff] }
 0x2c4   : > { %v3505_v50 = vsub.f32 %v3440_v28, %v3473_v23  ;;  %v7449_v34 = vpop.f32.mrf.mxu1  ;;  %v3475_v23 = vmul.f32 %v7041_v14, %v12962_v4  ;;  %v7042_v45 = vsel %vm15920_vm2, 1.0, %v15787_v40  ;;  %v3411_v58 = vmul.f32 %v8788_v61, %v12952_v53  ;;  %v15921_v28 = vld [vmem:[#allocation170_spill] sm:$0xff] }
 0x2c5   : > { %v3120_v30 = vpop.f32.mrf.mxu0  ;;  %v5066_v9 = vsel %vm2825_vm7, %v5034_v6, %v8691_v7  ;;  %v5067_v60 = vsel %vm2825_vm7, %v5035_v17, %v8692_v36  ;;  %v4938_v22 = vsel %vm2759_vm11, %v4906_v13, %v8686_v19  ;;  %v4939_v56 = vsel %vm2759_vm11, %v4907_v33, %v8687_v48  ;;  %v15923_v36 = vld [vmem:[#allocation186_spill] sm:$0xff]  ;;  %v15924_v7 = vld [vmem:[#allocation189_spill] sm:$0xff] }
 0x2c6   : > { %v8695_v3 = vpop.permute.xlu1 %8694  ;;  %3537 = vst.msk [vmem:[%s12989_s24 + $0x50] sm:$0xff] %vm2693_vm5, %v3505_v50  ;;  %v3441_v44 = vadd.f32 %v3409_v57, %v3120_v30  ;;  %v8700_v47 = vpop.permute.xlu0 %8699  ;;  %6063 = vrot.lane.b32.xlu1 %v3120_v30, %s9133_s15  ;;  %v5100_v59 = vpack.c.bf16 %v5067_v60, %v5066_v9  ;;  %v5107_v16 = vpack.c.bf16 %v15922_v49, %v15921_v28  ;;  %v15925_v19 = vld [vmem:[#allocation145_spill] sm:$0xff] }
 0x2c7   : > { %v8697_v38 = vunpack.i.h.bf16 %v8695_v3  ;;  %v8696_v51 = vunpack.i.l.bf16 %v8695_v3  ;;  %v7450_v26 = vpop.f32.mrf.mxu1  ;;  %v3122_v1 = vpop.f32.mrf.mxu0  ;;  %v8702_v31 = vunpack.i.h.bf16 %v8700_v47  ;;  %v8701_v43 = vunpack.i.l.bf16 %v8700_v47 }
 0x2c8   : > { %v13161_v2 = vadd.f32 %v7450_v26, %v7449_v34  ;;  %7544 = vmatmul.mubr.msk.bf16.vlgmr.msra.gmra.mxu1 %vm2693_vm5, %v5101_v5  ;;  %v3506_v8 = vsub.f32 %v3441_v44, %v3474_v11  ;;  %5376 = vmatprep.mubr.bf16.mxu0 %v5100_v59  ;;  %v5110_v48 = vpack.c.bf16 %v15924_v7, %v15923_v36  ;;  %v15934_v7 = vld [vmem:[#allocation82_spill] sm:$0xff] }
 0x2c9   : > { %v7452_v24 = vpop.f32.mrf.mxu1  ;;  %v4970_v29 = vsel %vm2825_vm7, %v4938_v22, %v8696_v51  ;;  %v4971_v32 = vsel %vm2825_vm7, %v4939_v56, %v8697_v38  ;;  %7547 = vmatprep.mubr.msk.bf16.mxu1 %vm2693_vm5, %v5104_v20  ;;  %v5005_v35 = vsel %vm2693_vm5, %v15925_v19, %v8702_v31  ;;  %v5004_v6 = vsel %vm2693_vm5, %v15823_v12, %v8701_v43 }
 0x2ca   : > { %v8705_v62 = vpop.permute.xlu1 %8704  ;;  %v5099_v37 = vpack.c.bf16 %v4971_v32, %v4970_v29  ;;  %3538 = vst.msk [vmem:[%s12989_s24 + $0x58] sm:$0xff] %vm2693_vm5, %v3506_v8  ;;  %v8710_v5 = vpop.permute.xlu0 %8709  ;;  %v15926_v29 = vld [vmem:[#allocation198_spill] sm:$0xff] }
 0x2cb   : > { %v7453_v41 = vpop.f32.mrf.mxu1  ;;  %v3125_v0 = vpop.f32.mrf.mxu0  ;;  %v8712_v57 = vunpack.i.h.bf16 %v8710_v5  ;;  %v8711_v11 = vunpack.i.l.bf16 %v8710_v5  ;;  %v8707_v17 = vunpack.i.h.bf16 %v8705_v62  ;;  %v8706_v50 = vunpack.i.l.bf16 %v8705_v62  ;;  %v15928_v62 = vld [vmem:[#allocation204_spill] sm:$0xff] }
 0x2cc   : > { %v13173_v46 = vadd.f32 %v7453_v41, %v7452_v24  ;;  %5377 = vmatmul.mubr.bf16.gmra.mxu0 %v5099_v37  ;;  %v3442_v27 = vadd.f32 %v3410_v54, %v3125_v0  ;;  %6065 = vrot.lane.b32.xlu1 %v3125_v0, %s9133_s15  ;;  %v3476_v54 = vmul.f32 %v7042_v45, %v12962_v4  ;;  %v15929_v37 = vld [vmem:[#allocation205_spill] sm:$0xff] }
 0x2cd   : > { %v3127_v34 = vpop.f32.mrf.mxu0  ;;  %v5036_v60 = vsel %vm2759_vm11, %v5004_v6, %v8711_v11  ;;  %v5037_v12 = vsel %vm2759_vm11, %v5005_v35, %v8712_v57  ;;  %v4909_v47 = vsel %vm2693_vm5, %v12526_v25, %v8707_v17  ;;  %v4908_v38 = vsel %vm2693_vm5, %v12530_v18, %v8706_v50  ;;  %v15927_v25 = vld [vmem:[#allocation199_spill] sm:$0xff]  ;;  %v8790_v6 = vld [vmem:[%s9449_s29 + $0x78] sm:$0xff]  ;;  %v15936_v50 = vld [vmem:[#allocation93_spill] sm:$0xff] }
 0x2ce   : > { %v8715_v15 = vpop.permute.xlu1 %8714  ;;  %v3507_v63 = vsub.f32 %v3442_v27, %v3475_v23  ;;  %v8720_v20 = vpop.permute.xlu0 %8719  ;;  %v5113_v32 = vpack.c.bf16 %v15927_v25, %v15926_v29  ;;  %v5116_v5 = vpack.c.bf16 %v15929_v37, %v15928_v62  ;;  %v15932_v27 = vld [vmem:[#allocation125_spill] sm:$0xff]  ;;  %v3413_v17 = vmul.f32 %v8790_v6, %v12952_v53  ;;  %v15937_v34 = vld [vmem:[#allocation95_spill] sm:$0xff]  ;;  %v8792_v37 = vld [vmem:[%s9449_s29 + $0x88] sm:$0xff] }
 0x2cf   : > { %v8722_v33 = vunpack.i.h.bf16 %v8720_v20  ;;  %v8721_v13 = vunpack.i.l.bf16 %v8720_v20  ;;  %v8717_v30 = vunpack.i.h.bf16 %v8715_v15  ;;  %v8716_v3 = vunpack.i.l.bf16 %v8715_v15  ;;  %v3128_v9 = vpop.f32.mrf.mxu0 }
 0x2d0   : > { %7548 = vmatmul.mubr.msk.bf16.gmra.mxu1 %vm2693_vm5, %v5107_v16  ;;  %3539 = vst.msk [vmem:[%s12989_s24 + $0x60] sm:$0xff] %vm2693_vm5, %v3507_v63  ;;  %v3443_v44 = vadd.f32 %v3411_v58, %v3128_v9  ;;  %6067 = vrot.lane.b32.xlu1 %v3128_v9, %s9133_s15  ;;  %v8789_v58 = vld [vmem:[%s9449_s29 + $0x70] sm:$0xff]  ;;  %v5122_v15 = vpack.c.bf16 %v15937_v34, %v15936_v50  ;;  %v15939_v9 = vld [vmem:[#allocation222_spill] sm:$0xff]  ;;  %v15955_v50 = vld [vmem:[#allocation128_spill] sm:$0xff] }
 0x2d1   : > { %7551 = vmatprep.mubr.msk.bf16.mxu1 %vm2693_vm5, %v5110_v48  ;;  %v3130_v51 = vpop.f32.mrf.mxu0  ;;  %v5068_v59 = vsel %vm2825_vm7, %v5036_v60, %v8721_v13  ;;  %v5069_v22 = vsel %vm2825_vm7, %v5037_v12, %v8722_v33  ;;  %v4940_v8 = vsel %vm2759_vm11, %v4908_v38, %v8716_v3  ;;  %v4941_v24 = vsel %vm2759_vm11, %v4909_v47, %v8717_v30  ;;  %v15935_v48 = vld [vmem:[#allocation85_spill] sm:$0xff]  ;;  %v15940_v60 = vld [vmem:[#allocation144_spill] sm:$0xff]  ;;  %v15941_v47 = vld [vmem:[#allocation55_spill] sm:$0xff] }
 0x2d2   : > { %v8725_v26 = vpop.permute.xlu1 %8724  ;;  %v3508_v56 = vsub.f32 %v3443_v44, %v3476_v54  ;;  %v5103_v14 = vpack.c.bf16 %v5069_v22, %v5068_v59  ;;  %vm15931_vm11 = vcmp.gt.f32.partialorder %v15930_v39, 0.0  ;;  %v3412_v28 = vmul.f32 %v8789_v58, %v12952_v53  ;;  %v15942_v38 = vld [vmem:[#allocation166_spill] sm:$0xff] }
 0x2d3   : > { %v8727_v1 = vunpack.i.h.bf16 %v8725_v26  ;;  %v8726_v10 = vunpack.i.l.bf16 %v8725_v26  ;;  %v7043_v45 = vsel %vm15931_vm11, 1.0, %v15787_v40  ;;  %v5119_v19 = vpack.c.bf16 %v15935_v48, %v15934_v7  ;;  %v15943_v22 = vld [vmem:[#allocation126_spill] sm:$0xff]  ;;  %v15953_v48 = vld [vmem:[#allocation213_spill] sm:$0xff] }
 0x2d4   : > { %3540 = vst.msk [vmem:[%s12989_s24 + $0x68] sm:$0xff] %vm2693_vm5, %v3508_v56  ;;  %5384 = vmatprep.mubr.bf16.mxu0 %v5103_v14  ;;  %v7455_v18 = vpop.f32.mrf.mxu1  ;;  %v3477_v16 = vmul.f32 %v7043_v45, %v12962_v4  ;;  %v5125_v12 = vpack.c.bf16 %v15940_v60, %v15939_v9  ;;  %v5128_v51 = vpack.c.bf16 %v15942_v38, %v15941_v47  ;;  %vm15944_vm3 = vcmp.gt.f32.partialorder %v15943_v22, 0.0  ;;  %v15957_v9 = vld [vmem:[#allocation46_spill] sm:$0xff] }
 0x2d5   : > { %v4972_v31 = vsel %vm2825_vm7, %v4940_v8, %v8726_v10  ;;  %v4973_v43 = vsel %vm2825_vm7, %v4941_v24, %v8727_v1  ;;  %vm15933_vm7 = vcmp.gt.f32.partialorder %v15932_v27, 0.0  ;;  %v7045_v56 = vsel %vm15944_vm3, 1.0, %v15787_v40  ;;  %v8791_v10 = vld [vmem:[%s9449_s29 + $0x80] sm:$0xff]  ;;  %v15952_v27 = vld [vmem:[#allocation38_spill] sm:$0xff] }
 0x2d6   : > { %v5102_v41 = vpack.c.bf16 %v4973_v43, %v4972_v31  ;;  %v7456_v23 = vpop.f32.mrf.mxu1  ;;  %v7044_v36 = vsel %vm15933_vm7, 1.0, %v15787_v40  ;;  %v3414_v14 = vmul.f32 %v8791_v10, %v12952_v53  ;;  %v3479_v24 = vmul.f32 %v7045_v56, %v12962_v4  ;;  %v15947_v31 = vld [vmem:[#allocation131_spill] sm:$0xff] }
 0x2d7   : > { %v13213_v0 = vadd.f32 %v7456_v23, %v7455_v18  ;;  %v3478_v54 = vmul.f32 %v7044_v36, %v12962_v4  ;;  %v5131_v43 = vpack.c.bf16 %v15947_v31, %v11970_v42  ;;  %v15949_v23 = vld [vmem:[#allocation182_spill] sm:$0xff]  ;;  %vm15956_vm6 = vcmp.gt.f32.partialorder %v15955_v50, 0.0  ;;  %v8795_v31 = vld [vmem:[%s9449_s29 + $0xa0] sm:$0xff] }
 0x2d8   : > { %5385 = vmatmul.mubr.bf16.gmra.mxu0 %v5102_v41  ;;  %7552 = vmatmul.mubr.msk.bf16.gmra.mxu1 %vm2693_vm5, %v5113_v32  ;;  %v7458_v61 = vpop.f32.mrf.mxu1  ;;  %v15945_v32 = vld [vmem:[#allocation34_spill] sm:$0xff]  ;;  %v15948_v41 = vld [vmem:[#allocation181_spill] sm:$0xff]  ;;  %v7047_v34 = vsel %vm15956_vm6, 1.0, %v15787_v40  ;;  %vm15958_vm10 = vcmp.gt.f32.partialorder %v15957_v9, 0.0 }
 0x2d9   : > { %7555 = vmatprep.mubr.msk.bf16.mxu1 %vm2693_vm5, %v5116_v5  ;;  %vm15946_vm4 = vcmp.gt.f32.partialorder %v15945_v32, 0.0  ;;  %v3415_v5 = vmul.f32 %v8792_v37, %v12952_v53  ;;  %v5134_v39 = vpack.c.bf16 %v15949_v23, %v15948_v41  ;;  %v7048_v60 = vsel %vm15958_vm10, 1.0, %v15787_v40  ;;  %v15962_v41 = vld [vmem:[#allocation132_spill] sm:$0xff] }
 0x2da   : > { %v7459_v49 = vpop.f32.mrf.mxu1  ;;  %v7046_v18 = vsel %vm15946_vm4, 1.0, %v15787_v40  ;;  %vm15963_vm15 = vcmp.gt.f32.partialorder %v15962_v41, 0.0  ;;  %v13400_v41 = vld [vmem:[%s9460_s13 + $0x38] sm:$0xff] }
 0x2db   : > { %v13223_v57 = vadd.f32 %v7459_v49, %v7458_v61  ;;  %v3133_v11 = vpop.f32.mrf.mxu0  ;;  %v3480_v58 = vmul.f32 %v7046_v18, %v12962_v4  ;;  %v7050_v23 = vsel %vm15963_vm15, 1.0, %v15787_v40 }
 0x2dc   : > { %v3444_v35 = vadd.f32 %v3412_v28, %v3133_v11  ;;  %6069 = vrot.lane.b32.xlu1 %v3133_v11, %s9133_s15  ;;  %v15951_v11 = vld [vmem:[#allocation212_spill] sm:$0xff] }
 0x2dd   : > { %v3135_v63 = vpop.f32.mrf.mxu0  ;;  %v5137_v36 = vpack.c.bf16 %v15952_v27, %v15951_v11  ;;  %v13332_v11 = vld [vmem:[%s9460_s13] sm:$0xff]  ;;  %v13334_v27 = vstv %s6967_s28 }
 0x2de   : > { %v3509_v20 = vsub.f32 %v3444_v35, %v3477_v16  ;;  %v8793_v63 = vld [vmem:[%s9449_s29 + $0x90] sm:$0xff]  ;;  %15965 = vst [vmem:[#allocation80_spill] sm:$0xff] %v13334_v27 }
 0x2df   : > { %v13236_v33 = vpop.f32.mrf.mxu0 }
 0x2e0   : > { %15938 = vst [vmem:[#allocation48_spill] sm:$0xff] %v13236_v33  ;;  %7556 = vmatmul.mubr.msk.bf16.gmra.mxu1 %vm2693_vm5, %v5119_v19  ;;  %3541 = vst.msk [vmem:[%s12989_s24 + $0x70] sm:$0xff] %vm2693_vm5, %v3509_v20  ;;  %v3445_v13 = vadd.f32 %v3413_v17, %v13236_v33  ;;  %v15954_v19 = vld [vmem:[#allocation49_spill] sm:$0xff]  ;;  %v3416_v20 = vmul.f32 %v8793_v63, %v12952_v53  ;;  %v13349_v63 = vld [vmem:[%s9460_s13 + $0x8] sm:$0xff] }
 0x2e1   : > { %7559 = vmatprep.mubr.msk.bf16.mxu1 %vm2693_vm5, %v5122_v15  ;;  %v3138_v30 = vpop.f32.mrf.mxu0  ;;  %v5140_v35 = vpack.c.bf16 %v15954_v19, %v15953_v48  ;;  %v13342_v48 = vld [vmem:[%s9460_s13 + $0x10] sm:$0xff] }
 0x2e2   : > { %v3510_v3 = vsub.f32 %v3445_v13, %v3478_v54  ;;  %v3481_v13 = vmul.f32 %v7047_v34, %v12962_v4  ;;  %v6298_v34 = vld [vmem:[%s9471_s3] sm:$0xff] }
 0x2e4   : > { %3542 = vst.msk [vmem:[%s12989_s24 + $0x78] sm:$0xff] %vm2693_vm5, %v3510_v3  ;;  %v7461_v44 = vpop.f32.mrf.mxu1 }
 0x2e6   : > { %v7462_v26 = vpop.f32.mrf.mxu1 }
 0x2e7   : > { %v13249_v59 = vadd.f32 %v7462_v26, %v7461_v44  ;;  %v8794_v44 = vld [vmem:[%s9449_s29 + $0x98] sm:$0xff]  ;;  %v3482_v26 = vmul.f32 %v7048_v60, %v12962_v4 }
 0x2e8   : > { %7560 = vmatmul.mubr.msk.bf16.gmra.mxu1 %vm2693_vm5, %v5125_v12  ;;  %v7464_v1 = vpop.f32.mrf.mxu1  ;;  %v3417_v47 = vmul.f32 %v8794_v44, %v12952_v53  ;;  %v13362_v60 = vld [vmem:[%s9460_s13 + $0x18] sm:$0xff]  ;;  %v15967_v44 = vld [vmem:[#allocation98_spill] sm:$0xff] }
 0x2e9   : > { %7563 = vmatprep.mubr.msk.bf16.mxu1 %vm2693_vm5, %v5128_v51 }
 0x2ea   : > { %v7465_v8 = vpop.f32.mrf.mxu1 }
 0x2eb   : > { %v13259_v29 = vadd.f32 %v7465_v8, %v7464_v1  ;;  %v3141_v25 = vpop.f32.mrf.mxu0 }
 0x2ec   : > { %v3446_v62 = vadd.f32 %v3414_v14, %v3141_v25  ;;  %6073 = vrot.lane.b32.xlu1 %v3141_v25, %s9133_s15  ;;  %v15960_v25 = vld [vmem:[#allocation60_spill] sm:$0xff] }
 0x2ed   : > { %v3143_v45 = vpop.f32.mrf.mxu0  ;;  %vm15961_vm14 = vcmp.gt.f32.partialorder %v15960_v25, 0.0 }
 0x2ee   : > { %v3511_v61 = vsub.f32 %v3446_v62, %v3479_v24  ;;  %v7049_v32 = vsel %vm15961_vm14, 1.0, %v15787_v40  ;;  %v8796_v45 = vld [vmem:[%s9449_s29 + $0xa8] sm:$0xff] }
 0x2ef   : > { %v13272_v28 = vpop.f32.mrf.mxu0  ;;  %v3483_v62 = vmul.f32 %v7049_v32, %v12962_v4 }
 0x2f0   : > { %15950 = vst [vmem:[#allocation106_spill] sm:$0xff] %v13272_v28  ;;  %7564 = vmatmul.mubr.msk.bf16.gmra.mxu1 %vm2693_vm5, %v5131_v43  ;;  %3543 = vst.msk [vmem:[%s12989_s24 + $0x80] sm:$0xff] %vm2693_vm5, %v3511_v61  ;;  %v3447_v42 = vadd.f32 %v3415_v5, %v13272_v28  ;;  %v3419_v61 = vmul.f32 %v8796_v45, %v12952_v53  ;;  %v6304_v45 = vld [vmem:[%s9471_s3 + $0x30] sm:$0xff] }
 0x2f1   : > { %7567 = vmatprep.mubr.msk.bf16.mxu1 %vm2693_vm5, %v5134_v39  ;;  %v3146_v49 = vpop.f32.mrf.mxu0 }
 0x2f2   : > { %v3512_v16 = vsub.f32 %v3447_v42, %v3480_v58  ;;  %v3484_v49 = vmul.f32 %v7050_v23, %v12962_v4  ;;  %v13403_v23 = vld [vmem:[%s9460_s13 + $0x50] sm:$0xff] }
 0x2f4   : > { %3544 = vst.msk [vmem:[%s12989_s24 + $0x88] sm:$0xff] %vm2693_vm5, %v3512_v16  ;;  %v7467_v7 = vpop.f32.mrf.mxu1 }
 0x2f6   : > { %v7468_v6 = vpop.f32.mrf.mxu1 }
 0x2f7   : > { %v13285_v17 = vadd.f32 %v7468_v6, %v7467_v7  ;;  %v5691_v7 = vmul.f32 %v13334_v27, %v13332_v11 }
 0x2f8   : > { %7568 = vmatmul.mubr.msk.bf16.gmra.mxu1 %vm2693_vm5, %v5137_v36  ;;  %v7470_v15 = vpop.f32.mrf.mxu1 }
 0x2f9   : > { %7571 = vmatprep.mubr.msk.bf16.mxu1 %vm2693_vm5, %v5140_v35  ;;  %v5693_v35 = vmul.f32 %v13334_v27, %v13342_v48  ;;  %v7094_v50 = vadd.f32 -1.0, %v5691_v7  ;;  %v6301_v7 = vld [vmem:[%s9471_s3 + $0x18] sm:$0xff] }
 0x2fa   : > { %v7471_v54 = vpop.f32.mrf.mxu1 }
 0x2fb   : > { %v13295_v30 = vadd.f32 %v7471_v54, %v7470_v15  ;;  %v7096_v15 = vadd.f32 -1.0, %v5693_v35  ;;  %vm5755_vm8 = vcmp.gt.f32.partialorder %v7094_v50, 0.0 }
 0x2fc   : > { %v3149_v3 = vpop.f32.mrf.mxu0 }
 0x2fd   : > { %v3448_v12 = vadd.f32 %v3416_v20, %v3149_v3  ;;  %6077 = vrot.lane.b32.xlu1 %v3149_v3, %s9133_s15  ;;  %v13352_v20 = vld [vmem:[%s9460_s13 + $0x30] sm:$0xff]  ;;  %v5692_v3 = vmul.f32 %v13334_v27, %v13349_v63  ;;  %vm5757_vm1 = vcmp.gt.f32.partialorder %v7096_v15, 0.0 }
 0x2fe   : > { %v3151_v38 = vpop.f32.mrf.mxu0  ;;  %v5697_v9 = vmul.f32 %v13334_v27, %v13352_v20 }
 0x2ff   : > { %v3513_v51 = vsub.f32 %v3448_v12, %v3481_v13  ;;  %v6300_v13 = vld [vmem:[%s9471_s3 + $0x10] sm:$0xff]  ;;  %v13365_v12 = vsel %vm5755_vm8, 1.0, %v15787_v40  ;;  %v5694_v38 = vmul.f32 %v13334_v27, %v13362_v60  ;;  %v7095_v32 = vadd.f32 -1.0, %v5692_v3 }
 0x300   : > { %v13304_v22 = vpop.f32.mrf.mxu0  ;;  %7572 = vmatmul.mubr.bf16.gmra.mxu1 %v9135_v55  ;;  %v3418_v55 = vmul.f32 %v8795_v31, %v12952_v53  ;;  %15966 = vst [vmem:[#allocation140_spill] sm:$0xff] %v13365_v12 }
 0x301   : > { %15959 = vst [vmem:[#allocation36_spill] sm:$0xff] %v13304_v22  ;;  %3545 = vst.msk [vmem:[%s12989_s24 + $0x90] sm:$0xff] %vm2693_vm5, %v3513_v51  ;;  %v3449_v56 = vadd.f32 %v3417_v47, %v13304_v22  ;;  %v6330_v47 = vsel %vm5755_vm8, %v15967_v44, %v6298_v34  ;;  %vm5756_vm11 = vcmp.gt.f32.partialorder %v7095_v32, 0.0 }
 0x302   : > { %v3154_v1 = vpop.f32.mrf.mxu0  ;;  %6362 = vst.msk [vmem:[%s13374_s22] sm:$0xff] %vm2693_vm5, %v6330_v47 }
 0x303   : > { %v3514_v10 = vsub.f32 %v3449_v56, %v3482_v26  ;;  %v15968_v26 = vld [vmem:[#allocation135_spill] sm:$0xff]  ;;  %v7214_v1 = vpack.c.bf16 %v13365_v12, %v13365_v12  ;;  %v8803_v12 = vld [vmem:[%s9449_s29 + $0xe0] sm:$0xff] }
 0x304   : > { %v7473_v14 = vpop.f32.mrf.mxu1  ;;  %vm15969_vm2 = vcmp.gt.f32.partialorder %v15968_v26, 0.0 }
 0x305   : > { %3546 = vst.msk [vmem:[%s12989_s24 + $0x98] sm:$0xff] %vm2693_vm5, %v3514_v10  ;;  %v7051_v56 = vsel %vm15969_vm2, 1.0, %v15787_v40  ;;  %v13381_v10 = vsel %vm5757_vm1, 1.0, %v15787_v40 }
 0x306   : > { %v7474_v8 = vpop.f32.mrf.mxu1  ;;  %15970 = vst [vmem:[#allocation56_spill] sm:$0xff] %v13381_v10  ;;  %v7216_v25 = vpack.c.bf16 %v13381_v10, %v13381_v10  ;;  %6523 = vst.msk [vmem:[%s13395_s14] sm:$0xf] %vm6522_vm0, %v7214_v1  ;;  %v6305_v1 = vld [vmem:[%s9471_s3 + $0x38] sm:$0xff] }
 0x307   : > { %v13312_v24 = vadd.f32 %v7474_v8, %v7473_v14  ;;  %v6332_v14 = vsel %vm5757_vm1, %v15967_v44, %v6300_v13  ;;  %v8798_v13 = vld [vmem:[%s9449_s29 + $0xb8] sm:$0xff] }
 0x308   : > { %v7476_v18 = vpop.f32.mrf.mxu1  ;;  %6364 = vst.msk [vmem:[%s13374_s22 + $0x10] sm:$0xff] %vm2693_vm5, %v6332_v14  ;;  %v3421_v3 = vmul.f32 %v8798_v13, %v12952_v53  ;;  %v13490_v13 = vld [vmem:[%s9460_s13 + $0x58] sm:$0xff] }
 0x309   : > { %6525 = vst.msk [vmem:[%s13395_s14 + $0x8] sm:$0xf] %vm6522_vm0, %v7216_v25  ;;  %v13448_v25 = vld [vmem:[%s9460_s13 + $0x20] sm:$0xff] }
 0x30a   : > { %v7477_v43 = vpop.f32.mrf.mxu1 }
 0x30b   : > { %v13320_v37 = vadd.f32 %v7477_v43, %v7476_v18  ;;  %v6299_v18 = vld [vmem:[%s9471_s3 + $0x8] sm:$0xff] }
 0x30c   : > { %v3157_v5 = vpop.f32.mrf.mxu0 }
 0x30d   : > { %v3450_v39 = vadd.f32 %v3418_v55, %v3157_v5  ;;  %6081 = vrot.lane.b32.xlu1 %v3157_v5, %s9133_s15  ;;  %v8797_v55 = vld [vmem:[%s9449_s29 + $0xb0] sm:$0xff]  ;;  %v7097_v5 = vadd.f32 -1.0, %v5694_v38 }
 0x30e   : > { %v3159_v58 = vpop.f32.mrf.mxu0  ;;  %v3420_v43 = vmul.f32 %v8797_v55, %v12952_v53  ;;  %v6308_v55 = vld [vmem:[%s9471_s3 + $0x50] sm:$0xff] }
 0x30f   : > { %v3515_v42 = vsub.f32 %v3450_v39, %v3483_v62  ;;  %v7100_v62 = vadd.f32 -1.0, %v5697_v9  ;;  %v3485_v39 = vmul.f32 %v7051_v56, %v12962_v4  ;;  %v5701_v58 = vmul.f32 %v13334_v27, %v13403_v23 }
 0x310   : > { %v13329_v16 = vpop.f32.mrf.mxu0  ;;  %vm5758_vm3 = vcmp.gt.f32.partialorder %v7097_v5, 0.0 }
 0x311   : > { %15964 = vst [vmem:[#allocation113_spill] sm:$0xff] %v13329_v16  ;;  %3547 = vst.msk [vmem:[%s12989_s24 + $0xa0] sm:$0xff] %vm2693_vm5, %v3515_v42  ;;  %v3451_v36 = vadd.f32 %v3419_v61, %v13329_v16  ;;  %v5698_v61 = vmul.f32 %v13334_v27, %v13400_v41  ;;  %vm5761_vm7 = vcmp.gt.f32.partialorder %v7100_v62, 0.0  ;;  %v6333_v26 = vsel %vm5758_vm3, %v15967_v44, %v6301_v7  ;;  %v13480_v7 = vld [vmem:[%s9460_s13 + $0x40] sm:$0xff] }
 0x312   : > { %v3162_v19 = vpop.f32.mrf.mxu0  ;;  %v13428_v15 = vsel %vm5761_vm7, 1.0, %v15787_v40  ;;  %v6336_v9 = vsel %vm5761_vm7, %v15967_v44, %v6304_v45  ;;  %v7104_v14 = vadd.f32 -1.0, %v5701_v58  ;;  %6365 = vst.msk [vmem:[%s13374_s22 + $0x18] sm:$0xff] %vm2693_vm5, %v6333_v26 }
 0x313   : > { %v3516_v6 = vsub.f32 %v3451_v36, %v3484_v49  ;;  %v13414_v49 = vsel %vm5756_vm11, 1.0, %v15787_v40  ;;  %v6331_v36 = vsel %vm5756_vm11, %v15967_v44, %v6299_v18  ;;  %15974 = vst [vmem:[#allocation39_spill] sm:$0xff] %v13428_v15  ;;  %v7220_v47 = vpack.c.bf16 %v13428_v15, %v13428_v15  ;;  %6368 = vst.msk [vmem:[%s13374_s22 + $0x30] sm:$0xff] %vm2693_vm5, %v6336_v9 }
 0x314   : > { %v7479_v54 = vpop.f32.mrf.mxu1  ;;  %15971 = vst [vmem:[#allocation57_spill] sm:$0xff] %v13414_v49  ;;  %6363 = vst.msk [vmem:[%s13374_s22 + $0x8] sm:$0xff] %vm2693_vm5, %v6331_v36  ;;  %v7215_v34 = vpack.c.bf16 %v13414_v49, %v13414_v49  ;;  %v7101_v56 = vadd.f32 -1.0, %v5698_v61  ;;  %vm5765_vm10 = vcmp.gt.f32.partialorder %v7104_v14, 0.0  ;;  %v5702_v9 = vmul.f32 %v13334_v27, %v13490_v13 }
 0x315   : > { %3548 = vst.msk [vmem:[%s12989_s24 + $0xa8] sm:$0xff] %vm2693_vm5, %v3516_v6  ;;  %v15972_v6 = vld [vmem:[#allocation142_spill] sm:$0xff]  ;;  %v6340_v36 = vsel %vm5765_vm10, %v15967_v44, %v6308_v55 }
 0x316   : > { %v7480_v51 = vpop.f32.mrf.mxu1  ;;  %vm15973_vm4 = vcmp.gt.f32.partialorder %v15972_v6, 0.0  ;;  %6524 = vst.msk [vmem:[%s13395_s14 + $0x4] sm:$0xf] %vm6522_vm0, %v7215_v34  ;;  %6529 = vst.msk [vmem:[%s13395_s14 + $0x18] sm:$0xf] %vm6522_vm0, %v7220_v47  ;;  %vm5762_vm6 = vcmp.gt.f32.partialorder %v7101_v56, 0.0 }
 0x317   : > { %v13384_v8 = vadd.f32 %v7480_v51, %v7479_v54  ;;  %v7052_v50 = vsel %vm15973_vm4, 1.0, %v15787_v40  ;;  %v13442_v51 = vsel %vm5758_vm3, 1.0, %v15787_v40  ;;  %v6337_v45 = vsel %vm5762_vm6, %v15967_v44, %v6305_v1  ;;  %6372 = vst.msk [vmem:[%s13374_s22 + $0x50] sm:$0xff] %vm2693_vm5, %v6340_v36  ;;  %v6302_v34 = vld [vmem:[%s9471_s3 + $0x20] sm:$0xff]  ;;  %v13512_v55 = vld [vmem:[%s9460_s13 + $0x48] sm:$0xff] }
 0x318   : > { %v7482_v31 = vpop.f32.mrf.mxu1  ;;  %15975 = vst [vmem:[#allocation215_spill] sm:$0xff] %v13442_v51  ;;  %v3486_v18 = vmul.f32 %v7052_v50, %v12962_v4  ;;  %6369 = vst.msk [vmem:[%s13374_s22 + $0x38] sm:$0xff] %vm2693_vm5, %v6337_v45  ;;  %v6306_v56 = vld [vmem:[%s9471_s3 + $0x40] sm:$0xff] }
 0x31a   : > { %v7483_v42 = vpop.f32.mrf.mxu1 }
 0x31b   : > { %v13418_v19 = vadd.f32 %v7483_v42, %v7482_v31  ;;  %v3165_v35 = vpop.f32.mrf.mxu0  ;;  %v7217_v31 = vpack.c.bf16 %v13442_v51, %v13442_v51  ;;  %v13476_v42 = vsel %vm5765_vm10, 1.0, %v15787_v40  ;;  %v8801_v51 = vld [vmem:[%s9449_s29 + $0xd0] sm:$0xff] }
 0x31c   : > { %v3452_v54 = vadd.f32 %v3420_v43, %v3165_v35  ;;  %6085 = vrot.lane.b32.xlu1 %v3165_v35, %s9133_s15  ;;  %v5695_v43 = vmul.f32 %v13334_v27, %v13448_v25  ;;  %15978 = vst [vmem:[#allocation137_spill] sm:$0xff] %v13476_v42  ;;  %v7224_v6 = vpack.c.bf16 %v13476_v42, %v13476_v42  ;;  %v6316_v42 = vld [vmem:[%s9471_s3 + $0x90] sm:$0xff] }
 0x31d   : > { %v3167_v38 = vpop.f32.mrf.mxu0  ;;  %6526 = vst.msk [vmem:[%s13395_s14 + $0xc] sm:$0xf] %vm6522_vm0, %v7217_v31 }
 0x31e   : > { %v3517_v32 = vsub.f32 %v3452_v54, %v3485_v39  ;;  %v13468_v39 = vsel %vm5762_vm6, 1.0, %v15787_v40  ;;  %v7098_v50 = vadd.f32 -1.0, %v5695_v43  ;;  %v5699_v54 = vmul.f32 %v13334_v27, %v13480_v7  ;;  %6533 = vst.msk [vmem:[%s13395_s14 + $0x28] sm:$0xf] %vm6522_vm0, %v7224_v6 }
 0x31f   : > { %v13460_v62 = vpop.f32.mrf.mxu0  ;;  %15977 = vst [vmem:[#allocation141_spill] sm:$0xff] %v13468_v39  ;;  %v7221_v58 = vpack.c.bf16 %v13468_v39, %v13468_v39 }
 0x320   : > { %15976 = vst [vmem:[#allocation225_spill] sm:$0xff] %v13460_v62  ;;  %3549 = vst.msk [vmem:[%s12989_s24 + $0xb0] sm:$0xff] %vm2693_vm5, %v3517_v32  ;;  %v3453_v5 = vadd.f32 %v3421_v3, %v13460_v62  ;;  %v13493_v3 = vld [vmem:[%s9460_s13 + $0x28] sm:$0xff]  ;;  %vm5759_vm14 = vcmp.gt.f32.partialorder %v7098_v50, 0.0  ;;  %v7102_v26 = vadd.f32 -1.0, %v5699_v54  ;;  %v7105_v32 = vadd.f32 -1.0, %v5702_v9 }
 0x321   : > { %v3170_v61 = vpop.f32.mrf.mxu0  ;;  %6530 = vst.msk [vmem:[%s13395_s14 + $0x1c] sm:$0xf] %vm6522_vm0, %v7221_v58  ;;  %v5696_v47 = vmul.f32 %v13334_v27, %v13493_v3  ;;  %v13507_v1 = vsel %vm5759_vm14, 1.0, %v15787_v40  ;;  %v6334_v14 = vsel %vm5759_vm14, %v15967_v44, %v6302_v34  ;;  %v5700_v58 = vmul.f32 %v13334_v27, %v13512_v55  ;;  %v6303_v50 = vld [vmem:[%s9471_s3 + $0x28] sm:$0xff]  ;;  %v8799_v54 = vld [vmem:[%s9449_s29 + $0xc0] sm:$0xff] }
 0x322   : > { %v3518_v35 = vsub.f32 %v3453_v5, %v3486_v18  ;;  %15979 = vst [vmem:[#allocation119_spill] sm:$0xff] %v13507_v1  ;;  %v6309_v18 = vld [vmem:[%s9471_s3 + $0x58] sm:$0xff]  ;;  %v15980_v5 = vld [vmem:[#allocation167_spill] sm:$0xff]  ;;  %6366 = vst.msk [vmem:[%s13374_s22 + $0x20] sm:$0xff] %vm2693_vm5, %v6334_v14  ;;  %v7218_v61 = vpack.c.bf16 %v13507_v1, %v13507_v1  ;;  %vm5763_vm8 = vcmp.gt.f32.partialorder %v7102_v26, 0.0  ;;  %vm5766_vm1 = vcmp.gt.f32.partialorder %v7105_v32, 0.0 }
 0x323   : > { %v7099_v31 = vadd.f32 -1.0, %v5696_v47  ;;  %vm15981_vm15 = vcmp.gt.f32.partialorder %v15980_v5, 0.0  ;;  %v6338_v6 = vsel %vm5763_vm8, %v15967_v44, %v6306_v56  ;;  %v3422_v9 = vmul.f32 %v8799_v54, %v12952_v53 }
 0x324   : > { %3550 = vst.msk [vmem:[%s12989_s24 + $0xb8] sm:$0xff] %vm2693_vm5, %v3518_v35  ;;  %v7485_v38 = vpop.f32.mrf.mxu1  ;;  %v7053_v45 = vsel %vm15981_vm15, 1.0, %v15787_v40  ;;  %v13526_v35 = vsel %vm5763_vm8, 1.0, %v15787_v40  ;;  %6370 = vst.msk [vmem:[%s13374_s22 + $0x40] sm:$0xff] %vm2693_vm5, %v6338_v6  ;;  %v6341_v26 = vsel %vm5766_vm1, %v15967_v44, %v6309_v18  ;;  %v7103_v14 = vadd.f32 -1.0, %v5700_v58 }
 0x325   : > { %15982 = vst [vmem:[#allocation83_spill] sm:$0xff] %v13526_v35  ;;  %6527 = vst.msk [vmem:[%s13395_s14 + $0x10] sm:$0xf] %vm6522_vm0, %v7218_v61  ;;  %v7222_v47 = vpack.c.bf16 %v13526_v35, %v13526_v35  ;;  %vm5760_vm2 = vcmp.gt.f32.partialorder %v7099_v31, 0.0  ;;  %v15985_v31 = vld [vmem:[#allocation169_spill] sm:$0xff] }
 0x326   : > { %v7486_v43 = vpop.f32.mrf.mxu1  ;;  %6373 = vst.msk [vmem:[%s13374_s22 + $0x58] sm:$0xff] %vm2693_vm5, %v6341_v26  ;;  %v13550_v5 = vsel %vm5760_vm2, 1.0, %v15787_v40  ;;  %v6335_v18 = vsel %vm5760_vm2, %v15967_v44, %v6303_v50  ;;  %vm15986_vm11 = vcmp.gt.f32.partialorder %v15985_v31, 0.0  ;;  %vm5764_vm7 = vcmp.gt.f32.partialorder %v7103_v14, 0.0  ;;  %v8800_v50 = vld [vmem:[%s9449_s29 + $0xc8] sm:$0xff]  ;;  %v13572_v26 = vld [vmem:[%s9460_s13 + $0x70] sm:$0xff] }
 0x327   : > { %v13523_v36 = vadd.f32 %v7486_v43, %v7485_v38  ;;  %v13539_v38 = vsel %vm5766_vm1, 1.0, %v15787_v40  ;;  %v3487_v43 = vmul.f32 %v7053_v45, %v12962_v4  ;;  %6531 = vst.msk [vmem:[%s13395_s14 + $0x20] sm:$0xf] %vm6522_vm0, %v7222_v47  ;;  %15984 = vst [vmem:[#allocation207_spill] sm:$0xff] %v13550_v5  ;;  %v7054_v58 = vsel %vm15986_vm11, 1.0, %v15787_v40 }
 0x328   : > { %v7488_v34 = vpop.f32.mrf.mxu1  ;;  %15983 = vst [vmem:[#allocation40_spill] sm:$0xff] %v13539_v38  ;;  %v7225_v56 = vpack.c.bf16 %v13539_v38, %v13539_v38  ;;  %6367 = vst.msk [vmem:[%s13374_s22 + $0x28] sm:$0xff] %vm2693_vm5, %v6335_v18  ;;  %v7219_v45 = vpack.c.bf16 %v13550_v5, %v13550_v5  ;;  %v13569_v47 = vsel %vm5764_vm7, 1.0, %v15787_v40  ;;  %v3488_v5 = vmul.f32 %v7054_v58, %v12962_v4  ;;  %v13600_v58 = vld [vmem:[%s9460_s13 + $0x68] sm:$0xff] }
 0x329   : > { %15987 = vst [vmem:[#allocation112_spill] sm:$0xff] %v13569_v47  ;;  %v7223_v18 = vpack.c.bf16 %v13569_v47, %v13569_v47  ;;  %v6312_v47 = vld [vmem:[%s9471_s3 + $0x70] sm:$0xff] }
 0x32a   : > { %v7489_v32 = vpop.f32.mrf.mxu1  ;;  %6534 = vst.msk [vmem:[%s13395_s14 + $0x2c] sm:$0xf] %vm6522_vm0, %v7225_v56  ;;  %v13575_v56 = vld [vmem:[%s9460_s13 + $0x60] sm:$0xff]  ;;  %6528 = vst.msk [vmem:[%s13395_s14 + $0x14] sm:$0xf] %vm6522_vm0, %v7219_v45 }
 0x32b   : > { %v13553_v61 = vadd.f32 %v7489_v32, %v7488_v34  ;;  %v3173_v6 = vpop.f32.mrf.mxu0  ;;  %v3423_v34 = vmul.f32 %v8800_v50, %v12952_v53  ;;  %v5703_v31 = vmul.f32 %v13334_v27, %v13575_v56  ;;  %6532 = vst.msk [vmem:[%s13395_s14 + $0x24] sm:$0xf] %vm6522_vm0, %v7223_v18 }
 0x32c   : > { %v3454_v54 = vadd.f32 %v3422_v9, %v3173_v6  ;;  %6089 = vrot.lane.b32.xlu1 %v3173_v6, %s9133_s15  ;;  %v6307_v9 = vld [vmem:[%s9471_s3 + $0x48] sm:$0xff]  ;;  %v5705_v6 = vmul.f32 %v13334_v27, %v13572_v26 }
 0x32d   : > { %v3175_v32 = vpop.f32.mrf.mxu0  ;;  %v7106_v35 = vadd.f32 -1.0, %v5703_v31 }
 0x32e   : > { %v3519_v50 = vsub.f32 %v3454_v54, %v3487_v43  ;;  %v6339_v32 = vsel %vm5764_vm7, %v15967_v44, %v6307_v9  ;;  %v7108_v45 = vadd.f32 -1.0, %v5705_v6  ;;  %v6310_v54 = vld [vmem:[%s9471_s3 + $0x60] sm:$0xff]  ;;  %v5704_v9 = vmul.f32 %v13334_v27, %v13600_v58 }
 0x32f   : > { %v13589_v38 = vpop.f32.mrf.mxu0  ;;  %6371 = vst.msk [vmem:[%s13374_s22 + $0x48] sm:$0xff] %vm2693_vm5, %v6339_v32  ;;  %vm5767_vm4 = vcmp.gt.f32.partialorder %v7106_v35, 0.0 }
 0x330   : > { %15988 = vst [vmem:[#allocation59_spill] sm:$0xff] %v13589_v38  ;;  %3551 = vst.msk [vmem:[%s12989_s24 + $0xc0] sm:$0xff] %vm2693_vm5, %v3519_v50  ;;  %v3455_v43 = vadd.f32 %v3423_v34, %v13589_v38  ;;  %vm5769_vm3 = vcmp.gt.f32.partialorder %v7108_v45, 0.0  ;;  %v13614_v35 = vsel %vm5767_vm4, 1.0, %v15787_v40  ;;  %v6342_v50 = vsel %vm5767_vm4, %v15967_v44, %v6310_v54  ;;  %v13624_v45 = vld [vmem:[%s9460_s13 + $0x90] sm:$0xff]  ;;  %v6322_v38 = vld [vmem:[%s9471_s3 + $0xc0] sm:$0xff] }
 0x331   : > { %v3178_v14 = vpop.f32.mrf.mxu0  ;;  %v13606_v6 = vsel %vm5769_vm3, 1.0, %v15787_v40  ;;  %v6344_v34 = vsel %vm5769_vm3, %v15967_v44, %v6312_v47  ;;  %15990 = vst [vmem:[#allocation172_spill] sm:$0xff] %v13614_v35  ;;  %6374 = vst.msk [vmem:[%s13374_s22 + $0x60] sm:$0xff] %vm2693_vm5, %v6342_v50  ;;  %v7107_v47 = vadd.f32 -1.0, %v5704_v9  ;;  %v5709_v54 = vmul.f32 %v13334_v27, %v13624_v45 }
 0x332   : > { %v3520_v18 = vsub.f32 %v3455_v43, %v3488_v5  ;;  %15989 = vst [vmem:[#allocation58_spill] sm:$0xff] %v13606_v6  ;;  %6376 = vst.msk [vmem:[%s13374_s22 + $0x70] sm:$0xff] %vm2693_vm5, %v6344_v34  ;;  %v7228_v31 = vpack.c.bf16 %v13606_v6, %v13606_v6  ;;  %v7226_v5 = vpack.c.bf16 %v13614_v35, %v13614_v35  ;;  %v13627_v43 = vld [vmem:[%s9460_s13 + $0x80] sm:$0xff]  ;;  %v6311_v14 = vld [vmem:[%s9471_s3 + $0x68] sm:$0xff]  ;;  %v7055_v9 = vsel %vm3327_vm13, 1.0, %v15787_v40 }
 0x333   : > { %vm5768_vm6 = vcmp.gt.f32.partialorder %v7107_v47, 0.0  ;;  %v7112_v1 = vadd.f32 -1.0, %v5709_v54  ;;  %v3424_v50 = vmul.f32 %v8801_v51, %v12952_v53  ;;  %v3489_v15 = vmul.f32 %v7055_v9, %v12962_v4  ;;  %v15994_v54 = vld [vmem:[#allocation191_spill] sm:$0xff] }
 0x334   : > { %3552 = vst.msk [vmem:[%s12989_s24 + $0xc8] sm:$0xff] %vm2693_vm5, %v3520_v18  ;;  %v7491_v32 = vpop.f32.mrf.mxu1  ;;  %v5707_v18 = vmul.f32 %v13334_v27, %v13627_v43  ;;  %v6343_v6 = vsel %vm5768_vm6, %v15967_v44, %v6311_v14  ;;  %vm15995_vm14 = vcmp.gt.f32.partialorder %v15994_v54, 0.0  ;;  %v13681_v54 = vld [vmem:[%s9460_s13 + $0xb0] sm:$0xff] }
 0x335   : > { %6537 = vst.msk [vmem:[%s13395_s14 + $0x38] sm:$0xf] %vm6522_vm0, %v7228_v31  ;;  %6535 = vst.msk [vmem:[%s13395_s14 + $0x30] sm:$0xf] %vm6522_vm0, %v7226_v5  ;;  %v13644_v31 = vsel %vm5768_vm6, 1.0, %v15787_v40  ;;  %vm5773_vm13 = vcmp.gt.f32.partialorder %v7112_v1, 0.0 }
 0x336   : > { %v7492_v34 = vpop.f32.mrf.mxu1  ;;  %15992 = vst [vmem:[#allocation163_spill] sm:$0xff] %v13644_v31  ;;  %6375 = vst.msk [vmem:[%s13374_s22 + $0x68] sm:$0xff] %vm2693_vm5, %v6343_v6  ;;  %v7227_v5 = vpack.c.bf16 %v13644_v31, %v13644_v31  ;;  %v7110_v47 = vadd.f32 -1.0, %v5707_v18  ;;  %v13659_v14 = vsel %vm5773_vm13, 1.0, %v15787_v40  ;;  %v6348_v51 = vsel %vm5773_vm13, %v15967_v44, %v6316_v42 }
 0x337   : > { %v13641_v35 = vadd.f32 %v7492_v34, %v7491_v32  ;;  %v6314_v32 = vld [vmem:[%s9471_s3 + $0x80] sm:$0xff]  ;;  %15993 = vst [vmem:[#allocation164_spill] sm:$0xff] %v13659_v14  ;;  %v7056_v18 = vsel %vm15995_vm14, 1.0, %v15787_v40  ;;  %6380 = vst.msk [vmem:[%s13374_s22 + $0x90] sm:$0xff] %vm2693_vm5, %v6348_v51  ;;  %v7232_v9 = vpack.c.bf16 %v13659_v14, %v13659_v14 }
 0x338   : > { %v7494_v39 = vpop.f32.mrf.mxu1  ;;  %6536 = vst.msk [vmem:[%s13395_s14 + $0x34] sm:$0xf] %vm6522_vm0, %v7227_v5  ;;  %vm5771_vm10 = vcmp.gt.f32.partialorder %v7110_v47, 0.0  ;;  %v13684_v14 = vld [vmem:[%s9460_s13 + $0xa0] sm:$0xff] }
 0x339   : > { %v13672_v5 = vsel %vm5771_vm10, 1.0, %v15787_v40  ;;  %6541 = vst.msk [vmem:[%s13395_s14 + $0x48] sm:$0xf] %vm6522_vm0, %v7232_v9  ;;  %v6320_v9 = vld [vmem:[%s9471_s3 + $0xb0] sm:$0xff] }
 0x33a   : > { %v7495_v34 = vpop.f32.mrf.mxu1  ;;  %15996 = vst [vmem:[#allocation84_spill] sm:$0xff] %v13672_v5  ;;  %v7230_v51 = vpack.c.bf16 %v13672_v5, %v13672_v5 }
 0x33b   : > { %v13662_v6 = vadd.f32 %v7495_v34, %v7494_v39  ;;  %v3181_v1 = vpop.f32.mrf.mxu0  ;;  %v8802_v39 = vld [vmem:[%s9449_s29 + $0xd8] sm:$0xff]  ;;  %v6346_v34 = vsel %vm5771_vm10, %v15967_v44, %v6314_v32  ;;  %v5711_v32 = vmul.f32 %v13334_v27, %v13684_v14 }
 0x33c   : > { %v3456_v42 = vadd.f32 %v3424_v50, %v3181_v1  ;;  %6093 = vrot.lane.b32.xlu1 %v3181_v1, %s9133_s15  ;;  %v3425_v47 = vmul.f32 %v8802_v39, %v12952_v53  ;;  %6378 = vst.msk [vmem:[%s13374_s22 + $0x80] sm:$0xff] %vm2693_vm5, %v6346_v34  ;;  %v5713_v50 = vmul.f32 %v13334_v27, %v13681_v54 }
 0x33d   : > { %v3183_v31 = vpop.f32.mrf.mxu0  ;;  %v3490_v39 = vmul.f32 %v7056_v18, %v12962_v4  ;;  %6539 = vst.msk [vmem:[%s13395_s14 + $0x40] sm:$0xf] %vm6522_vm0, %v7230_v51  ;;  %v7114_v49 = vadd.f32 -1.0, %v5711_v32 }
 0x33e   : > { %v3521_v1 = vsub.f32 %v3456_v42, %v3489_v15  ;;  %v7116_v31 = vadd.f32 -1.0, %v5713_v50  ;;  %v6318_v15 = vld [vmem:[%s9471_s3 + $0xa0] sm:$0xff] }
 0x33f   : > { %v13697_v5 = vpop.f32.mrf.mxu0  ;;  %vm5775_vm8 = vcmp.gt.f32.partialorder %v7114_v49, 0.0 }
 0x340   : > { %15997 = vst [vmem:[#allocation152_spill] sm:$0xff] %v13697_v5  ;;  %3553 = vst.msk [vmem:[%s12989_s24 + $0xd0] sm:$0xff] %vm2693_vm5, %v3521_v1  ;;  %v3457_v34 = vadd.f32 %v3425_v47, %v13697_v5  ;;  %vm5777_vm15 = vcmp.gt.f32.partialorder %v7116_v31, 0.0  ;;  %v13713_v47 = vsel %vm5775_vm8, 1.0, %v15787_v40  ;;  %v13723_v1 = vld [vmem:[%s9460_s13 + $0xd0] sm:$0xff]  ;;  %v3426_v5 = vmul.f32 %v8803_v12, %v12952_v53  ;;  %v16004_v12 = vld [vmem:[#allocation214_spill] sm:$0xff] }
 0x341   : > { %v3186_v10 = vpop.f32.mrf.mxu0  ;;  %v13705_v42 = vsel %vm5777_vm15, 1.0, %v15787_v40  ;;  %v6352_v51 = vsel %vm5777_vm15, %v15967_v44, %v6320_v9  ;;  %15999 = vst [vmem:[#allocation120_spill] sm:$0xff] %v13713_v47  ;;  %v7234_v32 = vpack.c.bf16 %v13713_v47, %v13713_v47  ;;  %v5717_v31 = vmul.f32 %v13334_v27, %v13723_v1  ;;  %v6324_v47 = vld [vmem:[%s9471_s3 + $0xd0] sm:$0xff] }
 0x342   : > { %v3522_v18 = vsub.f32 %v3457_v34, %v3490_v39  ;;  %15998 = vst [vmem:[#allocation138_spill] sm:$0xff] %v13705_v42  ;;  %6384 = vst.msk [vmem:[%s13374_s22 + $0xb0] sm:$0xff] %vm2693_vm5, %v6352_v51  ;;  %v7236_v50 = vpack.c.bf16 %v13705_v42, %v13705_v42  ;;  %v6350_v10 = vsel %vm5775_vm8, %v15967_v44, %v6318_v15  ;;  %v13726_v39 = vld [vmem:[%s9460_s13 + $0xc0] sm:$0xff]  ;;  %vm16005_vm7 = vcmp.gt.f32.partialorder %v16004_v12, 0.0 }
 0x343   : > { %6382 = vst.msk [vmem:[%s13374_s22 + $0xa0] sm:$0xff] %vm2693_vm5, %v6350_v10  ;;  %v5715_v9 = vmul.f32 %v13334_v27, %v13726_v39  ;;  %v7120_v10 = vadd.f32 -1.0, %v5717_v31 }
 0x344   : > { %3554 = vst.msk [vmem:[%s12989_s24 + $0xd8] sm:$0xff] %vm2693_vm5, %v3522_v18  ;;  %v7497_v49 = vpop.f32.mrf.mxu1  ;;  %v16000_v18 = vld [vmem:[#allocation211_spill] sm:$0xff] }
 0x345   : > { %6545 = vst.msk [vmem:[%s13395_s14 + $0x58] sm:$0xf] %vm6522_vm0, %v7236_v50  ;;  %6543 = vst.msk [vmem:[%s13395_s14 + $0x50] sm:$0xf] %vm6522_vm0, %v7234_v32  ;;  %vm16001_vm1 = vcmp.gt.f32.partialorder %v16000_v18, 0.0  ;;  %v7118_v42 = vadd.f32 -1.0, %v5715_v9 }
 0x346   : > { %v7498_v34 = vpop.f32.mrf.mxu1  ;;  %v7057_v51 = vsel %vm16001_vm1, 1.0, %v15787_v40  ;;  %vm5781_vm2 = vcmp.gt.f32.partialorder %v7120_v10, 0.0 }
 0x347   : > { %v13736_v15 = vadd.f32 %v7498_v34, %v7497_v49  ;;  %vm5779_vm11 = vcmp.gt.f32.partialorder %v7118_v42, 0.0  ;;  %v3491_v49 = vmul.f32 %v7057_v51, %v12962_v4  ;;  %v13747_v34 = vsel %vm5781_vm2, 1.0, %v15787_v40 }
 0x348   : > { %v7500_v50 = vpop.f32.mrf.mxu1  ;;  %16002 = vst [vmem:[#allocation66_spill] sm:$0xff] %v13747_v34  ;;  %v6356_v31 = vsel %vm5781_vm2, %v15967_v44, %v6324_v47  ;;  %v6354_v9 = vsel %vm5779_vm11, %v15967_v44, %v6322_v38  ;;  %v7058_v42 = vsel %vm16005_vm7, 1.0, %v15787_v40  ;;  %v7240_v51 = vpack.c.bf16 %v13747_v34, %v13747_v34  ;;  %v8804_v47 = vld [vmem:[%s9449_s29 + $0xe8] sm:$0xff] }
 0x349   : > { %6388 = vst.msk [vmem:[%s13374_s22 + $0xd0] sm:$0xff] %vm2693_vm5, %v6356_v31  ;;  %v13761_v10 = vsel %vm5779_vm11, 1.0, %v15787_v40  ;;  %6386 = vst.msk [vmem:[%s13374_s22 + $0xc0] sm:$0xff] %vm2693_vm5, %v6354_v9  ;;  %v13771_v31 = vld [vmem:[%s9460_s13 + $0xe0] sm:$0xff] }
 0x34a   : > { %v7501_v32 = vpop.f32.mrf.mxu1  ;;  %16006 = vst [vmem:[#allocation41_spill] sm:$0xff] %v13761_v10  ;;  %6549 = vst.msk [vmem:[%s13395_s14 + $0x68] sm:$0xf] %vm6522_vm0, %v7240_v51  ;;  %v5719_v34 = vmul.f32 %v13334_v27, %v13771_v31  ;;  %v6326_v51 = vld [vmem:[%s9471_s3 + $0xe0] sm:$0xff] }
 0x34b   : > { %v13751_v18 = vadd.f32 %v7501_v32, %v7500_v50  ;;  %v3189_v62 = vpop.f32.mrf.mxu0  ;;  %v3427_v50 = vmul.f32 %v8804_v47, %v12952_v53  ;;  %v7238_v32 = vpack.c.bf16 %v13761_v10, %v13761_v10 }
 0x34c   : > { %v3458_v38 = vadd.f32 %v3426_v5, %v3189_v62  ;;  %6097 = vrot.lane.b32.xlu1 %v3189_v62, %s9133_s15  ;;  %v3492_v62 = vmul.f32 %v7058_v42, %v12962_v4  ;;  %v7122_v47 = vadd.f32 -1.0, %v5719_v34 }
 0x34d   : > { %16003 = vst [vmem:[#allocation226_spill] sm:$0xff] %v13751_v18  ;;  %v3191_v12 = vpop.f32.mrf.mxu0  ;;  %6547 = vst.msk [vmem:[%s13395_s14 + $0x60] sm:$0xf] %vm6522_vm0, %v7238_v32 }
 0x34e   : > { %v3523_v5 = vsub.f32 %v3458_v38, %v3491_v49  ;;  %vm5783_vm3 = vcmp.gt.f32.partialorder %v7122_v47, 0.0  ;;  %v8805_v47 = vld [vmem:[%s9449_s29 + $0xf0] sm:$0xff] }
 0x34f   : > { %v13780_v9 = vpop.f32.mrf.mxu0  ;;  %v13787_v49 = vsel %vm5783_vm3, 1.0, %v15787_v40  ;;  %v6358_v42 = vsel %vm5783_vm3, %v15967_v44, %v6326_v51 }
 0x350   : > { %16007 = vst [vmem:[#allocation68_spill] sm:$0xff] %v13780_v9  ;;  %3555 = vst.msk [vmem:[%s12989_s24 + $0xe0] sm:$0xff] %vm2693_vm5, %v3523_v5  ;;  %v3459_v12 = vadd.f32 %v3427_v50, %v13780_v9  ;;  %v7242_v34 = vpack.c.bf16 %v13787_v49, %v13787_v49  ;;  %v7060_v5 = vsel %vm3332_vm12, 1.0, %v15787_v40  ;;  %vm5924_vm12 = vcmask 254976  }
 0x351   : > { %v3194_v10 = vpop.f32.mrf.mxu0  ;;  %16008 = vst [vmem:[#allocation69_spill] sm:$0xff] %v13787_v49  ;;  %6390 = vst.msk [vmem:[%s13374_s22 + $0xe0] sm:$0xff] %vm2693_vm5, %v6358_v42  ;;  %v13806_v42 = vld [vmem:[%s9460_s13 + $0xf0] sm:$0xff] }
 0x352   : > { %v3524_v16 = vsub.f32 %v3459_v12, %v3492_v62  ;;  %6551 = vst.msk [vmem:[%s13395_s14 + $0x70] sm:$0xf] %vm6522_vm0, %v7242_v34  ;;  %v7059_v62 = vsel %vm3331_vm9, 1.0, %v15787_v40  ;;  %v3428_v12 = vmul.f32 %v8805_v47, %v12952_v53  ;;  %v8806_v47 = vld [vmem:[%s9449_s29 + $0xf8] sm:$0xff]  ;;  %s6971_s29 = sld [smem:[#allocation3 + $0x5]] }
 0x353   : > { %v3493_v34 = vmul.f32 %v7059_v62, %v12962_v4  ;;  %v3429_v22 = vmul.f32 %v8806_v47, %v12952_v53  ;;  %v6328_v62 = vld [vmem:[%s9471_s3 + $0xf0] sm:$0xff] }
 0x354   : > { %3556 = vst.msk [vmem:[%s12989_s24 + $0xe8] sm:$0xff] %vm2693_vm5, %v3524_v16  ;;  %v7503_v38 = vpop.f32.mrf.mxu1 }
 0x356   : > { %v7504_v10 = vpop.f32.mrf.mxu1 }
 0x357   : > { %v13798_v50 = vadd.f32 %v7504_v10, %v7503_v38  ;;  %v5721_v38 = vmul.f32 %v13334_v27, %v13806_v42  ;;  %v3494_v27 = vmul.f32 %v7060_v5, %v12962_v4 }
 0x358   : > { %v7506_v32 = vpop.f32.mrf.mxu1 }
 0x35a   : > { %v7507_v51 = vpop.f32.mrf.mxu1 }
 0x35b   : > { %v13808_v16 = vadd.f32 %v7507_v51, %v7506_v32  ;;  %v7124_v32 = vadd.f32 -1.0, %v5721_v38 }
 0x35c   : > { %v3197_v10 = vpop.f32.mrf.mxu0 }
 0x35d   : > { %16010 = vst [vmem:[#allocation187_spill] sm:$0xff] %v13808_v16  ;;  %v3460_v9 = vadd.f32 %v3428_v12, %v3197_v10  ;;  %6101 = vrot.lane.b32.xlu1 %v3197_v10, %s9133_s15  ;;  %vm5785_vm9 = vcmp.gt.f32.partialorder %v7124_v32, 0.0 }
 0x35e   : > { %v3199_v51 = vpop.f32.mrf.mxu0  ;;  %v13824_v49 = vsel %vm5785_vm9, 1.0, %v15787_v40  ;;  %v6360_v12 = vsel %vm5785_vm9, %v15967_v44, %v6328_v62 }
 0x35f   : > { %v3525_v28 = vsub.f32 %v3460_v9, %v3493_v34  ;;  %16013 = vst [vmem:[#allocation230_spill] sm:$0xff] %v13824_v49  ;;  %6392 = vst.msk [vmem:[%s13374_s22 + $0xf0] sm:$0xff] %vm2693_vm5, %v6360_v12  ;;  %v7244_v38 = vpack.c.bf16 %v13824_v49, %v13824_v49 }
 0x360   : > { %v13821_v33 = vpop.f32.mrf.mxu0 }
 0x361   : > { %16012 = vst [vmem:[#allocation231_spill] sm:$0xff] %v13821_v33  ;;  %3557 = vst.msk [vmem:[%s12989_s24 + $0xf0] sm:$0xff] %vm2693_vm5, %v3525_v28  ;;  %v3461_v53 = vadd.f32 %v3429_v22, %v13821_v33 }
 0x362   : > { %v3202_v9 = vpop.f32.mrf.mxu0  ;;  %6553 = vst.msk [vmem:[%s13395_s14 + $0x78] sm:$0xf] %vm6522_vm0, %v7244_v38 }
 0x363   : > { %v3526_v34 = vsub.f32 %v3461_v53, %v3494_v27  ;;  %v13844_v9 = vstv %s6971_s29 }
 0x365   : > { %3558 = vst.msk [vmem:[%s12989_s24 + $0xf8] sm:$0xff] %vm2693_vm5, %v3526_v34  ;;  %v13846_v34 = vpop.permute.xlu1 %6041 }
 0x366   : > { %16016 = vst [vmem:[#allocation87_spill] sm:$0xff] %v13846_v34  ;;  %v5946_v34 = vmul.f32 %v13844_v9, %v13349_v63 }
 0x367   : > { %v7509_v4 = vpop.f32.mrf.mxu1 }
 0x369   : > { %v7510_v10 = vpop.f32.mrf.mxu1 }
 0x36a   : > { %v13838_v5 = vadd.f32 %v7510_v10, %v7509_v4 }
 0x36b   : > { %v7512_v47 = vpop.f32.mrf.mxu1 }
 0x36c   : > { %16014 = vst [vmem:[#allocation63_spill] sm:$0xff] %v13838_v5 }
 0x36d   : > { %v7513_v32 = vpop.f32.mrf.mxu1 }
 0x36e   : > { %v13840_v28 = vadd.f32 %v7513_v32, %v7512_v47  ;;  %v5945_v47 = vmul.f32 %v13844_v9, %v13332_v11 }
 0x370   : > { %16015 = vst [vmem:[#allocation33_spill] sm:$0xff] %v13840_v28 }
 0x377   : > { %v7425_v22 = vpop.f32.mrf.mxu0 }
 0x379   : > { %v7426_v51 = vpop.f32.mrf.mxu0 }
 0x37a   : > { %v7427_v44 = vadd.f32 %v7426_v51, %v7425_v22  ;;  %v5947_v22 = vmul.f32 %v13844_v9, %v13342_v48  ;;  %v5952_v48 = vmul.f32 %v13844_v9, %v13400_v41 }
 0x37b   : > { %v7428_v53 = vpop.f32.mrf.mxu0 }
 0x37d   : > { %v7429_v32 = vpop.f32.mrf.mxu0 }
 0x37e   : > { %v7430_v16 = vadd.f32 %v7429_v32, %v7428_v53 }
 0x380   : > { %v7515_v62 = vpop.f32.mrf.mxu1 }
 0x382   : > { %v7516_v12 = vpop.f32.mrf.mxu1 }
 0x383   : > { %v13842_v49 = vadd.f32 %v7516_v12, %v7515_v62  ;;  %v13852_v12 = vpop.permute.xlu1 %6043 }
 0x384   : > { %v7518_v27 = vpop.f32.mrf.mxu1  ;;  %16018 = vst [vmem:[#allocation157_spill] sm:$0xff] %v13852_v12 }
 0x386   : > { %v7519_v38 = vpop.f32.mrf.mxu1 }
 0x387   : > { %v13848_v4 = vadd.f32 %v7519_v38, %v7518_v27  ;;  %v13867_v32 = vpop.permute.xlu1 %6045 }
 0x388   : > { %v7545_v10 = vpop.f32.mrf.mxu1 }
 0x389   : > { %16017 = vst [vmem:[#allocation47_spill] sm:$0xff] %v13848_v4 }
 0x38a   : > { %v5531_v40 = vpop.f32.mrf.mxu1 }
 0x38b   : > { %v5532_v33 = vadd.f32 %v7427_v44, %v5531_v40  ;;  %v5951_v40 = vmul.f32 %v13844_v9, %v13352_v20  ;;  %v5948_v20 = vmul.f32 %v13844_v9, %v13362_v60 }
 0x38c   : > { %v7431_v28 = vpop.f32.mrf.mxu0  ;;  %v7546_v62 = vpop.f32.mrf.mxu1 }
 0x38d   : > { %v13854_v18 = vadd.f32 %v5945_v47, %v5532_v33 }
 0x38e   : > { %v7432_v27 = vpop.f32.mrf.mxu0  ;;  %v5534_v38 = vpop.f32.mrf.mxu1 }
 0x38f   : > { %v7433_v4 = vadd.f32 %v7432_v27, %v7431_v28  ;;  %v5535_v11 = vadd.f32 %v7430_v16, %v5534_v38 }
 0x390   : > { %v7434_v51 = vpop.f32.mrf.mxu0  ;;  %v7549_v5 = vpop.f32.mrf.mxu1 }
 0x391   : > { %v5540_v44 = vadd.f32 %v7545_v10, %v7433_v4  ;;  %v13862_v12 = vadd.f32 %v5946_v34, %v5535_v11  ;;  %v13865_v53 = vadd.f32 %v7549_v5, %v13093_v52  ;;  %v5852_v10 = vsel %vm2693_vm5, %v5535_v11, 0.0 }
 0x392   : > { %v7435_v47 = vpop.f32.mrf.mxu0  ;;  %v5547_v63 = vpop.f32.mrf.mxu1 }
 0x393   : > { %16019 = vst [vmem:[#allocation158_spill] sm:$0xff] %v13862_v12  ;;  %v13869_v28 = vadd.f32 %v5947_v22, %v5540_v44  ;;  %v13874_v16 = vadd.f32 %v5951_v40, %v13865_v53  ;;  %v7436_v27 = vadd.f32 %v7435_v47, %v7434_v51  ;;  %v5955_v22 = vmul.f32 %v13844_v9, %v13403_v23 }
 0x394   : > { %v7550_v34 = vpop.f32.mrf.mxu1  ;;  %v5851_v51 = vsel %vm2693_vm5, %v5532_v33, 0.0 }
 0x395   : > { %16020 = vst [vmem:[#allocation174_spill] sm:$0xff] %v13874_v16  ;;  %v5559_v52 = vadd.f32 %v7550_v34, %v13111_v21  ;;  %v5543_v5 = vadd.f32 %v7546_v62, %v7436_v27  ;;  %v6048_v16 = vpop.permute.xlu1 %6047  ;;  %v5953_v21 = vmul.f32 %v13844_v9, %v13480_v7  ;;  %v5853_v62 = vadd.f32 %v5852_v10, %v5851_v51 }
 0x396   : > { %v5550_v4 = vpop.f32.mrf.mxu1  ;;  %v5854_v27 = vsel %vm2693_vm5, %v5540_v44, 0.0  ;;  %v5956_v7 = vmul.f32 %v13844_v9, %v13490_v13 }
 0x397   : > { %v13880_v38 = vadd.f32 %v5952_v48, %v5559_v52  ;;  %v5980_v41 = vadd.f32 %v5948_v20, %v5543_v5  ;;  %v5949_v48 = vmul.f32 %v13844_v9, %v13448_v25  ;;  %v5855_v25 = vadd.f32 %v5854_v27, %v5853_v62 }
 0x398   : > { %v7437_v12 = vpop.f32.mrf.mxu0  ;;  %v7553_v40 = vpop.f32.mrf.mxu1 }
 0x399   : > { %v13886_v60 = vadd.f32 %v7553_v40, %v13213_v0  ;;  %v13890_v47 = vadd.f32 %v6048_v16, %v5980_v41  ;;  %v5856_v16 = vsel %vm2693_vm5, %v5543_v5, 0.0  ;;  %v6050_v5 = vpop.permute.xlu1 %6049 }
 0x39a   : > { %v7438_v11 = vpop.f32.mrf.mxu0  ;;  %v5563_v23 = vpop.f32.mrf.mxu1 }
 0x39b   : > { %16021 = vst [vmem:[#allocation155_spill] sm:$0xff] %v13890_v47  ;;  %v13896_v20 = vadd.f32 %v5955_v22, %v13886_v60  ;;  %v7439_v33 = vadd.f32 %v7438_v11, %v7437_v12  ;;  %v5564_v0 = vadd.f32 %v13161_v2, %v5563_v23  ;;  %v5950_v22 = vmul.f32 %v13844_v9, %v13493_v3 }
 0x39c   : > { %v7440_v34 = vpop.f32.mrf.mxu0  ;;  %v7554_v40 = vpop.f32.mrf.mxu1  ;;  %v5954_v2 = vmul.f32 %v13844_v9, %v13512_v55 }
 0x39d   : > { %v5548_v10 = vadd.f32 %v7439_v33, %v5547_v63  ;;  %v13902_v41 = vadd.f32 %v5953_v21, %v5564_v0  ;;  %v5575_v51 = vadd.f32 %v7554_v40, %v13223_v57  ;;  %v5959_v63 = vmul.f32 %v13844_v9, %v13572_v26 }
 0x39e   : > { %v7441_v44 = vpop.f32.mrf.mxu0  ;;  %v5566_v12 = vpop.f32.mrf.mxu1  ;;  %v5857_v21 = vadd.f32 %v5856_v16, %v5855_v25 }
 0x39f   : > { %v5858_v11 = vsel %vm2693_vm5, %v5548_v10, 0.0  ;;  %v5981_v23 = vadd.f32 %v5949_v48, %v5548_v10  ;;  %v7442_v13 = vadd.f32 %v7441_v44, %v7440_v34  ;;  %v13912_v62 = vadd.f32 %v5956_v7, %v5575_v51 }
 0x3a0   : > { %v5567_v57 = vadd.f32 %v13173_v46, %v5566_v12  ;;  %v7557_v27 = vpop.f32.mrf.mxu1  ;;  %v5859_v55 = vadd.f32 %v5858_v11, %v5857_v21  ;;  %v5957_v34 = vmul.f32 %v13844_v9, %v13575_v56  ;;  %v5963_v11 = vmul.f32 %v13844_v9, %v13624_v45 }
 0x3a1   : > { %v13915_v33 = vadd.f32 %v6050_v5, %v5981_v23  ;;  %v5551_v3 = vadd.f32 %v7442_v13, %v5550_v4  ;;  %v5588_v40 = vadd.f32 %v7557_v27, %v13285_v17  ;;  %v5862_v17 = vsel %vm2693_vm5, %v13865_v53, 0.0 }
 0x3a2   : > { %v13918_v47 = vadd.f32 %v5954_v2, %v5567_v57  ;;  %v5579_v48 = vpop.f32.mrf.mxu1  ;;  %v5958_v4 = vmul.f32 %v13844_v9, %v13600_v58  ;;  %v5864_v2 = vsel %vm2693_vm5, %v5559_v52, 0.0  ;;  %v5866_v13 = vsel %vm2693_vm5, %v5564_v0, 0.0 }
 0x3a3   : > { %16022 = vst [vmem:[#allocation81_spill] sm:$0xff] %v13915_v33  ;;  %v5860_v26 = vsel %vm2693_vm5, %v5551_v3, 0.0  ;;  %v13923_v16 = vadd.f32 %v5950_v22, %v5551_v3  ;;  %v13925_v7 = vadd.f32 %v5959_v63, %v5588_v40  ;;  %v5580_v10 = vadd.f32 %v13249_v59, %v5579_v48 }
 0x3a4   : > { %v5861_v46 = vadd.f32 %v5860_v26, %v5859_v55  ;;  %v7558_v25 = vpop.f32.mrf.mxu1  ;;  %v5961_v58 = vmul.f32 %v13844_v9, %v13627_v43  ;;  %v5868_v52 = vsel %vm2693_vm5, %v5567_v57, 0.0  ;;  %v5870_v0 = vsel %vm2693_vm5, %v13886_v60, 0.0 }
 0x3a5   : > { %v13932_v12 = vadd.f32 %v5957_v34, %v5580_v10  ;;  %v5872_v34 = vsel %vm2693_vm5, %v5575_v51, 0.0  ;;  %v5967_v43 = vmul.f32 %v13844_v9, %v13681_v54 }
 0x3a6   : > { %v5863_v44 = vadd.f32 %v5862_v17, %v5861_v46  ;;  %v5582_v56 = vpop.f32.mrf.mxu1  ;;  %v5874_v46 = vsel %vm2693_vm5, %v5580_v10, 0.0  ;;  %v5965_v17 = vmul.f32 %v13844_v9, %v13684_v14  ;;  %v5878_v10 = vsel %vm2693_vm5, %v5588_v40, 0.0 }
 0x3a7   : > { %v5583_v22 = vadd.f32 %v13259_v29, %v5582_v56  ;;  %v5969_v40 = vmul.f32 %v13844_v9, %v13726_v39 }
 0x3a8   : > { %v5865_v23 = vadd.f32 %v5864_v2, %v5863_v44  ;;  %v7561_v59 = vpop.f32.mrf.mxu1  ;;  %v13960_v44 = vadd.f32 %v7558_v25, %v13295_v30  ;;  %v5971_v25 = vmul.f32 %v13844_v9, %v13723_v1 }
 0x3a9   : > { %v13939_v63 = vadd.f32 %v5958_v4, %v5583_v22  ;;  %v5604_v53 = vadd.f32 %v7561_v59, %v13384_v8  ;;  %v5876_v56 = vsel %vm2693_vm5, %v5583_v22, 0.0 }
 0x3aa   : > { %v5867_v5 = vadd.f32 %v5866_v13, %v5865_v23  ;;  %v5595_v21 = vpop.f32.mrf.mxu1  ;;  %v5880_v14 = vsel %vm2693_vm5, %v13960_v44, 0.0 }
 0x3ab   : > { %v13945_v27 = vadd.f32 %v5963_v11, %v5604_v53  ;;  %v5596_v29 = vadd.f32 %v13312_v24, %v5595_v21 }
 0x3ac   : > { %v5869_v45 = vadd.f32 %v5868_v52, %v5867_v5  ;;  %v7562_v3 = vpop.f32.mrf.mxu1 }
 0x3ad   : > { %v13950_v55 = vadd.f32 %v5961_v58, %v5596_v29  ;;  %v13981_v52 = vadd.f32 %v7562_v3, %v13418_v19  ;;  %v5975_v3 = vmul.f32 %v13844_v9, %v13806_v42 }
 0x3ae   : > { %v5871_v48 = vadd.f32 %v5870_v0, %v5869_v45  ;;  %v5598_v8 = vpop.f32.mrf.mxu1 }
 0x3af   : > { %v13972_v30 = vadd.f32 %v13320_v37, %v5598_v8 }
 0x3b0   : > { %v5873_v26 = vadd.f32 %v5872_v34, %v5871_v48  ;;  %v7565_v57 = vpop.f32.mrf.mxu1  ;;  %v5888_v34 = vsel %vm2693_vm5, %v13981_v52, 0.0 }
 0x3b1   : > { %v5620_v24 = vadd.f32 %v7565_v57, %v13641_v35  ;;  %v5884_v37 = vsel %vm2693_vm5, %v13972_v30, 0.0 }
 0x3b2   : > { %v5875_v4 = vadd.f32 %v5874_v46, %v5873_v26  ;;  %v5611_v60 = vpop.f32.mrf.mxu1 }
 0x3b3   : > { %v13963_v51 = vadd.f32 %v5967_v43, %v5620_v24  ;;  %v5612_v54 = vadd.f32 %v13523_v36, %v5611_v60  ;;  %v5882_v36 = vsel %vm2693_vm5, %v5596_v29, 0.0  ;;  %v5886_v29 = vsel %vm2693_vm5, %v5604_v53, 0.0  ;;  %v16023_v60 = vld [vmem:[#allocation63_spill] sm:$0xff] }
 0x3b4   : > { %v5877_v2 = vadd.f32 %v5876_v56, %v5875_v4  ;;  %v7566_v11 = vpop.f32.mrf.mxu1  ;;  %v5973_v53 = vmul.f32 %v13844_v9, %v13771_v31 }
 0x3b5   : > { %v13967_v23 = vadd.f32 %v5965_v17, %v5612_v54  ;;  %v14003_v4 = vadd.f32 %v7566_v11, %v13662_v6 }
 0x3b6   : > { %v5879_v35 = vadd.f32 %v5878_v10, %v5877_v2  ;;  %v5614_v59 = vpop.f32.mrf.mxu1 }
 0x3b7   : > { %v13994_v19 = vadd.f32 %v13553_v61, %v5614_v59  ;;  %v5896_v31 = vsel %vm2693_vm5, %v14003_v4, 0.0 }
 0x3b8   : > { %v5881_v22 = vadd.f32 %v5880_v14, %v5879_v35  ;;  %v7569_v13 = vpop.f32.mrf.mxu1  ;;  %v16025_v35 = vld [vmem:[#allocation226_spill] sm:$0xff] }
 0x3b9   : > { %v5636_v58 = vadd.f32 %v7569_v13, %v13798_v50  ;;  %v5892_v61 = vsel %vm2693_vm5, %v13994_v19, 0.0 }
 0x3ba   : > { %v5883_v5 = vadd.f32 %v5882_v36, %v5881_v22  ;;  %v5627_v21 = vpop.f32.mrf.mxu1  ;;  %v16026_v22 = vld [vmem:[#allocation187_spill] sm:$0xff] }
 0x3bb   : > { %v13985_v45 = vadd.f32 %v5971_v25, %v5636_v58  ;;  %v5628_v1 = vadd.f32 %v13736_v15, %v5627_v21  ;;  %v5890_v15 = vsel %vm2693_vm5, %v5612_v54, 0.0  ;;  %v5894_v54 = vsel %vm2693_vm5, %v5620_v24, 0.0 }
 0x3bc   : > { %v5885_v0 = vadd.f32 %v5884_v37, %v5883_v5  ;;  %v7570_v48 = vpop.f32.mrf.mxu1  ;;  %v5902_v5 = vsel %vm2693_vm5, %v5636_v58, 0.0 }
 0x3bd   : > { %v13989_v50 = vadd.f32 %v5969_v40, %v5628_v1  ;;  %v5898_v14 = vsel %vm2693_vm5, %v5628_v1, 0.0  ;;  %v14020_v13 = vadd.f32 %v7570_v48, %v16026_v22  ;;  %v16030_v48 = vld [vmem:[#allocation47_spill] sm:$0xff] }
 0x3be   : > { %v5887_v8 = vadd.f32 %v5886_v29, %v5885_v0  ;;  %v5630_v39 = vpop.f32.mrf.mxu1  ;;  %v16028_v0 = vld [vmem:[#allocation33_spill] sm:$0xff]  ;;  %v16037_v22 = vld [vmem:[#allocation59_spill] sm:$0xff] }
 0x3bf   : > { %v14016_v59 = vadd.f32 %v16025_v35, %v5630_v39  ;;  %16027 = vst [vmem:[#allocation127_spill] sm:$0xff] %v14020_v13  ;;  %v5904_v37 = vsel %vm2693_vm5, %v14020_v13, 0.0  ;;  %v16032_v35 = vld [vmem:[#allocation48_spill] sm:$0xff] }
 0x3c0   : > { %v5889_v43 = vadd.f32 %v5888_v34, %v5887_v8  ;;  %v7573_v26 = vpop.f32.mrf.mxu1 }
 0x3c1   : > { %v5652_v57 = vadd.f32 %v7573_v26, %v13842_v49  ;;  %v5900_v24 = vsel %vm2693_vm5, %v14016_v59, 0.0 }
 0x3c2   : > { %v5891_v46 = vadd.f32 %v5890_v15, %v5889_v43  ;;  %v5643_v17 = vpop.f32.mrf.mxu1 }
 0x3c3   : > { %v5644_v56 = vadd.f32 %v16023_v60, %v5643_v17  ;;  %v14008_v42 = vadd.f32 %v5975_v3, %v5652_v57  ;;  %v5910_v58 = vsel %vm2693_vm5, %v5652_v57, 0.0 }
 0x3c4   : > { %v5893_v2 = vadd.f32 %v5892_v61, %v5891_v46  ;;  %v7574_v11 = vpop.f32.mrf.mxu1 }
 0x3c5   : > { %16024 = vst [vmem:[#allocation107_spill] sm:$0xff] %v14008_v42  ;;  %v14011_v10 = vadd.f32 %v5973_v53, %v5644_v56  ;;  %v5906_v1 = vsel %vm2693_vm5, %v5644_v56, 0.0  ;;  %v14032_v34 = vadd.f32 %v7574_v11, %v16030_v48  ;;  %v16034_v11 = vld [vmem:[#allocation36_spill] sm:$0xff]  ;;  %v16042_v48 = vmov 0.0  }
 0x3c6   : > { %v5895_v49 = vadd.f32 %v5894_v54, %v5893_v2  ;;  %v5646_v40 = vpop.f32.mrf.mxu1  ;;  %v5922_v54 = vld [vmem:[%s14882_s9] sm:$0x3] }
 0x3c7   : > { %v14028_v29 = vadd.f32 %v16028_v0, %v5646_v40  ;;  %16031 = vst [vmem:[#allocation67_spill] sm:$0xff] %v14032_v34  ;;  %v5912_v15 = vsel %vm2693_vm5, %v14032_v34, 0.0  ;;  %v16040_v40 = vld [vmem:[#allocation231_spill] sm:$0xff] }
 0x3c8   : > { %v5897_v6 = vadd.f32 %v5896_v31, %v5895_v49 }
 0x3c9   : > { %16029 = vst [vmem:[#allocation65_spill] sm:$0xff] %v14028_v29  ;;  %v5908_v3 = vsel %vm2693_vm5, %v14028_v29, 0.0  ;;  %v6323_v29 = vld [vmem:[%s9471_s3 + $0xc8] sm:$0xff] }
 0x3ca   : > { %v5899_v25 = vadd.f32 %v5898_v14, %v5897_v6  ;;  %v16033_v6 = vld [vmem:[#allocation106_spill] sm:$0xff]  ;;  %v16035_v14 = vld [vmem:[#allocation113_spill] sm:$0xff] }
 0x3cc   : > { %v5901_v36 = vadd.f32 %v5900_v24, %v5899_v25  ;;  %v16036_v25 = vld [vmem:[#allocation225_spill] sm:$0xff]  ;;  %v16038_v24 = vld [vmem:[#allocation152_spill] sm:$0xff] }
 0x3ce   : > { %v5903_v21 = vadd.f32 %v5902_v5, %v5901_v36  ;;  %v16039_v36 = vld [vmem:[#allocation68_spill] sm:$0xff] }
 0x3cf   : > { %v14062_v5 = vld [vmem:[%s9460_s13 + $0x78] sm:$0xff] }
 0x3d0   : > { %v5905_v8 = vadd.f32 %v5904_v37, %v5903_v21  ;;  %v16041_v21 = vld [vmem:[#allocation80_spill] sm:$0xff] }
 0x3d1   : > { %v5706_v37 = vmul.f32 %v16041_v21, %v14062_v5 }
 0x3d2   : > { %v5907_v39 = vadd.f32 %v5906_v1, %v5905_v8  ;;  %v14067_v8 = vld [vmem:[%s9460_s13 + $0x88] sm:$0xff] }
 0x3d3   : > { %v7109_v0 = vadd.f32 -1.0, %v5706_v37  ;;  %v5708_v1 = vmul.f32 %v16041_v21, %v14067_v8 }
 0x3d4   : > { %v5909_v43 = vadd.f32 %v5908_v3, %v5907_v39  ;;  %v14072_v39 = vld [vmem:[%s9460_s13 + $0x98] sm:$0xff] }
 0x3d5   : > { %vm5770_vm4 = vcmp.gt.f32.partialorder %v7109_v0, 0.0 }
 0x3d6   : > { %v5911_v26 = vadd.f32 %v5910_v58, %v5909_v43  ;;  %v14076_v3 = vsel %vm5770_vm4, 1.0, %v16042_v48  ;;  %v7111_v43 = vadd.f32 -1.0, %v5708_v1  ;;  %v14079_v58 = vld [vmem:[%s9460_s13 + $0xa8] sm:$0xff] }
 0x3d7   : > { %16043 = vst [vmem:[#allocation136_spill] sm:$0xff] %v14076_v3  ;;  %v6315_v1 = vld [vmem:[%s9471_s3 + $0x88] sm:$0xff] }
 0x3d8   : > { %v5913_v53 = vadd.f32 %v5912_v15, %v5911_v26  ;;  %v14082_v26 = vld [vmem:[%s9460_s13 + $0xb8] sm:$0xff]  ;;  %v14085_v15 = vld [vmem:[%s9460_s13 + $0xc8] sm:$0xff]  ;;  %vm5772_vm6 = vcmp.gt.f32.partialorder %v7111_v43, 0.0 }
 0x3d9   : > { %v14121_v37 = vsel %vm5772_vm6, 1.0, %v16042_v48  ;;  %v6317_v43 = vld [vmem:[%s9471_s3 + $0x98] sm:$0xff] }
 0x3da   : > { %v5914_v46 = vrot.slane %v5913_v53, 4  ;;  %16045 = vst [vmem:[#allocation221_spill] sm:$0xff] %v14121_v37 }
 0x3dc   : > { %v5915_v17 = vadd.f32 %v5914_v46, %v5913_v53  ;;  %v5710_v53 = vmul.f32 %v16041_v21, %v14072_v39  ;;  %v5712_v46 = vmul.f32 %v16041_v21, %v14079_v58 }
 0x3de   : > { %v5916_v61 = vrot.slane %v5915_v17, 2 }
 0x3e0   : > { %v5917_v60 = vadd.f32 %v5916_v61, %v5915_v17  ;;  %v5714_v17 = vmul.f32 %v16041_v21, %v14082_v26  ;;  %v5716_v61 = vmul.f32 %v16041_v21, %v14085_v15 }
 0x3e2   : > { %v5918_v56 = vrot.slane %v5917_v60, 1 }
 0x3e4   : > { %v5919_v2 = vadd.f32 %v5918_v56, %v5917_v60  ;;  %v14096_v60 = vld [vmem:[%s9460_s13 + $0xd8] sm:$0xff]  ;;  %v14099_v56 = vld [vmem:[%s9460_s13 + $0xe8] sm:$0xff] }
 0x3e6   : > { %v5921_v49 = vmul.f32 0.00390625, %v5919_v2  ;;  %v6313_v2 = vld [vmem:[%s9471_s3 + $0x78] sm:$0xff] }
 0x3e8   : > { %v5923_v57 = vmul.f32 %v5922_v54, %v5921_v49  ;;  %v7229_v54 = vpack.c.bf16 %v14076_v3, %v14076_v3  ;;  %v5718_v49 = vmul.f32 %v16041_v21, %v14096_v60  ;;  %v6327_v3 = vld [vmem:[%s9471_s3 + $0xe8] sm:$0xff] }
 0x3ea   : > { %v5925_v31 = vsel %vm5924_vm12, %v5923_v57, 0.0  ;;  %v5720_v57 = vmul.f32 %v16041_v21, %v14099_v56  ;;  %6538 = vst.msk [vmem:[%s13395_s14 + $0x3c] sm:$0xf] %vm6522_vm0, %v7229_v54 }
 0x3eb   : > { %5926 = vadd.xlane.f32.xlu0 %v5925_v31  ;;  %v16044_v31 = vld [vmem:[#allocation98_spill] sm:$0xff] }
 0x401   : > { %6071 = vrot.lane.b32.xlu0 %v16032_v35, %s9133_s15  ;;  %v6345_v35 = vsel %vm5770_vm4, %v16044_v31, %v6313_v2 }
 0x402   : > { %6377 = vst.msk [vmem:[%s13374_s22 + $0x78] sm:$0xff] %vm2693_vm5, %v6345_v35  ;;  %v6319_v35 = vld [vmem:[%s9471_s3 + $0xa8] sm:$0xff] }
 0x405   : > { %6075 = vrot.lane.b32.xlu0 %v16033_v6, %s9133_s15  ;;  %v7113_v6 = vadd.f32 -1.0, %v5710_v53 }
 0x407   : > { %vm5774_vm13 = vcmp.gt.f32.partialorder %v7113_v6, 0.0 }
 0x408   : > { %v14125_v0 = vsel %vm5774_vm13, 1.0, %v16042_v48 }
 0x409   : > { %6079 = vrot.lane.b32.xlu0 %v16034_v11, %s9133_s15  ;;  %v7115_v11 = vadd.f32 -1.0, %v5712_v46  ;;  %16046 = vst [vmem:[#allocation179_spill] sm:$0xff] %v14125_v0 }
 0x40b   : > { %vm5776_vm10 = vcmp.gt.f32.partialorder %v7115_v11, 0.0 }
 0x40c   : > { %v14132_v53 = vsel %vm5776_vm10, 1.0, %v16042_v48  ;;  %v6351_v33 = vsel %vm5776_vm10, %v16044_v31, %v6319_v35 }
 0x40d   : > { %6083 = vrot.lane.b32.xlu0 %v16035_v14, %s9133_s15  ;;  %v7117_v14 = vadd.f32 -1.0, %v5714_v17  ;;  %16047 = vst [vmem:[#allocation180_spill] sm:$0xff] %v14132_v53  ;;  %6383 = vst.msk [vmem:[%s13374_s22 + $0xa8] sm:$0xff] %vm2693_vm5, %v6351_v33 }
 0x40f   : > { %vm5778_vm14 = vcmp.gt.f32.partialorder %v7117_v14, 0.0 }
 0x410   : > { %v14136_v46 = vsel %vm5778_vm14, 1.0, %v16042_v48 }
 0x411   : > { %6087 = vrot.lane.b32.xlu0 %v16036_v25, %s9133_s15  ;;  %v7119_v25 = vadd.f32 -1.0, %v5716_v61  ;;  %16048 = vst [vmem:[#allocation224_spill] sm:$0xff] %v14136_v46  ;;  %v6347_v61 = vsel %vm5772_vm6, %v16044_v31, %v6315_v1  ;;  %v6321_v1 = vld [vmem:[%s9471_s3 + $0xb8] sm:$0xff] }
 0x412   : > { %6379 = vst.msk [vmem:[%s13374_s22 + $0x88] sm:$0xff] %vm2693_vm5, %v6347_v61  ;;  %v7237_v61 = vpack.c.bf16 %v14136_v46, %v14136_v46 }
 0x413   : > { %vm5780_vm15 = vcmp.gt.f32.partialorder %v7119_v25, 0.0 }
 0x414   : > { %v14142_v2 = vsel %vm5780_vm15, 1.0, %v16042_v48  ;;  %6546 = vst.msk [vmem:[%s13395_s14 + $0x5c] sm:$0xf] %vm6522_vm0, %v7237_v61  ;;  %v6355_v6 = vsel %vm5780_vm15, %v16044_v31, %v6323_v29 }
 0x415   : > { %6091 = vrot.lane.b32.xlu0 %v16037_v22, %s9133_s15  ;;  %v7121_v22 = vadd.f32 -1.0, %v5718_v49  ;;  %16049 = vst [vmem:[#allocation184_spill] sm:$0xff] %v14142_v2  ;;  %6387 = vst.msk [vmem:[%s13374_s22 + $0xc8] sm:$0xff] %vm2693_vm5, %v6355_v6 }
 0x417   : > { %vm5782_vm8 = vcmp.gt.f32.partialorder %v7121_v22, 0.0 }
 0x418   : > { %v14146_v54 = vsel %vm5782_vm8, 1.0, %v16042_v48 }
 0x419   : > { %6095 = vrot.lane.b32.xlu0 %v16038_v24, %s9133_s15  ;;  %v14115_v24 = vld [vmem:[%s9460_s13 + $0xf8] sm:$0xff]  ;;  %16050 = vst [vmem:[#allocation175_spill] sm:$0xff] %v14146_v54  ;;  %s14177_s13 = sshll.u32 %s9248_s26, 12  ;;  %v7241_v14 = vpack.c.bf16 %v14146_v54, %v14146_v54 }
 0x41a   : > { %s14205_s12 = scalar_lea.hbm %s16052_s19, %s14177_s13 }
 0x41b   : > { %6550 = vst.msk [vmem:[%s13395_s14 + $0x6c] sm:$0xf] %vm6522_vm0, %v7241_v14 }
 0x41d   : > { %6099 = vrot.lane.b32.xlu0 %v16039_v36, %s9133_s15  ;;  %v7123_v36 = vadd.f32 -1.0, %v5720_v57  ;;  %v7233_v57 = vpack.c.bf16 %v14125_v0, %v14125_v0  ;;  %v6353_v0 = vsel %vm5778_vm14, %v16044_v31, %v6321_v1 }
 0x41e   : > { %6385 = vst.msk [vmem:[%s13374_s22 + $0xb8] sm:$0xff] %vm2693_vm5, %v6353_v0 }
 0x41f   : > { %vm5784_vm1 = vcmp.gt.f32.partialorder %v7123_v36, 0.0  ;;  %6542 = vst.msk [vmem:[%s13395_s14 + $0x4c] sm:$0xf] %vm6522_vm0, %v7233_v57 }
 0x420   : > { %v14150_v49 = vsel %vm5784_vm1, 1.0, %v16042_v48  ;;  %v6359_v33 = vsel %vm5784_vm1, %v16044_v31, %v6327_v3 }
 0x421   : > { %6103 = vrot.lane.b32.xlu0 %v16040_v40, %s9133_s15  ;;  %v5722_v40 = vmul.f32 %v16041_v21, %v14115_v24  ;;  %v7231_v21 = vpack.c.bf16 %v14121_v37, %v14121_v37  ;;  %16051 = vst [vmem:[#allocation88_spill] sm:$0xff] %v14150_v49  ;;  %v6325_v37 = vld [vmem:[%s9471_s3 + $0xd8] sm:$0xff]  ;;  %s6605_s15 = sshll.u32 %s12989_s24, 4  ;;  %6391 = vst.msk [vmem:[%s13374_s22 + $0xe8] sm:$0xff] %vm2693_vm5, %v6359_v33  ;;  %v7243_v29 = vpack.c.bf16 %v14150_v49, %v14150_v49  ;;  %s9136_s24 = smov [#allocation13]   ;;  %s14223_s15 = int_to_ptr.vmem [resolvable:$true] %s6605_s15 }
 0x422   : > { %v6357_v11 = vsel %vm5782_vm8, %v16044_v31, %v6325_v37  ;;  %s8931_s21 = scalar_lea.vmem %s14223_s15, 4096  ;;  %s8935_s28 = sshll.u32 %s9136_s24, 4  ;;  %s8936_s28 = int_to_ptr.vmem [resolvable:$false] %s8935_s28 }
 0x423   : > { %v7125_v17 = vadd.f32 -1.0, %v5722_v40  ;;  %6540 = vst.msk [vmem:[%s13395_s14 + $0x44] sm:$0xf] %vm6522_vm0, %v7231_v21  ;;  %v7235_v40 = vpack.c.bf16 %v14132_v53, %v14132_v53  ;;  %v6349_v21 = vsel %vm5774_vm13, %v16044_v31, %v6317_v43  ;;  %v7239_v53 = vpack.c.bf16 %v14142_v2, %v14142_v2  ;;  %v6329_v43 = vld [vmem:[%s9471_s3 + $0xf8] sm:$0xff]  ;;  %6552 = vst.msk [vmem:[%s13395_s14 + $0x74] sm:$0xf] %vm6522_vm0, %v7243_v29  ;;  %p8932_p1 = scmp.ne.s32.totalorder %s14223_s15, %s8931_s21  ;;  %p8938_p11 = scmp.lt.s32.totalorder %s14223_s15, %s8936_s28 }
 0x424   : > { %6381 = vst.msk [vmem:[%s13374_s22 + $0x98] sm:$0xff] %vm2693_vm5, %v6349_v21  ;;  %6389 = vst.msk [vmem:[%s13374_s22 + $0xd8] sm:$0xff] %vm2693_vm5, %v6357_v11  ;;  %s15282_s3 = scalar_lea.sflag [#allocation14], %s9456_s30  ;;  %s8937_s20 = scalar_lea.vmem %s8936_s28, 8192 }
 0x425   : > { %vm5786_vm2 = vcmp.gt.f32.partialorder %v7125_v17, 0.0  ;;  %6544 = vst.msk [vmem:[%s13395_s14 + $0x54] sm:$0xf] %vm6522_vm0, %v7235_v40  ;;  %6548 = vst.msk [vmem:[%s13395_s14 + $0x64] sm:$0xf] %vm6522_vm0, %v7239_v53  ;;  %p8933_p8 = pnand %p8932_p1, %p16055_p6  ;;  %p8939_p3 = scmp.lt.s32.totalorder %s8937_s20, %s8931_s21 }
 0x426   : > { %v14219_v3 = vsel %vm5786_vm2, 1.0, %v16042_v48  ;;  %v6361_v25 = vsel %vm5786_vm2, %v16044_v31, %v6329_v43 }
 0x427   : > { %16054 = vst [vmem:[#allocation44_spill] sm:$0xff] %v14219_v3  ;;  %6393 = vst.msk [vmem:[%s13374_s22 + $0xf8] sm:$0xff] %vm2693_vm5, %v6361_v25  ;;  %v7245_v22 = vpack.c.bf16 %v14219_v3, %v14219_v3  ;;  %p8934_p0 = pneg %p8933_p8  ;;  %p8940_p5 = por %p8939_p3, %p8938_p11 }
 0x429   : > { %p8941_p2 = pnand %p8940_p5, %p8934_p0 }
 0x42b   : > { %8944 = shalt.err (!%p8941_p2)
}
 0x42c   : > { %s8945_s29 = scalar_lea.hbm %s14205_s12, 4096  ;;  %s8949_s16 = scalar_lea.hbm %s16052_s19, 8192 }
 0x42d   : > { %p8946_p9 = scmp.ne.s32.totalorder %s14205_s12, %s8945_s29  ;;  %p8950_p7 = scmp.lt.s32.totalorder %s14205_s12, %s16052_s19 }
 0x42e   : > { %p8951_p13 = scmp.lt.s32.totalorder %s8949_s16, %s8945_s29 }
 0x42f   : > { %p8947_p10 = pnand %p8946_p9, %p16055_p6 }
 0x430   : > { %p8952_p4 = por %p8951_p13, %p8950_p7 }
 0x431   : > { %p8948_p12 = pneg %p8947_p10 }
 0x433   : > { %p8953_p1 = pnand %p8952_p4, %p8948_p12 }
 0x435   : > { %8956 = shalt.err (!%p8953_p1)
}
 0x436   : > { %s9137_s21 = smov 128   ;;  %s9138_s28 = smov 8   ;;  %6554 = vst.msk [vmem:[%s13395_s14 + $0x7c] sm:$0xf] %vm6522_vm0, %v7245_v22 }
 0x437   : > { %7600 = dma.vmem_to_hbm [thread:$0]  (%p16055_p6), %s14223_s15, 4096, %s14205_s12, %s15282_s3, %s9137_s21, %s9137_s21, %s9138_s28  }
 0x438   : > { %s16056_s18 = sld [smem:[#allocation243_spill]]  ;;  %s6637_s16 = sshll.u32 %s10169_s25, 4  ;;  %s14268_s16 = int_to_ptr.vmem [resolvable:$true] %s6637_s16 }
 0x439   : > { %s8957_s24 = scalar_lea.vmem %s14268_s16, 4096  ;;  %s9139_s15 = smov [#allocation16]  }
 0x43a   : > { %p8958_p8 = scmp.ne.s32.totalorder %s14268_s16, %s8957_s24  ;;  %s8961_s12 = sshll.u32 %s9139_s15, 4  ;;  %s8962_s12 = int_to_ptr.vmem [resolvable:$false] %s8961_s12 }
 0x43b   : > { %s8963_s3 = scalar_lea.vmem %s8962_s12, 8192  ;;  %p8964_p3 = scmp.lt.s32.totalorder %s14268_s16, %s8962_s12 }
 0x43c   : > { %p8959_p0 = pnand %p8958_p8, %p16055_p6  ;;  %p8965_p5 = scmp.lt.s32.totalorder %s8963_s3, %s8957_s24 }
 0x43e   : > { %s14265_s11 = scalar_lea.hbm %s16056_s18, %s14177_s13  ;;  %p8960_p11 = pneg %p8959_p0 }
 0x43f   : > { %p8966_p2 = por %p8965_p5, %p8964_p3 }
 0x441   : > { %p8967_p9 = pnand %p8966_p2, %p8960_p11 }
 0x443   : > { %8970 = shalt.err (!%p8967_p9)
}
 0x444   : > { %s8971_s25 = scalar_lea.hbm %s14265_s11, 4096  ;;  %s8975_s15 = scalar_lea.hbm %s16056_s18, 8192 }
 0x445   : > { %p8972_p10 = scmp.ne.s32.totalorder %s14265_s11, %s8971_s25  ;;  %p8976_p13 = scmp.lt.s32.totalorder %s14265_s11, %s16056_s18 }
 0x446   : > { %p8977_p4 = scmp.lt.s32.totalorder %s8975_s15, %s8971_s25 }
 0x447   : > { %p8973_p12 = pnand %p8972_p10, %p16055_p6 }
 0x448   : > { %p8978_p1 = por %p8977_p4, %p8976_p13 }
 0x449   : > { %p8974_p7 = pneg %p8973_p12 }
 0x44b   : > { %p8979_p8 = pnand %p8978_p1, %p8974_p7 }
 0x44d   : > { %8982 = shalt.err (!%p8979_p8)
}
 0x44e   : > { %s16057_s3 = scalar_lea.sflag [#allocation17], %s9456_s30  ;;  %s7246_s27 = sshll.u32 %s9248_s26, 11 }
 0x44f   : > { %7602 = dma.vmem_to_hbm [thread:$0]  (%p16055_p6), %s14268_s16, 4096, %s14265_s11, %s16057_s3, %s9137_s21, %s9137_s21, %s9138_s28  }
 0x450   : > { %s6589_s0 = sshll.u32 %s13395_s14, 4  ;;  %s16058_s25 = sld [smem:[#allocation240_spill]]  ;;  %s14303_s0 = int_to_ptr.vmem [resolvable:$true] %s6589_s0 }
 0x451   : > { %s16060_s4 = sld [smem:[#allocation244_spill]]  ;;  %s6556_s6 = scalar_lea.sflag [#allocation6], %s9442_s10 }
 0x452   : > { %s8983_s7 = scalar_lea.vmem %s14303_s0, 2048  ;;  %s9140_s26 = smov [#allocation12]  }
 0x453   : > { %p8984_p0 = scmp.ne.s32.totalorder %s14303_s0, %s8983_s7  ;;  %s8987_s14 = sshll.u32 %s9140_s26, 4  ;;  %s8988_s14 = int_to_ptr.vmem [resolvable:$false] %s8987_s14 }
 0x454   : > { %s8989_s11 = scalar_lea.vmem %s8988_s14, 4096  ;;  %p8990_p5 = scmp.lt.s32.totalorder %s14303_s0, %s8988_s14 }
 0x455   : > { %p8985_p11 = pnand %p8984_p0, %p16055_p6  ;;  %p8991_p2 = scmp.lt.s32.totalorder %s8989_s11, %s8983_s7 }
 0x456   : > { %s16059_s20 = smov %s16058_s25  ;;  %s14301_s29 = scalar_lea.hbm %s16058_s25, %s7246_s27 }
 0x457   : > { %s14309_s5 = scalar_lea.hbm %s16060_s4, %s14177_s13  ;;  %p8986_p3 = pneg %p8985_p11 }
 0x458   : > { %p8992_p9 = por %p8991_p2, %p8990_p5 }
 0x45a   : > { %p8993_p10 = pnand %p8992_p9, %p8986_p3 }
 0x45c   : > { %8996 = shalt.err (!%p8993_p10)
}
 0x45d   : > { %s8997_s1 = scalar_lea.hbm %s14301_s29, 2048  ;;  %s9001_s27 = scalar_lea.hbm %s16059_s20, 4096 }
 0x45e   : > { %p8998_p12 = scmp.ne.s32.totalorder %s14301_s29, %s8997_s1  ;;  %p9002_p4 = scmp.lt.s32.totalorder %s14301_s29, %s16059_s20 }
 0x45f   : > { %p9003_p1 = scmp.lt.s32.totalorder %s9001_s27, %s8997_s1 }
 0x460   : > { %p8999_p7 = pnand %p8998_p12, %p16055_p6 }
 0x461   : > { %p9004_p8 = por %p9003_p1, %p9002_p4 }
 0x462   : > { %p9000_p13 = pneg %p8999_p7 }
 0x464   : > { %p9005_p0 = pnand %p9004_p8, %p9000_p13 }
 0x466   : > { %9008 = shalt.err (!%p9005_p0)
}
 0x467   : > { %s9141_s7 = smov 4   ;;  %s16061_s25 = smov 64  }
 0x468   : > { %7599 = dma.vmem_to_hbm [thread:$0]  (%p16055_p6), %s14303_s0, 2048, %s14301_s29, %s6556_s6, %s16061_s25, %s16061_s25, %s9141_s7  }
 0x469   : > { %s6653_s15 = sshll.u32 %s13374_s22, 4  ;;  %s9142_s14 = smov [#allocation18]   ;;  %s6654_s15 = int_to_ptr.vmem [resolvable:$true] %s6653_s15 }
 0x46a   : > { %s9009_s26 = scalar_lea.vmem %s6654_s15, 4096  ;;  %s9013_s11 = sshll.u32 %s9142_s14, 4  ;;  %s9014_s11 = int_to_ptr.vmem [resolvable:$false] %s9013_s11 }
 0x46b   : > { %p9010_p11 = scmp.ne.s32.totalorder %s6654_s15, %s9009_s26  ;;  %s9015_s1 = scalar_lea.vmem %s9014_s11, 8192 }
 0x46c   : > { %p9016_p2 = scmp.lt.s32.totalorder %s6654_s15, %s9014_s11  ;;  %p9017_p9 = scmp.lt.s32.totalorder %s9015_s1, %s9009_s26 }
 0x46d   : > { %p9011_p3 = pnand %p9010_p11, %p16055_p6 }
 0x46e   : > { %p9018_p10 = por %p9017_p9, %p9016_p2 }
 0x46f   : > { %p9012_p5 = pneg %p9011_p3 }
 0x471   : > { %p9019_p12 = pnand %p9018_p10, %p9012_p5 }
 0x473   : > { %9022 = shalt.err (!%p9019_p12)
}
 0x474   : > { %s9023_s6 = scalar_lea.hbm %s14309_s5, 4096  ;;  %s9027_s0 = scalar_lea.hbm %s16060_s4, 8192 }
 0x475   : > { %p9024_p7 = scmp.ne.s32.totalorder %s14309_s5, %s9023_s6  ;;  %p9028_p1 = scmp.lt.s32.totalorder %s14309_s5, %s16060_s4 }
 0x476   : > { %p9029_p8 = scmp.lt.s32.totalorder %s9027_s0, %s9023_s6 }
 0x477   : > { %p9025_p13 = pnand %p9024_p7, %p16055_p6 }
 0x478   : > { %p9030_p0 = por %p9029_p8, %p9028_p1 }
 0x479   : > { %p9026_p4 = pneg %p9025_p13 }
 0x47b   : > { %p9031_p11 = pnand %p9030_p0, %p9026_p4 }
 0x47d   : > { %9034 = shalt.err (!%p9031_p11)
}
 0x47e   : > { %s16062_s3 = scalar_lea.sflag [#allocation17], %s9456_s30  ;;  %v14358_v48 = vpop.permute.xlu1 %6051  ;;  %v14368_v53 = vpop.permute.xlu0 %6057  ;;  %s16063_s12 = sld [smem:[#allocation239_spill]]  ;;  %v16078_v2 = vld [vmem:[#allocation215_spill] sm:$0xff]  ;;  %v16092_v42 = vld [vmem:[#allocation112_spill] sm:$0xff] }
 0x47f   : > { %7603 = dma.vmem_to_hbm [thread:$0]  (%p16055_p6), %s6654_s15, 4096, %s14309_s5, %s16062_s3, %s9137_s21, %s9137_s21, %s9138_s28  }
 0x480   : > { %s6969_s5 = sld [smem:[#allocation3 + $0x3]]  ;;  %s14717_s7 = scalar_lea.vmem [#allocation15], %s9445_s2 }
 0x481   : > { %s6621_s2 = sshll.u32 %s14717_s7, 4  ;;  %s16186_s26 = sld [smem:[#allocation242_spill]]  ;;  %s14810_s2 = int_to_ptr.vmem [resolvable:$true] %s6621_s2 }
 0x482   : > { %v14360_v31 = vpop.permute.xlu1 %6053  ;;  %v5927_v40 = vpop.xlane.xlu0 %5926  ;;  %s9143_s11 = smov [#allocation15]  }
 0x483   : > { %v5928_v1 = vmax.f32 %v5927_v40, 0.0  ;;  %s9039_s1 = sshll.u32 %s9143_s11, 4  ;;  %s9040_s1 = int_to_ptr.vmem [resolvable:$false] %s9039_s1 }
 0x484   : > { %v5929_v35 = vld [vmem:[%s16063_s12] sm:$0x3]  ;;  %s9041_s6 = scalar_lea.vmem %s9040_s1, 8192  ;;  %p9042_p9 = scmp.lt.s32.totalorder %s14810_s2, %s9040_s1 }
 0x485   : > { %v5930_v61 = vmul.f32 %v5929_v35, %v5928_v1 }
 0x486   : > { %v14362_v36 = vpop.permute.xlu1 %6055  ;;  %v14377_v21 = vpop.permute.xlu0 %6071 }
 0x487   : > { %16064 = vst [vmem:[#allocation72_spill] sm:$0xff] %v14377_v21  ;;  %v5931_v6 = vsel %vm5924_vm12, %v5930_v61, 0.0  ;;  %s14808_s14 = scalar_lea.hbm %s16186_s26, %s14177_s13  ;;  %s9035_s13 = scalar_lea.vmem %s14810_s2, 4096 }
 0x488   : > { %v5932_v14 = vrot.slane %v5931_v6, 4  ;;  %p9036_p3 = scmp.ne.s32.totalorder %s14810_s2, %s9035_s13  ;;  %p9043_p10 = scmp.lt.s32.totalorder %s9041_s6, %s9035_s13 }
 0x48a   : > { %v14364_v37 = vpop.permute.xlu1 %6059  ;;  %v5933_v33 = vadd.f32 %v5932_v14, %v5931_v6  ;;  %v14382_v43 = vpop.permute.xlu0 %6075  ;;  %p9037_p5 = pnand %p9036_p3, %p16055_p6  ;;  %p9044_p12 = por %p9043_p10, %p9042_p9 }
 0x48b   : > { %16065 = vst [vmem:[#allocation73_spill] sm:$0xff] %v14382_v43  ;;  %v14396_v43 = vstv %s6969_s5 }
 0x48c   : > { %v5934_v25 = vrot.slane %v5933_v33, 2  ;;  %v14418_v46 = vmul.f32 %v16078_v2, %v14396_v43  ;;  %v16088_v2 = vld [vmem:[#allocation40_spill] sm:$0xff]  ;;  %p9038_p2 = pneg %p9037_p5 }
 0x48e   : > { %v14366_v0 = vpop.permute.xlu1 %6061  ;;  %v5935_v22 = vadd.f32 %v5934_v25, %v5933_v33  ;;  %v14386_v3 = vpop.permute.xlu0 %6079  ;;  %v16070_v25 = vld [vmem:[#allocation140_spill] sm:$0xff]  ;;  %16079 = vst [vmem:[#allocation229_spill] sm:$0xff] %v14418_v46  ;;  %v14438_v46 = vmul.f32 %v16088_v2, %v14396_v43  ;;  %p9045_p7 = pnand %p9044_p12, %p9038_p2 }
 0x48f   : > { %16066 = vst [vmem:[#allocation139_spill] sm:$0xff] %v14386_v3  ;;  %v14402_v3 = vmul.f32 %v16070_v25, %v14396_v43 }
 0x490   : > { %v5936_v40 = vrot.slane %v5935_v22, 1  ;;  %16089 = vst [vmem:[#allocation203_spill] sm:$0xff] %v14438_v46  ;;  %v16098_v46 = vld [vmem:[#allocation163_spill] sm:$0xff] }
 0x491   : > { %16071 = vst [vmem:[#allocation183_spill] sm:$0xff] %v14402_v3 }
 0x492   : > { %v14370_v17 = vpop.permute.xlu1 %6063  ;;  %v5937_v35 = vadd.f32 %v5936_v40, %v5935_v22  ;;  %v14390_v1 = vpop.permute.xlu0 %6083  ;;  %v16072_v22 = vld [vmem:[#allocation56_spill] sm:$0xff] }
 0x493   : > { %16067 = vst [vmem:[#allocation196_spill] sm:$0xff] %v14390_v1  ;;  %v14406_v40 = vmul.f32 %v16072_v22, %v14396_v43  ;;  %v16074_v1 = vld [vmem:[#allocation57_spill] sm:$0xff] }
 0x494   : > { %v7158_v61 = vmul.f32 -1.442695, %v5937_v35  ;;  %v14410_v35 = vmul.f32 %v16074_v1, %v14396_v43  ;;  %v16082_v22 = vld [vmem:[#allocation137_spill] sm:$0xff]  ;;  %v16084_v1 = vld [vmem:[#allocation119_spill] sm:$0xff] }
 0x495   : > { %16073 = vst [vmem:[#allocation45_spill] sm:$0xff] %v14406_v40  ;;  %v14426_v40 = vmul.f32 %v16082_v22, %v14396_v43  ;;  %v14446_v22 = vmul.f32 %v16092_v42, %v14396_v43  ;;  %v5962_v42 = vmul.f32 %v13844_v9, %v14067_v8  ;;  %v16104_v8 = vld [vmem:[#allocation138_spill] sm:$0xff] }
 0x496   : > { %v14372_v57 = vpop.permute.xlu1 %6065  ;;  %8755 = vpow2.f32 %v7158_v61  ;;  %v14394_v14 = vpop.permute.xlu0 %6087  ;;  %16075 = vst [vmem:[#allocation143_spill] sm:$0xff] %v14410_v35  ;;  %v16076_v61 = vld [vmem:[#allocation39_spill] sm:$0xff]  ;;  %v14430_v35 = vmul.f32 %v16084_v1, %v14396_v43  ;;  %v14480_v34 = vmul.f32 %v16104_v8, %v14396_v43  ;;  %v5970_v8 = vmul.f32 %v13844_v9, %v14085_v15 }
 0x497   : > { %16068 = vst [vmem:[#allocation192_spill] sm:$0xff] %v14394_v14  ;;  %v14414_v14 = vmul.f32 %v16076_v61, %v14396_v43  ;;  %16083 = vst [vmem:[#allocation70_spill] sm:$0xff] %v14426_v40  ;;  %v16086_v61 = vld [vmem:[#allocation83_spill] sm:$0xff]  ;;  %v16094_v40 = vld [vmem:[#allocation58_spill] sm:$0xff]  ;;  %v14518_v15 = vadd.f32 %v13867_v32, %v13869_v28  ;;  %v14538_v32 = vadd.f32 %v14368_v53, %v13902_v41 }
 0x498   : > { %16085 = vst [vmem:[#allocation71_spill] sm:$0xff] %v14430_v35  ;;  %16093 = vst [vmem:[#allocation197_spill] sm:$0xff] %v14446_v22  ;;  %v14450_v1 = vmul.f32 %v16094_v40, %v14396_v43  ;;  %v16096_v35 = vld [vmem:[#allocation172_spill] sm:$0xff]  ;;  %v5964_v22 = vmul.f32 %v13844_v9, %v14072_v39  ;;  %v14542_v28 = vadd.f32 %v14370_v17, %v13912_v62 }
 0x499   : > { %16077 = vst [vmem:[#allocation94_spill] sm:$0xff] %v14414_v14  ;;  %v14434_v14 = vmul.f32 %v16086_v61, %v14396_v43  ;;  %v5960_v61 = vmul.f32 %v13844_v9, %v14062_v5  ;;  %v14456_v2 = vmul.f32 %v16096_v35, %v14396_v43  ;;  %v16100_v40 = vld [vmem:[#allocation164_spill] sm:$0xff]  ;;  %16105 = vst [vmem:[#allocation35_spill] sm:$0xff] %v14480_v34 }
 0x49a   : > { %v14380_v11 = vpop.permute.xlu1 %6067  ;;  %v14398_v33 = vpop.permute.xlu0 %6091  ;;  %16095 = vst [vmem:[#allocation190_spill] sm:$0xff] %v14450_v1  ;;  %v14468_v1 = vmul.f32 %v16100_v40, %v14396_v43  ;;  %v16102_v5 = vld [vmem:[#allocation84_spill] sm:$0xff]  ;;  %v5966_v40 = vmul.f32 %v13844_v9, %v14079_v58  ;;  %v16113_v58 = vld [vmem:[#allocation230_spill] sm:$0xff] }
 0x49b   : > { %16069 = vst [vmem:[#allocation193_spill] sm:$0xff] %v14398_v33  ;;  %v16080_v33 = vld [vmem:[#allocation141_spill] sm:$0xff]  ;;  %16087 = vst [vmem:[#allocation89_spill] sm:$0xff] %v14434_v14  ;;  %v16106_v39 = vld [vmem:[#allocation120_spill] sm:$0xff]  ;;  %v14563_v62 = vadd.f32 %v14380_v11, %v13939_v63  ;;  %v5996_v63 = vadd.f32 %v5964_v22, %v13981_v52 }
 0x49c   : > { %v14422_v25 = vmul.f32 %v16080_v33, %v14396_v43  ;;  %v16090_v33 = vld [vmem:[#allocation207_spill] sm:$0xff]  ;;  %16097 = vst [vmem:[#allocation151_spill] sm:$0xff] %v14456_v2  ;;  %16101 = vst [vmem:[#allocation92_spill] sm:$0xff] %v14468_v1  ;;  %v14484_v13 = vmul.f32 %v16106_v39, %v14396_v43  ;;  %v16111_v39 = vld [vmem:[#allocation69_spill] sm:$0xff] }
 0x49d   : > { %v14502_v34 = vmul.f32 %v16111_v39, %v14396_v43  ;;  %v16116_v39 = vld [vmem:[#allocation158_spill] sm:$0xff]  ;;  %v16121_v52 = vld [vmem:[#allocation107_spill] sm:$0xff]  ;;  %v16127_v11 = vld [vmem:[#allocation224_spill] sm:$0xff] }
 0x49e   : > { %v14384_v29 = vpop.permute.xlu1 %6069  ;;  %16081 = vst [vmem:[#allocation188_spill] sm:$0xff] %v14422_v25  ;;  %v14442_v25 = vmul.f32 %v16090_v33, %v14396_v43  ;;  %v14460_v33 = vmul.f32 %v16098_v46, %v14396_v43  ;;  %v5968_v46 = vmul.f32 %v13844_v9, %v14082_v26  ;;  %16107 = vst [vmem:[#allocation101_spill] sm:$0xff] %v14484_v13  ;;  %v16110_v26 = vld [vmem:[#allocation41_spill] sm:$0xff] }
 0x49f   : > { %16112 = vst [vmem:[#allocation77_spill] sm:$0xff] %v14502_v34  ;;  %v14506_v13 = vmul.f32 %v16113_v58, %v14396_v43  ;;  %v16117_v34 = vld [vmem:[#allocation157_spill] sm:$0xff]  ;;  %v16118_v58 = vld [vmem:[#allocation174_spill] sm:$0xff] }
 0x4a0   : > { %16091 = vst [vmem:[#allocation202_spill] sm:$0xff] %v14442_v25  ;;  %16099 = vst [vmem:[#allocation50_spill] sm:$0xff] %v14460_v33  ;;  %v14472_v25 = vmul.f32 %v16102_v5, %v14396_v43  ;;  %v14476_v33 = vpop.permute.xlu0 %6095  ;;  %v5972_v5 = vmul.f32 %v13844_v9, %v14096_v60  ;;  %v5974_v60 = vmul.f32 %v13844_v9, %v14099_v56 }
 0x4a1   : > { %16114 = vst [vmem:[#allocation150_spill] sm:$0xff] %v14506_v13  ;;  %v14526_v13 = vadd.f32 %v14360_v31, %v16118_v58  ;;  %v14559_v31 = vadd.f32 %v14372_v57, %v13932_v12  ;;  %v16139_v58 = vld [vmem:[#allocation139_spill] sm:$0xff] }
 0x4a2   : > { %v14388_v49 = vpop.permute.xlu1 %6073  ;;  %16103 = vst [vmem:[#allocation54_spill] sm:$0xff] %v14472_v25  ;;  %v14496_v25 = vmul.f32 %v16110_v26, %v14396_v43  ;;  %v16115_v26 = vld [vmem:[#allocation87_spill] sm:$0xff] }
 0x4a3   : > { %v8756_v14 = vpop.eup %8755 }
 0x4a4   : > { %v5941_v2 = vadd.f32 1.0, %v8756_v14  ;;  %v16108_v14 = vld [vmem:[#allocation66_spill] sm:$0xff]  ;;  %v6100_v41 = vpop.permute.xlu0 %6099 }
 0x4a5   : > { %v14492_v1 = vmul.f32 %v16108_v14, %v14396_v43  ;;  %v5976_v14 = vmul.f32 %v13844_v9, %v14115_v24  ;;  %v14530_v9 = vadd.f32 %v14362_v36, %v13880_v38  ;;  %v14550_v38 = vadd.f32 %v14364_v37, %v13918_v47 }
 0x4a6   : > { %v14392_v54 = vpop.permute.xlu1 %6077  ;;  %8757 = vrcp.f32 %v5941_v2  ;;  %v14514_v2 = vadd.f32 %v16115_v26, %v13854_v18  ;;  %v14534_v18 = vadd.f32 %v14366_v0, %v13896_v20  ;;  %v14554_v20 = vadd.f32 %v14384_v29, %v13925_v7  ;;  %v16137_v26 = vld [vmem:[#allocation73_spill] sm:$0xff] }
 0x4a7   : > { %16109 = vst [vmem:[#allocation76_spill] sm:$0xff] %v14492_v1  ;;  %v14522_v1 = vadd.f32 %v16117_v34, %v16116_v39  ;;  %v14546_v34 = vadd.f32 %v14358_v48, %v13923_v16  ;;  %v5992_v24 = vadd.f32 %v5960_v61, %v13960_v44  ;;  %v14567_v16 = vadd.f32 %v14392_v54, %v13945_v27 }
 0x4a8   : > { %v14571_v47 = vadd.f32 %v14388_v49, %v13950_v55  ;;  %v5994_v48 = vadd.f32 %v5962_v42, %v13972_v30  ;;  %v5998_v55 = vadd.f32 %v5966_v40, %v13994_v19  ;;  %v6000_v54 = vadd.f32 %v5968_v46, %v14003_v4  ;;  %v16119_v49 = vld [vmem:[#allocation127_spill] sm:$0xff]  ;;  %v16124_v4 = vld [vmem:[#allocation65_spill] sm:$0xff]  ;;  %v6104_v61 = vpop.permute.xlu0 %6103  ;;  %v16130_v42 = vld [vmem:[#allocation72_spill] sm:$0xff] }
 0x4a9   : > { %v6004_v37 = vadd.f32 %v5972_v5, %v16119_v49  ;;  %v16120_v30 = vld [vmem:[#allocation67_spill] sm:$0xff]  ;;  %v6006_v17 = vadd.f32 %v5974_v60, %v16124_v4  ;;  %v14615_v29 = vmul.f32 %v16127_v11, %v14396_v43  ;;  %v16133_v5 = vld [vmem:[#allocation88_spill] sm:$0xff] }
 0x4aa   : > { %v6082_v6 = vpop.permute.xlu1 %6081  ;;  %v6008_v0 = vadd.f32 %v5976_v14, %v16120_v30  ;;  %v16131_v46 = vld [vmem:[#allocation175_spill] sm:$0xff]  ;;  %v16135_v60 = vld [vmem:[#allocation44_spill] sm:$0xff]  ;;  %v14635_v39 = vadd.f32 %v16137_v26, %v5994_v48  ;;  %v16159_v26 = vld [vmem:[#allocation197_spill] sm:$0xff] }
 0x4ab   : > { %v14577_v44 = vadd.f32 %v6082_v6, %v13967_v23  ;;  %v6002_v23 = vadd.f32 %v5970_v8, %v14016_v59  ;;  %v16126_v59 = vld [vmem:[#allocation180_spill] sm:$0xff]  ;;  %v14624_v40 = vmul.f32 %v16131_v46, %v14396_v43  ;;  %v14628_v8 = vmul.f32 %v16133_v5, %v14396_v43  ;;  %v16158_v5 = vld [vmem:[#allocation89_spill] sm:$0xff] }
 0x4ac   : > { %v16128_v6 = vld [vmem:[#allocation184_spill] sm:$0xff]  ;;  %v14632_v14 = vmul.f32 %v16135_v60, %v14396_v43  ;;  %16138 = vst [vmem:[#allocation86_spill] sm:$0xff] %v14635_v39  ;;  %v14654_v4 = vadd.f32 %v6100_v41, %v6006_v17  ;;  %v14656_v48 = vadd.f32 %v6104_v61, %v6008_v0  ;;  %v16156_v0 = vld [vmem:[#allocation94_spill] sm:$0xff]  ;;  %v16172_v39 = vld [vmem:[#allocation155_spill] sm:$0xff] }
 0x4ad   : > { %v14619_v22 = vmul.f32 %v16128_v6, %v14396_v43  ;;  %16132 = vst [vmem:[#allocation208_spill] sm:$0xff] %v14624_v40  ;;  %16134 = vst [vmem:[#allocation209_spill] sm:$0xff] %v14628_v8  ;;  %v16143_v49 = vld [vmem:[#allocation192_spill] sm:$0xff]  ;;  %v16153_v6 = vld [vmem:[#allocation229_spill] sm:$0xff] }
 0x4ae   : > { %v6086_v21 = vpop.permute.xlu1 %6085  ;;  %16136 = vst [vmem:[#allocation177_spill] sm:$0xff] %v14632_v14  ;;  %v14644_v30 = vadd.f32 %v16143_v49, %v6000_v54  ;;  %16148 = vst [vmem:[#allocation162_spill] sm:$0xff] %v14654_v4  ;;  %v16152_v54 = vld [vmem:[#allocation45_spill] sm:$0xff]  ;;  %v16157_v61 = vld [vmem:[#allocation188_spill] sm:$0xff] }
 0x4af   : > { %v14574_v7 = vadd.f32 %v6086_v21, %v13963_v51  ;;  %v14611_v21 = vmul.f32 %v16126_v59, %v14396_v43  ;;  %16129 = vst [vmem:[#allocation194_spill] sm:$0xff] %v14619_v22  ;;  %16149 = vst [vmem:[#allocation168_spill] sm:$0xff] %v14656_v48  ;;  %v16166_v48 = vld [vmem:[#allocation92_spill] sm:$0xff]  ;;  %v16167_v4 = vld [vmem:[#allocation101_spill] sm:$0xff] }
 0x4b0   : > { %16144 = vst [vmem:[#allocation100_spill] sm:$0xff] %v14644_v30  ;;  %v16170_v30 = vld [vmem:[#allocation77_spill] sm:$0xff] }
 0x4b1   : > { %v16173_v8 = vld [vmem:[#allocation81_spill] sm:$0xff] }
 0x4b2   : > { %v6090_v3 = vpop.permute.xlu1 %6089 }
 0x4b3   : > { %v14585_v27 = vadd.f32 %v6090_v3, %v13989_v50  ;;  %v16123_v3 = vld [vmem:[#allocation221_spill] sm:$0xff] }
 0x4b4   : > { %v14602_v19 = vmul.f32 %v16123_v3, %v14396_v43 }
 0x4b6   : > { %v6094_v35 = vpop.permute.xlu1 %6093 }
 0x4b7   : > { %v14582_v36 = vadd.f32 %v6094_v35, %v13985_v45  ;;  %v16122_v45 = vld [vmem:[#allocation136_spill] sm:$0xff]  ;;  %v6152_v35 = vadd.f32 %v16130_v42, %v5992_v24  ;;  %v16154_v42 = vld [vmem:[#allocation71_spill] sm:$0xff] }
 0x4b8   : > { %v6185_v50 = vmul.f32 %v16122_v45, %v14396_v43  ;;  %v16145_v45 = vld [vmem:[#allocation193_spill] sm:$0xff] }
 0x4b9   : > { %v14649_v3 = vadd.f32 %v16145_v45, %v6002_v23  ;;  %v16161_v45 = vld [vmem:[#allocation203_spill] sm:$0xff] }
 0x4ba   : > { %v6098_v56 = vpop.permute.xlu1 %6097 }
 0x4bb   : > { %v14590_v51 = vadd.f32 %v6098_v56, %v14011_v10  ;;  %v16125_v10 = vld [vmem:[#allocation179_spill] sm:$0xff]  ;;  %v14638_v56 = vadd.f32 %v16139_v58, %v5996_v63  ;;  %16146 = vst [vmem:[#allocation102_spill] sm:$0xff] %v14649_v3  ;;  %v16169_v3 = vld [vmem:[#allocation76_spill] sm:$0xff] }
 0x4bc   : > { %v14607_v57 = vmul.f32 %v16125_v10, %v14396_v43  ;;  %v14652_v43 = vadd.f32 %v14476_v33, %v6004_v37  ;;  %v16150_v63 = vld [vmem:[#allocation183_spill] sm:$0xff]  ;;  %v16155_v37 = vld [vmem:[#allocation202_spill] sm:$0xff] }
 0x4bd   : > { %16140 = vst [vmem:[#allocation210_spill] sm:$0xff] %v14638_v56 }
 0x4be   : > { %v6102_v12 = vpop.permute.xlu1 %6101  ;;  %16147 = vst [vmem:[#allocation165_spill] sm:$0xff] %v14652_v43  ;;  %v16168_v43 = vld [vmem:[#allocation35_spill] sm:$0xff] }
 0x4bf   : > { %v14596_v53 = vadd.f32 %v6102_v12, %v16121_v52  ;;  %v16141_v12 = vld [vmem:[#allocation196_spill] sm:$0xff]  ;;  %v14646_v52 = vpop.eup %8757 }
 0x4c0   : > { %v14641_v24 = vadd.f32 %v16141_v12, %v5998_v55  ;;  %v6202_v10 = vmul.f32 %v14646_v52, %v16150_v63  ;;  %v16151_v55 = vld [vmem:[#allocation143_spill] sm:$0xff]  ;;  %v6204_v11 = vmul.f32 %v14646_v52, %v16152_v54  ;;  %v6205_v23 = vmul.f32 %v14646_v52, %v16153_v6  ;;  %v16160_v12 = vld [vmem:[#allocation70_spill] sm:$0xff] }
 0x4c1   : > { %v6203_v59 = vmul.f32 %v14646_v52, %v16151_v55  ;;  %v6206_v33 = vmul.f32 %v14646_v52, %v16154_v42  ;;  %v6207_v41 = vmul.f32 %v14646_v52, %v16155_v37  ;;  %v6208_v17 = vmul.f32 %v14646_v52, %v16156_v0  ;;  %v16162_v55 = vld [vmem:[#allocation151_spill] sm:$0xff]  ;;  %v16163_v6 = vld [vmem:[#allocation50_spill] sm:$0xff] }
 0x4c2   : > { %16142 = vst [vmem:[#allocation156_spill] sm:$0xff] %v14641_v24  ;;  %v6209_v46 = vmul.f32 %v14646_v52, %v16157_v61  ;;  %v6210_v60 = vmul.f32 %v14646_v52, %v16158_v5  ;;  %v6211_v58 = vmul.f32 %v14646_v52, %v16159_v26  ;;  %v6212_v49 = vmul.f32 %v14646_v52, %v16160_v12  ;;  %v16164_v37 = vld [vmem:[#allocation190_spill] sm:$0xff] }
 0x4c3   : > { %v6213_v63 = vmul.f32 %v14646_v52, %v16161_v45  ;;  %v6214_v54 = vmul.f32 %v14646_v52, %v16162_v55  ;;  %v6215_v42 = vmul.f32 %v14646_v52, %v16163_v6  ;;  %v6216_v0 = vmul.f32 %v14646_v52, %v16164_v37  ;;  %v16165_v61 = vld [vmem:[#allocation54_spill] sm:$0xff] }
 0x4c4   : > { %v6218_v5 = vmul.f32 %v14646_v52, %v16165_v61  ;;  %v6220_v26 = vmul.f32 %v14646_v52, %v16166_v48  ;;  %v6222_v12 = vmul.f32 %v14646_v52, %v16167_v4  ;;  %v6224_v45 = vmul.f32 %v14646_v52, %v16168_v43  ;;  %v16171_v61 = vld [vmem:[#allocation150_spill] sm:$0xff] }
 0x4c5   : > { %v6226_v55 = vmul.f32 %v14646_v52, %v14496_v25  ;;  %v6228_v6 = vmul.f32 %v14646_v52, %v16169_v3  ;;  %v6230_v37 = vmul.f32 %v14646_v52, %v16170_v30  ;;  %v6232_v24 = vmul.f32 %v14646_v52, %v16171_v61 }
 0x4c6   : > { %v6217_v48 = vmul.f32 %v14646_v52, %v6185_v50  ;;  %v6234_v4 = vsub.f32 %v14514_v2, %v6202_v10  ;;  %v6235_v56 = vsub.f32 %v14522_v1, %v6203_v59  ;;  %v6236_v43 = vsub.f32 %v14518_v15, %v6204_v11  ;;  %v16182_v10 = vld [vmem:[#allocation102_spill] sm:$0xff]  ;;  %v16183_v11 = vld [vmem:[#allocation165_spill] sm:$0xff] }
 0x4c7   : > { %v6237_v25 = vsub.f32 %v16172_v39, %v6205_v23  ;;  %v6238_v3 = vsub.f32 %v16173_v8, %v6206_v33  ;;  %v6239_v40 = vsub.f32 %v14546_v34, %v6207_v41  ;;  %v6240_v30 = vsub.f32 %v14526_v13, %v6208_v17  ;;  %v16184_v33 = vld [vmem:[#allocation162_spill] sm:$0xff]  ;;  %v16185_v17 = vld [vmem:[#allocation168_spill] sm:$0xff] }
 0x4c8   : > { %v6249_v14 = vsub.f32 %v6152_v35, %v6217_v48  ;;  %v6241_v22 = vsub.f32 %v14530_v9, %v6209_v46  ;;  %v6242_v61 = vsub.f32 %v14538_v32, %v6210_v60  ;;  %v6243_v50 = vsub.f32 %v14550_v38, %v6211_v58  ;;  %6266 = vst.msk [vmem:[%s14717_s7] sm:$0xff] %vm2693_vm5, %v6234_v4 }
 0x4c9   : > { %v6244_v2 = vsub.f32 %v14534_v18, %v6212_v49  ;;  %6267 = vst.msk [vmem:[%s14717_s7 + $0x8] sm:$0xff] %vm2693_vm5, %v6235_v56  ;;  %6268 = vst.msk [vmem:[%s14717_s7 + $0x10] sm:$0xff] %vm2693_vm5, %v6236_v43  ;;  %v6245_v13 = vsub.f32 %v14542_v28, %v6213_v63  ;;  %v6246_v1 = vsub.f32 %v14559_v31, %v6214_v54  ;;  %v16181_v56 = vld [vmem:[#allocation100_spill] sm:$0xff] }
 0x4ca   : > { %6269 = vst.msk [vmem:[%s14717_s7 + $0x18] sm:$0xff] %vm2693_vm5, %v6237_v25  ;;  %6281 = vst.msk [vmem:[%s14717_s7 + $0x78] sm:$0xff] %vm2693_vm5, %v6249_v14  ;;  %v6247_v15 = vsub.f32 %v14563_v62, %v6215_v42  ;;  %v6248_v9 = vsub.f32 %v14554_v20, %v6216_v0  ;;  %v6250_v18 = vsub.f32 %v14571_v47, %v6218_v5  ;;  %v16180_v14 = vld [vmem:[#allocation156_spill] sm:$0xff] }
 0x4cb   : > { %6270 = vst.msk [vmem:[%s14717_s7 + $0x20] sm:$0xff] %vm2693_vm5, %v6238_v3  ;;  %6271 = vst.msk [vmem:[%s14717_s7 + $0x28] sm:$0xff] %vm2693_vm5, %v6239_v40  ;;  %v6252_v32 = vsub.f32 %v14567_v16, %v6220_v26  ;;  %v6254_v28 = vsub.f32 %v14577_v44, %v6222_v12  ;;  %v6256_v34 = vsub.f32 %v14574_v7, %v6224_v45  ;;  %v16179_v40 = vld [vmem:[#allocation210_spill] sm:$0xff] }
 0x4cc   : > { %6272 = vst.msk [vmem:[%s14717_s7 + $0x30] sm:$0xff] %vm2693_vm5, %v6240_v30  ;;  %6273 = vst.msk [vmem:[%s14717_s7 + $0x38] sm:$0xff] %vm2693_vm5, %v6241_v22  ;;  %v6258_v38 = vsub.f32 %v14585_v27, %v6226_v55  ;;  %v6260_v20 = vsub.f32 %v14582_v36, %v6228_v6  ;;  %v6262_v31 = vsub.f32 %v14590_v51, %v6230_v37  ;;  %v16174_v36 = vld [vmem:[#allocation194_spill] sm:$0xff]  ;;  %v16175_v51 = vld [vmem:[#allocation208_spill] sm:$0xff] }
 0x4cd   : > { %6274 = vst.msk [vmem:[%s14717_s7 + $0x40] sm:$0xff] %vm2693_vm5, %v6242_v61  ;;  %6275 = vst.msk [vmem:[%s14717_s7 + $0x48] sm:$0xff] %vm2693_vm5, %v6243_v50  ;;  %v6264_v62 = vsub.f32 %v14596_v53, %v6232_v24  ;;  %v6219_v16 = vmul.f32 %v14646_v52, %v14602_v19  ;;  %v6221_v47 = vmul.f32 %v14646_v52, %v14607_v57  ;;  %v16176_v19 = vld [vmem:[#allocation209_spill] sm:$0xff]  ;;  %v16178_v22 = vld [vmem:[#allocation86_spill] sm:$0xff] }
 0x4ce   : > { %6276 = vst.msk [vmem:[%s14717_s7 + $0x50] sm:$0xff] %vm2693_vm5, %v6244_v2  ;;  %6277 = vst.msk [vmem:[%s14717_s7 + $0x58] sm:$0xff] %vm2693_vm5, %v6245_v13  ;;  %v6223_v7 = vmul.f32 %v14646_v52, %v14611_v21  ;;  %v6225_v44 = vmul.f32 %v14646_v52, %v14615_v29  ;;  %v6227_v27 = vmul.f32 %v14646_v52, %v16174_v36  ;;  %v16177_v21 = vld [vmem:[#allocation177_spill] sm:$0xff] }
 0x4cf   : > { %6278 = vst.msk [vmem:[%s14717_s7 + $0x60] sm:$0xff] %vm2693_vm5, %v6246_v1  ;;  %6279 = vst.msk [vmem:[%s14717_s7 + $0x68] sm:$0xff] %vm2693_vm5, %v6247_v15  ;;  %v6229_v53 = vmul.f32 %v14646_v52, %v16175_v51  ;;  %v6231_v57 = vmul.f32 %v14646_v52, %v16176_v19  ;;  %v6233_v29 = vmul.f32 %v14646_v52, %v16177_v21 }
 0x4d0   : > { %6280 = vst.msk [vmem:[%s14717_s7 + $0x70] sm:$0xff] %vm2693_vm5, %v6248_v9  ;;  %6282 = vst.msk [vmem:[%s14717_s7 + $0x80] sm:$0xff] %vm2693_vm5, %v6250_v18  ;;  %v6251_v35 = vsub.f32 %v16178_v22, %v6219_v16  ;;  %v6253_v8 = vsub.f32 %v16179_v40, %v6221_v47  ;;  %v6255_v39 = vsub.f32 %v16180_v14, %v6223_v7 }
 0x4d1   : > { %6284 = vst.msk [vmem:[%s14717_s7 + $0x90] sm:$0xff] %vm2693_vm5, %v6252_v32  ;;  %6286 = vst.msk [vmem:[%s14717_s7 + $0xa0] sm:$0xff] %vm2693_vm5, %v6254_v28  ;;  %v6257_v24 = vsub.f32 %v16181_v56, %v6225_v44  ;;  %v6259_v59 = vsub.f32 %v16182_v10, %v6227_v27  ;;  %v6261_v23 = vsub.f32 %v16183_v11, %v6229_v53 }
 0x4d2   : > { %6288 = vst.msk [vmem:[%s14717_s7 + $0xb0] sm:$0xff] %vm2693_vm5, %v6256_v34  ;;  %6290 = vst.msk [vmem:[%s14717_s7 + $0xc0] sm:$0xff] %vm2693_vm5, %v6258_v38  ;;  %v6263_v41 = vsub.f32 %v16184_v33, %v6231_v57  ;;  %v6265_v52 = vsub.f32 %v16185_v17, %v6233_v29 }
 0x4d3   : > { %6292 = vst.msk [vmem:[%s14717_s7 + $0xd0] sm:$0xff] %vm2693_vm5, %v6260_v20  ;;  %6294 = vst.msk [vmem:[%s14717_s7 + $0xe0] sm:$0xff] %vm2693_vm5, %v6262_v31 }
 0x4d4   : > { %6296 = vst.msk [vmem:[%s14717_s7 + $0xf0] sm:$0xff] %vm2693_vm5, %v6264_v62  ;;  %6283 = vst.msk [vmem:[%s14717_s7 + $0x88] sm:$0xff] %vm2693_vm5, %v6251_v35 }
 0x4d5   : > { %6285 = vst.msk [vmem:[%s14717_s7 + $0x98] sm:$0xff] %vm2693_vm5, %v6253_v8  ;;  %6287 = vst.msk [vmem:[%s14717_s7 + $0xa8] sm:$0xff] %vm2693_vm5, %v6255_v39 }
 0x4d6   : > { %6289 = vst.msk [vmem:[%s14717_s7 + $0xb8] sm:$0xff] %vm2693_vm5, %v6257_v24  ;;  %6291 = vst.msk [vmem:[%s14717_s7 + $0xc8] sm:$0xff] %vm2693_vm5, %v6259_v59 }
 0x4d7   : > { %6293 = vst.msk [vmem:[%s14717_s7 + $0xd8] sm:$0xff] %vm2693_vm5, %v6261_v23  ;;  %6295 = vst.msk [vmem:[%s14717_s7 + $0xe8] sm:$0xff] %vm2693_vm5, %v6263_v41 }
 0x4d8   : > { %6297 = vst.msk [vmem:[%s14717_s7 + $0xf8] sm:$0xff] %vm2693_vm5, %v6265_v52 }
 0x4d9   : > { %9048 = shalt.err (!%p9045_p7)
}
 0x4da   : > { %s9049_s10 = scalar_lea.hbm %s14808_s14, 4096  ;;  %s9053_s29 = scalar_lea.hbm %s16186_s26, 8192 }
 0x4db   : > { %p9050_p13 = scmp.ne.s32.totalorder %s14808_s14, %s9049_s10  ;;  %p9054_p8 = scmp.lt.s32.totalorder %s14808_s14, %s16186_s26 }
 0x4dc   : > { %p9055_p0 = scmp.lt.s32.totalorder %s9053_s29, %s9049_s10 }
 0x4dd   : > { %p9051_p4 = pnand %p9050_p13, %p16055_p6 }
 0x4de   : > { %p9056_p11 = por %p9055_p0, %p9054_p8 }
 0x4df   : > { %p9052_p1 = pneg %p9051_p4 }
 0x4e1   : > { %p9057_p3 = pnand %p9056_p11, %p9052_p1 }
 0x4e3   : > { %9060 = shalt.err (!%p9057_p3)
}
 0x4e4   : > { %s16187_s27 = scalar_lea.sflag [#allocation14], %s9456_s30 }
 0x4e5   : > { %7601 = dma.vmem_to_hbm [thread:$0]  (%p16055_p6), %s14810_s2, 4096, %s14808_s14, %s16187_s27, %s9137_s21, %s9137_s21, %s9138_s28  }
 0x4e6 PF: > { %s16188_s24 = sld [smem:[#allocation26_spill]] }
 0x4e7   : > { %s16189_s12 = sld [smem:[#allocation32_spill]] }
 0x4e8   : > { %s16190_s5 = sld [smem:[#allocation28_spill]] }
 0x4ec   : > { %s6668_s7 = sand.u32 1, %s16188_s24  }
 0x4ed   : > { %p16191_p5 = scmp.ne.s32.totalorder %s16189_s12, 0  ;;  %s6669_s25 = scalar_lea.sflag [#allocation6], %s6668_s7 }
 0x4ee   : > { %p16192_p2 = scmp.ge.s32.totalorder %s16190_s5, 2 }
 0x4f0   : > { %p7623_p9 = pnand %p16192_p2, %p16191_p5 }
 0x4f2   : > { %p7624_p10 = pneg %p7623_p9 }
 0x4f4   : > { %9092 = dma.done.wait (%p7624_p10), %s6669_s25, 2048  }
 0x4f5   : > { %9094 = vsyncadd (%p7624_p10), %s6669_s25, 4294965248  ;;  %s16193_s17 = sadd.s32 4294967294, %s16190_s5  }
 0x4f6   : > { %s6677_s15 = sand.u32 1, %s16193_s17  }
 0x4f7   : > { %s6678_s13 = scalar_lea.sflag [#allocation14], %s6677_s15 }
 0x4f8   : > { %9096 = dma.done.wait (%p7624_p10), %s6678_s13, 8192  }
 0x4f9   : > { %9098 = vsyncadd (%p7624_p10), %s6678_s13, 4294959104  ;;  %s6696_s30 = scalar_lea.sflag [#allocation17], %s6677_s15 }
 0x4fa   : > { %9100 = dma.done.wait (%p7624_p10), %s6696_s30, 8192  }
 0x4fb   : > { %9102 = vsyncadd (%p7624_p10), %s6696_s30, 4294959104  ;;  %s16194_s25 = sld [smem:[#allocation29_spill]]  ;;  %s16197_s0 = smov %s9109_s23 }
 0x4fc   : > { %s16195_s21 = sld [smem:[#allocation27_spill]] }
 0x4fd   : > { %s16196_s24 = sld [smem:[#allocation30_spill]] }
 0x501   : > { %p47_p6 = scmp.ge.s32.totalorder %s16194_s25, 4  }
 0x502   : > { %s16198_s23 = smov %s16195_s21 }
 0x503   :  { %49 = sbr.rel (!%p47_p6) target bundleno = 33 (0x21), region = 212 }
 0x508   :  { %6710 = vsyncpa [#allocation5], 1 }
 0x509   :  { %6712 = vsyncpa [#allocation5 + $0x1], 1 }
 0x50a   :  { %6713 = vsyncpa [#allocation8], 1 }
 0x50b   :  { %6715 = vsyncpa [#allocation8 + $0x1], 1 }
 0x50c   :  { %6716 = vsyncpa [#allocation11], 1 }
 0x50d   :  { %6718 = vsyncpa [#allocation11 + $0x1], 1 }
 0x50e   :  { %6719 = vsyncpa [#allocation6], 1 }
 0x50f   :  { %6721 = vsyncpa [#allocation6 + $0x1], 1 }
 0x510   :  { %6722 = vsyncpa [#allocation14], 1 }
 0x511   :  { %6724 = vsyncpa [#allocation14 + $0x1], 1 }
 0x512   :  { %6725 = vsyncpa [#allocation17], 1 }
 0x513   :  { %6727 = vsyncpa [#allocation17 + $0x1], 1 }

</bundles_post_ra>
